<compile_context>
chip_gen: v7x
topology: tpu7x:2x2x1
jax: 0.10.0
libtpu: 0.0.40
codegen_flags: <defaults>
</compile_context>

<pallas_src>
import functools

import jax
import jax.numpy as jnp
from jax.experimental import pallas as pl
from jax.experimental.pallas import tpu as pltpu


def _round_up(a, m):
    return (a + m - 1) // m * m


# ----------------------------------------------------------------------------
# Pallas kernel: full encoder_cada forward (both branches, reparameterize)
# ----------------------------------------------------------------------------
def encoder_cada_kernel(
    # inputs
    x_ref, att_ref, eps_ref,
    # x branch params: fc1 + fused [mu | logvar] head
    w1x_ref, b1x_ref, whx_ref, bhx_ref,
    # att branch params
    w1a_ref, b1a_ref, wha_ref, bha_ref,
    # outputs (all lane-dense, >=128 lanes)
    z_ref, mulv_x_ref, mulv_att_ref,
    *, z,
):
    def linear(a, w_ref, b_ref):
        # bf16 x bf16 on the MXU, f32 accumulation; bias add in f32.
        return jnp.dot(a.astype(jnp.bfloat16), w_ref[...],
                       preferred_element_type=jnp.float32) + b_ref[...]

    # ---- x (image-feature) branch ----
    h1x = jnp.maximum(linear(x_ref[...], w1x_ref, b1x_ref), 0.0)   # f32
    mulv_x = linear(h1x, whx_ref, bhx_ref)          # (bm, zz_pad) = [mu | logvar]

    # ---- att (attribute) branch ----
    h1a = jnp.maximum(linear(att_ref[...], w1a_ref, b1a_ref), 0.0)
    mulv_a = linear(h1a, wha_ref, bha_ref)

    # ---- reparameterize (matches torch: sigma = exp(logvar), eps (B,1)
    #      expanded over the z dim; eps_ref already holds the expansion) ----
    mu = jnp.concatenate([mulv_x[:, :z], mulv_a[:, :z]], axis=1)          # (bm, 2z)
    lv = jnp.concatenate([mulv_x[:, z:2 * z], mulv_a[:, z:2 * z]], axis=1)
    zf = mu + jnp.exp(lv) * eps_ref[:, :2 * z]                            # [z_x | z_att]
    if zf.shape[1] < z_ref.shape[1]:                                      # static
        zf = jnp.pad(zf, ((0, 0), (0, z_ref.shape[1] - zf.shape[1])))

    z_ref[...] = zf
    mulv_x_ref[...] = mulv_x
    mulv_att_ref[...] = mulv_a


# ----------------------------------------------------------------------------
# Jitted forward (params as args, static dims)
# ----------------------------------------------------------------------------
@functools.partial(jax.jit, static_argnames=("dims",))
def _forward(params, x, att, eps_x, eps_att, *, dims):
    input_dim, atts_pad, z, zz_pad, h1x_pad, h1a_pad = dims
    w1x, b1x, whx, bhx, w1a, b1a, wha, bha = params

    B = x.shape[0]
    # Batch tile: 16-row granularity (bf16 sublane packing), up to 256 rows to
    # fill the 256-wide MXU on v6e/v7x, and >=2 grid steps when B >= 32 so the
    # "parallel" axis can shard across v7x's two TensorCores.
    if B >= 32:
        bm = min(256, _round_up(pl.cdiv(B, 2), 16))
    else:
        bm = _round_up(B, 16)
    b_pad = _round_up(B, bm)
    grid = (b_pad // bm,)

    def prep(a, rows, cols, dtype):
        # Cast (fused with pad) only when needed; no-op when already aligned.
        a = a.astype(dtype)
        pr, pc = rows - a.shape[0], cols - a.shape[1]
        if pr or pc:
            a = jnp.pad(a, ((0, pr), (0, pc)))
        return a

    x_p = prep(x, b_pad, input_dim, jnp.bfloat16)
    att_p = prep(att, b_pad, atts_pad, jnp.bfloat16)
    # Pack eps_x / eps_att into one lane-dense (b_pad, zz_pad) f32 block:
    # lanes [0, z) = eps_x broadcast, lanes [z, 2z) = eps_att broadcast.
    eps = jnp.concatenate(
        [jnp.broadcast_to(eps_x.astype(jnp.float32), (B, z)),
         jnp.broadcast_to(eps_att.astype(jnp.float32), (B, z))], axis=1)
    eps_p = prep(eps, b_pad, zz_pad, jnp.float32)

    def row_spec(cols):
        return pl.BlockSpec((bm, cols), lambda i: (i, 0))

    def resident_spec(arr):
        # Full array, constant block index -> stays VMEM-resident across the
        # batch grid axis (no re-DMA per step).
        return pl.BlockSpec(arr.shape, lambda i: (0, 0))

    in_specs = [
        row_spec(input_dim), row_spec(atts_pad), row_spec(zz_pad),
        resident_spec(w1x), resident_spec(b1x),
        resident_spec(whx), resident_spec(bhx),
        resident_spec(w1a), resident_spec(b1a),
        resident_spec(wha), resident_spec(bha),
    ]
    out_specs = (row_spec(zz_pad), row_spec(zz_pad), row_spec(zz_pad))
    out_shapes = (
        jax.ShapeDtypeStruct((b_pad, zz_pad), jnp.float32),   # [z_x | z_att]
        jax.ShapeDtypeStruct((b_pad, zz_pad), jnp.float32),   # [mu_x | logvar_x]
        jax.ShapeDtypeStruct((b_pad, zz_pad), jnp.float32),   # [mu_att | logvar_att]
    )

    # VMEM budget: double-buffered resident params + per-tile IO + activations.
    param_bytes = sum(int(p.size) * p.dtype.itemsize for p in params)
    tile_io_bytes = bm * (2 * input_dim          # x tile (bf16)
                          + 2 * atts_pad         # att tile (bf16)
                          + 4 * zz_pad           # eps tile (f32)
                          + 3 * 4 * zz_pad)      # 3 f32 output tiles
    act_bytes = 4 * bm * (h1x_pad + h1a_pad + 3 * zz_pad)
    vmem_limit = int(2 * param_bytes + 2 * tile_io_bytes + 2 * act_bytes
                     + (8 << 20))

    flops = 2 * b_pad * (input_dim * h1x_pad + h1x_pad * zz_pad
                         + atts_pad * h1a_pad + h1a_pad * zz_pad)
    bytes_accessed = (param_bytes
                      + b_pad * (2 * input_dim + 2 * atts_pad + 4 * zz_pad)
                      + 4 * b_pad * 3 * zz_pad)
    cost = pl.CostEstimate(flops=flops,
                           transcendentals=2 * b_pad * z,
                           bytes_accessed=bytes_accessed)

    z_fused, mulv_x, mulv_a = pl.pallas_call(
        functools.partial(encoder_cada_kernel, z=z),
        grid=grid,
        in_specs=in_specs,
        out_specs=out_specs,
        out_shape=out_shapes,
        compiler_params=pltpu.CompilerParams(
            dimension_semantics=("parallel",),
            vmem_limit_bytes=vmem_limit),
        cost_estimate=cost,
    )(x_p, att_p, eps_p, *params)

    # Slice padded rows / fused lanes back to the module's output shapes.
    return (z_fused[:B, :z], z_fused[:B, z:2 * z],
            mulv_x[:B, :z], mulv_x[:B, z:2 * z],
            mulv_a[:B, :z], mulv_a[:B, z:2 * z])


# ----------------------------------------------------------------------------
# Wrapper with PyTorch-style init (xavier_uniform gain=0.5, zero bias)
# ----------------------------------------------------------------------------
class EncoderCadaPallas:
    def __init__(self, input_dim=2048, atts_dim=312, z=64,
                 h1_x=1560, h1_att=1450, seed=42):
        assert input_dim % 128 == 0, "input_dim must be a multiple of 128"
        self.input_dim = input_dim
        self.atts_dim = atts_dim
        self.z = z
        self.atts_pad = _round_up(atts_dim, 128)
        self.h1_x_pad = _round_up(h1_x, 128)
        self.h1_att_pad = _round_up(h1_att, 128)
        self.zz_pad = _round_up(2 * z, 128)

        def xavier_w(key, fan_in, fan_out):
            # torch weights_init: xavier_uniform_(gain=0.5), bias.fill_(0).
            bound = 0.5 * (6.0 / (fan_in + fan_out)) ** 0.5
            return jax.random.uniform(key, (fan_in, fan_out), jnp.float32,
                                      minval=-bound, maxval=bound)

        def pad_w(w, rows, cols):
            return jnp.pad(w, ((0, rows - w.shape[0]), (0, cols - w.shape[1])))

        k1, k2, k3, k4, k5, k6 = jax.random.split(jax.random.PRNGKey(seed), 6)
        w1x = xavier_w(k1, input_dim, h1_x)
        w_mu_x = xavier_w(k2, h1_x, z)
        w_lv_x = xavier_w(k3, h1_x, z)
        w1a = xavier_w(k4, atts_dim, h1_att)
        w_mu_a = xavier_w(k5, h1_att, z)
        w_lv_a = xavier_w(k6, h1_att, z)

        # bf16 weights (cast once here), f32 zero biases, all zero-padded to
        # 128-multiples so padded columns/rows contribute exactly nothing.
        self.params = (
            pad_w(w1x, input_dim, self.h1_x_pad).astype(jnp.bfloat16),
            jnp.zeros((1, self.h1_x_pad), jnp.float32),
            pad_w(jnp.concatenate([w_mu_x, w_lv_x], axis=1),
                  self.h1_x_pad, self.zz_pad).astype(jnp.bfloat16),
            jnp.zeros((1, self.zz_pad), jnp.float32),
            pad_w(w1a, self.atts_pad, self.h1_att_pad).astype(jnp.bfloat16),
            jnp.zeros((1, self.h1_att_pad), jnp.float32),
            pad_w(jnp.concatenate([w_mu_a, w_lv_a], axis=1),
                  self.h1_att_pad, self.zz_pad).astype(jnp.bfloat16),
            jnp.zeros((1, self.zz_pad), jnp.float32),
        )

    def __call__(self, x, att, eps_x, eps_att):
        # eps_x / eps_att: (B, 1) standard-normal draws (the torch module draws
        # them internally with an unseeded device RNG; we take them as inputs).
        # TODO(synk): eps could be generated in-kernel via pltpu.prng_seed /
        # prng_random_bits, but that cannot reproduce torch's RNG stream.
        dims = (self.input_dim, self.atts_pad, self.z, self.zz_pad,
                self.h1_x_pad, self.h1_att_pad)
        return _forward(self.params, x, att, eps_x, eps_att, dims=dims)


# ----------------------------------------------------------------------------
# Pure-JAX reference for correctness check (f32 math on the bf16-rounded W)
# ----------------------------------------------------------------------------
def reference_forward(model, x, att, eps_x, eps_att):
    w1x, b1x, whx, bhx, w1a, b1a, wha, bha = [
        p.astype(jnp.float32) for p in model.params]
    z = model.z
    hp = jax.lax.Precision.HIGHEST
    att_p = jnp.pad(att, ((0, 0), (0, model.atts_pad - att.shape[1])))

    h1x = jax.nn.relu(jnp.dot(x, w1x, precision=hp) + b1x)
    mulv_x = jnp.dot(h1x, whx, precision=hp) + bhx
    mu_x, logvar_x = mulv_x[:, :z], mulv_x[:, z:2 * z]
    z_x = mu_x + jnp.exp(logvar_x) * eps_x

    h1a = jax.nn.relu(jnp.dot(att_p, w1a, precision=hp) + b1a)
    mulv_a = jnp.dot(h1a, wha, precision=hp) + bha
    mu_a, logvar_a = mulv_a[:, :z], mulv_a[:, z:2 * z]
    z_a = mu_a + jnp.exp(logvar_a) * eps_att

    return z_x, z_a, mu_x, logvar_x, mu_a, logvar_a


if __name__ == "__main__":
    # Real encoder_cada dims (input_dim=2048, atts_dim=312, z=64, hidden
    # 1560 / 1450) with a small batch.
    B = 8
    model = EncoderCadaPallas(input_dim=2048, atts_dim=312, z=64,
                              h1_x=1560, h1_att=1450, seed=42)

    key = jax.random.PRNGKey(0)
    kx, ka, ke1, ke2 = jax.random.split(key, 4)
    x = jax.random.normal(kx, (B, 2048), jnp.float32)
    att = jax.random.normal(ka, (B, 312), jnp.float32)
    eps_x = jax.random.normal(ke1, (B, 1), jnp.float32)
    eps_att = jax.random.normal(ke2, (B, 1), jnp.float32)

    outs = jax.block_until_ready(model(x, att, eps_x, eps_att))
    refs = reference_forward(model, x, att, eps_x, eps_att)

    # bf16 activations into the MXU (f32 accumulate) -> ~0.5% relative error;
    # 2e-2 abs/rel comfortably covers it while still catching real bugs.
    names = ("z_x", "z_att", "mu_x", "logvar_x", "mu_att", "logvar_att")
    for name, o, r in zip(names, outs, refs):
        assert o.shape == r.shape and o.dtype == r.dtype, name
        assert jnp.allclose(o, r, atol=2e-2, rtol=2e-2), f"mismatch: {name}"

    print("KERNEL_OK")
</pallas_src>

<mosaic_0001>
module attributes {stable_mosaic.version = 11 : i64} {
  func.func @encoder_cada_kernel(%arg0: i32, %arg1: memref<16x2048xbf16, #tpu.memory_space<vmem>>, %arg2: memref<16x384xbf16, #tpu.memory_space<vmem>>, %arg3: memref<16x128xf32, #tpu.memory_space<vmem>>, %arg4: memref<2048x1664xbf16, #tpu.memory_space<vmem>>, %arg5: memref<1x1664xf32, #tpu.memory_space<vmem>>, %arg6: memref<1664x128xbf16, #tpu.memory_space<vmem>>, %arg7: memref<1x128xf32, #tpu.memory_space<vmem>>, %arg8: memref<384x1536xbf16, #tpu.memory_space<vmem>>, %arg9: memref<1x1536xf32, #tpu.memory_space<vmem>>, %arg10: memref<1536x128xbf16, #tpu.memory_space<vmem>>, %arg11: memref<1x128xf32, #tpu.memory_space<vmem>>, %arg12: memref<16x128xf32, #tpu.memory_space<vmem>>, %arg13: memref<16x128xf32, #tpu.memory_space<vmem>>, %arg14: memref<16x128xf32, #tpu.memory_space<vmem>>) attributes {dimension_semantics = [#tpu.dimension_semantics<parallel>], iteration_bounds = array<i64: 1>, scalar_prefetch = 0 : i64, scratch_operands = 0 : i64, tpu.core_type = #tpu.core_type<tc>, window_params = [{transform_indices = @transform_0, window_bounds = array<i64: 16, 2048>}, {transform_indices = @transform_1, window_bounds = array<i64: 16, 384>}, {transform_indices = @transform_2, window_bounds = array<i64: 16, 128>}, {pipeline_mode = #tpu.pipeline_mode<synchronous>, transform_indices = @transform_3, window_bounds = array<i64: 2048, 1664>}, {pipeline_mode = #tpu.pipeline_mode<synchronous>, transform_indices = @transform_4, window_bounds = array<i64: 1, 1664>}, {pipeline_mode = #tpu.pipeline_mode<synchronous>, transform_indices = @transform_5, window_bounds = array<i64: 1664, 128>}, {pipeline_mode = #tpu.pipeline_mode<synchronous>, transform_indices = @transform_6, window_bounds = array<i64: 1, 128>}, {pipeline_mode = #tpu.pipeline_mode<synchronous>, transform_indices = @transform_7, window_bounds = array<i64: 384, 1536>}, {pipeline_mode = #tpu.pipeline_mode<synchronous>, transform_indices = @transform_8, window_bounds = array<i64: 1, 1536>}, {pipeline_mode = #tpu.pipeline_mode<synchronous>, transform_indices = @transform_9, window_bounds = array<i64: 1536, 128>}, {pipeline_mode = #tpu.pipeline_mode<synchronous>, transform_indices = @transform_10, window_bounds = array<i64: 1, 128>}, {transform_indices = @transform_11, window_bounds = array<i64: 16, 128>}, {transform_indices = @transform_12, window_bounds = array<i64: 16, 128>}, {transform_indices = @transform_13, window_bounds = array<i64: 16, 128>}]} {
    %c0 = arith.constant 0 : index
    %c0_0 = arith.constant 0 : index
    %0 = vector.load %arg1[%c0, %c0_0] : memref<16x2048xbf16, #tpu.memory_space<vmem>>, vector<16x2048xbf16>
    %c0_1 = arith.constant 0 : index
    %c0_2 = arith.constant 0 : index
    %1 = vector.load %arg4[%c0_1, %c0_2] : memref<2048x1664xbf16, #tpu.memory_space<vmem>>, vector<2048x1664xbf16>
    %cst = arith.constant dense<0.000000e+00> : vector<16x1664xf32>
    %2 = tpu.matmul %0, %1, %cst {dimension_numbers = #tpu.dot_dimension_numbers<[1], [0], [0], [1], [0, 0, 1, 1], [], []>} : vector<16x2048xbf16>, vector<2048x1664xbf16>, vector<16x1664xf32> -> vector<16x1664xf32>
    %c0_3 = arith.constant 0 : index
    %c0_4 = arith.constant 0 : index
    %3 = vector.load %arg5[%c0_3, %c0_4] : memref<1x1664xf32, #tpu.memory_space<vmem>>, vector<1x1664xf32>
    %4 = vector.broadcast %3 : vector<1x1664xf32> to vector<16x1664xf32>
    %5 = arith.addf %2, %4 : vector<16x1664xf32>
    %cst_5 = arith.constant 0.000000e+00 : f32
    %6 = vector.broadcast %cst_5 : f32 to vector<16x1664xf32>
    %7 = arith.maximumf %5, %6 : vector<16x1664xf32>
    %8 = arith.truncf %7 : vector<16x1664xf32> to vector<16x1664xbf16>
    %c0_6 = arith.constant 0 : index
    %c0_7 = arith.constant 0 : index
    %9 = vector.load %arg6[%c0_6, %c0_7] : memref<1664x128xbf16, #tpu.memory_space<vmem>>, vector<1664x128xbf16>
    %cst_8 = arith.constant dense<0.000000e+00> : vector<16x128xf32>
    %10 = tpu.matmul %8, %9, %cst_8 {dimension_numbers = #tpu.dot_dimension_numbers<[1], [0], [0], [1], [0, 0, 1, 1], [], []>} : vector<16x1664xbf16>, vector<1664x128xbf16>, vector<16x128xf32> -> vector<16x128xf32>
    %c0_9 = arith.constant 0 : index
    %c0_10 = arith.constant 0 : index
    %11 = vector.load %arg7[%c0_9, %c0_10] : memref<1x128xf32, #tpu.memory_space<vmem>>, vector<1x128xf32>
    %12 = vector.broadcast %11 : vector<1x128xf32> to vector<16x128xf32>
    %13 = arith.addf %10, %12 : vector<16x128xf32>
    %c0_11 = arith.constant 0 : index
    %c0_12 = arith.constant 0 : index
    %14 = vector.load %arg2[%c0_11, %c0_12] : memref<16x384xbf16, #tpu.memory_space<vmem>>, vector<16x384xbf16>
    %c0_13 = arith.constant 0 : index
    %c0_14 = arith.constant 0 : index
    %15 = vector.load %arg8[%c0_13, %c0_14] : memref<384x1536xbf16, #tpu.memory_space<vmem>>, vector<384x1536xbf16>
    %cst_15 = arith.constant dense<0.000000e+00> : vector<16x1536xf32>
    %16 = tpu.matmul %14, %15, %cst_15 {dimension_numbers = #tpu.dot_dimension_numbers<[1], [0], [0], [1], [0, 0, 1, 1], [], []>} : vector<16x384xbf16>, vector<384x1536xbf16>, vector<16x1536xf32> -> vector<16x1536xf32>
    %c0_16 = arith.constant 0 : index
    %c0_17 = arith.constant 0 : index
    %17 = vector.load %arg9[%c0_16, %c0_17] : memref<1x1536xf32, #tpu.memory_space<vmem>>, vector<1x1536xf32>
    %18 = vector.broadcast %17 : vector<1x1536xf32> to vector<16x1536xf32>
    %19 = arith.addf %16, %18 : vector<16x1536xf32>
    %cst_18 = arith.constant 0.000000e+00 : f32
    %20 = vector.broadcast %cst_18 : f32 to vector<16x1536xf32>
    %21 = arith.maximumf %19, %20 : vector<16x1536xf32>
    %22 = arith.truncf %21 : vector<16x1536xf32> to vector<16x1536xbf16>
    %c0_19 = arith.constant 0 : index
    %c0_20 = arith.constant 0 : index
    %23 = vector.load %arg10[%c0_19, %c0_20] : memref<1536x128xbf16, #tpu.memory_space<vmem>>, vector<1536x128xbf16>
    %cst_21 = arith.constant dense<0.000000e+00> : vector<16x128xf32>
    %24 = tpu.matmul %22, %23, %cst_21 {dimension_numbers = #tpu.dot_dimension_numbers<[1], [0], [0], [1], [0, 0, 1, 1], [], []>} : vector<16x1536xbf16>, vector<1536x128xbf16>, vector<16x128xf32> -> vector<16x128xf32>
    %c0_22 = arith.constant 0 : index
    %c0_23 = arith.constant 0 : index
    %25 = vector.load %arg11[%c0_22, %c0_23] : memref<1x128xf32, #tpu.memory_space<vmem>>, vector<1x128xf32>
    %26 = vector.broadcast %25 : vector<1x128xf32> to vector<16x128xf32>
    %27 = arith.addf %24, %26 : vector<16x128xf32>
    %28 = vector.extract_strided_slice %13 {offsets = [0, 0], sizes = [16, 64], strides = [1, 1]} : vector<16x128xf32> to vector<16x64xf32>
    %29 = vector.extract_strided_slice %27 {offsets = [0, 0], sizes = [16, 64], strides = [1, 1]} : vector<16x128xf32> to vector<16x64xf32>
    %30 = tpu.concatenate %28, %29 in 1 : vector<16x64xf32>, vector<16x64xf32> -> vector<16x128xf32>
    %31 = vector.extract_strided_slice %13 {offsets = [0, 64], sizes = [16, 64], strides = [1, 1]} : vector<16x128xf32> to vector<16x64xf32>
    %32 = vector.extract_strided_slice %27 {offsets = [0, 64], sizes = [16, 64], strides = [1, 1]} : vector<16x128xf32> to vector<16x64xf32>
    %33 = tpu.concatenate %31, %32 in 1 : vector<16x64xf32>, vector<16x64xf32> -> vector<16x128xf32>
    %34 = math.exp %33 : vector<16x128xf32>
    %c0_24 = arith.constant 0 : index
    %c0_25 = arith.constant 0 : index
    %35 = vector.load %arg3[%c0_24, %c0_25] : memref<16x128xf32, #tpu.memory_space<vmem>>, vector<16x128xf32>
    %36 = arith.mulf %34, %35 : vector<16x128xf32>
    %37 = arith.addf %30, %36 : vector<16x128xf32>
    %c0_26 = arith.constant 0 : index
    %c0_27 = arith.constant 0 : index
    %38 = vector.load %arg12[%c0_26, %c0_27] : memref<16x128xf32, #tpu.memory_space<vmem>>, vector<16x128xf32>
    tpu.vector_store %arg12[%c0_26, %c0_27], %37 {strides = array<i32>} : memref<16x128xf32, #tpu.memory_space<vmem>>, vector<16x128xf32>,
    %c0_28 = arith.constant 0 : index
    %c0_29 = arith.constant 0 : index
    %39 = vector.load %arg13[%c0_28, %c0_29] : memref<16x128xf32, #tpu.memory_space<vmem>>, vector<16x128xf32>
    tpu.vector_store %arg13[%c0_28, %c0_29], %13 {strides = array<i32>} : memref<16x128xf32, #tpu.memory_space<vmem>>, vector<16x128xf32>,
    %c0_30 = arith.constant 0 : index
    %c0_31 = arith.constant 0 : index
    %40 = vector.load %arg14[%c0_30, %c0_31] : memref<16x128xf32, #tpu.memory_space<vmem>>, vector<16x128xf32>
    tpu.vector_store %arg14[%c0_30, %c0_31], %27 {strides = array<i32>} : memref<16x128xf32, #tpu.memory_space<vmem>>, vector<16x128xf32>,
    return
  }
  func.func @transform_0(%arg0: i32) -> (i32, i32) {
    %c0_i32 = arith.constant 0 : i32
    %c0_i32_0 = arith.constant 0 : i32
    return %arg0, %c0_i32 : i32, i32
  }
  func.func @transform_1(%arg0: i32) -> (i32, i32) {
    %c0_i32 = arith.constant 0 : i32
    %c0_i32_0 = arith.constant 0 : i32
    return %arg0, %c0_i32 : i32, i32
  }
  func.func @transform_2(%arg0: i32) -> (i32, i32) {
    %c0_i32 = arith.constant 0 : i32
    %c0_i32_0 = arith.constant 0 : i32
    return %arg0, %c0_i32 : i32, i32
  }
  func.func @transform_3(%arg0: i32) -> (i32, i32) {
    %c0_i32 = arith.constant 0 : i32
    %c0_i32_0 = arith.constant 0 : i32
    %c0_i32_1 = arith.constant 0 : i32
    return %c0_i32, %c0_i32_0 : i32, i32
  }
  func.func @transform_4(%arg0: i32) -> (i32, i32) {
    %c0_i32 = arith.constant 0 : i32
    %c0_i32_0 = arith.constant 0 : i32
    %c0_i32_1 = arith.constant 0 : i32
    return %c0_i32, %c0_i32_0 : i32, i32
  }
  func.func @transform_5(%arg0: i32) -> (i32, i32) {
    %c0_i32 = arith.constant 0 : i32
    %c0_i32_0 = arith.constant 0 : i32
    %c0_i32_1 = arith.constant 0 : i32
    return %c0_i32, %c0_i32_0 : i32, i32
  }
  func.func @transform_6(%arg0: i32) -> (i32, i32) {
    %c0_i32 = arith.constant 0 : i32
    %c0_i32_0 = arith.constant 0 : i32
    %c0_i32_1 = arith.constant 0 : i32
    return %c0_i32, %c0_i32_0 : i32, i32
  }
  func.func @transform_7(%arg0: i32) -> (i32, i32) {
    %c0_i32 = arith.constant 0 : i32
    %c0_i32_0 = arith.constant 0 : i32
    %c0_i32_1 = arith.constant 0 : i32
    return %c0_i32, %c0_i32_0 : i32, i32
  }
  func.func @transform_8(%arg0: i32) -> (i32, i32) {
    %c0_i32 = arith.constant 0 : i32
    %c0_i32_0 = arith.constant 0 : i32
    %c0_i32_1 = arith.constant 0 : i32
    return %c0_i32, %c0_i32_0 : i32, i32
  }
  func.func @transform_9(%arg0: i32) -> (i32, i32) {
    %c0_i32 = arith.constant 0 : i32
    %c0_i32_0 = arith.constant 0 : i32
    %c0_i32_1 = arith.constant 0 : i32
    return %c0_i32, %c0_i32_0 : i32, i32
  }
  func.func @transform_10(%arg0: i32) -> (i32, i32) {
    %c0_i32 = arith.constant 0 : i32
    %c0_i32_0 = arith.constant 0 : i32
    %c0_i32_1 = arith.constant 0 : i32
    return %c0_i32, %c0_i32_0 : i32, i32
  }
  func.func @transform_11(%arg0: i32) -> (i32, i32) {
    %c0_i32 = arith.constant 0 : i32
    %c0_i32_0 = arith.constant 0 : i32
    return %arg0, %c0_i32 : i32, i32
  }
  func.func @transform_12(%arg0: i32) -> (i32, i32) {
    %c0_i32 = arith.constant 0 : i32
    %c0_i32_0 = arith.constant 0 : i32
    return %arg0, %c0_i32 : i32, i32
  }
  func.func @transform_13(%arg0: i32) -> (i32, i32) {
    %c0_i32 = arith.constant 0 : i32
    %c0_i32_0 = arith.constant 0 : i32
    return %arg0, %c0_i32 : i32, i32
  }
}

</mosaic_0001>

<bundles_post_ra>
// kernel: _forward.1
= control target key start
LH: loop header
LB: loop body
LE: loop exit
PB: predicated region body
PF: predicated region fallthrough
CT: control target
= control target key end

     0   :  { %19 = vsyncpa [#allocation3], 0  ;;  %s24370_s0 = inlined_call_operand.vmem [shape: bf16[16,2048], index: 0, kind: input, shape index: {}]   ;;  %s24371_s1 = inlined_call_operand.vmem [shape: bf16[16,384], index: 1, kind: input, shape index: {}]   ;;  %s24372_s2 = inlined_call_operand.vmem [shape: f32[16,128], index: 2, kind: input, shape index: {}]   ;;  %s24373_s3 = inlined_call_operand.hbm [shape: bf16[2048,1664], index: 3, kind: input, shape index: {}]   ;;  %s24374_s4 = inlined_call_operand.hbm [shape: f32[1,1664], index: 4, kind: input, shape index: {}]   ;;  %s24375_s5 = inlined_call_operand.hbm [shape: bf16[1664,128], index: 5, kind: input, shape index: {}]   ;;  %s24376_s6 = inlined_call_operand.hbm [shape: f32[1,128], index: 6, kind: input, shape index: {}]   ;;  %s24377_s7 = inlined_call_operand.hbm [shape: bf16[384,1536], index: 7, kind: input, shape index: {}]   ;;  %s24378_s8 = inlined_call_operand.hbm [shape: f32[1,1536], index: 8, kind: input, shape index: {}]   ;;  %s24379_s9 = inlined_call_operand.hbm [shape: bf16[1536,128], index: 9, kind: input, shape index: {}]   ;;  %s24380_s10 = inlined_call_operand.hbm [shape: f32[1,128], index: 10, kind: input, shape index: {}]   ;;  %s24381_s11 = inlined_call_operand.vmem [shape: f32[16,128], index: 11, kind: output, shape index: {0}]   ;;  %s24382_s12 = inlined_call_operand.vmem [shape: f32[16,128], index: 12, kind: output, shape index: {1}]   ;;  %s24383_s13 = inlined_call_operand.vmem [shape: f32[16,128], index: 13, kind: output, shape index: {2}]  }
   0x1   :  { %20 = vsyncpa [#allocation5], 0 }
   0x2   :  { %21 = vsyncpa [#allocation8], 0 }
   0x3   :  { %22 = vsyncpa [#allocation11], 0 }
   0x4   :  { %23 = vsyncpa [#allocation14], 0  ;;  %s23705_s25 = smov [#allocation4]   ;;  %s23706_s27 = smov [#allocation7]  }
   0x5   :  { %s48_s26 = sshll.u32 %s23705_s25, 4  ;;  %s70_s28 = sshll.u32 %s23706_s27, 4  ;;  %s49_s26 = int_to_ptr.vmem [resolvable:$true] %s48_s26  ;;  %s71_s28 = int_to_ptr.vmem [resolvable:$true] %s70_s28 }
   0x6   :  { %s23519_s14 = scalar_lea.hbm %s24374_s4, 208 }
   0x7   :  { %p23520_p0 = scmp.ne.s32.totalorder %s24374_s4, %s23519_s14  ;;  %p23523_p1 = scmp.lt.u32.totalorder %s23519_s14, %s24374_s4 }
   0x9   :  { %p23525_p2 = pnand %p23523_p1, %p23520_p0 }
   0xb   :  { %23528 = shalt.err (!%p23525_p2)
}
   0xc   :  { %s23529_s19 = scalar_lea.vmem %s49_s26, 208  ;;  %s23533_s20 = scalar_lea.vmem %s49_s26, 224 }
   0xd   :  { %p23530_p3 = scmp.ne.s32.totalorder %s49_s26, %s23529_s19  ;;  %p23534_p4 = scmp.lt.s32.totalorder %s49_s26, %s49_s26 }
   0xe   :  { %p23535_p5 = scmp.lt.s32.totalorder %s23533_s20, %s23529_s19 }
  0x10   :  { %p23536_p6 = por %p23535_p5, %p23534_p4 }
  0x12   :  { %p23537_p7 = pnand %p23536_p6, %p23530_p3 }
  0x14   :  { %23540 = shalt.err (!%p23537_p7)
}
  0x15   :  { %51 = dma.hbm_to_vmem [thread:$0]  %s24374_s4, 208, %s49_s26, [#allocation5]  }
  0x16   :  { %s23541_s25 = scalar_lea.hbm %s24376_s6, 16 }
  0x17   :  { %p23542_p8 = scmp.ne.s32.totalorder %s24376_s6, %s23541_s25  ;;  %p23545_p9 = scmp.lt.u32.totalorder %s23541_s25, %s24376_s6 }
  0x19   :  { %p23547_p10 = pnand %p23545_p9, %p23542_p8 }
  0x1b   :  { %23550 = shalt.err (!%p23547_p10)
}
  0x1c   :  { %s23551_s15 = scalar_lea.vmem %s71_s28, 16  ;;  %s23555_s16 = scalar_lea.vmem %s71_s28, 32 }
  0x1d   :  { %p23552_p11 = scmp.ne.s32.totalorder %s71_s28, %s23551_s15  ;;  %p23556_p12 = scmp.lt.s32.totalorder %s71_s28, %s71_s28 }
  0x1e   :  { %p23557_p13 = scmp.lt.s32.totalorder %s23555_s16, %s23551_s15 }
  0x20   :  { %p23558_p0 = por %p23557_p13, %p23556_p12 }
  0x22   :  { %p23559_p1 = pnand %p23558_p0, %p23552_p11 }
  0x24   :  { %23562 = shalt.err (!%p23559_p1)
}
  0x25   :  { %73 = dma.hbm_to_vmem [thread:$0]  %s24376_s6, 16, %s71_s28, [#allocation8]  }
  0x26   :  { %s23707_s17 = smov [#allocation10]   ;;  %s23708_s19 = smov [#allocation2]  }
  0x27   :  { %s92_s18 = sshll.u32 %s23707_s17, 4  ;;  %s35_s20 = sshll.u32 %s23708_s19, 4  ;;  %s93_s18 = int_to_ptr.vmem [resolvable:$true] %s92_s18  ;;  %s23816_s20 = int_to_ptr.vmem [resolvable:$true] %s35_s20 }
  0x28   :  { %s23563_s23 = scalar_lea.hbm %s24378_s8, 192 }
  0x29   :  { %p23564_p2 = scmp.ne.s32.totalorder %s24378_s8, %s23563_s23  ;;  %p23567_p3 = scmp.lt.u32.totalorder %s23563_s23, %s24378_s8 }
  0x2b   :  { %p23569_p4 = pnand %p23567_p3, %p23564_p2 }
  0x2d   :  { %23572 = shalt.err (!%p23569_p4)
}
  0x2e   :  { %s23573_s6 = scalar_lea.vmem %s93_s18, 192  ;;  %p23578_p6 = scmp.lt.s32.totalorder %s93_s18, %s93_s18 }
  0x2f   :  { %p23574_p5 = scmp.ne.s32.totalorder %s93_s18, %s23573_s6  ;;  %p23579_p7 = scmp.lt.s32.totalorder %s23573_s6, %s23573_s6 }
  0x31   :  { %p23580_p8 = por %p23579_p7, %p23578_p6 }
  0x33   :  { %p23581_p9 = pnand %p23580_p8, %p23574_p5 }
  0x35   :  { %23584 = shalt.err (!%p23581_p9)
}
  0x36   :  { %95 = dma.hbm_to_vmem [thread:$0]  %s24378_s8, 192, %s93_s18, [#allocation11]  }
  0x37   :  { %s23585_s16 = scalar_lea.hbm %s24373_s3, 212992 }
  0x38   :  { %p23586_p10 = scmp.ne.s32.totalorder %s24373_s3, %s23585_s16  ;;  %p23589_p11 = scmp.lt.u32.totalorder %s23585_s16, %s24373_s3 }
  0x3a   :  { %p23591_p12 = pnand %p23589_p11, %p23586_p10 }
  0x3c   :  { %23594 = shalt.err (!%p23591_p12)
}
  0x3d   :  { %s23595_s21 = scalar_lea.vmem %s23816_s20, 212992  ;;  %p23600_p0 = scmp.lt.s32.totalorder %s23816_s20, %s23816_s20 }
  0x3e   :  { %p23596_p13 = scmp.ne.s32.totalorder %s23816_s20, %s23595_s21  ;;  %p23601_p1 = scmp.lt.s32.totalorder %s23595_s21, %s23595_s21 }
  0x40   :  { %p23602_p2 = por %p23601_p1, %p23600_p0 }
  0x42   :  { %p23603_p3 = pnand %p23602_p2, %p23596_p13 }
  0x44   :  { %23606 = shalt.err (!%p23603_p3)
}
  0x45   :  { %s23709_s8 = smov 832   ;;  %s23710_s18 = smov 52  }
  0x46   :  { %41 = dma.hbm_to_vmem [thread:$0]  %s24373_s3, 212992, %s23816_s20, [#allocation3], %s23709_s8, %s23709_s8, %s23710_s18  }
  0x47   :  { %s23711_s24 = smov [#allocation6]   ;;  %s23607_s6 = scalar_lea.hbm %s24375_s5, 13312 }
  0x48   :  { %s57_s25 = sshll.u32 %s23711_s24, 4  ;;  %p23608_p4 = scmp.ne.s32.totalorder %s24375_s5, %s23607_s6  ;;  %s58_s25 = int_to_ptr.vmem [resolvable:$true] %s57_s25 }
  0x49   :  { %p23611_p5 = scmp.lt.u32.totalorder %s23607_s6, %s24375_s5 }
  0x4b   :  { %p23613_p6 = pnand %p23611_p5, %p23608_p4 }
  0x4d   :  { %23616 = shalt.err (!%p23613_p6)
}
  0x4e   :  { %s23617_s16 = scalar_lea.vmem %s58_s25, 13312  ;;  %p23622_p8 = scmp.lt.s32.totalorder %s58_s25, %s58_s25 }
  0x4f   :  { %p23618_p7 = scmp.ne.s32.totalorder %s58_s25, %s23617_s16  ;;  %p23623_p9 = scmp.lt.s32.totalorder %s23617_s16, %s23617_s16 }
  0x51   :  { %p23624_p10 = por %p23623_p9, %p23622_p8 }
  0x53   :  { %p23625_p11 = pnand %p23624_p10, %p23618_p7 }
  0x55   :  { %23628 = shalt.err (!%p23625_p11)
}
  0x56   :  { %s23712_s3 = smov 64   ;;  %s23713_s20 = smov 4  }
  0x57   :  { %63 = dma.hbm_to_vmem [thread:$0]  %s24375_s5, 13312, %s58_s25, [#allocation5], %s23712_s3, %s23712_s3, %s23713_s20  }
  0x58   :  { %s23714_s17 = smov [#allocation9]   ;;  %s23629_s18 = scalar_lea.hbm %s24377_s7, 36864 }
  0x59   :  { %s79_s19 = sshll.u32 %s23714_s17, 4  ;;  %p23630_p12 = scmp.ne.s32.totalorder %s24377_s7, %s23629_s18  ;;  %s80_s19 = int_to_ptr.vmem [resolvable:$true] %s79_s19 }
  0x5a   :  { %p23633_p13 = scmp.lt.u32.totalorder %s23629_s18, %s24377_s7 }
  0x5c   :  { %p23635_p0 = pnand %p23633_p13, %p23630_p12 }
  0x5e   :  { %23638 = shalt.err (!%p23635_p0)
}
  0x5f   :  { %s23639_s29 = scalar_lea.vmem %s80_s19, 36864  ;;  %p23644_p2 = scmp.lt.s32.totalorder %s80_s19, %s80_s19 }
  0x60   :  { %p23640_p1 = scmp.ne.s32.totalorder %s80_s19, %s23639_s29  ;;  %p23645_p3 = scmp.lt.s32.totalorder %s23639_s29, %s23639_s29 }
  0x62   :  { %p23646_p4 = por %p23645_p3, %p23644_p2 }
  0x64   :  { %p23647_p5 = pnand %p23646_p4, %p23640_p1 }
  0x66   :  { %23650 = shalt.err (!%p23647_p5)
}
  0x67   :  { %s23715_s5 = smov 768   ;;  %s23716_s25 = smov 48  }
  0x68   :  { %85 = dma.hbm_to_vmem [thread:$0]  %s24377_s7, 36864, %s80_s19, [#allocation8], %s23715_s5, %s23715_s5, %s23716_s25  }
  0x69   :  { %s23717_s30 = smov [#allocation12]   ;;  %s23718_s15 = smov [#allocation13]  }
  0x6a   :  { %s101_s14 = sshll.u32 %s23717_s30, 4  ;;  %s114_s16 = sshll.u32 %s23718_s15, 4  ;;  %s102_s14 = int_to_ptr.vmem [resolvable:$true] %s101_s14  ;;  %s115_s16 = int_to_ptr.vmem [resolvable:$true] %s114_s16 }
  0x6b   :  { %s23651_s17 = scalar_lea.hbm %s24379_s9, 12288 }
  0x6c   :  { %p23652_p6 = scmp.ne.s32.totalorder %s24379_s9, %s23651_s17  ;;  %p23655_p7 = scmp.lt.u32.totalorder %s23651_s17, %s24379_s9 }
  0x6e   :  { %p23657_p8 = pnand %p23655_p7, %p23652_p6 }
  0x70   :  { %23660 = shalt.err (!%p23657_p8)
}
  0x71   :  { %s23661_s7 = scalar_lea.vmem %s102_s14, 12288  ;;  %p23666_p10 = scmp.lt.s32.totalorder %s102_s14, %s102_s14 }
  0x72   :  { %p23662_p9 = scmp.ne.s32.totalorder %s102_s14, %s23661_s7  ;;  %p23667_p11 = scmp.lt.s32.totalorder %s23661_s7, %s23661_s7 }
  0x74   :  { %p23668_p12 = por %p23667_p11, %p23666_p10 }
  0x76   :  { %p23669_p13 = pnand %p23668_p12, %p23662_p9 }
  0x78   :  { %23672 = shalt.err (!%p23669_p13)
}
  0x79   :  { %107 = dma.hbm_to_vmem [thread:$0]  %s24379_s9, 12288, %s102_s14, [#allocation11], %s23712_s3, %s23712_s3, %s23713_s20  }
  0x7a   :  { %s23673_s29 = scalar_lea.hbm %s24380_s10, 16 }
  0x7b   :  { %p23674_p0 = scmp.ne.s32.totalorder %s24380_s10, %s23673_s29  ;;  %p23677_p1 = scmp.lt.u32.totalorder %s23673_s29, %s24380_s10 }
  0x7d   :  { %p23679_p2 = pnand %p23677_p1, %p23674_p0 }
  0x7f   :  { %23682 = shalt.err (!%p23679_p2)
}
  0x80   :  { %s23683_s30 = scalar_lea.vmem %s115_s16, 16  ;;  %s23687_s15 = scalar_lea.vmem %s115_s16, 32 }
  0x81   :  { %p23684_p3 = scmp.ne.s32.totalorder %s115_s16, %s23683_s30  ;;  %p23688_p4 = scmp.lt.s32.totalorder %s115_s16, %s115_s16 }
  0x82   :  { %p23689_p5 = scmp.lt.s32.totalorder %s23687_s15, %s23683_s30 }
  0x84   :  { %p23690_p6 = por %p23689_p5, %p23688_p4 }
  0x86   :  { %p23691_p7 = pnand %p23690_p6, %p23684_p3 }
  0x88   :  { %23694 = shalt.err (!%p23691_p7)
}
  0x89   :  { %117 = dma.hbm_to_vmem [thread:$0]  %s24380_s10, 16, %s115_s16, [#allocation14]  }
  0x8a   :  { %23695 = dma.done.wait [#allocation3], 212992  }
  0x8b   :  { %23696 = vsyncadd [#allocation3], 4294754304 }
  0x8c   :  { %23697 = dma.done.wait [#allocation5], 13520  }
  0x8d   :  { %23698 = vsyncadd [#allocation5], 4294953776 }
  0x8e   :  { %23699 = dma.done.wait [#allocation8], 36880  }
  0x8f   :  { %23700 = vsyncadd [#allocation8], 4294930416 }
  0x90   :  { %23701 = dma.done.wait [#allocation11], 12480  }
  0x91   :  { %23702 = vsyncadd [#allocation11], 4294954816 }
  0x92   :  { %23703 = dma.done.wait [#allocation14], 16  }
  0x93   :  { %23704 = vsyncadd [#allocation14], 4294967280  ;;  %v20443_v0 = vld [vmem:[#allocation2 + $0x4] ss:$52 sps:$4 sm:$0xff]   ;;  %v20445_v1 = vld [vmem:[#allocation2 + $0xc] ss:$52 sps:$4 sm:$0xff]  }
  0x94   :  { %10548 = vmatprep.subr.bf16.mxu0 %v20443_v0  ;;  %v20447_v2 = vld [vmem:[#allocation2] ss:$52 sps:$4 sm:$0xff]   ;;  %v20448_v3 = vld [vmem:[#allocation2 + $0x8] ss:$52 sps:$4 sm:$0xff]   ;;  %10892 = vmatprep.subr.bf16.mxu1 %v20445_v1  ;;  %v20454_v7 = vld [vmem:[#allocation2 + $0x70] ss:$52 sps:$4 sm:$0xff]  }
  0x95   :  { %v20449_v4 = vld [vmem:[#allocation2 + $0x6c] ss:$52 sps:$4 sm:$0xff]   ;;  %10549 = vmatpush1.bf16.msra.mxu0 %v20447_v2  ;;  %10893 = vmatpush1.bf16.msra.mxu1 %v20448_v3  ;;  %v20451_v5 = vld [vmem:[#allocation2 + $0x74] ss:$52 sps:$4 sm:$0xff]   ;;  %v20457_v9 = vld [vmem:[#allocation2 + $0xdc] ss:$52 sps:$4 sm:$0xff]  }
  0x96   :  { %v20453_v6 = vld [vmem:[#allocation2 + $0x68] ss:$52 sps:$4 sm:$0xff]   ;;  %10550 = vmatprep.subr.bf16.mxu0 %v20449_v4  ;;  %10894 = vmatprep.subr.bf16.mxu1 %v20451_v5  ;;  %v20459_v10 = vld [vmem:[#allocation2 + $0xd0] ss:$52 sps:$4 sm:$0xff]   ;;  %v20460_v11 = vld [vmem:[#allocation2 + $0xd8] ss:$52 sps:$4 sm:$0xff]  }
  0x97   :  { %v20455_v8 = vld [vmem:[#allocation2 + $0xd4] ss:$52 sps:$4 sm:$0xff]   ;;  %v20461_v12 = vld [vmem:[#allocation2 + $0x13c] ss:$52 sps:$4 sm:$0xff]   ;;  %v20463_v13 = vld [vmem:[#allocation2 + $0x144] ss:$52 sps:$4 sm:$0xff]  }
  0x98   :  { %v20465_v14 = vld [vmem:[#allocation2 + $0x138] ss:$52 sps:$4 sm:$0xff]   ;;  %v20466_v15 = vld [vmem:[#allocation2 + $0x140] ss:$52 sps:$4 sm:$0xff]   ;;  %v20472_v19 = vld [vmem:[#allocation2 + $0x1a8] ss:$52 sps:$4 sm:$0xff]  }
  0x99   :  { %10551 = vmatpush1.bf16.msra.mxu0 %v20453_v6  ;;  %10895 = vmatpush1.bf16.msra.mxu1 %v20454_v7  ;;  %v20467_v16 = vld [vmem:[#allocation2 + $0x1a4] ss:$52 sps:$4 sm:$0xff]   ;;  %v20469_v17 = vld [vmem:[#allocation2 + $0x1ac] ss:$52 sps:$4 sm:$0xff]   ;;  %v20475_v21 = vld [vmem:[#allocation2 + $0x214] ss:$52 sps:$4 sm:$0xff]  }
  0x9a   :  { %10552 = vmatprep.subr.bf16.mxu0 %v20455_v8  ;;  %10896 = vmatprep.subr.bf16.mxu1 %v20457_v9  ;;  %v20471_v18 = vld [vmem:[#allocation2 + $0x1a0] ss:$52 sps:$4 sm:$0xff]   ;;  %v20477_v22 = vld [vmem:[#allocation2 + $0x208] ss:$52 sps:$4 sm:$0xff]   ;;  %v20478_v23 = vld [vmem:[#allocation2 + $0x210] ss:$52 sps:$4 sm:$0xff]  }
  0x9b   :  { %v20473_v20 = vld [vmem:[#allocation2 + $0x20c] ss:$52 sps:$4 sm:$0xff]   ;;  %v20479_v24 = vld [vmem:[#allocation2 + $0x274] ss:$52 sps:$4 sm:$0xff]   ;;  %v20481_v25 = vld [vmem:[#allocation2 + $0x27c] ss:$52 sps:$4 sm:$0xff]  }
  0x9c   :  { %v20483_v26 = vld [vmem:[#allocation2 + $0x270] ss:$52 sps:$4 sm:$0xff]   ;;  %v20484_v27 = vld [vmem:[#allocation2 + $0x278] ss:$52 sps:$4 sm:$0xff]   ;;  %v20490_v31 = vld [vmem:[#allocation2 + $0x2e0] ss:$52 sps:$4 sm:$0xff]  }
  0x9d   :  { %10553 = vmatpush1.bf16.msra.mxu0 %v20459_v10  ;;  %10897 = vmatpush1.bf16.msra.mxu1 %v20460_v11  ;;  %v20485_v28 = vld [vmem:[#allocation2 + $0x2dc] ss:$52 sps:$4 sm:$0xff]   ;;  %v20487_v29 = vld [vmem:[#allocation2 + $0x2e4] ss:$52 sps:$4 sm:$0xff]   ;;  %v20493_v33 = vld [vmem:[#allocation2 + $0x34c] ss:$52 sps:$4 sm:$0xff]  }
  0x9e   :  { %10554 = vmatprep.subr.bf16.mxu0 %v20461_v12  ;;  %10898 = vmatprep.subr.bf16.mxu1 %v20463_v13  ;;  %v20489_v30 = vld [vmem:[#allocation2 + $0x2d8] ss:$52 sps:$4 sm:$0xff]   ;;  %v20495_v34 = vld [vmem:[#allocation2 + $0x340] ss:$52 sps:$4 sm:$0xff]   ;;  %v20496_v35 = vld [vmem:[#allocation2 + $0x348] ss:$52 sps:$4 sm:$0xff]  }
  0x9f   :  { %v20491_v32 = vld [vmem:[#allocation2 + $0x344] ss:$52 sps:$4 sm:$0xff]   ;;  %v20497_v36 = vld [vmem:[#allocation2 + $0x3ac] ss:$52 sps:$4 sm:$0xff]   ;;  %v20499_v37 = vld [vmem:[#allocation2 + $0x3b4] ss:$52 sps:$4 sm:$0xff]  }
  0xa0   :  { %v20501_v38 = vld [vmem:[#allocation2 + $0x3a8] ss:$52 sps:$4 sm:$0xff]   ;;  %v20502_v39 = vld [vmem:[#allocation2 + $0x3b0] ss:$52 sps:$4 sm:$0xff]   ;;  %v20508_v43 = vld [vmem:[#allocation2 + $0x418] ss:$52 sps:$4 sm:$0xff]  }
  0xa1   :  { %10555 = vmatpush1.bf16.msra.mxu0 %v20465_v14  ;;  %10899 = vmatpush1.bf16.msra.mxu1 %v20466_v15  ;;  %v20503_v40 = vld [vmem:[#allocation2 + $0x414] ss:$52 sps:$4 sm:$0xff]   ;;  %v20505_v41 = vld [vmem:[#allocation2 + $0x41c] ss:$52 sps:$4 sm:$0xff]   ;;  %v20511_v45 = vld [vmem:[#allocation2 + $0x484] ss:$52 sps:$4 sm:$0xff]  }
  0xa2   :  { %10556 = vmatprep.subr.bf16.mxu0 %v20467_v16  ;;  %10900 = vmatprep.subr.bf16.mxu1 %v20469_v17  ;;  %v20507_v42 = vld [vmem:[#allocation2 + $0x410] ss:$52 sps:$4 sm:$0xff]   ;;  %v20513_v48 = vld [vmem:[#allocation2 + $0x478] ss:$52 sps:$4 sm:$0xff]   ;;  %v20514_v49 = vld [vmem:[#allocation2 + $0x480] ss:$52 sps:$4 sm:$0xff]  }
  0xa3   :  { %v20509_v44 = vld [vmem:[#allocation2 + $0x47c] ss:$52 sps:$4 sm:$0xff]   ;;  %v143_v46 = vld [vmem:[%s24370_s0] sm:$0xff]  ;;  %v20523_v56 = vld [vmem:[#allocation2 + $0x554] ss:$52 sps:$4 sm:$0xff]   ;;  %vm23720_vm0 = vmmov 0  }
  0xa4   :  { %v151_v47 = vld [vmem:[%s24370_s0 + $0x40] sm:$0xff]  ;;  %v20520_v54 = vld [vmem:[#allocation2 + $0x4e8] ss:$52 sps:$4 sm:$0xff]   ;;  %v20532_v62 = vld [vmem:[#allocation2 + $0x5b8] ss:$52 sps:$4 sm:$0xff]   ;;  %vm17498_vm1 = vcmask 523264  }
  0xa5   :  { %10557 = vmatpush1.bf16.msra.mxu0 %v20471_v18  ;;  %10901 = vmatpush1.bf16.msra.mxu1 %v20472_v19  ;;  %v23907_v50 = vcombine.high %v143_v46, %v151_v47  ;;  %v20515_v51 = vld [vmem:[#allocation2 + $0x4e4] ss:$52 sps:$4 sm:$0xff]   ;;  %v20517_v52 = vld [vmem:[#allocation2 + $0x4ec] ss:$52 sps:$4 sm:$0xff]   ;;  %v20525_v57 = vld [vmem:[#allocation2 + $0x548] ss:$52 sps:$4 sm:$0xff]   ;;  %v23911_v5 = vcombine.low %v143_v46, %v151_v47 }
  0xa6   :  { %10558 = vmatprep.subr.bf16.mxu0 %v20473_v20  ;;  %10902 = vmatprep.subr.bf16.mxu1 %v20475_v21  ;;  %v20519_v53 = vld [vmem:[#allocation2 + $0x4e0] ss:$52 sps:$4 sm:$0xff]   ;;  %v20526_v58 = vld [vmem:[#allocation2 + $0x550] ss:$52 sps:$4 sm:$0xff]   ;;  %v20537_v1 = vld [vmem:[#allocation2 + $0x618] ss:$52 sps:$4 sm:$0xff]  }
  0xa7   :  { %10580 = vmatprep.mubr.bf16.mxu0 %v23907_v50  ;;  %10924 = vmatprep.mubr.bf16.mxu1 %v23907_v50  ;;  %v20521_v55 = vld [vmem:[#allocation2 + $0x54c] ss:$52 sps:$4 sm:$0xff]   ;;  %v20527_v59 = vld [vmem:[#allocation2 + $0x5b4] ss:$52 sps:$4 sm:$0xff]   ;;  %v20529_v60 = vld [vmem:[#allocation2 + $0x5bc] ss:$52 sps:$4 sm:$0xff]  }
  0xa8   :  { %v20531_v61 = vld [vmem:[#allocation2 + $0x5b0] ss:$52 sps:$4 sm:$0xff]   ;;  %v20538_v2 = vld [vmem:[#allocation2 + $0x620] ss:$52 sps:$4 sm:$0xff]   ;;  %v20542_v7 = vld [vmem:[#allocation2 + $0x688] ss:$52 sps:$4 sm:$0xff]  }
  0xa9   :  { %10559 = vmatpush1.bf16.msra.mxu0 %v20477_v22  ;;  %10903 = vmatpush1.bf16.msra.mxu1 %v20478_v23  ;;  %v20533_v63 = vld [vmem:[#allocation2 + $0x61c] ss:$52 sps:$4 sm:$0xff]   ;;  %v20535_v0 = vld [vmem:[#allocation2 + $0x624] ss:$52 sps:$4 sm:$0xff]   ;;  %v20544_v4 = vld [vmem:[#allocation2 + $0x68c] ss:$52 sps:$4 sm:$0xff]  }
  0xaa   :  { %10560 = vmatprep.subr.bf16.mxu0 %v20479_v24  ;;  %10904 = vmatprep.subr.bf16.mxu1 %v20481_v25  ;;  %v20541_v3 = vld [vmem:[#allocation2 + $0x684] ss:$52 sps:$4 sm:$0xff]   ;;  %v20539_v6 = vld [vmem:[#allocation2 + $0x680] ss:$52 sps:$4 sm:$0xff]   ;;  %v20545_v10 = vld [vmem:[#allocation2 + $0x6e8] ss:$52 sps:$4 sm:$0xff]  }
  0xab   :  { %v20547_v8 = vld [vmem:[#allocation2 + $0x6ec] ss:$52 sps:$4 sm:$0xff]   ;;  %v20550_v9 = vld [vmem:[#allocation2 + $0x6f4] ss:$52 sps:$4 sm:$0xff]   ;;  %v20548_v11 = vld [vmem:[#allocation2 + $0x6f0] ss:$52 sps:$4 sm:$0xff]  }
  0xac   :  { %v20553_v12 = vld [vmem:[#allocation2 + $0x754] ss:$52 sps:$4 sm:$0xff]   ;;  %v20556_v13 = vld [vmem:[#allocation2 + $0x75c] ss:$52 sps:$4 sm:$0xff]   ;;  %v20554_v15 = vld [vmem:[#allocation2 + $0x758] ss:$52 sps:$4 sm:$0xff]  }
  0xad   :  { %10561 = vmatpush1.bf16.msra.mxu0 %v20483_v26  ;;  %10905 = vmatpush1.bf16.msra.mxu1 %v20484_v27  ;;  %v20551_v14 = vld [vmem:[#allocation2 + $0x750] ss:$52 sps:$4 sm:$0xff]   ;;  %v20557_v18 = vld [vmem:[#allocation2 + $0x7b8] ss:$52 sps:$4 sm:$0xff]   ;;  %v20560_v19 = vld [vmem:[#allocation2 + $0x7c0] ss:$52 sps:$4 sm:$0xff]  }
  0xae   :  { %10562 = vmatprep.subr.bf16.mxu0 %v20485_v28  ;;  %10906 = vmatprep.subr.bf16.mxu1 %v20487_v29  ;;  %v20559_v16 = vld [vmem:[#allocation2 + $0x7bc] ss:$52 sps:$4 sm:$0xff]   ;;  %v20562_v17 = vld [vmem:[#allocation2 + $0x7c4] ss:$52 sps:$4 sm:$0xff]   ;;  %v20568_v21 = vld [vmem:[#allocation2 + $0x82c] ss:$52 sps:$4 sm:$0xff]  }
  0xaf   :  { %v20565_v20 = vld [vmem:[#allocation2 + $0x824] ss:$52 sps:$4 sm:$0xff]   ;;  %v20563_v22 = vld [vmem:[#allocation2 + $0x820] ss:$52 sps:$4 sm:$0xff]   ;;  %v20566_v23 = vld [vmem:[#allocation2 + $0x828] ss:$52 sps:$4 sm:$0xff]  }
  0xb0   :  { %v20571_v24 = vld [vmem:[#allocation2 + $0x88c] ss:$52 sps:$4 sm:$0xff]   ;;  %v20574_v25 = vld [vmem:[#allocation2 + $0x894] ss:$52 sps:$4 sm:$0xff]   ;;  %v20572_v27 = vld [vmem:[#allocation2 + $0x890] ss:$52 sps:$4 sm:$0xff]  }
  0xb1   :  { %10563 = vmatpush1.bf16.msra.mxu0 %v20489_v30  ;;  %10907 = vmatpush1.bf16.msra.mxu1 %v20490_v31  ;;  %v20569_v26 = vld [vmem:[#allocation2 + $0x888] ss:$52 sps:$4 sm:$0xff]   ;;  %v20596_v46 = vld [vmem:[#allocation2 + $0xa30] ss:$52 sps:$4 sm:$0xff]  }
  0xb2   :  { %10564 = vmatprep.subr.bf16.mxu0 %v20491_v32  ;;  %10908 = vmatprep.subr.bf16.mxu1 %v20493_v33  ;;  %v20577_v28 = vld [vmem:[#allocation2 + $0x8f4] ss:$52 sps:$4 sm:$0xff]   ;;  %v20580_v29 = vld [vmem:[#allocation2 + $0x8fc] ss:$52 sps:$4 sm:$0xff]   ;;  %v20578_v33 = vld [vmem:[#allocation2 + $0x8f8] ss:$52 sps:$4 sm:$0xff]  }
  0xb3   :  { %v23918_v30 = vld [vmem:[%s24370_s0 + $0x8] sm:$0xff]  ;;  %v20575_v32 = vld [vmem:[#allocation2 + $0x8f0] ss:$52 sps:$4 sm:$0xff]  }
  0xb4   :  { %v23923_v31 = vld [vmem:[%s24370_s0 + $0x48] sm:$0xff] }
  0xb5   :  { %10565 = vmatpush1.bf16.msra.mxu0 %v20495_v34  ;;  %10909 = vmatpush1.bf16.msra.mxu1 %v20496_v35  ;;  %v23927_v34 = vcombine.high %v23918_v30, %v23923_v31  ;;  %v20583_v35 = vld [vmem:[#allocation2 + $0x95c] ss:$52 sps:$4 sm:$0xff]   ;;  %v20601_v47 = vld [vmem:[#allocation2 + $0xa94] ss:$52 sps:$4 sm:$0xff]  }
  0xb6   :  { %10566 = vmatprep.subr.bf16.mxu0 %v20497_v36  ;;  %10910 = vmatprep.subr.bf16.mxu1 %v20499_v37  ;;  %v20586_v36 = vld [vmem:[#allocation2 + $0x964] ss:$52 sps:$4 sm:$0xff]  }
  0xb7   :  { %v20581_v37 = vld [vmem:[#allocation2 + $0x958] ss:$52 sps:$4 sm:$0xff]  }
  0xb9   :  { %10567 = vmatpush1.bf16.msra.mxu0 %v20501_v38  ;;  %10911 = vmatpush1.bf16.msra.mxu1 %v20502_v39  ;;  %v20584_v38 = vld [vmem:[#allocation2 + $0x960] ss:$52 sps:$4 sm:$0xff]   ;;  %v20589_v39 = vld [vmem:[#allocation2 + $0x9c4] ss:$52 sps:$4 sm:$0xff]  }
  0xba   :  { %10568 = vmatprep.subr.bf16.mxu0 %v20503_v40  ;;  %10912 = vmatprep.subr.bf16.mxu1 %v20505_v41  ;;  %v20592_v40 = vld [vmem:[#allocation2 + $0x9cc] ss:$52 sps:$4 sm:$0xff]  }
  0xbb   :  { %v20587_v41 = vld [vmem:[#allocation2 + $0x9c0] ss:$52 sps:$4 sm:$0xff]  }
  0xbd   :  { %10569 = vmatpush1.bf16.msra.mxu0 %v20507_v42  ;;  %10913 = vmatpush1.bf16.msra.mxu1 %v20508_v43  ;;  %v20590_v42 = vld [vmem:[#allocation2 + $0x9c8] ss:$52 sps:$4 sm:$0xff]   ;;  %v20595_v43 = vld [vmem:[#allocation2 + $0xa2c] ss:$52 sps:$4 sm:$0xff]  }
  0xbe   :  { %10570 = vmatprep.subr.bf16.mxu0 %v20509_v44  ;;  %10914 = vmatprep.subr.bf16.mxu1 %v20511_v45  ;;  %v20598_v44 = vld [vmem:[#allocation2 + $0xa34] ss:$52 sps:$4 sm:$0xff]  }
  0xbf   :  { %v20593_v45 = vld [vmem:[#allocation2 + $0xa28] ss:$52 sps:$4 sm:$0xff]  }
  0xc1   :  { %10571 = vmatpush1.bf16.msra.mxu0 %v20513_v48  ;;  %10915 = vmatpush1.bf16.msra.mxu1 %v20514_v49  ;;  %v20604_v48 = vld [vmem:[#allocation2 + $0xa9c] ss:$52 sps:$4 sm:$0xff]  }
  0xc2   :  { %10572 = vmatprep.subr.bf16.mxu0 %v20515_v51  ;;  %10916 = vmatprep.subr.bf16.mxu1 %v20517_v52  ;;  %v20599_v49 = vld [vmem:[#allocation2 + $0xa90] ss:$52 sps:$4 sm:$0xff]   ;;  %v20602_v51 = vld [vmem:[#allocation2 + $0xa98] ss:$52 sps:$4 sm:$0xff]  }
  0xc3   :  { %v20607_v52 = vld [vmem:[#allocation2 + $0xafc] ss:$52 sps:$4 sm:$0xff]  }
  0xc5   :  { %10573 = vmatpush1.bf16.msra.mxu0 %v20519_v53  ;;  %10917 = vmatpush1.bf16.msra.mxu1 %v20520_v54  ;;  %v20610_v53 = vld [vmem:[#allocation2 + $0xb04] ss:$52 sps:$4 sm:$0xff]  }
  0xc6   :  { %10574 = vmatprep.subr.bf16.mxu0 %v20521_v55  ;;  %10918 = vmatprep.subr.bf16.mxu1 %v20523_v56  ;;  %v20605_v54 = vld [vmem:[#allocation2 + $0xaf8] ss:$52 sps:$4 sm:$0xff]   ;;  %v20608_v55 = vld [vmem:[#allocation2 + $0xb00] ss:$52 sps:$4 sm:$0xff]  }
  0xc7   :  { %v20613_v56 = vld [vmem:[#allocation2 + $0xb64] ss:$52 sps:$4 sm:$0xff]  }
  0xc9   :  { %10575 = vmatpush1.bf16.msra.mxu0 %v20525_v57  ;;  %10919 = vmatpush1.bf16.msra.mxu1 %v20526_v58  ;;  %v20616_v57 = vld [vmem:[#allocation2 + $0xb6c] ss:$52 sps:$4 sm:$0xff]  }
  0xca   :  { %10576 = vmatprep.subr.bf16.mxu0 %v20527_v59  ;;  %10920 = vmatprep.subr.bf16.mxu1 %v20529_v60  ;;  %v20611_v58 = vld [vmem:[#allocation2 + $0xb60] ss:$52 sps:$4 sm:$0xff]   ;;  %v20614_v59 = vld [vmem:[#allocation2 + $0xb68] ss:$52 sps:$4 sm:$0xff]  }
  0xcb   :  { %v20619_v60 = vld [vmem:[#allocation2 + $0xbcc] ss:$52 sps:$4 sm:$0xff]  }
  0xcd   :  { %10577 = vmatpush1.bf16.msra.mxu0 %v20531_v61  ;;  %10921 = vmatpush1.bf16.msra.mxu1 %v20532_v62  ;;  %v20622_v61 = vld [vmem:[#allocation2 + $0xbd4] ss:$52 sps:$4 sm:$0xff]  }
  0xce   :  { %10578 = vmatprep.subr.bf16.mxu0 %v20533_v63  ;;  %10922 = vmatprep.subr.bf16.mxu1 %v20535_v0  ;;  %v20617_v62 = vld [vmem:[#allocation2 + $0xbc8] ss:$52 sps:$4 sm:$0xff]   ;;  %v20620_v63 = vld [vmem:[#allocation2 + $0xbd0] ss:$52 sps:$4 sm:$0xff]  }
  0xcf   :  { %v20625_v0 = vld [vmem:[#allocation2 + $0xc34] ss:$52 sps:$4 sm:$0xff]  }
  0xd1   :  { %10579 = vmatpush1.bf16.msra.mxu0 %v20537_v1  ;;  %10923 = vmatpush1.bf16.msra.mxu1 %v20538_v2  ;;  %v20628_v1 = vld [vmem:[#allocation2 + $0xc3c] ss:$52 sps:$4 sm:$0xff]  }
  0xd2   :  { %10591 = vmatprep.subr.bf16.mxu0 %v20541_v3  ;;  %10935 = vmatprep.subr.bf16.mxu1 %v20544_v4  ;;  %v20623_v2 = vld [vmem:[#allocation2 + $0xc30] ss:$52 sps:$4 sm:$0xff]   ;;  %v20626_v3 = vld [vmem:[#allocation2 + $0xc38] ss:$52 sps:$4 sm:$0xff]  }
  0xd3   :  { %v20631_v4 = vld [vmem:[#allocation2 + $0xc9c] ss:$52 sps:$4 sm:$0xff]  }
  0xd4   :  { %10581 = vmatmul.mubr.bf16.vlgmr.msra.gmra.mrb[0].mxu0 %v23911_v5  ;;  %10925 = vmatmul.mubr.bf16.vlgmr.msra.gmra.mrb[0].mxu1 %v23911_v5 }
  0xd5   :  { %10592 = vmatpush1.bf16.msra.mxu0 %v20539_v6  ;;  %10936 = vmatpush1.bf16.msra.mxu1 %v20542_v7  ;;  %v20634_v6 = vld [vmem:[#allocation2 + $0xca4] ss:$52 sps:$4 sm:$0xff]  }
  0xd6   :  { %10593 = vmatprep.subr.bf16.mxu0 %v20547_v8  ;;  %10937 = vmatprep.subr.bf16.mxu1 %v20550_v9  ;;  %v20629_v7 = vld [vmem:[#allocation2 + $0xc98] ss:$52 sps:$4 sm:$0xff]   ;;  %v20632_v8 = vld [vmem:[#allocation2 + $0xca0] ss:$52 sps:$4 sm:$0xff]  }
  0xd7   :  { %10623 = vmatprep.mubr.bf16.mxu0 %v23927_v34  ;;  %10967 = vmatprep.mubr.bf16.mxu1 %v23927_v34  ;;  %v20637_v9 = vld [vmem:[#allocation2 + $0xd04] ss:$52 sps:$4 sm:$0xff]  }
  0xd9   :  { %10594 = vmatpush1.bf16.msra.mxu0 %v20545_v10  ;;  %10938 = vmatpush1.bf16.msra.mxu1 %v20548_v11  ;;  %v20640_v10 = vld [vmem:[#allocation2 + $0xd0c] ss:$52 sps:$4 sm:$0xff]  }
  0xda   :  { %10595 = vmatprep.subr.bf16.mxu0 %v20553_v12  ;;  %10939 = vmatprep.subr.bf16.mxu1 %v20556_v13  ;;  %v20635_v11 = vld [vmem:[#allocation2 + $0xd00] ss:$52 sps:$4 sm:$0xff]   ;;  %v20638_v12 = vld [vmem:[#allocation2 + $0xd08] ss:$52 sps:$4 sm:$0xff]   ;;  %v23933_v13 = vcombine.low %v23918_v30, %v23923_v31 }
  0xdb   :  { %v20664_v30 = vld [vmem:[#allocation2 + $0xeac] ss:$52 sps:$4 sm:$0xff]  }
  0xdc   :  { %v20659_v31 = vld [vmem:[#allocation2 + $0xea0] ss:$52 sps:$4 sm:$0xff]  }
  0xdd   :  { %10596 = vmatpush1.bf16.msra.mxu0 %v20551_v14  ;;  %10940 = vmatpush1.bf16.msra.mxu1 %v20554_v15  ;;  %v20643_v14 = vld [vmem:[#allocation2 + $0xd6c] ss:$52 sps:$4 sm:$0xff]   ;;  %v20646_v15 = vld [vmem:[#allocation2 + $0xd74] ss:$52 sps:$4 sm:$0xff]  }
  0xde   :  { %10597 = vmatprep.subr.bf16.mxu0 %v20559_v16  ;;  %10941 = vmatprep.subr.bf16.mxu1 %v20562_v17  ;;  %v23938_v16 = vld [vmem:[%s24370_s0 + $0x10] sm:$0xff] }
  0xdf   :  { %v23943_v17 = vld [vmem:[%s24370_s0 + $0x50] sm:$0xff] }
  0xe1   :  { %10598 = vmatpush1.bf16.msra.mxu0 %v20557_v18  ;;  %10942 = vmatpush1.bf16.msra.mxu1 %v20560_v19  ;;  %v23947_v18 = vcombine.high %v23938_v16, %v23943_v17  ;;  %v20641_v19 = vld [vmem:[#allocation2 + $0xd68] ss:$52 sps:$4 sm:$0xff]  }
  0xe2   :  { %10599 = vmatprep.subr.bf16.mxu0 %v20565_v20  ;;  %10943 = vmatprep.subr.bf16.mxu1 %v20568_v21  ;;  %v20644_v20 = vld [vmem:[#allocation2 + $0xd70] ss:$52 sps:$4 sm:$0xff]   ;;  %v20649_v21 = vld [vmem:[#allocation2 + $0xdd4] ss:$52 sps:$4 sm:$0xff]  }
  0xe5   :  { %10600 = vmatpush1.bf16.msra.mxu0 %v20563_v22  ;;  %10944 = vmatpush1.bf16.msra.mxu1 %v20566_v23  ;;  %v20652_v22 = vld [vmem:[#allocation2 + $0xddc] ss:$52 sps:$4 sm:$0xff]  }
  0xe6   :  { %10601 = vmatprep.subr.bf16.mxu0 %v20571_v24  ;;  %10945 = vmatprep.subr.bf16.mxu1 %v20574_v25  ;;  %v20647_v23 = vld [vmem:[#allocation2 + $0xdd0] ss:$52 sps:$4 sm:$0xff]   ;;  %v20650_v24 = vld [vmem:[#allocation2 + $0xdd8] ss:$52 sps:$4 sm:$0xff]  }
  0xe7   :  { %v20655_v25 = vld [vmem:[#allocation2 + $0xe3c] ss:$52 sps:$4 sm:$0xff]  }
  0xe9   :  { %10602 = vmatpush1.bf16.msra.mxu0 %v20569_v26  ;;  %10946 = vmatpush1.bf16.msra.mxu1 %v20572_v27  ;;  %v20658_v26 = vld [vmem:[#allocation2 + $0xe44] ss:$52 sps:$4 sm:$0xff]  }
  0xea   :  { %10603 = vmatprep.subr.bf16.mxu0 %v20577_v28  ;;  %10947 = vmatprep.subr.bf16.mxu1 %v20580_v29  ;;  %v20653_v27 = vld [vmem:[#allocation2 + $0xe38] ss:$52 sps:$4 sm:$0xff]   ;;  %v20656_v28 = vld [vmem:[#allocation2 + $0xe40] ss:$52 sps:$4 sm:$0xff]  }
  0xeb   :  { %v20661_v29 = vld [vmem:[#allocation2 + $0xea4] ss:$52 sps:$4 sm:$0xff]  }
  0xed   :  { %10604 = vmatpush1.bf16.msra.mxu0 %v20575_v32  ;;  %10948 = vmatpush1.bf16.msra.mxu1 %v20578_v33  ;;  %v20662_v32 = vld [vmem:[#allocation2 + $0xea8] ss:$52 sps:$4 sm:$0xff]   ;;  %v20667_v33 = vld [vmem:[#allocation2 + $0xf0c] ss:$52 sps:$4 sm:$0xff]  }
  0xee   :  { %10605 = vmatprep.subr.bf16.mxu0 %v20583_v35  ;;  %10949 = vmatprep.subr.bf16.mxu1 %v20586_v36  ;;  %v20670_v35 = vld [vmem:[#allocation2 + $0xf14] ss:$52 sps:$4 sm:$0xff]  }
  0xef   :  { %v20665_v36 = vld [vmem:[#allocation2 + $0xf08] ss:$52 sps:$4 sm:$0xff]  }
  0xf1   :  { %10606 = vmatpush1.bf16.msra.mxu0 %v20581_v37  ;;  %10950 = vmatpush1.bf16.msra.mxu1 %v20584_v38  ;;  %v20668_v37 = vld [vmem:[#allocation2 + $0xf10] ss:$52 sps:$4 sm:$0xff]   ;;  %v20673_v38 = vld [vmem:[#allocation2 + $0xf74] ss:$52 sps:$4 sm:$0xff]  }
  0xf2   :  { %10607 = vmatprep.subr.bf16.mxu0 %v20589_v39  ;;  %10951 = vmatprep.subr.bf16.mxu1 %v20592_v40  ;;  %v20676_v39 = vld [vmem:[#allocation2 + $0xf7c] ss:$52 sps:$4 sm:$0xff]  }
  0xf3   :  { %v20671_v40 = vld [vmem:[#allocation2 + $0xf70] ss:$52 sps:$4 sm:$0xff]  }
  0xf5   :  { %10608 = vmatpush1.bf16.msra.mxu0 %v20587_v41  ;;  %10952 = vmatpush1.bf16.msra.mxu1 %v20590_v42  ;;  %v20674_v41 = vld [vmem:[#allocation2 + $0xf78] ss:$52 sps:$4 sm:$0xff]   ;;  %v20679_v42 = vld [vmem:[#allocation2 + $0xfdc] ss:$52 sps:$4 sm:$0xff]  }
  0xf6   :  { %10609 = vmatprep.subr.bf16.mxu0 %v20595_v43  ;;  %10953 = vmatprep.subr.bf16.mxu1 %v20598_v44  ;;  %v20682_v43 = vld [vmem:[#allocation2 + $0xfe4] ss:$52 sps:$4 sm:$0xff]  }
  0xf7   :  { %v20677_v44 = vld [vmem:[#allocation2 + $0xfd8] ss:$52 sps:$4 sm:$0xff]  }
  0xf9   :  { %10610 = vmatpush1.bf16.msra.mxu0 %v20593_v45  ;;  %10954 = vmatpush1.bf16.msra.mxu1 %v20596_v46  ;;  %v20680_v45 = vld [vmem:[#allocation2 + $0xfe0] ss:$52 sps:$4 sm:$0xff]   ;;  %v20685_v46 = vld [vmem:[#allocation2 + $0x1044] ss:$52 sps:$4 sm:$0xff]  }
  0xfa   :  { %10611 = vmatprep.subr.bf16.mxu0 %v20601_v47  ;;  %10955 = vmatprep.subr.bf16.mxu1 %v20604_v48  ;;  %v20688_v47 = vld [vmem:[#allocation2 + $0x104c] ss:$52 sps:$4 sm:$0xff]  }
  0xfb   :  { %v20683_v48 = vld [vmem:[#allocation2 + $0x1040] ss:$52 sps:$4 sm:$0xff]  }
  0xfd   :  { %10612 = vmatpush1.bf16.msra.mxu0 %v20599_v49  ;;  %10956 = vmatpush1.bf16.msra.mxu1 %v20602_v51  ;;  %v20686_v49 = vld [vmem:[#allocation2 + $0x1048] ss:$52 sps:$4 sm:$0xff]   ;;  %v20691_v51 = vld [vmem:[#allocation2 + $0x10ac] ss:$52 sps:$4 sm:$0xff]  }
  0xfe   :  { %10613 = vmatprep.subr.bf16.mxu0 %v20607_v52  ;;  %10957 = vmatprep.subr.bf16.mxu1 %v20610_v53  ;;  %v20694_v52 = vld [vmem:[#allocation2 + $0x10b4] ss:$52 sps:$4 sm:$0xff]  }
  0xff   :  { %v20689_v53 = vld [vmem:[#allocation2 + $0x10a8] ss:$52 sps:$4 sm:$0xff]  }
 0x101   :  { %10614 = vmatpush1.bf16.msra.mxu0 %v20605_v54  ;;  %10958 = vmatpush1.bf16.msra.mxu1 %v20608_v55  ;;  %v20692_v54 = vld [vmem:[#allocation2 + $0x10b0] ss:$52 sps:$4 sm:$0xff]   ;;  %v20697_v55 = vld [vmem:[#allocation2 + $0x1114] ss:$52 sps:$4 sm:$0xff]  }
 0x102   :  { %10615 = vmatprep.subr.bf16.mxu0 %v20613_v56  ;;  %10959 = vmatprep.subr.bf16.mxu1 %v20616_v57  ;;  %v20700_v56 = vld [vmem:[#allocation2 + $0x111c] ss:$52 sps:$4 sm:$0xff]  }
 0x103   :  { %v20695_v57 = vld [vmem:[#allocation2 + $0x1110] ss:$52 sps:$4 sm:$0xff]  }
 0x105   :  { %10616 = vmatpush1.bf16.msra.mxu0 %v20611_v58  ;;  %10960 = vmatpush1.bf16.msra.mxu1 %v20614_v59  ;;  %v20698_v58 = vld [vmem:[#allocation2 + $0x1118] ss:$52 sps:$4 sm:$0xff]   ;;  %v20703_v59 = vld [vmem:[#allocation2 + $0x117c] ss:$52 sps:$4 sm:$0xff]  }
 0x106   :  { %10617 = vmatprep.subr.bf16.mxu0 %v20619_v60  ;;  %10961 = vmatprep.subr.bf16.mxu1 %v20622_v61  ;;  %v20706_v60 = vld [vmem:[#allocation2 + $0x1184] ss:$52 sps:$4 sm:$0xff]  }
 0x107   :  { %v20701_v61 = vld [vmem:[#allocation2 + $0x1178] ss:$52 sps:$4 sm:$0xff]  }
 0x109   :  { %10618 = vmatpush1.bf16.msra.mxu0 %v20617_v62  ;;  %10962 = vmatpush1.bf16.msra.mxu1 %v20620_v63  ;;  %v20704_v62 = vld [vmem:[#allocation2 + $0x1180] ss:$52 sps:$4 sm:$0xff]   ;;  %v20709_v63 = vld [vmem:[#allocation2 + $0x11e4] ss:$52 sps:$4 sm:$0xff]  }
 0x10a   :  { %10619 = vmatprep.subr.bf16.mxu0 %v20625_v0  ;;  %10963 = vmatprep.subr.bf16.mxu1 %v20628_v1  ;;  %v20712_v0 = vld [vmem:[#allocation2 + $0x11ec] ss:$52 sps:$4 sm:$0xff]  }
 0x10b   :  { %v20707_v1 = vld [vmem:[#allocation2 + $0x11e0] ss:$52 sps:$4 sm:$0xff]  }
 0x10d   :  { %10620 = vmatpush1.bf16.msra.mxu0 %v20623_v2  ;;  %10964 = vmatpush1.bf16.msra.mxu1 %v20626_v3  ;;  %v20710_v2 = vld [vmem:[#allocation2 + $0x11e8] ss:$52 sps:$4 sm:$0xff]   ;;  %v20715_v3 = vld [vmem:[#allocation2 + $0x124c] ss:$52 sps:$4 sm:$0xff]  }
 0x10e   :  { %10621 = vmatprep.subr.bf16.mxu0 %v20631_v4  ;;  %10965 = vmatprep.subr.bf16.mxu1 %v20634_v6  ;;  %v20718_v4 = vld [vmem:[#allocation2 + $0x1254] ss:$52 sps:$4 sm:$0xff]  }
 0x10f   :  { %v20713_v6 = vld [vmem:[#allocation2 + $0x1248] ss:$52 sps:$4 sm:$0xff]  }
 0x111   :  { %10622 = vmatpush1.bf16.msra.mxu0 %v20629_v7  ;;  %10966 = vmatpush1.bf16.msra.mxu1 %v20632_v8  ;;  %v20716_v7 = vld [vmem:[#allocation2 + $0x1250] ss:$52 sps:$4 sm:$0xff]   ;;  %v20721_v8 = vld [vmem:[#allocation2 + $0x12b4] ss:$52 sps:$4 sm:$0xff]  }
 0x112   :  { %10634 = vmatprep.subr.bf16.mxu0 %v20637_v9  ;;  %10978 = vmatprep.subr.bf16.mxu1 %v20640_v10  ;;  %v20724_v9 = vld [vmem:[#allocation2 + $0x12bc] ss:$52 sps:$4 sm:$0xff]  }
 0x113   :  { %v20719_v10 = vld [vmem:[#allocation2 + $0x12b0] ss:$52 sps:$4 sm:$0xff]  }
 0x114   :  { %10624 = vmatmul.mubr.bf16.vlgmr.msra.gmra.mrb[0].mxu0 %v23933_v13  ;;  %10968 = vmatmul.mubr.bf16.vlgmr.msra.gmra.mrb[0].mxu1 %v23933_v13 }
 0x115   :  { %10635 = vmatpush1.bf16.msra.mxu0 %v20635_v11  ;;  %10979 = vmatpush1.bf16.msra.mxu1 %v20638_v12  ;;  %v20722_v11 = vld [vmem:[#allocation2 + $0x12b8] ss:$52 sps:$4 sm:$0xff]   ;;  %v20727_v12 = vld [vmem:[#allocation2 + $0x131c] ss:$52 sps:$4 sm:$0xff]  }
 0x116   :  { %10636 = vmatprep.subr.bf16.mxu0 %v20643_v14  ;;  %10980 = vmatprep.subr.bf16.mxu1 %v20646_v15  ;;  %v20730_v14 = vld [vmem:[#allocation2 + $0x1324] ss:$52 sps:$4 sm:$0xff]  }
 0x117   :  { %10666 = vmatprep.mubr.bf16.mxu0 %v23947_v18  ;;  %11010 = vmatprep.mubr.bf16.mxu1 %v23947_v18  ;;  %v20725_v15 = vld [vmem:[#allocation2 + $0x1318] ss:$52 sps:$4 sm:$0xff]  }
 0x119   :  { %10637 = vmatpush1.bf16.msra.mxu0 %v20641_v19  ;;  %10981 = vmatpush1.bf16.msra.mxu1 %v20644_v20  ;;  %v20728_v19 = vld [vmem:[#allocation2 + $0x1320] ss:$52 sps:$4 sm:$0xff]   ;;  %v20733_v20 = vld [vmem:[#allocation2 + $0x1384] ss:$52 sps:$4 sm:$0xff]  }
 0x11a   :  { %10638 = vmatprep.subr.bf16.mxu0 %v20649_v21  ;;  %10982 = vmatprep.subr.bf16.mxu1 %v20652_v22  ;;  %v20736_v21 = vld [vmem:[#allocation2 + $0x138c] ss:$52 sps:$4 sm:$0xff]  }
 0x11b   :  { %v20731_v22 = vld [vmem:[#allocation2 + $0x1380] ss:$52 sps:$4 sm:$0xff]  }
 0x11d   :  { %10639 = vmatpush1.bf16.msra.mxu0 %v20647_v23  ;;  %10983 = vmatpush1.bf16.msra.mxu1 %v20650_v24  ;;  %v20734_v23 = vld [vmem:[#allocation2 + $0x1388] ss:$52 sps:$4 sm:$0xff]   ;;  %v23955_v24 = vcombine.low %v23938_v16, %v23943_v17 }
 0x11e   :  { %10640 = vmatprep.subr.bf16.mxu0 %v20655_v25  ;;  %10984 = vmatprep.subr.bf16.mxu1 %v20658_v26  ;;  %v23960_v25 = vld [vmem:[%s24370_s0 + $0x18] sm:$0xff] }
 0x11f   :  { %v23965_v26 = vld [vmem:[%s24370_s0 + $0x58] sm:$0xff] }
 0x120   :  { %v23969_v16 = vcombine.high %v23960_v25, %v23965_v26  ;;  %v20737_v17 = vld [vmem:[#allocation2 + $0x13e8] ss:$52 sps:$4 sm:$0xff]  }
 0x121   :  { %10641 = vmatpush1.bf16.msra.mxu0 %v20653_v27  ;;  %10985 = vmatpush1.bf16.msra.mxu1 %v20656_v28  ;;  %v20739_v27 = vld [vmem:[#allocation2 + $0x13ec] ss:$52 sps:$4 sm:$0xff]   ;;  %v20742_v28 = vld [vmem:[#allocation2 + $0x13f4] ss:$52 sps:$4 sm:$0xff]  }
 0x122   :  { %10642 = vmatprep.subr.bf16.mxu0 %v20661_v29  ;;  %10986 = vmatprep.subr.bf16.mxu1 %v20664_v30  ;;  %v20740_v29 = vld [vmem:[#allocation2 + $0x13f0] ss:$52 sps:$4 sm:$0xff]   ;;  %v20745_v30 = vld [vmem:[#allocation2 + $0x1454] ss:$52 sps:$4 sm:$0xff]  }
 0x125   :  { %10643 = vmatpush1.bf16.msra.mxu0 %v20659_v31  ;;  %10987 = vmatpush1.bf16.msra.mxu1 %v20662_v32  ;;  %v20748_v31 = vld [vmem:[#allocation2 + $0x145c] ss:$52 sps:$4 sm:$0xff]  }
 0x126   :  { %10644 = vmatprep.subr.bf16.mxu0 %v20667_v33  ;;  %10988 = vmatprep.subr.bf16.mxu1 %v20670_v35  ;;  %v20743_v32 = vld [vmem:[#allocation2 + $0x1450] ss:$52 sps:$4 sm:$0xff]   ;;  %v20746_v33 = vld [vmem:[#allocation2 + $0x1458] ss:$52 sps:$4 sm:$0xff]  }
 0x127   :  { %v20751_v35 = vld [vmem:[#allocation2 + $0x14bc] ss:$52 sps:$4 sm:$0xff]  }
 0x129   :  { %10645 = vmatpush1.bf16.msra.mxu0 %v20665_v36  ;;  %10989 = vmatpush1.bf16.msra.mxu1 %v20668_v37  ;;  %v20754_v36 = vld [vmem:[#allocation2 + $0x14c4] ss:$52 sps:$4 sm:$0xff]  }
 0x12a   :  { %10646 = vmatprep.subr.bf16.mxu0 %v20673_v38  ;;  %10990 = vmatprep.subr.bf16.mxu1 %v20676_v39  ;;  %v20749_v37 = vld [vmem:[#allocation2 + $0x14b8] ss:$52 sps:$4 sm:$0xff]   ;;  %v20752_v38 = vld [vmem:[#allocation2 + $0x14c0] ss:$52 sps:$4 sm:$0xff]  }
 0x12b   :  { %v20757_v39 = vld [vmem:[#allocation2 + $0x1524] ss:$52 sps:$4 sm:$0xff]  }
 0x12d   :  { %10647 = vmatpush1.bf16.msra.mxu0 %v20671_v40  ;;  %10991 = vmatpush1.bf16.msra.mxu1 %v20674_v41  ;;  %v20760_v40 = vld [vmem:[#allocation2 + $0x152c] ss:$52 sps:$4 sm:$0xff]  }
 0x12e   :  { %10648 = vmatprep.subr.bf16.mxu0 %v20679_v42  ;;  %10992 = vmatprep.subr.bf16.mxu1 %v20682_v43  ;;  %v20755_v41 = vld [vmem:[#allocation2 + $0x1520] ss:$52 sps:$4 sm:$0xff]   ;;  %v20758_v42 = vld [vmem:[#allocation2 + $0x1528] ss:$52 sps:$4 sm:$0xff]  }
 0x12f   :  { %v20763_v43 = vld [vmem:[#allocation2 + $0x158c] ss:$52 sps:$4 sm:$0xff]  }
 0x131   :  { %10649 = vmatpush1.bf16.msra.mxu0 %v20677_v44  ;;  %10993 = vmatpush1.bf16.msra.mxu1 %v20680_v45  ;;  %v20766_v44 = vld [vmem:[#allocation2 + $0x1594] ss:$52 sps:$4 sm:$0xff]  }
 0x132   :  { %10650 = vmatprep.subr.bf16.mxu0 %v20685_v46  ;;  %10994 = vmatprep.subr.bf16.mxu1 %v20688_v47  ;;  %v20761_v45 = vld [vmem:[#allocation2 + $0x1588] ss:$52 sps:$4 sm:$0xff]   ;;  %v20764_v46 = vld [vmem:[#allocation2 + $0x1590] ss:$52 sps:$4 sm:$0xff]  }
 0x133   :  { %v20769_v47 = vld [vmem:[#allocation2 + $0x15f4] ss:$52 sps:$4 sm:$0xff]  }
 0x135   :  { %10651 = vmatpush1.bf16.msra.mxu0 %v20683_v48  ;;  %10995 = vmatpush1.bf16.msra.mxu1 %v20686_v49  ;;  %v20772_v48 = vld [vmem:[#allocation2 + $0x15fc] ss:$52 sps:$4 sm:$0xff]  }
 0x136   :  { %10652 = vmatprep.subr.bf16.mxu0 %v20691_v51  ;;  %10996 = vmatprep.subr.bf16.mxu1 %v20694_v52  ;;  %v20767_v49 = vld [vmem:[#allocation2 + $0x15f0] ss:$52 sps:$4 sm:$0xff]   ;;  %v20770_v51 = vld [vmem:[#allocation2 + $0x15f8] ss:$52 sps:$4 sm:$0xff]  }
 0x137   :  { %v20775_v52 = vld [vmem:[#allocation2 + $0x165c] ss:$52 sps:$4 sm:$0xff]  }
 0x139   :  { %10653 = vmatpush1.bf16.msra.mxu0 %v20689_v53  ;;  %10997 = vmatpush1.bf16.msra.mxu1 %v20692_v54  ;;  %v20778_v53 = vld [vmem:[#allocation2 + $0x1664] ss:$52 sps:$4 sm:$0xff]  }
 0x13a   :  { %10654 = vmatprep.subr.bf16.mxu0 %v20697_v55  ;;  %10998 = vmatprep.subr.bf16.mxu1 %v20700_v56  ;;  %v20773_v54 = vld [vmem:[#allocation2 + $0x1658] ss:$52 sps:$4 sm:$0xff]   ;;  %v20776_v55 = vld [vmem:[#allocation2 + $0x1660] ss:$52 sps:$4 sm:$0xff]  }
 0x13b   :  { %v20781_v56 = vld [vmem:[#allocation2 + $0x16c4] ss:$52 sps:$4 sm:$0xff]  }
 0x13d   :  { %10655 = vmatpush1.bf16.msra.mxu0 %v20695_v57  ;;  %10999 = vmatpush1.bf16.msra.mxu1 %v20698_v58  ;;  %v20784_v57 = vld [vmem:[#allocation2 + $0x16cc] ss:$52 sps:$4 sm:$0xff]  }
 0x13e   :  { %10656 = vmatprep.subr.bf16.mxu0 %v20703_v59  ;;  %11000 = vmatprep.subr.bf16.mxu1 %v20706_v60  ;;  %v20779_v58 = vld [vmem:[#allocation2 + $0x16c0] ss:$52 sps:$4 sm:$0xff]   ;;  %v20782_v59 = vld [vmem:[#allocation2 + $0x16c8] ss:$52 sps:$4 sm:$0xff]  }
 0x13f   :  { %v20787_v60 = vld [vmem:[#allocation2 + $0x172c] ss:$52 sps:$4 sm:$0xff]  }
 0x141   :  { %10657 = vmatpush1.bf16.msra.mxu0 %v20701_v61  ;;  %11001 = vmatpush1.bf16.msra.mxu1 %v20704_v62  ;;  %v20790_v61 = vld [vmem:[#allocation2 + $0x1734] ss:$52 sps:$4 sm:$0xff]  }
 0x142   :  { %10658 = vmatprep.subr.bf16.mxu0 %v20709_v63  ;;  %11002 = vmatprep.subr.bf16.mxu1 %v20712_v0  ;;  %v20785_v62 = vld [vmem:[#allocation2 + $0x1728] ss:$52 sps:$4 sm:$0xff]   ;;  %v20788_v63 = vld [vmem:[#allocation2 + $0x1730] ss:$52 sps:$4 sm:$0xff]  }
 0x143   :  { %v20793_v0 = vld [vmem:[#allocation2 + $0x1794] ss:$52 sps:$4 sm:$0xff]  }
 0x145   :  { %10659 = vmatpush1.bf16.msra.mxu0 %v20707_v1  ;;  %11003 = vmatpush1.bf16.msra.mxu1 %v20710_v2  ;;  %v20796_v1 = vld [vmem:[#allocation2 + $0x179c] ss:$52 sps:$4 sm:$0xff]  }
 0x146   :  { %10660 = vmatprep.subr.bf16.mxu0 %v20715_v3  ;;  %11004 = vmatprep.subr.bf16.mxu1 %v20718_v4  ;;  %v20791_v2 = vld [vmem:[#allocation2 + $0x1790] ss:$52 sps:$4 sm:$0xff]   ;;  %v20794_v3 = vld [vmem:[#allocation2 + $0x1798] ss:$52 sps:$4 sm:$0xff]  }
 0x147   :  { %v20799_v4 = vld [vmem:[#allocation2 + $0x17fc] ss:$52 sps:$4 sm:$0xff]  }
 0x149   :  { %10661 = vmatpush1.bf16.msra.mxu0 %v20713_v6  ;;  %11005 = vmatpush1.bf16.msra.mxu1 %v20716_v7  ;;  %v20802_v6 = vld [vmem:[#allocation2 + $0x1804] ss:$52 sps:$4 sm:$0xff]  }
 0x14a   :  { %10662 = vmatprep.subr.bf16.mxu0 %v20721_v8  ;;  %11006 = vmatprep.subr.bf16.mxu1 %v20724_v9  ;;  %v20797_v7 = vld [vmem:[#allocation2 + $0x17f8] ss:$52 sps:$4 sm:$0xff]   ;;  %v20800_v8 = vld [vmem:[#allocation2 + $0x1800] ss:$52 sps:$4 sm:$0xff]  }
 0x14b   :  { %v20805_v9 = vld [vmem:[#allocation2 + $0x1864] ss:$52 sps:$4 sm:$0xff]  }
 0x14d   :  { %10663 = vmatpush1.bf16.msra.mxu0 %v20719_v10  ;;  %11007 = vmatpush1.bf16.msra.mxu1 %v20722_v11  ;;  %v20808_v10 = vld [vmem:[#allocation2 + $0x186c] ss:$52 sps:$4 sm:$0xff]  }
 0x14e   :  { %10664 = vmatprep.subr.bf16.mxu0 %v20727_v12  ;;  %11008 = vmatprep.subr.bf16.mxu1 %v20730_v14  ;;  %v20803_v11 = vld [vmem:[#allocation2 + $0x1860] ss:$52 sps:$4 sm:$0xff]   ;;  %v20806_v12 = vld [vmem:[#allocation2 + $0x1868] ss:$52 sps:$4 sm:$0xff]  }
 0x14f   :  { %v20811_v14 = vld [vmem:[#allocation2 + $0x18cc] ss:$52 sps:$4 sm:$0xff]  }
 0x151   :  { %10665 = vmatpush1.bf16.msra.mxu0 %v20725_v15  ;;  %11009 = vmatpush1.bf16.msra.mxu1 %v20728_v19  ;;  %v20814_v15 = vld [vmem:[#allocation2 + $0x18d4] ss:$52 sps:$4 sm:$0xff]  }
 0x152   :  { %10677 = vmatprep.subr.bf16.mxu0 %v20733_v20  ;;  %11021 = vmatprep.subr.bf16.mxu1 %v20736_v21  ;;  %v20809_v19 = vld [vmem:[#allocation2 + $0x18c8] ss:$52 sps:$4 sm:$0xff]   ;;  %v20812_v20 = vld [vmem:[#allocation2 + $0x18d0] ss:$52 sps:$4 sm:$0xff]  }
 0x153   :  { %v20817_v21 = vld [vmem:[#allocation2 + $0x1934] ss:$52 sps:$4 sm:$0xff]  }
 0x154   :  { %10667 = vmatmul.mubr.bf16.vlgmr.msra.gmra.mrb[0].mxu0 %v23955_v24  ;;  %11011 = vmatmul.mubr.bf16.vlgmr.msra.gmra.mrb[0].mxu1 %v23955_v24 }
 0x155   :  { %10678 = vmatpush1.bf16.msra.mxu0 %v20731_v22  ;;  %11022 = vmatpush1.bf16.msra.mxu1 %v20734_v23  ;;  %v20820_v22 = vld [vmem:[#allocation2 + $0x193c] ss:$52 sps:$4 sm:$0xff]  }
 0x156   :  { %10679 = vmatprep.subr.bf16.mxu0 %v20739_v27  ;;  %11023 = vmatprep.subr.bf16.mxu1 %v20742_v28  ;;  %v20815_v23 = vld [vmem:[#allocation2 + $0x1930] ss:$52 sps:$4 sm:$0xff]   ;;  %v20818_v27 = vld [vmem:[#allocation2 + $0x1938] ss:$52 sps:$4 sm:$0xff]  }
 0x157   :  { %10709 = vmatprep.mubr.bf16.mxu0 %v23969_v16  ;;  %11053 = vmatprep.mubr.bf16.mxu1 %v23969_v16  ;;  %v20823_v28 = vld [vmem:[#allocation2 + $0x199c] ss:$52 sps:$4 sm:$0xff]  }
 0x159   :  { %10680 = vmatpush1.bf16.msra.mxu0 %v20737_v17  ;;  %11024 = vmatpush1.bf16.msra.mxu1 %v20740_v29  ;;  %v20826_v17 = vld [vmem:[#allocation2 + $0x19a4] ss:$52 sps:$4 sm:$0xff]  }
 0x15a   :  { %10681 = vmatprep.subr.bf16.mxu0 %v20745_v30  ;;  %11025 = vmatprep.subr.bf16.mxu1 %v20748_v31  ;;  %v20821_v29 = vld [vmem:[#allocation2 + $0x1998] ss:$52 sps:$4 sm:$0xff]   ;;  %v20824_v30 = vld [vmem:[#allocation2 + $0x19a0] ss:$52 sps:$4 sm:$0xff]  }
 0x15b   :  { %v20829_v31 = vld [vmem:[#allocation2 + $0x1a04] ss:$52 sps:$4 sm:$0xff]  }
 0x15d   :  { %10682 = vmatpush1.bf16.msra.mxu0 %v20743_v32  ;;  %11026 = vmatpush1.bf16.msra.mxu1 %v20746_v33  ;;  %v20832_v32 = vld [vmem:[#allocation2 + $0x1a0c] ss:$52 sps:$4 sm:$0xff]  }
 0x15e   :  { %10683 = vmatprep.subr.bf16.mxu0 %v20751_v35  ;;  %11027 = vmatprep.subr.bf16.mxu1 %v20754_v36  ;;  %v23978_v33 = vld [vmem:[%s24370_s0 + $0x20] sm:$0xff]  ;;  %v23982_v35 = vcombine.low %v23960_v25, %v23965_v26  ;;  %v20833_v25 = vld [vmem:[#allocation2 + $0x1a68] ss:$52 sps:$4 sm:$0xff]  }
 0x15f   :  { %v23987_v36 = vld [vmem:[%s24370_s0 + $0x60] sm:$0xff] }
 0x160   :  { %v20836_v26 = vld [vmem:[#allocation2 + $0x1a70] ss:$52 sps:$4 sm:$0xff]  }
 0x161   :  { %10684 = vmatpush1.bf16.msra.mxu0 %v20749_v37  ;;  %11028 = vmatpush1.bf16.msra.mxu1 %v20752_v38  ;;  %v20827_v37 = vld [vmem:[#allocation2 + $0x1a00] ss:$52 sps:$4 sm:$0xff]   ;;  %v20830_v38 = vld [vmem:[#allocation2 + $0x1a08] ss:$52 sps:$4 sm:$0xff]  }
 0x162   :  { %10685 = vmatprep.subr.bf16.mxu0 %v20757_v39  ;;  %11029 = vmatprep.subr.bf16.mxu1 %v20760_v40  ;;  %v20835_v39 = vld [vmem:[#allocation2 + $0x1a6c] ss:$52 sps:$4 sm:$0xff]   ;;  %v20838_v40 = vld [vmem:[#allocation2 + $0x1a74] ss:$52 sps:$4 sm:$0xff]  }
 0x165   :  { %10686 = vmatpush1.bf16.msra.mxu0 %v20755_v41  ;;  %11030 = vmatpush1.bf16.msra.mxu1 %v20758_v42  ;;  %v23991_v41 = vcombine.high %v23978_v33, %v23987_v36  ;;  %v20841_v42 = vld [vmem:[#allocation2 + $0x1ad4] ss:$52 sps:$4 sm:$0xff]  }
 0x166   :  { %10687 = vmatprep.subr.bf16.mxu0 %v20763_v43  ;;  %11031 = vmatprep.subr.bf16.mxu1 %v20766_v44  ;;  %v20844_v43 = vld [vmem:[#allocation2 + $0x1adc] ss:$52 sps:$4 sm:$0xff]  }
 0x167   :  { %v20839_v44 = vld [vmem:[#allocation2 + $0x1ad0] ss:$52 sps:$4 sm:$0xff]  }
 0x169   :  { %10688 = vmatpush1.bf16.msra.mxu0 %v20761_v45  ;;  %11032 = vmatpush1.bf16.msra.mxu1 %v20764_v46  ;;  %v20842_v45 = vld [vmem:[#allocation2 + $0x1ad8] ss:$52 sps:$4 sm:$0xff]   ;;  %v20847_v46 = vld [vmem:[#allocation2 + $0x1b3c] ss:$52 sps:$4 sm:$0xff]  }
 0x16a   :  { %10689 = vmatprep.subr.bf16.mxu0 %v20769_v47  ;;  %11033 = vmatprep.subr.bf16.mxu1 %v20772_v48  ;;  %v20850_v47 = vld [vmem:[#allocation2 + $0x1b44] ss:$52 sps:$4 sm:$0xff]  }
 0x16b   :  { %v20845_v48 = vld [vmem:[#allocation2 + $0x1b38] ss:$52 sps:$4 sm:$0xff]  }
 0x16d   :  { %10690 = vmatpush1.bf16.msra.mxu0 %v20767_v49  ;;  %11034 = vmatpush1.bf16.msra.mxu1 %v20770_v51  ;;  %v20848_v49 = vld [vmem:[#allocation2 + $0x1b40] ss:$52 sps:$4 sm:$0xff]   ;;  %v20853_v51 = vld [vmem:[#allocation2 + $0x1ba4] ss:$52 sps:$4 sm:$0xff]  }
 0x16e   :  { %10691 = vmatprep.subr.bf16.mxu0 %v20775_v52  ;;  %11035 = vmatprep.subr.bf16.mxu1 %v20778_v53  ;;  %v20856_v52 = vld [vmem:[#allocation2 + $0x1bac] ss:$52 sps:$4 sm:$0xff]  }
 0x16f   :  { %v20851_v53 = vld [vmem:[#allocation2 + $0x1ba0] ss:$52 sps:$4 sm:$0xff]  }
 0x171   :  { %10692 = vmatpush1.bf16.msra.mxu0 %v20773_v54  ;;  %11036 = vmatpush1.bf16.msra.mxu1 %v20776_v55  ;;  %v20854_v54 = vld [vmem:[#allocation2 + $0x1ba8] ss:$52 sps:$4 sm:$0xff]   ;;  %v20859_v55 = vld [vmem:[#allocation2 + $0x1c0c] ss:$52 sps:$4 sm:$0xff]  }
 0x172   :  { %10693 = vmatprep.subr.bf16.mxu0 %v20781_v56  ;;  %11037 = vmatprep.subr.bf16.mxu1 %v20784_v57  ;;  %v20862_v56 = vld [vmem:[#allocation2 + $0x1c14] ss:$52 sps:$4 sm:$0xff]  }
 0x173   :  { %v20857_v57 = vld [vmem:[#allocation2 + $0x1c08] ss:$52 sps:$4 sm:$0xff]  }
 0x175   :  { %10694 = vmatpush1.bf16.msra.mxu0 %v20779_v58  ;;  %11038 = vmatpush1.bf16.msra.mxu1 %v20782_v59  ;;  %v20860_v58 = vld [vmem:[#allocation2 + $0x1c10] ss:$52 sps:$4 sm:$0xff]   ;;  %v20865_v59 = vld [vmem:[#allocation2 + $0x1c74] ss:$52 sps:$4 sm:$0xff]  }
 0x176   :  { %10695 = vmatprep.subr.bf16.mxu0 %v20787_v60  ;;  %11039 = vmatprep.subr.bf16.mxu1 %v20790_v61  ;;  %v20868_v60 = vld [vmem:[#allocation2 + $0x1c7c] ss:$52 sps:$4 sm:$0xff]  }
 0x177   :  { %v20863_v61 = vld [vmem:[#allocation2 + $0x1c70] ss:$52 sps:$4 sm:$0xff]  }
 0x179   :  { %10696 = vmatpush1.bf16.msra.mxu0 %v20785_v62  ;;  %11040 = vmatpush1.bf16.msra.mxu1 %v20788_v63  ;;  %v20866_v62 = vld [vmem:[#allocation2 + $0x1c78] ss:$52 sps:$4 sm:$0xff]   ;;  %v20871_v63 = vld [vmem:[#allocation2 + $0x1cdc] ss:$52 sps:$4 sm:$0xff]  }
 0x17a   :  { %10697 = vmatprep.subr.bf16.mxu0 %v20793_v0  ;;  %11041 = vmatprep.subr.bf16.mxu1 %v20796_v1  ;;  %v20874_v0 = vld [vmem:[#allocation2 + $0x1ce4] ss:$52 sps:$4 sm:$0xff]  }
 0x17b   :  { %v20869_v1 = vld [vmem:[#allocation2 + $0x1cd8] ss:$52 sps:$4 sm:$0xff]  }
 0x17d   :  { %10698 = vmatpush1.bf16.msra.mxu0 %v20791_v2  ;;  %11042 = vmatpush1.bf16.msra.mxu1 %v20794_v3  ;;  %v20872_v2 = vld [vmem:[#allocation2 + $0x1ce0] ss:$52 sps:$4 sm:$0xff]   ;;  %v20877_v3 = vld [vmem:[#allocation2 + $0x1d44] ss:$52 sps:$4 sm:$0xff]  }
 0x17e   :  { %10699 = vmatprep.subr.bf16.mxu0 %v20799_v4  ;;  %11043 = vmatprep.subr.bf16.mxu1 %v20802_v6  ;;  %v20880_v4 = vld [vmem:[#allocation2 + $0x1d4c] ss:$52 sps:$4 sm:$0xff]  }
 0x17f   :  { %v20875_v6 = vld [vmem:[#allocation2 + $0x1d40] ss:$52 sps:$4 sm:$0xff]  }
 0x181   :  { %10700 = vmatpush1.bf16.msra.mxu0 %v20797_v7  ;;  %11044 = vmatpush1.bf16.msra.mxu1 %v20800_v8  ;;  %v20878_v7 = vld [vmem:[#allocation2 + $0x1d48] ss:$52 sps:$4 sm:$0xff]   ;;  %v20883_v8 = vld [vmem:[#allocation2 + $0x1dac] ss:$52 sps:$4 sm:$0xff]  }
 0x182   :  { %10701 = vmatprep.subr.bf16.mxu0 %v20805_v9  ;;  %11045 = vmatprep.subr.bf16.mxu1 %v20808_v10  ;;  %v20886_v9 = vld [vmem:[#allocation2 + $0x1db4] ss:$52 sps:$4 sm:$0xff]  }
 0x183   :  { %v20881_v10 = vld [vmem:[#allocation2 + $0x1da8] ss:$52 sps:$4 sm:$0xff]  }
 0x185   :  { %10702 = vmatpush1.bf16.msra.mxu0 %v20803_v11  ;;  %11046 = vmatpush1.bf16.msra.mxu1 %v20806_v12  ;;  %v20884_v11 = vld [vmem:[#allocation2 + $0x1db0] ss:$52 sps:$4 sm:$0xff]   ;;  %v20889_v12 = vld [vmem:[#allocation2 + $0x1e14] ss:$52 sps:$4 sm:$0xff]  }
 0x186   :  { %10703 = vmatprep.subr.bf16.mxu0 %v20811_v14  ;;  %11047 = vmatprep.subr.bf16.mxu1 %v20814_v15  ;;  %v20892_v14 = vld [vmem:[#allocation2 + $0x1e1c] ss:$52 sps:$4 sm:$0xff]  }
 0x187   :  { %v20887_v15 = vld [vmem:[#allocation2 + $0x1e10] ss:$52 sps:$4 sm:$0xff]  }
 0x189   :  { %10704 = vmatpush1.bf16.msra.mxu0 %v20809_v19  ;;  %11048 = vmatpush1.bf16.msra.mxu1 %v20812_v20  ;;  %v20890_v19 = vld [vmem:[#allocation2 + $0x1e18] ss:$52 sps:$4 sm:$0xff]   ;;  %v20895_v20 = vld [vmem:[#allocation2 + $0x1e7c] ss:$52 sps:$4 sm:$0xff]  }
 0x18a   :  { %10705 = vmatprep.subr.bf16.mxu0 %v20817_v21  ;;  %11049 = vmatprep.subr.bf16.mxu1 %v20820_v22  ;;  %v20898_v21 = vld [vmem:[#allocation2 + $0x1e84] ss:$52 sps:$4 sm:$0xff]  }
 0x18b   :  { %v20893_v22 = vld [vmem:[#allocation2 + $0x1e78] ss:$52 sps:$4 sm:$0xff]  }
 0x18d   :  { %10706 = vmatpush1.bf16.msra.mxu0 %v20815_v23  ;;  %11050 = vmatpush1.bf16.msra.mxu1 %v20818_v27  ;;  %v20896_v23 = vld [vmem:[#allocation2 + $0x1e80] ss:$52 sps:$4 sm:$0xff]   ;;  %v20901_v27 = vld [vmem:[#allocation2 + $0x1ee4] ss:$52 sps:$4 sm:$0xff]  }
 0x18e   :  { %10707 = vmatprep.subr.bf16.mxu0 %v20823_v28  ;;  %11051 = vmatprep.subr.bf16.mxu1 %v20826_v17  ;;  %v20904_v28 = vld [vmem:[#allocation2 + $0x1eec] ss:$52 sps:$4 sm:$0xff]  }
 0x18f   :  { %v20899_v17 = vld [vmem:[#allocation2 + $0x1ee0] ss:$52 sps:$4 sm:$0xff]  }
 0x191   :  { %10708 = vmatpush1.bf16.msra.mxu0 %v20821_v29  ;;  %11052 = vmatpush1.bf16.msra.mxu1 %v20824_v30  ;;  %v20902_v29 = vld [vmem:[#allocation2 + $0x1ee8] ss:$52 sps:$4 sm:$0xff]   ;;  %v20907_v30 = vld [vmem:[#allocation2 + $0x1f4c] ss:$52 sps:$4 sm:$0xff]  }
 0x192   :  { %10720 = vmatprep.subr.bf16.mxu0 %v20829_v31  ;;  %11064 = vmatprep.subr.bf16.mxu1 %v20832_v32  ;;  %v20910_v31 = vld [vmem:[#allocation2 + $0x1f54] ss:$52 sps:$4 sm:$0xff]  }
 0x193   :  { %v20905_v32 = vld [vmem:[#allocation2 + $0x1f48] ss:$52 sps:$4 sm:$0xff]  }
 0x194   :  { %10710 = vmatmul.mubr.bf16.vlgmr.msra.gmra.mrb[0].mxu0 %v23982_v35  ;;  %11054 = vmatmul.mubr.bf16.vlgmr.msra.gmra.mrb[0].mxu1 %v23982_v35 }
 0x195   :  { %10721 = vmatpush1.bf16.msra.mxu0 %v20827_v37  ;;  %11065 = vmatpush1.bf16.msra.mxu1 %v20830_v38  ;;  %v20908_v37 = vld [vmem:[#allocation2 + $0x1f50] ss:$52 sps:$4 sm:$0xff]   ;;  %v20913_v38 = vld [vmem:[#allocation2 + $0x1fb4] ss:$52 sps:$4 sm:$0xff]  }
 0x196   :  { %10722 = vmatprep.subr.bf16.mxu0 %v20835_v39  ;;  %11066 = vmatprep.subr.bf16.mxu1 %v20838_v40  ;;  %v20916_v39 = vld [vmem:[#allocation2 + $0x1fbc] ss:$52 sps:$4 sm:$0xff]  }
 0x197   :  { %10752 = vmatprep.mubr.bf16.mxu0 %v23991_v41  ;;  %11096 = vmatprep.mubr.bf16.mxu1 %v23991_v41  ;;  %v20911_v40 = vld [vmem:[#allocation2 + $0x1fb0] ss:$52 sps:$4 sm:$0xff]  }
 0x199   :  { %10723 = vmatpush1.bf16.msra.mxu0 %v20833_v25  ;;  %11067 = vmatpush1.bf16.msra.mxu1 %v20836_v26  ;;  %v20914_v25 = vld [vmem:[#allocation2 + $0x1fb8] ss:$52 sps:$4 sm:$0xff]   ;;  %v20919_v26 = vld [vmem:[#allocation2 + $0x201c] ss:$52 sps:$4 sm:$0xff]  }
 0x19a   :  { %10724 = vmatprep.subr.bf16.mxu0 %v20841_v42  ;;  %11068 = vmatprep.subr.bf16.mxu1 %v20844_v43  ;;  %v20922_v42 = vld [vmem:[#allocation2 + $0x2024] ss:$52 sps:$4 sm:$0xff]  }
 0x19b   :  { %v20917_v43 = vld [vmem:[#allocation2 + $0x2018] ss:$52 sps:$4 sm:$0xff]  }
 0x19d   :  { %10725 = vmatpush1.bf16.msra.mxu0 %v20839_v44  ;;  %11069 = vmatpush1.bf16.msra.mxu1 %v20842_v45  ;;  %v20920_v44 = vld [vmem:[#allocation2 + $0x2020] ss:$52 sps:$4 sm:$0xff]   ;;  %v20925_v45 = vld [vmem:[#allocation2 + $0x2084] ss:$52 sps:$4 sm:$0xff]  }
 0x19e   :  { %10726 = vmatprep.subr.bf16.mxu0 %v20847_v46  ;;  %11070 = vmatprep.subr.bf16.mxu1 %v20850_v47  ;;  %v20928_v46 = vld [vmem:[#allocation2 + $0x208c] ss:$52 sps:$4 sm:$0xff]  }
 0x19f   :  { %v24000_v47 = vld [vmem:[%s24370_s0 + $0x28] sm:$0xff] }
 0x1a1   :  { %10727 = vmatpush1.bf16.msra.mxu0 %v20845_v48  ;;  %11071 = vmatpush1.bf16.msra.mxu1 %v20848_v49  ;;  %v24005_v48 = vld [vmem:[%s24370_s0 + $0x68] sm:$0xff]  ;;  %v24009_v49 = vcombine.low %v23978_v33, %v23987_v36  ;;  %v20932_v36 = vld [vmem:[#allocation2 + $0x20f0] ss:$52 sps:$4 sm:$0xff]  }
 0x1a2   :  { %10728 = vmatprep.subr.bf16.mxu0 %v20853_v51  ;;  %11072 = vmatprep.subr.bf16.mxu1 %v20856_v52  ;;  %v20923_v51 = vld [vmem:[#allocation2 + $0x2080] ss:$52 sps:$4 sm:$0xff]   ;;  %v20926_v52 = vld [vmem:[#allocation2 + $0x2088] ss:$52 sps:$4 sm:$0xff]  }
 0x1a3   :  { %v20929_v33 = vld [vmem:[#allocation2 + $0x20e8] ss:$52 sps:$4 sm:$0xff]  }
 0x1a5   :  { %10729 = vmatpush1.bf16.msra.mxu0 %v20851_v53  ;;  %11073 = vmatpush1.bf16.msra.mxu1 %v20854_v54  ;;  %v20931_v53 = vld [vmem:[#allocation2 + $0x20ec] ss:$52 sps:$4 sm:$0xff]   ;;  %v20934_v54 = vld [vmem:[#allocation2 + $0x20f4] ss:$52 sps:$4 sm:$0xff]  }
 0x1a6   :  { %10730 = vmatprep.subr.bf16.mxu0 %v20859_v55  ;;  %11074 = vmatprep.subr.bf16.mxu1 %v20862_v56  ;;  %v24013_v55 = vcombine.high %v24000_v47, %v24005_v48  ;;  %v20937_v56 = vld [vmem:[#allocation2 + $0x2154] ss:$52 sps:$4 sm:$0xff]  }
 0x1a9   :  { %10731 = vmatpush1.bf16.msra.mxu0 %v20857_v57  ;;  %11075 = vmatpush1.bf16.msra.mxu1 %v20860_v58  ;;  %v20940_v57 = vld [vmem:[#allocation2 + $0x215c] ss:$52 sps:$4 sm:$0xff]  }
 0x1aa   :  { %10732 = vmatprep.subr.bf16.mxu0 %v20865_v59  ;;  %11076 = vmatprep.subr.bf16.mxu1 %v20868_v60  ;;  %v20935_v58 = vld [vmem:[#allocation2 + $0x2150] ss:$52 sps:$4 sm:$0xff]   ;;  %v20938_v59 = vld [vmem:[#allocation2 + $0x2158] ss:$52 sps:$4 sm:$0xff]  }
 0x1ab   :  { %v20943_v60 = vld [vmem:[#allocation2 + $0x21bc] ss:$52 sps:$4 sm:$0xff]  }
 0x1ad   :  { %10733 = vmatpush1.bf16.msra.mxu0 %v20863_v61  ;;  %11077 = vmatpush1.bf16.msra.mxu1 %v20866_v62  ;;  %v20946_v61 = vld [vmem:[#allocation2 + $0x21c4] ss:$52 sps:$4 sm:$0xff]  }
 0x1ae   :  { %10734 = vmatprep.subr.bf16.mxu0 %v20871_v63  ;;  %11078 = vmatprep.subr.bf16.mxu1 %v20874_v0  ;;  %v20941_v62 = vld [vmem:[#allocation2 + $0x21b8] ss:$52 sps:$4 sm:$0xff]   ;;  %v20944_v63 = vld [vmem:[#allocation2 + $0x21c0] ss:$52 sps:$4 sm:$0xff]  }
 0x1af   :  { %v20949_v0 = vld [vmem:[#allocation2 + $0x2224] ss:$52 sps:$4 sm:$0xff]  }
 0x1b1   :  { %10735 = vmatpush1.bf16.msra.mxu0 %v20869_v1  ;;  %11079 = vmatpush1.bf16.msra.mxu1 %v20872_v2  ;;  %v20952_v1 = vld [vmem:[#allocation2 + $0x222c] ss:$52 sps:$4 sm:$0xff]  }
 0x1b2   :  { %10736 = vmatprep.subr.bf16.mxu0 %v20877_v3  ;;  %11080 = vmatprep.subr.bf16.mxu1 %v20880_v4  ;;  %v20947_v2 = vld [vmem:[#allocation2 + $0x2220] ss:$52 sps:$4 sm:$0xff]   ;;  %v20950_v3 = vld [vmem:[#allocation2 + $0x2228] ss:$52 sps:$4 sm:$0xff]  }
 0x1b3   :  { %v20955_v4 = vld [vmem:[#allocation2 + $0x228c] ss:$52 sps:$4 sm:$0xff]  }
 0x1b5   :  { %10737 = vmatpush1.bf16.msra.mxu0 %v20875_v6  ;;  %11081 = vmatpush1.bf16.msra.mxu1 %v20878_v7  ;;  %v20958_v6 = vld [vmem:[#allocation2 + $0x2294] ss:$52 sps:$4 sm:$0xff]  }
 0x1b6   :  { %10738 = vmatprep.subr.bf16.mxu0 %v20883_v8  ;;  %11082 = vmatprep.subr.bf16.mxu1 %v20886_v9  ;;  %v20953_v7 = vld [vmem:[#allocation2 + $0x2288] ss:$52 sps:$4 sm:$0xff]   ;;  %v20956_v8 = vld [vmem:[#allocation2 + $0x2290] ss:$52 sps:$4 sm:$0xff]  }
 0x1b7   :  { %v20961_v9 = vld [vmem:[#allocation2 + $0x22f4] ss:$52 sps:$4 sm:$0xff]  }
 0x1b9   :  { %10739 = vmatpush1.bf16.msra.mxu0 %v20881_v10  ;;  %11083 = vmatpush1.bf16.msra.mxu1 %v20884_v11  ;;  %v20964_v10 = vld [vmem:[#allocation2 + $0x22fc] ss:$52 sps:$4 sm:$0xff]  }
 0x1ba   :  { %10740 = vmatprep.subr.bf16.mxu0 %v20889_v12  ;;  %11084 = vmatprep.subr.bf16.mxu1 %v20892_v14  ;;  %v20959_v11 = vld [vmem:[#allocation2 + $0x22f0] ss:$52 sps:$4 sm:$0xff]   ;;  %v20962_v12 = vld [vmem:[#allocation2 + $0x22f8] ss:$52 sps:$4 sm:$0xff]  }
 0x1bb   :  { %v20967_v14 = vld [vmem:[#allocation2 + $0x235c] ss:$52 sps:$4 sm:$0xff]  }
 0x1bd   :  { %10741 = vmatpush1.bf16.msra.mxu0 %v20887_v15  ;;  %11085 = vmatpush1.bf16.msra.mxu1 %v20890_v19  ;;  %v20970_v15 = vld [vmem:[#allocation2 + $0x2364] ss:$52 sps:$4 sm:$0xff]  }
 0x1be   :  { %10742 = vmatprep.subr.bf16.mxu0 %v20895_v20  ;;  %11086 = vmatprep.subr.bf16.mxu1 %v20898_v21  ;;  %v20965_v19 = vld [vmem:[#allocation2 + $0x2358] ss:$52 sps:$4 sm:$0xff]   ;;  %v20968_v20 = vld [vmem:[#allocation2 + $0x2360] ss:$52 sps:$4 sm:$0xff]  }
 0x1bf   :  { %v20973_v21 = vld [vmem:[#allocation2 + $0x23c4] ss:$52 sps:$4 sm:$0xff]  }
 0x1c1   :  { %10743 = vmatpush1.bf16.msra.mxu0 %v20893_v22  ;;  %11087 = vmatpush1.bf16.msra.mxu1 %v20896_v23  ;;  %v20976_v22 = vld [vmem:[#allocation2 + $0x23cc] ss:$52 sps:$4 sm:$0xff]  }
 0x1c2   :  { %10744 = vmatprep.subr.bf16.mxu0 %v20901_v27  ;;  %11088 = vmatprep.subr.bf16.mxu1 %v20904_v28  ;;  %v20971_v23 = vld [vmem:[#allocation2 + $0x23c0] ss:$52 sps:$4 sm:$0xff]   ;;  %v20974_v27 = vld [vmem:[#allocation2 + $0x23c8] ss:$52 sps:$4 sm:$0xff]  }
 0x1c3   :  { %v20979_v28 = vld [vmem:[#allocation2 + $0x242c] ss:$52 sps:$4 sm:$0xff]  }
 0x1c5   :  { %10745 = vmatpush1.bf16.msra.mxu0 %v20899_v17  ;;  %11089 = vmatpush1.bf16.msra.mxu1 %v20902_v29  ;;  %v20982_v17 = vld [vmem:[#allocation2 + $0x2434] ss:$52 sps:$4 sm:$0xff]  }
 0x1c6   :  { %10746 = vmatprep.subr.bf16.mxu0 %v20907_v30  ;;  %11090 = vmatprep.subr.bf16.mxu1 %v20910_v31  ;;  %v20977_v29 = vld [vmem:[#allocation2 + $0x2428] ss:$52 sps:$4 sm:$0xff]   ;;  %v20980_v30 = vld [vmem:[#allocation2 + $0x2430] ss:$52 sps:$4 sm:$0xff]  }
 0x1c7   :  { %v20985_v31 = vld [vmem:[#allocation2 + $0x2494] ss:$52 sps:$4 sm:$0xff]  }
 0x1c9   :  { %10747 = vmatpush1.bf16.msra.mxu0 %v20905_v32  ;;  %11091 = vmatpush1.bf16.msra.mxu1 %v20908_v37  ;;  %v20988_v32 = vld [vmem:[#allocation2 + $0x249c] ss:$52 sps:$4 sm:$0xff]  }
 0x1ca   :  { %10748 = vmatprep.subr.bf16.mxu0 %v20913_v38  ;;  %11092 = vmatprep.subr.bf16.mxu1 %v20916_v39  ;;  %v20983_v37 = vld [vmem:[#allocation2 + $0x2490] ss:$52 sps:$4 sm:$0xff]   ;;  %v20986_v38 = vld [vmem:[#allocation2 + $0x2498] ss:$52 sps:$4 sm:$0xff]  }
 0x1cb   :  { %v20991_v39 = vld [vmem:[#allocation2 + $0x24fc] ss:$52 sps:$4 sm:$0xff]  }
 0x1cd   :  { %10749 = vmatpush1.bf16.msra.mxu0 %v20911_v40  ;;  %11093 = vmatpush1.bf16.msra.mxu1 %v20914_v25  ;;  %v20994_v40 = vld [vmem:[#allocation2 + $0x2504] ss:$52 sps:$4 sm:$0xff]  }
 0x1ce   :  { %10750 = vmatprep.subr.bf16.mxu0 %v20919_v26  ;;  %11094 = vmatprep.subr.bf16.mxu1 %v20922_v42  ;;  %v20989_v25 = vld [vmem:[#allocation2 + $0x24f8] ss:$52 sps:$4 sm:$0xff]   ;;  %v20992_v26 = vld [vmem:[#allocation2 + $0x2500] ss:$52 sps:$4 sm:$0xff]  }
 0x1cf   :  { %v20997_v42 = vld [vmem:[#allocation2 + $0x2564] ss:$52 sps:$4 sm:$0xff]  }
 0x1d1   :  { %10751 = vmatpush1.bf16.msra.mxu0 %v20917_v43  ;;  %11095 = vmatpush1.bf16.msra.mxu1 %v20920_v44  ;;  %v21000_v43 = vld [vmem:[#allocation2 + $0x256c] ss:$52 sps:$4 sm:$0xff]  }
 0x1d2   :  { %10763 = vmatprep.subr.bf16.mxu0 %v20925_v45  ;;  %11107 = vmatprep.subr.bf16.mxu1 %v20928_v46  ;;  %v20995_v44 = vld [vmem:[#allocation2 + $0x2560] ss:$52 sps:$4 sm:$0xff]   ;;  %v20998_v45 = vld [vmem:[#allocation2 + $0x2568] ss:$52 sps:$4 sm:$0xff]  }
 0x1d3   :  { %v21003_v46 = vld [vmem:[#allocation2 + $0x25cc] ss:$52 sps:$4 sm:$0xff]  }
 0x1d4   :  { %10753 = vmatmul.mubr.bf16.vlgmr.msra.gmra.mrb[0].mxu0 %v24009_v49  ;;  %11097 = vmatmul.mubr.bf16.vlgmr.msra.gmra.mrb[0].mxu1 %v24009_v49 }
 0x1d5   :  { %10764 = vmatpush1.bf16.msra.mxu0 %v20923_v51  ;;  %11108 = vmatpush1.bf16.msra.mxu1 %v20926_v52  ;;  %v21006_v51 = vld [vmem:[#allocation2 + $0x25d4] ss:$52 sps:$4 sm:$0xff]  }
 0x1d6   :  { %10765 = vmatprep.subr.bf16.mxu0 %v20931_v53  ;;  %11109 = vmatprep.subr.bf16.mxu1 %v20934_v54  ;;  %v21001_v52 = vld [vmem:[#allocation2 + $0x25c8] ss:$52 sps:$4 sm:$0xff]   ;;  %v21004_v53 = vld [vmem:[#allocation2 + $0x25d0] ss:$52 sps:$4 sm:$0xff]  }
 0x1d7   :  { %10795 = vmatprep.mubr.bf16.mxu0 %v24013_v55  ;;  %11139 = vmatprep.mubr.bf16.mxu1 %v24013_v55  ;;  %v21009_v54 = vld [vmem:[#allocation2 + $0x2634] ss:$52 sps:$4 sm:$0xff]  }
 0x1d9   :  { %10766 = vmatpush1.bf16.msra.mxu0 %v20929_v33  ;;  %11110 = vmatpush1.bf16.msra.mxu1 %v20932_v36  ;;  %v21012_v33 = vld [vmem:[#allocation2 + $0x263c] ss:$52 sps:$4 sm:$0xff]  }
 0x1da   :  { %10767 = vmatprep.subr.bf16.mxu0 %v20937_v56  ;;  %11111 = vmatprep.subr.bf16.mxu1 %v20940_v57  ;;  %v21007_v36 = vld [vmem:[#allocation2 + $0x2630] ss:$52 sps:$4 sm:$0xff]   ;;  %v21010_v56 = vld [vmem:[#allocation2 + $0x2638] ss:$52 sps:$4 sm:$0xff]  }
 0x1db   :  { %v21015_v57 = vld [vmem:[#allocation2 + $0x269c] ss:$52 sps:$4 sm:$0xff]  }
 0x1dd   :  { %10768 = vmatpush1.bf16.msra.mxu0 %v20935_v58  ;;  %11112 = vmatpush1.bf16.msra.mxu1 %v20938_v59  ;;  %v21018_v58 = vld [vmem:[#allocation2 + $0x26a4] ss:$52 sps:$4 sm:$0xff]  }
 0x1de   :  { %10769 = vmatprep.subr.bf16.mxu0 %v20943_v60  ;;  %11113 = vmatprep.subr.bf16.mxu1 %v20946_v61  ;;  %v21013_v59 = vld [vmem:[#allocation2 + $0x2698] ss:$52 sps:$4 sm:$0xff]   ;;  %v21016_v60 = vld [vmem:[#allocation2 + $0x26a0] ss:$52 sps:$4 sm:$0xff]  }
 0x1df   :  { %v21021_v61 = vld [vmem:[#allocation2 + $0x2704] ss:$52 sps:$4 sm:$0xff]  }
 0x1e1   :  { %10770 = vmatpush1.bf16.msra.mxu0 %v20941_v62  ;;  %11114 = vmatpush1.bf16.msra.mxu1 %v20944_v63  ;;  %v21024_v62 = vld [vmem:[#allocation2 + $0x270c] ss:$52 sps:$4 sm:$0xff]  }
 0x1e2   :  { %10771 = vmatprep.subr.bf16.mxu0 %v20949_v0  ;;  %11115 = vmatprep.subr.bf16.mxu1 %v20952_v1  ;;  %v21019_v63 = vld [vmem:[#allocation2 + $0x2700] ss:$52 sps:$4 sm:$0xff]   ;;  %v21022_v0 = vld [vmem:[#allocation2 + $0x2708] ss:$52 sps:$4 sm:$0xff]   ;;  %v24021_v1 = vcombine.low %v24000_v47, %v24005_v48 }
 0x1e3   :  { %v21025_v48 = vld [vmem:[#allocation2 + $0x2768] ss:$52 sps:$4 sm:$0xff]  }
 0x1e5   :  { %10772 = vmatpush1.bf16.msra.mxu0 %v20947_v2  ;;  %11116 = vmatpush1.bf16.msra.mxu1 %v20950_v3  ;;  %v24026_v2 = vld [vmem:[%s24370_s0 + $0x30] sm:$0xff] }
 0x1e6   :  { %10773 = vmatprep.subr.bf16.mxu0 %v20955_v4  ;;  %11117 = vmatprep.subr.bf16.mxu1 %v20958_v6  ;;  %v24031_v3 = vld [vmem:[%s24370_s0 + $0x70] sm:$0xff]  ;;  %v21027_v4 = vld [vmem:[#allocation2 + $0x276c] ss:$52 sps:$4 sm:$0xff]  }
 0x1e7   :  { %v21030_v6 = vld [vmem:[#allocation2 + $0x2774] ss:$52 sps:$4 sm:$0xff]   ;;  %v24035_v47 = vcombine.high %v24026_v2, %v24031_v3 }
 0x1e9   :  { %10774 = vmatpush1.bf16.msra.mxu0 %v20953_v7  ;;  %11118 = vmatpush1.bf16.msra.mxu1 %v20956_v8  ;;  %v21028_v7 = vld [vmem:[#allocation2 + $0x2770] ss:$52 sps:$4 sm:$0xff]   ;;  %v21033_v8 = vld [vmem:[#allocation2 + $0x27d4] ss:$52 sps:$4 sm:$0xff]  }
 0x1ea   :  { %10775 = vmatprep.subr.bf16.mxu0 %v20961_v9  ;;  %11119 = vmatprep.subr.bf16.mxu1 %v20964_v10  ;;  %v21036_v9 = vld [vmem:[#allocation2 + $0x27dc] ss:$52 sps:$4 sm:$0xff]  }
 0x1eb   :  { %v21031_v10 = vld [vmem:[#allocation2 + $0x27d0] ss:$52 sps:$4 sm:$0xff]  }
 0x1ed   :  { %10776 = vmatpush1.bf16.msra.mxu0 %v20959_v11  ;;  %11120 = vmatpush1.bf16.msra.mxu1 %v20962_v12  ;;  %v21034_v11 = vld [vmem:[#allocation2 + $0x27d8] ss:$52 sps:$4 sm:$0xff]   ;;  %v21039_v12 = vld [vmem:[#allocation2 + $0x283c] ss:$52 sps:$4 sm:$0xff]  }
 0x1ee   :  { %10777 = vmatprep.subr.bf16.mxu0 %v20967_v14  ;;  %11121 = vmatprep.subr.bf16.mxu1 %v20970_v15  ;;  %v21042_v14 = vld [vmem:[#allocation2 + $0x2844] ss:$52 sps:$4 sm:$0xff]  }
 0x1ef   :  { %v21037_v15 = vld [vmem:[#allocation2 + $0x2838] ss:$52 sps:$4 sm:$0xff]  }
 0x1f1   :  { %10778 = vmatpush1.bf16.msra.mxu0 %v20965_v19  ;;  %11122 = vmatpush1.bf16.msra.mxu1 %v20968_v20  ;;  %v21040_v19 = vld [vmem:[#allocation2 + $0x2840] ss:$52 sps:$4 sm:$0xff]   ;;  %v21045_v20 = vld [vmem:[#allocation2 + $0x28a4] ss:$52 sps:$4 sm:$0xff]  }
 0x1f2   :  { %10779 = vmatprep.subr.bf16.mxu0 %v20973_v21  ;;  %11123 = vmatprep.subr.bf16.mxu1 %v20976_v22  ;;  %v21048_v21 = vld [vmem:[#allocation2 + $0x28ac] ss:$52 sps:$4 sm:$0xff]  }
 0x1f3   :  { %v21043_v22 = vld [vmem:[#allocation2 + $0x28a0] ss:$52 sps:$4 sm:$0xff]  }
 0x1f5   :  { %10780 = vmatpush1.bf16.msra.mxu0 %v20971_v23  ;;  %11124 = vmatpush1.bf16.msra.mxu1 %v20974_v27  ;;  %v21046_v23 = vld [vmem:[#allocation2 + $0x28a8] ss:$52 sps:$4 sm:$0xff]   ;;  %v21051_v27 = vld [vmem:[#allocation2 + $0x290c] ss:$52 sps:$4 sm:$0xff]  }
 0x1f6   :  { %10781 = vmatprep.subr.bf16.mxu0 %v20979_v28  ;;  %11125 = vmatprep.subr.bf16.mxu1 %v20982_v17  ;;  %v21054_v28 = vld [vmem:[#allocation2 + $0x2914] ss:$52 sps:$4 sm:$0xff]  }
 0x1f7   :  { %v21049_v17 = vld [vmem:[#allocation2 + $0x2908] ss:$52 sps:$4 sm:$0xff]  }
 0x1f9   :  { %10782 = vmatpush1.bf16.msra.mxu0 %v20977_v29  ;;  %11126 = vmatpush1.bf16.msra.mxu1 %v20980_v30  ;;  %v21052_v29 = vld [vmem:[#allocation2 + $0x2910] ss:$52 sps:$4 sm:$0xff]   ;;  %v21057_v30 = vld [vmem:[#allocation2 + $0x2974] ss:$52 sps:$4 sm:$0xff]  }
 0x1fa   :  { %10783 = vmatprep.subr.bf16.mxu0 %v20985_v31  ;;  %11127 = vmatprep.subr.bf16.mxu1 %v20988_v32  ;;  %v21060_v31 = vld [vmem:[#allocation2 + $0x297c] ss:$52 sps:$4 sm:$0xff]  }
 0x1fb   :  { %v21055_v32 = vld [vmem:[#allocation2 + $0x2970] ss:$52 sps:$4 sm:$0xff]  }
 0x1fd   :  { %10784 = vmatpush1.bf16.msra.mxu0 %v20983_v37  ;;  %11128 = vmatpush1.bf16.msra.mxu1 %v20986_v38  ;;  %v21058_v37 = vld [vmem:[#allocation2 + $0x2978] ss:$52 sps:$4 sm:$0xff]   ;;  %v21063_v38 = vld [vmem:[#allocation2 + $0x29dc] ss:$52 sps:$4 sm:$0xff]  }
 0x1fe   :  { %10785 = vmatprep.subr.bf16.mxu0 %v20991_v39  ;;  %11129 = vmatprep.subr.bf16.mxu1 %v20994_v40  ;;  %v21066_v39 = vld [vmem:[#allocation2 + $0x29e4] ss:$52 sps:$4 sm:$0xff]  }
 0x1ff   :  { %v21061_v40 = vld [vmem:[#allocation2 + $0x29d8] ss:$52 sps:$4 sm:$0xff]  }
 0x201   :  { %10786 = vmatpush1.bf16.msra.mxu0 %v20989_v25  ;;  %11130 = vmatpush1.bf16.msra.mxu1 %v20992_v26  ;;  %v21064_v25 = vld [vmem:[#allocation2 + $0x29e0] ss:$52 sps:$4 sm:$0xff]   ;;  %v21069_v26 = vld [vmem:[#allocation2 + $0x2a44] ss:$52 sps:$4 sm:$0xff]  }
 0x202   :  { %10787 = vmatprep.subr.bf16.mxu0 %v20997_v42  ;;  %11131 = vmatprep.subr.bf16.mxu1 %v21000_v43  ;;  %v21072_v42 = vld [vmem:[#allocation2 + $0x2a4c] ss:$52 sps:$4 sm:$0xff]  }
 0x203   :  { %v21067_v43 = vld [vmem:[#allocation2 + $0x2a40] ss:$52 sps:$4 sm:$0xff]  }
 0x205   :  { %10788 = vmatpush1.bf16.msra.mxu0 %v20995_v44  ;;  %11132 = vmatpush1.bf16.msra.mxu1 %v20998_v45  ;;  %v21070_v44 = vld [vmem:[#allocation2 + $0x2a48] ss:$52 sps:$4 sm:$0xff]   ;;  %v21075_v45 = vld [vmem:[#allocation2 + $0x2aac] ss:$52 sps:$4 sm:$0xff]  }
 0x206   :  { %10789 = vmatprep.subr.bf16.mxu0 %v21003_v46  ;;  %11133 = vmatprep.subr.bf16.mxu1 %v21006_v51  ;;  %v21078_v46 = vld [vmem:[#allocation2 + $0x2ab4] ss:$52 sps:$4 sm:$0xff]  }
 0x207   :  { %v21073_v51 = vld [vmem:[#allocation2 + $0x2aa8] ss:$52 sps:$4 sm:$0xff]  }
 0x209   :  { %10790 = vmatpush1.bf16.msra.mxu0 %v21001_v52  ;;  %11134 = vmatpush1.bf16.msra.mxu1 %v21004_v53  ;;  %v21076_v52 = vld [vmem:[#allocation2 + $0x2ab0] ss:$52 sps:$4 sm:$0xff]   ;;  %v21081_v53 = vld [vmem:[#allocation2 + $0x2b14] ss:$52 sps:$4 sm:$0xff]  }
 0x20a   :  { %10791 = vmatprep.subr.bf16.mxu0 %v21009_v54  ;;  %11135 = vmatprep.subr.bf16.mxu1 %v21012_v33  ;;  %v21084_v54 = vld [vmem:[#allocation2 + $0x2b1c] ss:$52 sps:$4 sm:$0xff]  }
 0x20b   :  { %v21079_v33 = vld [vmem:[#allocation2 + $0x2b10] ss:$52 sps:$4 sm:$0xff]  }
 0x20d   :  { %10792 = vmatpush1.bf16.msra.mxu0 %v21007_v36  ;;  %11136 = vmatpush1.bf16.msra.mxu1 %v21010_v56  ;;  %v21082_v36 = vld [vmem:[#allocation2 + $0x2b18] ss:$52 sps:$4 sm:$0xff]   ;;  %v21087_v56 = vld [vmem:[#allocation2 + $0x2b7c] ss:$52 sps:$4 sm:$0xff]  }
 0x20e   :  { %10793 = vmatprep.subr.bf16.mxu0 %v21015_v57  ;;  %11137 = vmatprep.subr.bf16.mxu1 %v21018_v58  ;;  %v21090_v57 = vld [vmem:[#allocation2 + $0x2b84] ss:$52 sps:$4 sm:$0xff]  }
 0x20f   :  { %v21085_v58 = vld [vmem:[#allocation2 + $0x2b78] ss:$52 sps:$4 sm:$0xff]  }
 0x211   :  { %10794 = vmatpush1.bf16.msra.mxu0 %v21013_v59  ;;  %11138 = vmatpush1.bf16.msra.mxu1 %v21016_v60  ;;  %v21088_v59 = vld [vmem:[#allocation2 + $0x2b80] ss:$52 sps:$4 sm:$0xff]   ;;  %v21093_v60 = vld [vmem:[#allocation2 + $0x2be4] ss:$52 sps:$4 sm:$0xff]  }
 0x212   :  { %10806 = vmatprep.subr.bf16.mxu0 %v21021_v61  ;;  %11150 = vmatprep.subr.bf16.mxu1 %v21024_v62  ;;  %v21096_v61 = vld [vmem:[#allocation2 + $0x2bec] ss:$52 sps:$4 sm:$0xff]  }
 0x213   :  { %v21091_v62 = vld [vmem:[#allocation2 + $0x2be0] ss:$52 sps:$4 sm:$0xff]  }
 0x214   :  { %10796 = vmatmul.mubr.bf16.vlgmr.msra.gmra.mrb[0].mxu0 %v24021_v1  ;;  %11140 = vmatmul.mubr.bf16.vlgmr.msra.gmra.mrb[0].mxu1 %v24021_v1 }
 0x215   :  { %10807 = vmatpush1.bf16.msra.mxu0 %v21019_v63  ;;  %11151 = vmatpush1.bf16.msra.mxu1 %v21022_v0  ;;  %v21094_v63 = vld [vmem:[#allocation2 + $0x2be8] ss:$52 sps:$4 sm:$0xff]   ;;  %v21099_v0 = vld [vmem:[#allocation2 + $0x2c4c] ss:$52 sps:$4 sm:$0xff]  }
 0x216   :  { %10808 = vmatprep.subr.bf16.mxu0 %v21027_v4  ;;  %11152 = vmatprep.subr.bf16.mxu1 %v21030_v6  ;;  %v21102_v4 = vld [vmem:[#allocation2 + $0x2c54] ss:$52 sps:$4 sm:$0xff]  }
 0x217   :  { %10838 = vmatprep.mubr.bf16.mxu0 %v24035_v47  ;;  %11182 = vmatprep.mubr.bf16.mxu1 %v24035_v47  ;;  %v21097_v6 = vld [vmem:[#allocation2 + $0x2c48] ss:$52 sps:$4 sm:$0xff]  }
 0x219   :  { %10809 = vmatpush1.bf16.msra.mxu0 %v21025_v48  ;;  %11153 = vmatpush1.bf16.msra.mxu1 %v21028_v7  ;;  %v21100_v48 = vld [vmem:[#allocation2 + $0x2c50] ss:$52 sps:$4 sm:$0xff]   ;;  %v21105_v7 = vld [vmem:[#allocation2 + $0x2cb4] ss:$52 sps:$4 sm:$0xff]  }
 0x21a   :  { %10810 = vmatprep.subr.bf16.mxu0 %v21033_v8  ;;  %11154 = vmatprep.subr.bf16.mxu1 %v21036_v9  ;;  %v21108_v8 = vld [vmem:[#allocation2 + $0x2cbc] ss:$52 sps:$4 sm:$0xff]  }
 0x21b   :  { %v21103_v9 = vld [vmem:[#allocation2 + $0x2cb0] ss:$52 sps:$4 sm:$0xff]  }
 0x21d   :  { %10811 = vmatpush1.bf16.msra.mxu0 %v21031_v10  ;;  %11155 = vmatpush1.bf16.msra.mxu1 %v21034_v11  ;;  %v21106_v10 = vld [vmem:[#allocation2 + $0x2cb8] ss:$52 sps:$4 sm:$0xff]   ;;  %v21111_v11 = vld [vmem:[#allocation2 + $0x2d1c] ss:$52 sps:$4 sm:$0xff]  }
 0x21e   :  { %10812 = vmatprep.subr.bf16.mxu0 %v21039_v12  ;;  %11156 = vmatprep.subr.bf16.mxu1 %v21042_v14  ;;  %v21114_v12 = vld [vmem:[#allocation2 + $0x2d24] ss:$52 sps:$4 sm:$0xff]  }
 0x21f   :  { %v21109_v14 = vld [vmem:[#allocation2 + $0x2d18] ss:$52 sps:$4 sm:$0xff]  }
 0x221   :  { %10813 = vmatpush1.bf16.msra.mxu0 %v21037_v15  ;;  %11157 = vmatpush1.bf16.msra.mxu1 %v21040_v19  ;;  %v21112_v15 = vld [vmem:[#allocation2 + $0x2d20] ss:$52 sps:$4 sm:$0xff]   ;;  %v21117_v19 = vld [vmem:[#allocation2 + $0x2d84] ss:$52 sps:$4 sm:$0xff]  }
 0x222   :  { %10814 = vmatprep.subr.bf16.mxu0 %v21045_v20  ;;  %11158 = vmatprep.subr.bf16.mxu1 %v21048_v21  ;;  %v21120_v20 = vld [vmem:[#allocation2 + $0x2d8c] ss:$52 sps:$4 sm:$0xff]   ;;  %v24044_v21 = vld [vmem:[%s24370_s0 + $0x38] sm:$0xff] }
 0x225   :  { %10815 = vmatpush1.bf16.msra.mxu0 %v21043_v22  ;;  %11159 = vmatpush1.bf16.msra.mxu1 %v21046_v23  ;;  %v24049_v22 = vld [vmem:[%s24370_s0 + $0x78] sm:$0xff]  ;;  %v24053_v23 = vcombine.low %v24026_v2, %v24031_v3  ;;  %v21124_v3 = vld [vmem:[#allocation2 + $0x2df0] ss:$52 sps:$4 sm:$0xff]  }
 0x226   :  { %10816 = vmatprep.subr.bf16.mxu0 %v21051_v27  ;;  %11160 = vmatprep.subr.bf16.mxu1 %v21054_v28  ;;  %v21115_v27 = vld [vmem:[#allocation2 + $0x2d80] ss:$52 sps:$4 sm:$0xff]   ;;  %v21118_v28 = vld [vmem:[#allocation2 + $0x2d88] ss:$52 sps:$4 sm:$0xff]  }
 0x227   :  { %v21121_v2 = vld [vmem:[#allocation2 + $0x2de8] ss:$52 sps:$4 sm:$0xff]  }
 0x229   :  { %10817 = vmatpush1.bf16.msra.mxu0 %v21049_v17  ;;  %11161 = vmatpush1.bf16.msra.mxu1 %v21052_v29  ;;  %v21123_v17 = vld [vmem:[#allocation2 + $0x2dec] ss:$52 sps:$4 sm:$0xff]   ;;  %v21126_v29 = vld [vmem:[#allocation2 + $0x2df4] ss:$52 sps:$4 sm:$0xff]  }
 0x22a   :  { %10818 = vmatprep.subr.bf16.mxu0 %v21057_v30  ;;  %11162 = vmatprep.subr.bf16.mxu1 %v21060_v31  ;;  %v24057_v30 = vcombine.high %v24044_v21, %v24049_v22  ;;  %v21129_v31 = vld [vmem:[#allocation2 + $0x2e54] ss:$52 sps:$4 sm:$0xff]  }
 0x22d   :  { %10819 = vmatpush1.bf16.msra.mxu0 %v21055_v32  ;;  %11163 = vmatpush1.bf16.msra.mxu1 %v21058_v37  ;;  %v21132_v32 = vld [vmem:[#allocation2 + $0x2e5c] ss:$52 sps:$4 sm:$0xff]  }
 0x22e   :  { %10820 = vmatprep.subr.bf16.mxu0 %v21063_v38  ;;  %11164 = vmatprep.subr.bf16.mxu1 %v21066_v39  ;;  %v21127_v37 = vld [vmem:[#allocation2 + $0x2e50] ss:$52 sps:$4 sm:$0xff]   ;;  %v21130_v38 = vld [vmem:[#allocation2 + $0x2e58] ss:$52 sps:$4 sm:$0xff]  }
 0x22f   :  { %v21135_v39 = vld [vmem:[#allocation2 + $0x2ebc] ss:$52 sps:$4 sm:$0xff]  }
 0x231   :  { %10821 = vmatpush1.bf16.msra.mxu0 %v21061_v40  ;;  %11165 = vmatpush1.bf16.msra.mxu1 %v21064_v25  ;;  %v21138_v40 = vld [vmem:[#allocation2 + $0x2ec4] ss:$52 sps:$4 sm:$0xff]  }
 0x232   :  { %10822 = vmatprep.subr.bf16.mxu0 %v21069_v26  ;;  %11166 = vmatprep.subr.bf16.mxu1 %v21072_v42  ;;  %v21133_v25 = vld [vmem:[#allocation2 + $0x2eb8] ss:$52 sps:$4 sm:$0xff]   ;;  %v21136_v26 = vld [vmem:[#allocation2 + $0x2ec0] ss:$52 sps:$4 sm:$0xff]  }
 0x233   :  { %v21141_v42 = vld [vmem:[#allocation2 + $0x2f24] ss:$52 sps:$4 sm:$0xff]  }
 0x235   :  { %10823 = vmatpush1.bf16.msra.mxu0 %v21067_v43  ;;  %11167 = vmatpush1.bf16.msra.mxu1 %v21070_v44  ;;  %v21144_v43 = vld [vmem:[#allocation2 + $0x2f2c] ss:$52 sps:$4 sm:$0xff]  }
 0x236   :  { %10824 = vmatprep.subr.bf16.mxu0 %v21075_v45  ;;  %11168 = vmatprep.subr.bf16.mxu1 %v21078_v46  ;;  %v21139_v44 = vld [vmem:[#allocation2 + $0x2f20] ss:$52 sps:$4 sm:$0xff]   ;;  %v21142_v45 = vld [vmem:[#allocation2 + $0x2f28] ss:$52 sps:$4 sm:$0xff]  }
 0x237   :  { %v21147_v46 = vld [vmem:[#allocation2 + $0x2f8c] ss:$52 sps:$4 sm:$0xff]  }
 0x239   :  { %10825 = vmatpush1.bf16.msra.mxu0 %v21073_v51  ;;  %11169 = vmatpush1.bf16.msra.mxu1 %v21076_v52  ;;  %v21150_v51 = vld [vmem:[#allocation2 + $0x2f94] ss:$52 sps:$4 sm:$0xff]  }
 0x23a   :  { %10826 = vmatprep.subr.bf16.mxu0 %v21081_v53  ;;  %11170 = vmatprep.subr.bf16.mxu1 %v21084_v54  ;;  %v21145_v52 = vld [vmem:[#allocation2 + $0x2f88] ss:$52 sps:$4 sm:$0xff]   ;;  %v21148_v53 = vld [vmem:[#allocation2 + $0x2f90] ss:$52 sps:$4 sm:$0xff]  }
 0x23b   :  { %v21153_v54 = vld [vmem:[#allocation2 + $0x2ff4] ss:$52 sps:$4 sm:$0xff]  }
 0x23d   :  { %10827 = vmatpush1.bf16.msra.mxu0 %v21079_v33  ;;  %11171 = vmatpush1.bf16.msra.mxu1 %v21082_v36  ;;  %v21156_v33 = vld [vmem:[#allocation2 + $0x2ffc] ss:$52 sps:$4 sm:$0xff]  }
 0x23e   :  { %10828 = vmatprep.subr.bf16.mxu0 %v21087_v56  ;;  %11172 = vmatprep.subr.bf16.mxu1 %v21090_v57  ;;  %v21151_v36 = vld [vmem:[#allocation2 + $0x2ff0] ss:$52 sps:$4 sm:$0xff]   ;;  %v21154_v56 = vld [vmem:[#allocation2 + $0x2ff8] ss:$52 sps:$4 sm:$0xff]  }
 0x23f   :  { %v21159_v57 = vld [vmem:[#allocation2 + $0x305c] ss:$52 sps:$4 sm:$0xff]  }
 0x241   :  { %10829 = vmatpush1.bf16.msra.mxu0 %v21085_v58  ;;  %11173 = vmatpush1.bf16.msra.mxu1 %v21088_v59  ;;  %v21162_v58 = vld [vmem:[#allocation2 + $0x3064] ss:$52 sps:$4 sm:$0xff]  }
 0x242   :  { %10830 = vmatprep.subr.bf16.mxu0 %v21093_v60  ;;  %11174 = vmatprep.subr.bf16.mxu1 %v21096_v61  ;;  %v21157_v59 = vld [vmem:[#allocation2 + $0x3058] ss:$52 sps:$4 sm:$0xff]   ;;  %v21160_v60 = vld [vmem:[#allocation2 + $0x3060] ss:$52 sps:$4 sm:$0xff]  }
 0x243   :  { %v21165_v61 = vld [vmem:[#allocation2 + $0x30c4] ss:$52 sps:$4 sm:$0xff]  }
 0x245   :  { %10831 = vmatpush1.bf16.msra.mxu0 %v21091_v62  ;;  %11175 = vmatpush1.bf16.msra.mxu1 %v21094_v63  ;;  %v21168_v62 = vld [vmem:[#allocation2 + $0x30cc] ss:$52 sps:$4 sm:$0xff]  }
 0x246   :  { %10832 = vmatprep.subr.bf16.mxu0 %v21099_v0  ;;  %11176 = vmatprep.subr.bf16.mxu1 %v21102_v4  ;;  %v21163_v63 = vld [vmem:[#allocation2 + $0x30c0] ss:$52 sps:$4 sm:$0xff]   ;;  %v21166_v0 = vld [vmem:[#allocation2 + $0x30c8] ss:$52 sps:$4 sm:$0xff]  }
 0x247   :  { %v21171_v4 = vld [vmem:[#allocation2 + $0x312c] ss:$52 sps:$4 sm:$0xff]  }
 0x249   :  { %10833 = vmatpush1.bf16.msra.mxu0 %v21097_v6  ;;  %11177 = vmatpush1.bf16.msra.mxu1 %v21100_v48  ;;  %v21174_v6 = vld [vmem:[#allocation2 + $0x3134] ss:$52 sps:$4 sm:$0xff]  }
 0x24a   :  { %10834 = vmatprep.subr.bf16.mxu0 %v21105_v7  ;;  %11178 = vmatprep.subr.bf16.mxu1 %v21108_v8  ;;  %v21169_v48 = vld [vmem:[#allocation2 + $0x3128] ss:$52 sps:$4 sm:$0xff]   ;;  %v21172_v7 = vld [vmem:[#allocation2 + $0x3130] ss:$52 sps:$4 sm:$0xff]  }
 0x24b   :  { %v21177_v8 = vld [vmem:[#allocation2 + $0x3194] ss:$52 sps:$4 sm:$0xff]  }
 0x24d   :  { %10835 = vmatpush1.bf16.msra.mxu0 %v21103_v9  ;;  %11179 = vmatpush1.bf16.msra.mxu1 %v21106_v10  ;;  %v21180_v9 = vld [vmem:[#allocation2 + $0x319c] ss:$52 sps:$4 sm:$0xff]  }
 0x24e   :  { %10836 = vmatprep.subr.bf16.mxu0 %v21111_v11  ;;  %11180 = vmatprep.subr.bf16.mxu1 %v21114_v12  ;;  %v21175_v10 = vld [vmem:[#allocation2 + $0x3190] ss:$52 sps:$4 sm:$0xff]   ;;  %v21178_v11 = vld [vmem:[#allocation2 + $0x3198] ss:$52 sps:$4 sm:$0xff]  }
 0x24f   :  { %v21183_v12 = vld [vmem:[#allocation2 + $0x31fc] ss:$52 sps:$4 sm:$0xff]  }
 0x251   :  { %10837 = vmatpush1.bf16.msra.mxu0 %v21109_v14  ;;  %11181 = vmatpush1.bf16.msra.mxu1 %v21112_v15  ;;  %v21186_v14 = vld [vmem:[#allocation2 + $0x3204] ss:$52 sps:$4 sm:$0xff]  }
 0x252   :  { %10849 = vmatprep.subr.bf16.mxu0 %v21117_v19  ;;  %11193 = vmatprep.subr.bf16.mxu1 %v21120_v20  ;;  %v21181_v15 = vld [vmem:[#allocation2 + $0x31f8] ss:$52 sps:$4 sm:$0xff]   ;;  %v21184_v19 = vld [vmem:[#allocation2 + $0x3200] ss:$52 sps:$4 sm:$0xff]  }
 0x253   :  { %v21189_v20 = vld [vmem:[#allocation2 + $0x3264] ss:$52 sps:$4 sm:$0xff]  }
 0x254   :  { %10839 = vmatmul.mubr.bf16.vlgmr.msra.gmra.mrb[0].mxu0 %v24053_v23  ;;  %11183 = vmatmul.mubr.bf16.vlgmr.msra.gmra.mrb[0].mxu1 %v24053_v23 }
 0x255   :  { %10850 = vmatpush1.bf16.msra.mxu0 %v21115_v27  ;;  %11194 = vmatpush1.bf16.msra.mxu1 %v21118_v28  ;;  %v21192_v27 = vld [vmem:[#allocation2 + $0x326c] ss:$52 sps:$4 sm:$0xff]  }
 0x256   :  { %10851 = vmatprep.subr.bf16.mxu0 %v21123_v17  ;;  %11195 = vmatprep.subr.bf16.mxu1 %v21126_v29  ;;  %v21187_v28 = vld [vmem:[#allocation2 + $0x3260] ss:$52 sps:$4 sm:$0xff]   ;;  %v21190_v17 = vld [vmem:[#allocation2 + $0x3268] ss:$52 sps:$4 sm:$0xff]  }
 0x257   :  { %10881 = vmatprep.mubr.bf16.mxu0 %v24057_v30  ;;  %11225 = vmatprep.mubr.bf16.mxu1 %v24057_v30  ;;  %v21195_v29 = vld [vmem:[#allocation2 + $0x32cc] ss:$52 sps:$4 sm:$0xff]  }
 0x259   :  { %10852 = vmatpush1.bf16.msra.mxu0 %v21121_v2  ;;  %11196 = vmatpush1.bf16.msra.mxu1 %v21124_v3  ;;  %v21198_v2 = vld [vmem:[#allocation2 + $0x32d4] ss:$52 sps:$4 sm:$0xff]  }
 0x25a   :  { %10853 = vmatprep.subr.bf16.mxu0 %v21129_v31  ;;  %11197 = vmatprep.subr.bf16.mxu1 %v21132_v32  ;;  %v21193_v3 = vld [vmem:[#allocation2 + $0x32c8] ss:$52 sps:$4 sm:$0xff]   ;;  %v21196_v31 = vld [vmem:[#allocation2 + $0x32d0] ss:$52 sps:$4 sm:$0xff]  }
 0x25b   :  { %v21201_v32 = vld [vmem:[#allocation2 + $0x3334] ss:$52 sps:$4 sm:$0xff]  }
 0x25d   :  { %10854 = vmatpush1.bf16.msra.mxu0 %v21127_v37  ;;  %11198 = vmatpush1.bf16.msra.mxu1 %v21130_v38  ;;  %v21204_v37 = vld [vmem:[#allocation2 + $0x333c] ss:$52 sps:$4 sm:$0xff]  }
 0x25e   :  { %10855 = vmatprep.subr.bf16.mxu0 %v21135_v39  ;;  %11199 = vmatprep.subr.bf16.mxu1 %v21138_v40  ;;  %v21199_v38 = vld [vmem:[#allocation2 + $0x3330] ss:$52 sps:$4 sm:$0xff]   ;;  %v21202_v39 = vld [vmem:[#allocation2 + $0x3338] ss:$52 sps:$4 sm:$0xff]  }
 0x25f   :  { %v21207_v40 = vld [vmem:[#allocation2 + $0x339c] ss:$52 sps:$4 sm:$0xff]  }
 0x261   :  { %10856 = vmatpush1.bf16.msra.mxu0 %v21133_v25  ;;  %11200 = vmatpush1.bf16.msra.mxu1 %v21136_v26  ;;  %v21210_v25 = vld [vmem:[#allocation2 + $0x33a4] ss:$52 sps:$4 sm:$0xff]  }
 0x262   :  { %10857 = vmatprep.subr.bf16.mxu0 %v21141_v42  ;;  %11201 = vmatprep.subr.bf16.mxu1 %v21144_v43  ;;  %v21205_v26 = vld [vmem:[#allocation2 + $0x3398] ss:$52 sps:$4 sm:$0xff]   ;;  %v21208_v42 = vld [vmem:[#allocation2 + $0x33a0] ss:$52 sps:$4 sm:$0xff]  }
 0x263   :  { %v21213_v43 = vld [vmem:[#allocation2 + $0x14] ss:$52 sps:$4 sm:$0xff]  }
 0x265   :  { %10858 = vmatpush1.bf16.msra.mxu0 %v21139_v44  ;;  %11202 = vmatpush1.bf16.msra.mxu1 %v21142_v45  ;;  %v21216_v44 = vld [vmem:[#allocation2 + $0x1c] ss:$52 sps:$4 sm:$0xff]   ;;  %v24065_v45 = vcombine.low %v24044_v21, %v24049_v22  ;;  %v21225_v21 = vld [vmem:[#allocation2 + $0xe4] ss:$52 sps:$4 sm:$0xff]   ;;  %v21228_v22 = vld [vmem:[#allocation2 + $0xec] ss:$52 sps:$4 sm:$0xff]  }
 0x266   :  { %10859 = vmatprep.subr.bf16.mxu0 %v21147_v46  ;;  %11203 = vmatprep.subr.bf16.mxu1 %v21150_v51  ;;  %v21211_v46 = vld [vmem:[#allocation2 + $0x10] ss:$52 sps:$4 sm:$0xff]   ;;  %v21214_v51 = vld [vmem:[#allocation2 + $0x18] ss:$52 sps:$4 sm:$0xff]  }
 0x269   :  { %10860 = vmatpush1.bf16.msra.mxu0 %v21145_v52  ;;  %11204 = vmatpush1.bf16.msra.mxu1 %v21148_v53  ;;  %v21219_v52 = vld [vmem:[#allocation2 + $0x7c] ss:$52 sps:$4 sm:$0xff]   ;;  %v21222_v53 = vld [vmem:[#allocation2 + $0x84] ss:$52 sps:$4 sm:$0xff]  }
 0x26a   :  { %10861 = vmatprep.subr.bf16.mxu0 %v21153_v54  ;;  %11205 = vmatprep.subr.bf16.mxu1 %v21156_v33  ;;  %v21217_v54 = vld [vmem:[#allocation2 + $0x78] ss:$52 sps:$4 sm:$0xff]   ;;  %v21220_v33 = vld [vmem:[#allocation2 + $0x80] ss:$52 sps:$4 sm:$0xff]  }
 0x26d   :  { %10862 = vmatpush1.bf16.msra.mxu0 %v21151_v36  ;;  %11206 = vmatpush1.bf16.msra.mxu1 %v21154_v56  ;;  %v21223_v36 = vld [vmem:[#allocation2 + $0xe0] ss:$52 sps:$4 sm:$0xff]   ;;  %v21226_v56 = vld [vmem:[#allocation2 + $0xe8] ss:$52 sps:$4 sm:$0xff]  }
 0x26e   :  { %10863 = vmatprep.subr.bf16.mxu0 %v21159_v57  ;;  %11207 = vmatprep.subr.bf16.mxu1 %v21162_v58  ;;  %v21231_v57 = vld [vmem:[#allocation2 + $0x14c] ss:$52 sps:$4 sm:$0xff]   ;;  %v21234_v58 = vld [vmem:[#allocation2 + $0x154] ss:$52 sps:$4 sm:$0xff]  }
 0x271   :  { %10864 = vmatpush1.bf16.msra.mxu0 %v21157_v59  ;;  %11208 = vmatpush1.bf16.msra.mxu1 %v21160_v60  ;;  %v21229_v59 = vld [vmem:[#allocation2 + $0x148] ss:$52 sps:$4 sm:$0xff]   ;;  %v21232_v60 = vld [vmem:[#allocation2 + $0x150] ss:$52 sps:$4 sm:$0xff]  }
 0x272   :  { %10865 = vmatprep.subr.bf16.mxu0 %v21165_v61  ;;  %11209 = vmatprep.subr.bf16.mxu1 %v21168_v62  ;;  %v21237_v61 = vld [vmem:[#allocation2 + $0x1b4] ss:$52 sps:$4 sm:$0xff]   ;;  %v21240_v62 = vld [vmem:[#allocation2 + $0x1bc] ss:$52 sps:$4 sm:$0xff]  }
 0x275   :  { %10866 = vmatpush1.bf16.msra.mxu0 %v21163_v63  ;;  %11210 = vmatpush1.bf16.msra.mxu1 %v21166_v0  ;;  %v21235_v63 = vld [vmem:[#allocation2 + $0x1b0] ss:$52 sps:$4 sm:$0xff]   ;;  %v21238_v0 = vld [vmem:[#allocation2 + $0x1b8] ss:$52 sps:$4 sm:$0xff]  }
 0x276   :  { %10867 = vmatprep.subr.bf16.mxu0 %v21171_v4  ;;  %11211 = vmatprep.subr.bf16.mxu1 %v21174_v6  ;;  %v21243_v4 = vld [vmem:[#allocation2 + $0x21c] ss:$52 sps:$4 sm:$0xff]   ;;  %v21246_v6 = vld [vmem:[#allocation2 + $0x224] ss:$52 sps:$4 sm:$0xff]  }
 0x279   :  { %10868 = vmatpush1.bf16.msra.mxu0 %v21169_v48  ;;  %11212 = vmatpush1.bf16.msra.mxu1 %v21172_v7  ;;  %v21241_v48 = vld [vmem:[#allocation2 + $0x218] ss:$52 sps:$4 sm:$0xff]   ;;  %v21244_v7 = vld [vmem:[#allocation2 + $0x220] ss:$52 sps:$4 sm:$0xff]  }
 0x27a   :  { %10869 = vmatprep.subr.bf16.mxu0 %v21177_v8  ;;  %11213 = vmatprep.subr.bf16.mxu1 %v21180_v9  ;;  %v21249_v8 = vld [vmem:[#allocation2 + $0x284] ss:$52 sps:$4 sm:$0xff]   ;;  %v21252_v9 = vld [vmem:[#allocation2 + $0x28c] ss:$52 sps:$4 sm:$0xff]  }
 0x27d   :  { %10870 = vmatpush1.bf16.msra.mxu0 %v21175_v10  ;;  %11214 = vmatpush1.bf16.msra.mxu1 %v21178_v11  ;;  %v21247_v10 = vld [vmem:[#allocation2 + $0x280] ss:$52 sps:$4 sm:$0xff]   ;;  %v21250_v11 = vld [vmem:[#allocation2 + $0x288] ss:$52 sps:$4 sm:$0xff]  }
 0x27e   :  { %10871 = vmatprep.subr.bf16.mxu0 %v21183_v12  ;;  %11215 = vmatprep.subr.bf16.mxu1 %v21186_v14  ;;  %v21255_v12 = vld [vmem:[#allocation2 + $0x2ec] ss:$52 sps:$4 sm:$0xff]   ;;  %v21258_v14 = vld [vmem:[#allocation2 + $0x2f4] ss:$52 sps:$4 sm:$0xff]  }
 0x281   :  { %10872 = vmatpush1.bf16.msra.mxu0 %v21181_v15  ;;  %11216 = vmatpush1.bf16.msra.mxu1 %v21184_v19  ;;  %v21253_v15 = vld [vmem:[#allocation2 + $0x2e8] ss:$52 sps:$4 sm:$0xff]   ;;  %v21256_v19 = vld [vmem:[#allocation2 + $0x2f0] ss:$52 sps:$4 sm:$0xff]  }
 0x282   :  { %10873 = vmatprep.subr.bf16.mxu0 %v21189_v20  ;;  %11217 = vmatprep.subr.bf16.mxu1 %v21192_v27  ;;  %v21261_v20 = vld [vmem:[#allocation2 + $0x354] ss:$52 sps:$4 sm:$0xff]   ;;  %v21264_v27 = vld [vmem:[#allocation2 + $0x35c] ss:$52 sps:$4 sm:$0xff]  }
 0x285   :  { %10874 = vmatpush1.bf16.msra.mxu0 %v21187_v28  ;;  %11218 = vmatpush1.bf16.msra.mxu1 %v21190_v17  ;;  %v21259_v28 = vld [vmem:[#allocation2 + $0x350] ss:$52 sps:$4 sm:$0xff]   ;;  %v21262_v17 = vld [vmem:[#allocation2 + $0x358] ss:$52 sps:$4 sm:$0xff]  }
 0x286   :  { %10875 = vmatprep.subr.bf16.mxu0 %v21195_v29  ;;  %11219 = vmatprep.subr.bf16.mxu1 %v21198_v2  ;;  %v21267_v29 = vld [vmem:[#allocation2 + $0x3bc] ss:$52 sps:$4 sm:$0xff]   ;;  %v21270_v2 = vld [vmem:[#allocation2 + $0x3c4] ss:$52 sps:$4 sm:$0xff]  }
 0x289   :  { %10876 = vmatpush1.bf16.msra.mxu0 %v21193_v3  ;;  %11220 = vmatpush1.bf16.msra.mxu1 %v21196_v31  ;;  %v21265_v3 = vld [vmem:[#allocation2 + $0x3b8] ss:$52 sps:$4 sm:$0xff]   ;;  %v21268_v31 = vld [vmem:[#allocation2 + $0x3c0] ss:$52 sps:$4 sm:$0xff]  }
 0x28a   :  { %10877 = vmatprep.subr.bf16.mxu0 %v21201_v32  ;;  %11221 = vmatprep.subr.bf16.mxu1 %v21204_v37  ;;  %v21273_v32 = vld [vmem:[#allocation2 + $0x424] ss:$52 sps:$4 sm:$0xff]   ;;  %v21276_v37 = vld [vmem:[#allocation2 + $0x42c] ss:$52 sps:$4 sm:$0xff]  }
 0x28d   :  { %10878 = vmatpush1.bf16.msra.mxu0 %v21199_v38  ;;  %11222 = vmatpush1.bf16.msra.mxu1 %v21202_v39  ;;  %v21271_v38 = vld [vmem:[#allocation2 + $0x420] ss:$52 sps:$4 sm:$0xff]   ;;  %v21274_v39 = vld [vmem:[#allocation2 + $0x428] ss:$52 sps:$4 sm:$0xff]  }
 0x28e   :  { %10879 = vmatprep.subr.bf16.mxu0 %v21207_v40  ;;  %11223 = vmatprep.subr.bf16.mxu1 %v21210_v25  ;;  %v21279_v40 = vld [vmem:[#allocation2 + $0x48c] ss:$52 sps:$4 sm:$0xff]   ;;  %v21282_v25 = vld [vmem:[#allocation2 + $0x494] ss:$52 sps:$4 sm:$0xff]  }
 0x291   :  { %10880 = vmatpush1.bf16.msra.mxu0 %v21205_v26  ;;  %11224 = vmatpush1.bf16.msra.mxu1 %v21208_v42  ;;  %v21277_v26 = vld [vmem:[#allocation2 + $0x488] ss:$52 sps:$4 sm:$0xff]   ;;  %v21280_v42 = vld [vmem:[#allocation2 + $0x490] ss:$52 sps:$4 sm:$0xff]  }
 0x292   :  { %11236 = vmatprep.subr.bf16.mxu0 %v21213_v43  ;;  %11580 = vmatprep.subr.bf16.mxu1 %v21216_v44  ;;  %v21285_v43 = vld [vmem:[#allocation2 + $0x4f4] ss:$52 sps:$4 sm:$0xff]   ;;  %v21288_v44 = vld [vmem:[#allocation2 + $0x4fc] ss:$52 sps:$4 sm:$0xff]  }
 0x294   :  { %10882 = vmatmul.mubr.bf16.vlgmr.msra.gmra.mrb[0].mxu0 %v24065_v45  ;;  %11226 = vmatmul.mubr.bf16.vlgmr.msra.gmra.mrb[0].mxu1 %v24065_v45 }
 0x295   :  { %11237 = vmatpush1.bf16.msra.mxu0 %v21211_v46  ;;  %11581 = vmatpush1.bf16.msra.mxu1 %v21214_v51  ;;  %v21283_v46 = vld [vmem:[#allocation2 + $0x4f0] ss:$52 sps:$4 sm:$0xff]   ;;  %v21286_v51 = vld [vmem:[#allocation2 + $0x4f8] ss:$52 sps:$4 sm:$0xff]  }
 0x296   :  { %11238 = vmatprep.subr.bf16.mxu0 %v21219_v52  ;;  %11582 = vmatprep.subr.bf16.mxu1 %v21222_v53  ;;  %v21291_v52 = vld [vmem:[#allocation2 + $0x55c] ss:$52 sps:$4 sm:$0xff]   ;;  %v21294_v53 = vld [vmem:[#allocation2 + $0x564] ss:$52 sps:$4 sm:$0xff]  }
 0x297   :  { %11268 = vmatprep.mubr.bf16.mxu0 %v23907_v50  ;;  %11612 = vmatprep.mubr.bf16.mxu1 %v23907_v50 }
 0x299   :  { %11239 = vmatpush1.bf16.msra.mxu0 %v21217_v54  ;;  %11583 = vmatpush1.bf16.msra.mxu1 %v21220_v33  ;;  %v21289_v54 = vld [vmem:[#allocation2 + $0x558] ss:$52 sps:$4 sm:$0xff]   ;;  %v21292_v33 = vld [vmem:[#allocation2 + $0x560] ss:$52 sps:$4 sm:$0xff]  }
 0x29a   :  { %11240 = vmatprep.subr.bf16.mxu0 %v21225_v21  ;;  %11584 = vmatprep.subr.bf16.mxu1 %v21228_v22  ;;  %v21297_v21 = vld [vmem:[#allocation2 + $0x5c4] ss:$52 sps:$4 sm:$0xff]   ;;  %v21300_v22 = vld [vmem:[#allocation2 + $0x5cc] ss:$52 sps:$4 sm:$0xff]  }
 0x29d   :  { %11241 = vmatpush1.bf16.msra.mxu0 %v21223_v36  ;;  %11585 = vmatpush1.bf16.msra.mxu1 %v21226_v56  ;;  %v21295_v36 = vld [vmem:[#allocation2 + $0x5c0] ss:$52 sps:$4 sm:$0xff]   ;;  %v21298_v56 = vld [vmem:[#allocation2 + $0x5c8] ss:$52 sps:$4 sm:$0xff]  }
 0x29e   :  { %11242 = vmatprep.subr.bf16.mxu0 %v21231_v57  ;;  %11586 = vmatprep.subr.bf16.mxu1 %v21234_v58  ;;  %v21303_v57 = vld [vmem:[#allocation2 + $0x62c] ss:$52 sps:$4 sm:$0xff]   ;;  %v21306_v58 = vld [vmem:[#allocation2 + $0x634] ss:$52 sps:$4 sm:$0xff]  }
 0x2a1   :  { %11243 = vmatpush1.bf16.msra.mxu0 %v21229_v59  ;;  %11587 = vmatpush1.bf16.msra.mxu1 %v21232_v60  ;;  %v21301_v59 = vld [vmem:[#allocation2 + $0x628] ss:$52 sps:$4 sm:$0xff]   ;;  %v21304_v60 = vld [vmem:[#allocation2 + $0x630] ss:$52 sps:$4 sm:$0xff]  }
 0x2a2   :  { %11244 = vmatprep.subr.bf16.mxu0 %v21237_v61  ;;  %11588 = vmatprep.subr.bf16.mxu1 %v21240_v62  ;;  %v21309_v61 = vld [vmem:[#allocation2 + $0x694] ss:$52 sps:$4 sm:$0xff]   ;;  %v21312_v62 = vld [vmem:[#allocation2 + $0x69c] ss:$52 sps:$4 sm:$0xff]  }
 0x2a5   :  { %11245 = vmatpush1.bf16.msra.mxu0 %v21235_v63  ;;  %11589 = vmatpush1.bf16.msra.mxu1 %v21238_v0  ;;  %v21307_v63 = vld [vmem:[#allocation2 + $0x690] ss:$52 sps:$4 sm:$0xff]   ;;  %v21310_v0 = vld [vmem:[#allocation2 + $0x698] ss:$52 sps:$4 sm:$0xff]  }
 0x2a6   :  { %11246 = vmatprep.subr.bf16.mxu0 %v21243_v4  ;;  %11590 = vmatprep.subr.bf16.mxu1 %v21246_v6  ;;  %v21315_v4 = vld [vmem:[#allocation2 + $0x6fc] ss:$52 sps:$4 sm:$0xff]   ;;  %v21318_v6 = vld [vmem:[#allocation2 + $0x704] ss:$52 sps:$4 sm:$0xff]  }
 0x2a9   :  { %11247 = vmatpush1.bf16.msra.mxu0 %v21241_v48  ;;  %11591 = vmatpush1.bf16.msra.mxu1 %v21244_v7  ;;  %v21313_v48 = vld [vmem:[#allocation2 + $0x6f8] ss:$52 sps:$4 sm:$0xff]   ;;  %v21316_v7 = vld [vmem:[#allocation2 + $0x700] ss:$52 sps:$4 sm:$0xff]  }
 0x2aa   :  { %11248 = vmatprep.subr.bf16.mxu0 %v21249_v8  ;;  %11592 = vmatprep.subr.bf16.mxu1 %v21252_v9  ;;  %v21321_v8 = vld [vmem:[#allocation2 + $0x764] ss:$52 sps:$4 sm:$0xff]   ;;  %v21324_v9 = vld [vmem:[#allocation2 + $0x76c] ss:$52 sps:$4 sm:$0xff]  }
 0x2ad   :  { %11249 = vmatpush1.bf16.msra.mxu0 %v21247_v10  ;;  %11593 = vmatpush1.bf16.msra.mxu1 %v21250_v11  ;;  %v21319_v10 = vld [vmem:[#allocation2 + $0x760] ss:$52 sps:$4 sm:$0xff]   ;;  %v21322_v11 = vld [vmem:[#allocation2 + $0x768] ss:$52 sps:$4 sm:$0xff]  }
 0x2ae   :  { %11250 = vmatprep.subr.bf16.mxu0 %v21255_v12  ;;  %11594 = vmatprep.subr.bf16.mxu1 %v21258_v14  ;;  %v21327_v12 = vld [vmem:[#allocation2 + $0x7cc] ss:$52 sps:$4 sm:$0xff]   ;;  %v21330_v14 = vld [vmem:[#allocation2 + $0x7d4] ss:$52 sps:$4 sm:$0xff]  }
 0x2b1   :  { %11251 = vmatpush1.bf16.msra.mxu0 %v21253_v15  ;;  %11595 = vmatpush1.bf16.msra.mxu1 %v21256_v19  ;;  %v21325_v15 = vld [vmem:[#allocation2 + $0x7c8] ss:$52 sps:$4 sm:$0xff]   ;;  %v21328_v19 = vld [vmem:[#allocation2 + $0x7d0] ss:$52 sps:$4 sm:$0xff]  }
 0x2b2   :  { %11252 = vmatprep.subr.bf16.mxu0 %v21261_v20  ;;  %11596 = vmatprep.subr.bf16.mxu1 %v21264_v27  ;;  %v21333_v20 = vld [vmem:[#allocation2 + $0x834] ss:$52 sps:$4 sm:$0xff]   ;;  %v21336_v27 = vld [vmem:[#allocation2 + $0x83c] ss:$52 sps:$4 sm:$0xff]  }
 0x2b5   :  { %11253 = vmatpush1.bf16.msra.mxu0 %v21259_v28  ;;  %11597 = vmatpush1.bf16.msra.mxu1 %v21262_v17  ;;  %v21331_v28 = vld [vmem:[#allocation2 + $0x830] ss:$52 sps:$4 sm:$0xff]   ;;  %v21334_v17 = vld [vmem:[#allocation2 + $0x838] ss:$52 sps:$4 sm:$0xff]  }
 0x2b6   :  { %11254 = vmatprep.subr.bf16.mxu0 %v21267_v29  ;;  %11598 = vmatprep.subr.bf16.mxu1 %v21270_v2  ;;  %v21339_v29 = vld [vmem:[#allocation2 + $0x89c] ss:$52 sps:$4 sm:$0xff]   ;;  %v21342_v2 = vld [vmem:[#allocation2 + $0x8a4] ss:$52 sps:$4 sm:$0xff]  }
 0x2b9   :  { %11255 = vmatpush1.bf16.msra.mxu0 %v21265_v3  ;;  %11599 = vmatpush1.bf16.msra.mxu1 %v21268_v31  ;;  %v21337_v3 = vld [vmem:[#allocation2 + $0x898] ss:$52 sps:$4 sm:$0xff]   ;;  %v21340_v31 = vld [vmem:[#allocation2 + $0x8a0] ss:$52 sps:$4 sm:$0xff]  }
 0x2ba   :  { %11256 = vmatprep.subr.bf16.mxu0 %v21273_v32  ;;  %11600 = vmatprep.subr.bf16.mxu1 %v21276_v37  ;;  %v21345_v32 = vld [vmem:[#allocation2 + $0x904] ss:$52 sps:$4 sm:$0xff]   ;;  %v21348_v37 = vld [vmem:[#allocation2 + $0x90c] ss:$52 sps:$4 sm:$0xff]  }
 0x2bd   :  { %11257 = vmatpush1.bf16.msra.mxu0 %v21271_v38  ;;  %11601 = vmatpush1.bf16.msra.mxu1 %v21274_v39  ;;  %v21343_v38 = vld [vmem:[#allocation2 + $0x900] ss:$52 sps:$4 sm:$0xff]   ;;  %v21346_v39 = vld [vmem:[#allocation2 + $0x908] ss:$52 sps:$4 sm:$0xff]  }
 0x2be   :  { %11258 = vmatprep.subr.bf16.mxu0 %v21279_v40  ;;  %11602 = vmatprep.subr.bf16.mxu1 %v21282_v25  ;;  %v21351_v40 = vld [vmem:[#allocation2 + $0x96c] ss:$52 sps:$4 sm:$0xff]   ;;  %v21354_v25 = vld [vmem:[#allocation2 + $0x974] ss:$52 sps:$4 sm:$0xff]  }
 0x2c1   :  { %11259 = vmatpush1.bf16.msra.mxu0 %v21277_v26  ;;  %11603 = vmatpush1.bf16.msra.mxu1 %v21280_v42  ;;  %v21349_v26 = vld [vmem:[#allocation2 + $0x968] ss:$52 sps:$4 sm:$0xff]   ;;  %v21352_v42 = vld [vmem:[#allocation2 + $0x970] ss:$52 sps:$4 sm:$0xff]  }
 0x2c2   :  { %11260 = vmatprep.subr.bf16.mxu0 %v21285_v43  ;;  %11604 = vmatprep.subr.bf16.mxu1 %v21288_v44  ;;  %v21357_v43 = vld [vmem:[#allocation2 + $0x9d4] ss:$52 sps:$4 sm:$0xff]   ;;  %v21360_v44 = vld [vmem:[#allocation2 + $0x9dc] ss:$52 sps:$4 sm:$0xff]  }
 0x2c5   :  { %11261 = vmatpush1.bf16.msra.mxu0 %v21283_v46  ;;  %11605 = vmatpush1.bf16.msra.mxu1 %v21286_v51  ;;  %v21355_v46 = vld [vmem:[#allocation2 + $0x9d0] ss:$52 sps:$4 sm:$0xff]   ;;  %v21358_v51 = vld [vmem:[#allocation2 + $0x9d8] ss:$52 sps:$4 sm:$0xff]  }
 0x2c6   :  { %11262 = vmatprep.subr.bf16.mxu0 %v21291_v52  ;;  %11606 = vmatprep.subr.bf16.mxu1 %v21294_v53  ;;  %v21363_v52 = vld [vmem:[#allocation2 + $0xa3c] ss:$52 sps:$4 sm:$0xff]   ;;  %v21366_v53 = vld [vmem:[#allocation2 + $0xa44] ss:$52 sps:$4 sm:$0xff]  }
 0x2c9   :  { %11263 = vmatpush1.bf16.msra.mxu0 %v21289_v54  ;;  %11607 = vmatpush1.bf16.msra.mxu1 %v21292_v33  ;;  %v21361_v54 = vld [vmem:[#allocation2 + $0xa38] ss:$52 sps:$4 sm:$0xff]   ;;  %v21364_v33 = vld [vmem:[#allocation2 + $0xa40] ss:$52 sps:$4 sm:$0xff]  }
 0x2ca   :  { %11264 = vmatprep.subr.bf16.mxu0 %v21297_v21  ;;  %11608 = vmatprep.subr.bf16.mxu1 %v21300_v22  ;;  %v21369_v21 = vld [vmem:[#allocation2 + $0xaa4] ss:$52 sps:$4 sm:$0xff]   ;;  %v21372_v22 = vld [vmem:[#allocation2 + $0xaac] ss:$52 sps:$4 sm:$0xff]  }
 0x2cd   :  { %11265 = vmatpush1.bf16.msra.mxu0 %v21295_v36  ;;  %11609 = vmatpush1.bf16.msra.mxu1 %v21298_v56  ;;  %v21367_v36 = vld [vmem:[#allocation2 + $0xaa0] ss:$52 sps:$4 sm:$0xff]   ;;  %v21370_v56 = vld [vmem:[#allocation2 + $0xaa8] ss:$52 sps:$4 sm:$0xff]  }
 0x2ce   :  { %11266 = vmatprep.subr.bf16.mxu0 %v21303_v57  ;;  %11610 = vmatprep.subr.bf16.mxu1 %v21306_v58  ;;  %v21375_v57 = vld [vmem:[#allocation2 + $0xb0c] ss:$52 sps:$4 sm:$0xff]   ;;  %v21378_v58 = vld [vmem:[#allocation2 + $0xb14] ss:$52 sps:$4 sm:$0xff]  }
 0x2d1   :  { %11267 = vmatpush1.bf16.msra.mxu0 %v21301_v59  ;;  %11611 = vmatpush1.bf16.msra.mxu1 %v21304_v60  ;;  %v21373_v59 = vld [vmem:[#allocation2 + $0xb08] ss:$52 sps:$4 sm:$0xff]   ;;  %v21376_v60 = vld [vmem:[#allocation2 + $0xb10] ss:$52 sps:$4 sm:$0xff]  }
 0x2d2   :  { %11279 = vmatprep.subr.bf16.mxu0 %v21309_v61  ;;  %11623 = vmatprep.subr.bf16.mxu1 %v21312_v62  ;;  %v21381_v61 = vld [vmem:[#allocation2 + $0xb74] ss:$52 sps:$4 sm:$0xff]   ;;  %v21384_v62 = vld [vmem:[#allocation2 + $0xb7c] ss:$52 sps:$4 sm:$0xff]  }
 0x2d4   :  { %11269 = vmatmul.mubr.bf16.vlgmr.msra.gmra.mrb[4].mxu0 %v23911_v5  ;;  %11613 = vmatmul.mubr.bf16.vlgmr.msra.gmra.mrb[4].mxu1 %v23911_v5 }
 0x2d5   :  { %11280 = vmatpush1.bf16.msra.mxu0 %v21307_v63  ;;  %11624 = vmatpush1.bf16.msra.mxu1 %v21310_v0  ;;  %v21379_v63 = vld [vmem:[#allocation2 + $0xb70] ss:$52 sps:$4 sm:$0xff]   ;;  %v21382_v0 = vld [vmem:[#allocation2 + $0xb78] ss:$52 sps:$4 sm:$0xff]  }
 0x2d6   :  { %11281 = vmatprep.subr.bf16.mxu0 %v21315_v4  ;;  %11625 = vmatprep.subr.bf16.mxu1 %v21318_v6  ;;  %v21387_v4 = vld [vmem:[#allocation2 + $0xbdc] ss:$52 sps:$4 sm:$0xff]   ;;  %v21390_v6 = vld [vmem:[#allocation2 + $0xbe4] ss:$52 sps:$4 sm:$0xff]  }
 0x2d7   :  { %11311 = vmatprep.mubr.bf16.mxu0 %v23927_v34  ;;  %11655 = vmatprep.mubr.bf16.mxu1 %v23927_v34 }
 0x2d9   :  { %11282 = vmatpush1.bf16.msra.mxu0 %v21313_v48  ;;  %11626 = vmatpush1.bf16.msra.mxu1 %v21316_v7  ;;  %v21385_v48 = vld [vmem:[#allocation2 + $0xbd8] ss:$52 sps:$4 sm:$0xff]   ;;  %v21388_v7 = vld [vmem:[#allocation2 + $0xbe0] ss:$52 sps:$4 sm:$0xff]  }
 0x2da   :  { %11283 = vmatprep.subr.bf16.mxu0 %v21321_v8  ;;  %11627 = vmatprep.subr.bf16.mxu1 %v21324_v9  ;;  %v21393_v8 = vld [vmem:[#allocation2 + $0xc44] ss:$52 sps:$4 sm:$0xff]   ;;  %v21396_v9 = vld [vmem:[#allocation2 + $0xc4c] ss:$52 sps:$4 sm:$0xff]  }
 0x2dd   :  { %11284 = vmatpush1.bf16.msra.mxu0 %v21319_v10  ;;  %11628 = vmatpush1.bf16.msra.mxu1 %v21322_v11  ;;  %v21391_v10 = vld [vmem:[#allocation2 + $0xc40] ss:$52 sps:$4 sm:$0xff]   ;;  %v21394_v11 = vld [vmem:[#allocation2 + $0xc48] ss:$52 sps:$4 sm:$0xff]  }
 0x2de   :  { %11285 = vmatprep.subr.bf16.mxu0 %v21327_v12  ;;  %11629 = vmatprep.subr.bf16.mxu1 %v21330_v14  ;;  %v21399_v12 = vld [vmem:[#allocation2 + $0xcac] ss:$52 sps:$4 sm:$0xff]   ;;  %v21402_v14 = vld [vmem:[#allocation2 + $0xcb4] ss:$52 sps:$4 sm:$0xff]  }
 0x2e1   :  { %11286 = vmatpush1.bf16.msra.mxu0 %v21325_v15  ;;  %11630 = vmatpush1.bf16.msra.mxu1 %v21328_v19  ;;  %v21397_v15 = vld [vmem:[#allocation2 + $0xca8] ss:$52 sps:$4 sm:$0xff]   ;;  %v21400_v19 = vld [vmem:[#allocation2 + $0xcb0] ss:$52 sps:$4 sm:$0xff]  }
 0x2e2   :  { %11287 = vmatprep.subr.bf16.mxu0 %v21333_v20  ;;  %11631 = vmatprep.subr.bf16.mxu1 %v21336_v27  ;;  %v21405_v20 = vld [vmem:[#allocation2 + $0xd14] ss:$52 sps:$4 sm:$0xff]   ;;  %v21408_v27 = vld [vmem:[#allocation2 + $0xd1c] ss:$52 sps:$4 sm:$0xff]  }
 0x2e5   :  { %11288 = vmatpush1.bf16.msra.mxu0 %v21331_v28  ;;  %11632 = vmatpush1.bf16.msra.mxu1 %v21334_v17  ;;  %v21403_v28 = vld [vmem:[#allocation2 + $0xd10] ss:$52 sps:$4 sm:$0xff]   ;;  %v21406_v17 = vld [vmem:[#allocation2 + $0xd18] ss:$52 sps:$4 sm:$0xff]  }
 0x2e6   :  { %11289 = vmatprep.subr.bf16.mxu0 %v21339_v29  ;;  %11633 = vmatprep.subr.bf16.mxu1 %v21342_v2  ;;  %v21411_v29 = vld [vmem:[#allocation2 + $0xd7c] ss:$52 sps:$4 sm:$0xff]   ;;  %v21414_v2 = vld [vmem:[#allocation2 + $0xd84] ss:$52 sps:$4 sm:$0xff]  }
 0x2e9   :  { %11290 = vmatpush1.bf16.msra.mxu0 %v21337_v3  ;;  %11634 = vmatpush1.bf16.msra.mxu1 %v21340_v31  ;;  %v21409_v3 = vld [vmem:[#allocation2 + $0xd78] ss:$52 sps:$4 sm:$0xff]   ;;  %v21412_v31 = vld [vmem:[#allocation2 + $0xd80] ss:$52 sps:$4 sm:$0xff]  }
 0x2ea   :  { %11291 = vmatprep.subr.bf16.mxu0 %v21345_v32  ;;  %11635 = vmatprep.subr.bf16.mxu1 %v21348_v37  ;;  %v21417_v32 = vld [vmem:[#allocation2 + $0xde4] ss:$52 sps:$4 sm:$0xff]   ;;  %v21420_v37 = vld [vmem:[#allocation2 + $0xdec] ss:$52 sps:$4 sm:$0xff]  }
 0x2ed   :  { %11292 = vmatpush1.bf16.msra.mxu0 %v21343_v38  ;;  %11636 = vmatpush1.bf16.msra.mxu1 %v21346_v39  ;;  %v21415_v38 = vld [vmem:[#allocation2 + $0xde0] ss:$52 sps:$4 sm:$0xff]   ;;  %v21418_v39 = vld [vmem:[#allocation2 + $0xde8] ss:$52 sps:$4 sm:$0xff]  }
 0x2ee   :  { %11293 = vmatprep.subr.bf16.mxu0 %v21351_v40  ;;  %11637 = vmatprep.subr.bf16.mxu1 %v21354_v25  ;;  %v21423_v40 = vld [vmem:[#allocation2 + $0xe4c] ss:$52 sps:$4 sm:$0xff]   ;;  %v21426_v25 = vld [vmem:[#allocation2 + $0xe54] ss:$52 sps:$4 sm:$0xff]  }
 0x2f1   :  { %11294 = vmatpush1.bf16.msra.mxu0 %v21349_v26  ;;  %11638 = vmatpush1.bf16.msra.mxu1 %v21352_v42  ;;  %v21421_v26 = vld [vmem:[#allocation2 + $0xe48] ss:$52 sps:$4 sm:$0xff]   ;;  %v21424_v42 = vld [vmem:[#allocation2 + $0xe50] ss:$52 sps:$4 sm:$0xff]  }
 0x2f2   :  { %11295 = vmatprep.subr.bf16.mxu0 %v21357_v43  ;;  %11639 = vmatprep.subr.bf16.mxu1 %v21360_v44  ;;  %v21429_v43 = vld [vmem:[#allocation2 + $0xeb4] ss:$52 sps:$4 sm:$0xff]   ;;  %v21432_v44 = vld [vmem:[#allocation2 + $0xebc] ss:$52 sps:$4 sm:$0xff]  }
 0x2f5   :  { %11296 = vmatpush1.bf16.msra.mxu0 %v21355_v46  ;;  %11640 = vmatpush1.bf16.msra.mxu1 %v21358_v51  ;;  %v21427_v46 = vld [vmem:[#allocation2 + $0xeb0] ss:$52 sps:$4 sm:$0xff]   ;;  %v21430_v51 = vld [vmem:[#allocation2 + $0xeb8] ss:$52 sps:$4 sm:$0xff]  }
 0x2f6   :  { %11297 = vmatprep.subr.bf16.mxu0 %v21363_v52  ;;  %11641 = vmatprep.subr.bf16.mxu1 %v21366_v53  ;;  %v21435_v52 = vld [vmem:[#allocation2 + $0xf1c] ss:$52 sps:$4 sm:$0xff]   ;;  %v21438_v53 = vld [vmem:[#allocation2 + $0xf24] ss:$52 sps:$4 sm:$0xff]  }
 0x2f9   :  { %11298 = vmatpush1.bf16.msra.mxu0 %v21361_v54  ;;  %11642 = vmatpush1.bf16.msra.mxu1 %v21364_v33  ;;  %v21433_v54 = vld [vmem:[#allocation2 + $0xf18] ss:$52 sps:$4 sm:$0xff]   ;;  %v21436_v33 = vld [vmem:[#allocation2 + $0xf20] ss:$52 sps:$4 sm:$0xff]  }
 0x2fa   :  { %11299 = vmatprep.subr.bf16.mxu0 %v21369_v21  ;;  %11643 = vmatprep.subr.bf16.mxu1 %v21372_v22  ;;  %v21441_v21 = vld [vmem:[#allocation2 + $0xf84] ss:$52 sps:$4 sm:$0xff]   ;;  %v21444_v22 = vld [vmem:[#allocation2 + $0xf8c] ss:$52 sps:$4 sm:$0xff]  }
 0x2fd   :  { %11300 = vmatpush1.bf16.msra.mxu0 %v21367_v36  ;;  %11644 = vmatpush1.bf16.msra.mxu1 %v21370_v56  ;;  %v21439_v36 = vld [vmem:[#allocation2 + $0xf80] ss:$52 sps:$4 sm:$0xff]   ;;  %v21442_v56 = vld [vmem:[#allocation2 + $0xf88] ss:$52 sps:$4 sm:$0xff]  }
 0x2fe   :  { %11301 = vmatprep.subr.bf16.mxu0 %v21375_v57  ;;  %11645 = vmatprep.subr.bf16.mxu1 %v21378_v58  ;;  %v21447_v57 = vld [vmem:[#allocation2 + $0xfec] ss:$52 sps:$4 sm:$0xff]   ;;  %v21450_v58 = vld [vmem:[#allocation2 + $0xff4] ss:$52 sps:$4 sm:$0xff]  }
 0x301   :  { %11302 = vmatpush1.bf16.msra.mxu0 %v21373_v59  ;;  %11646 = vmatpush1.bf16.msra.mxu1 %v21376_v60  ;;  %v21445_v59 = vld [vmem:[#allocation2 + $0xfe8] ss:$52 sps:$4 sm:$0xff]   ;;  %v21448_v60 = vld [vmem:[#allocation2 + $0xff0] ss:$52 sps:$4 sm:$0xff]  }
 0x302   :  { %11303 = vmatprep.subr.bf16.mxu0 %v21381_v61  ;;  %11647 = vmatprep.subr.bf16.mxu1 %v21384_v62  ;;  %v21453_v61 = vld [vmem:[#allocation2 + $0x1054] ss:$52 sps:$4 sm:$0xff]   ;;  %v21456_v62 = vld [vmem:[#allocation2 + $0x105c] ss:$52 sps:$4 sm:$0xff]  }
 0x305   :  { %11304 = vmatpush1.bf16.msra.mxu0 %v21379_v63  ;;  %11648 = vmatpush1.bf16.msra.mxu1 %v21382_v0  ;;  %v21451_v63 = vld [vmem:[#allocation2 + $0x1050] ss:$52 sps:$4 sm:$0xff]   ;;  %v21454_v0 = vld [vmem:[#allocation2 + $0x1058] ss:$52 sps:$4 sm:$0xff]  }
 0x306   :  { %11305 = vmatprep.subr.bf16.mxu0 %v21387_v4  ;;  %11649 = vmatprep.subr.bf16.mxu1 %v21390_v6  ;;  %v21459_v4 = vld [vmem:[#allocation2 + $0x10bc] ss:$52 sps:$4 sm:$0xff]   ;;  %v21462_v6 = vld [vmem:[#allocation2 + $0x10c4] ss:$52 sps:$4 sm:$0xff]  }
 0x309   :  { %11306 = vmatpush1.bf16.msra.mxu0 %v21385_v48  ;;  %11650 = vmatpush1.bf16.msra.mxu1 %v21388_v7  ;;  %v21457_v48 = vld [vmem:[#allocation2 + $0x10b8] ss:$52 sps:$4 sm:$0xff]   ;;  %v21460_v7 = vld [vmem:[#allocation2 + $0x10c0] ss:$52 sps:$4 sm:$0xff]  }
 0x30a   :  { %11307 = vmatprep.subr.bf16.mxu0 %v21393_v8  ;;  %11651 = vmatprep.subr.bf16.mxu1 %v21396_v9  ;;  %v21465_v8 = vld [vmem:[#allocation2 + $0x1124] ss:$52 sps:$4 sm:$0xff]   ;;  %v21468_v9 = vld [vmem:[#allocation2 + $0x112c] ss:$52 sps:$4 sm:$0xff]  }
 0x30d   :  { %11308 = vmatpush1.bf16.msra.mxu0 %v21391_v10  ;;  %11652 = vmatpush1.bf16.msra.mxu1 %v21394_v11  ;;  %v21463_v10 = vld [vmem:[#allocation2 + $0x1120] ss:$52 sps:$4 sm:$0xff]   ;;  %v21466_v11 = vld [vmem:[#allocation2 + $0x1128] ss:$52 sps:$4 sm:$0xff]  }
 0x30e   :  { %11309 = vmatprep.subr.bf16.mxu0 %v21399_v12  ;;  %11653 = vmatprep.subr.bf16.mxu1 %v21402_v14  ;;  %v21471_v12 = vld [vmem:[#allocation2 + $0x118c] ss:$52 sps:$4 sm:$0xff]   ;;  %v21474_v14 = vld [vmem:[#allocation2 + $0x1194] ss:$52 sps:$4 sm:$0xff]  }
 0x311   :  { %11310 = vmatpush1.bf16.msra.mxu0 %v21397_v15  ;;  %11654 = vmatpush1.bf16.msra.mxu1 %v21400_v19  ;;  %v21469_v15 = vld [vmem:[#allocation2 + $0x1188] ss:$52 sps:$4 sm:$0xff]   ;;  %v21472_v19 = vld [vmem:[#allocation2 + $0x1190] ss:$52 sps:$4 sm:$0xff]  }
 0x312   :  { %11322 = vmatprep.subr.bf16.mxu0 %v21405_v20  ;;  %11666 = vmatprep.subr.bf16.mxu1 %v21408_v27  ;;  %v21477_v20 = vld [vmem:[#allocation2 + $0x11f4] ss:$52 sps:$4 sm:$0xff]   ;;  %v21480_v27 = vld [vmem:[#allocation2 + $0x11fc] ss:$52 sps:$4 sm:$0xff]  }
 0x314   :  { %11312 = vmatmul.mubr.bf16.vlgmr.msra.gmra.mrb[4].mxu0 %v23933_v13  ;;  %11656 = vmatmul.mubr.bf16.vlgmr.msra.gmra.mrb[4].mxu1 %v23933_v13 }
 0x315   :  { %11323 = vmatpush1.bf16.msra.mxu0 %v21403_v28  ;;  %11667 = vmatpush1.bf16.msra.mxu1 %v21406_v17  ;;  %v21475_v28 = vld [vmem:[#allocation2 + $0x11f0] ss:$52 sps:$4 sm:$0xff]   ;;  %v21478_v17 = vld [vmem:[#allocation2 + $0x11f8] ss:$52 sps:$4 sm:$0xff]  }
 0x316   :  { %11324 = vmatprep.subr.bf16.mxu0 %v21411_v29  ;;  %11668 = vmatprep.subr.bf16.mxu1 %v21414_v2  ;;  %v21483_v29 = vld [vmem:[#allocation2 + $0x125c] ss:$52 sps:$4 sm:$0xff]   ;;  %v21486_v2 = vld [vmem:[#allocation2 + $0x1264] ss:$52 sps:$4 sm:$0xff]  }
 0x317   :  { %11354 = vmatprep.mubr.bf16.mxu0 %v23947_v18  ;;  %11698 = vmatprep.mubr.bf16.mxu1 %v23947_v18 }
 0x319   :  { %11325 = vmatpush1.bf16.msra.mxu0 %v21409_v3  ;;  %11669 = vmatpush1.bf16.msra.mxu1 %v21412_v31  ;;  %v21481_v3 = vld [vmem:[#allocation2 + $0x1258] ss:$52 sps:$4 sm:$0xff]   ;;  %v21484_v31 = vld [vmem:[#allocation2 + $0x1260] ss:$52 sps:$4 sm:$0xff]  }
 0x31a   :  { %11326 = vmatprep.subr.bf16.mxu0 %v21417_v32  ;;  %11670 = vmatprep.subr.bf16.mxu1 %v21420_v37  ;;  %v21489_v32 = vld [vmem:[#allocation2 + $0x12c4] ss:$52 sps:$4 sm:$0xff]   ;;  %v21492_v37 = vld [vmem:[#allocation2 + $0x12cc] ss:$52 sps:$4 sm:$0xff]  }
 0x31d   :  { %11327 = vmatpush1.bf16.msra.mxu0 %v21415_v38  ;;  %11671 = vmatpush1.bf16.msra.mxu1 %v21418_v39  ;;  %v21487_v38 = vld [vmem:[#allocation2 + $0x12c0] ss:$52 sps:$4 sm:$0xff]   ;;  %v21490_v39 = vld [vmem:[#allocation2 + $0x12c8] ss:$52 sps:$4 sm:$0xff]  }
 0x31e   :  { %11328 = vmatprep.subr.bf16.mxu0 %v21423_v40  ;;  %11672 = vmatprep.subr.bf16.mxu1 %v21426_v25  ;;  %v21495_v40 = vld [vmem:[#allocation2 + $0x132c] ss:$52 sps:$4 sm:$0xff]   ;;  %v21498_v25 = vld [vmem:[#allocation2 + $0x1334] ss:$52 sps:$4 sm:$0xff]  }
 0x321   :  { %11329 = vmatpush1.bf16.msra.mxu0 %v21421_v26  ;;  %11673 = vmatpush1.bf16.msra.mxu1 %v21424_v42  ;;  %v21493_v26 = vld [vmem:[#allocation2 + $0x1328] ss:$52 sps:$4 sm:$0xff]   ;;  %v21496_v42 = vld [vmem:[#allocation2 + $0x1330] ss:$52 sps:$4 sm:$0xff]  }
 0x322   :  { %11330 = vmatprep.subr.bf16.mxu0 %v21429_v43  ;;  %11674 = vmatprep.subr.bf16.mxu1 %v21432_v44  ;;  %v21501_v43 = vld [vmem:[#allocation2 + $0x1394] ss:$52 sps:$4 sm:$0xff]   ;;  %v21504_v44 = vld [vmem:[#allocation2 + $0x139c] ss:$52 sps:$4 sm:$0xff]  }
 0x325   :  { %11331 = vmatpush1.bf16.msra.mxu0 %v21427_v46  ;;  %11675 = vmatpush1.bf16.msra.mxu1 %v21430_v51  ;;  %v21499_v46 = vld [vmem:[#allocation2 + $0x1390] ss:$52 sps:$4 sm:$0xff]   ;;  %v21502_v51 = vld [vmem:[#allocation2 + $0x1398] ss:$52 sps:$4 sm:$0xff]  }
 0x326   :  { %11332 = vmatprep.subr.bf16.mxu0 %v21435_v52  ;;  %11676 = vmatprep.subr.bf16.mxu1 %v21438_v53  ;;  %v21507_v52 = vld [vmem:[#allocation2 + $0x13fc] ss:$52 sps:$4 sm:$0xff]   ;;  %v21510_v53 = vld [vmem:[#allocation2 + $0x1404] ss:$52 sps:$4 sm:$0xff]  }
 0x329   :  { %11333 = vmatpush1.bf16.msra.mxu0 %v21433_v54  ;;  %11677 = vmatpush1.bf16.msra.mxu1 %v21436_v33  ;;  %v21505_v54 = vld [vmem:[#allocation2 + $0x13f8] ss:$52 sps:$4 sm:$0xff]   ;;  %v21508_v33 = vld [vmem:[#allocation2 + $0x1400] ss:$52 sps:$4 sm:$0xff]  }
 0x32a   :  { %11334 = vmatprep.subr.bf16.mxu0 %v21441_v21  ;;  %11678 = vmatprep.subr.bf16.mxu1 %v21444_v22  ;;  %v21513_v21 = vld [vmem:[#allocation2 + $0x1464] ss:$52 sps:$4 sm:$0xff]   ;;  %v21516_v22 = vld [vmem:[#allocation2 + $0x146c] ss:$52 sps:$4 sm:$0xff]  }
 0x32d   :  { %11335 = vmatpush1.bf16.msra.mxu0 %v21439_v36  ;;  %11679 = vmatpush1.bf16.msra.mxu1 %v21442_v56  ;;  %v1955_v36 = vlaneseq  ;;  %v21511_v56 = vld [vmem:[#allocation2 + $0x1460] ss:$52 sps:$4 sm:$0xff]  }
 0x32e   :  { %11336 = vmatprep.subr.bf16.mxu0 %v21447_v57  ;;  %11680 = vmatprep.subr.bf16.mxu1 %v21450_v58  ;;  %v21514_v57 = vld [vmem:[#allocation2 + $0x1468] ss:$52 sps:$4 sm:$0xff]   ;;  %v21519_v58 = vld [vmem:[#allocation2 + $0x14cc] ss:$52 sps:$4 sm:$0xff]  }
 0x331   :  { %11337 = vmatpush1.bf16.msra.mxu0 %v21445_v59  ;;  %11681 = vmatpush1.bf16.msra.mxu1 %v21448_v60  ;;  %v21522_v59 = vld [vmem:[#allocation2 + $0x14d4] ss:$52 sps:$4 sm:$0xff]   ;;  %v24083_v60 = vshrl.u32 %v1955_v36, 7 }
 0x332   :  { %11338 = vmatprep.subr.bf16.mxu0 %v21453_v61  ;;  %11682 = vmatprep.subr.bf16.mxu1 %v21456_v62  ;;  %v21517_v61 = vld [vmem:[#allocation2 + $0x14c8] ss:$52 sps:$4 sm:$0xff]   ;;  %v21520_v62 = vld [vmem:[#allocation2 + $0x14d0] ss:$52 sps:$4 sm:$0xff]  }
 0x333   :  { %v21541_v36 = vld [vmem:[#allocation2 + $0x1668] ss:$52 sps:$4 sm:$0xff]  }
 0x335   :  { %11339 = vmatpush1.bf16.msra.mxu0 %v21451_v63  ;;  %11683 = vmatpush1.bf16.msra.mxu1 %v21454_v0  ;;  %v21525_v63 = vld [vmem:[#allocation2 + $0x1534] ss:$52 sps:$4 sm:$0xff]   ;;  %v21528_v0 = vld [vmem:[#allocation2 + $0x153c] ss:$52 sps:$4 sm:$0xff]  }
 0x336   :  { %11340 = vmatprep.subr.bf16.mxu0 %v21459_v4  ;;  %11684 = vmatprep.subr.bf16.mxu1 %v21462_v6  ;;  %v21523_v4 = vld [vmem:[#allocation2 + $0x1530] ss:$52 sps:$4 sm:$0xff]   ;;  %v24086_v6 = vsub.s32 0, %v24083_v60 }
 0x339   :  { %11341 = vmatpush1.bf16.msra.mxu0 %v21457_v48  ;;  %11685 = vmatpush1.bf16.msra.mxu1 %v21460_v7  ;;  %v24089_v48 = vsub.s32 2, %v24083_v60  ;;  %v21526_v7 = vld [vmem:[#allocation2 + $0x1538] ss:$52 sps:$4 sm:$0xff]  }
 0x33a   :  { %11342 = vmatprep.subr.bf16.mxu0 %v21465_v8  ;;  %11686 = vmatprep.subr.bf16.mxu1 %v21468_v9  ;;  %v1951_v8 = vld [vmem:[#allocation4] sm:$0xff]  ;;  %v24092_v9 = vsub.s32 1, %v24083_v60 }
 0x33d   :  { %11343 = vmatpush1.bf16.msra.mxu0 %v21463_v10  ;;  %11687 = vmatpush1.bf16.msra.mxu1 %v21466_v11  ;;  %v24095_v10 = vsub.s32 3, %v24083_v60  ;;  %v21531_v11 = vld [vmem:[#allocation2 + $0x159c] ss:$52 sps:$4 sm:$0xff]  }
 0x33e   :  { %11344 = vmatprep.subr.bf16.mxu0 %v21471_v12  ;;  %11688 = vmatprep.subr.bf16.mxu1 %v21474_v14  ;;  %v21534_v12 = vld [vmem:[#allocation2 + $0x15a4] ss:$52 sps:$4 sm:$0xff]   ;;  %v1958_v14 = vrot.slane %v1951_v8, %v24086_v6 }
 0x341   :  { %11345 = vmatpush1.bf16.msra.mxu0 %v21469_v15  ;;  %11689 = vmatpush1.bf16.msra.mxu1 %v21472_v19  ;;  %v1966_v15 = vrot.slane %v1951_v8, %v24089_v48  ;;  %v1962_v19 = vrot.slane %v1951_v8, %v24092_v9 }
 0x342   :  { %11346 = vmatprep.subr.bf16.mxu0 %v21477_v20  ;;  %11690 = vmatprep.subr.bf16.mxu1 %v21480_v27  ;;  %v1970_v20 = vrot.slane %v1951_v8, %v24095_v10  ;;  %v21529_v27 = vld [vmem:[#allocation2 + $0x1598] ss:$52 sps:$4 sm:$0xff]   ;;  %v21549_v8 = vld [vmem:[#allocation2 + $0x16d4] ss:$52 sps:$4 sm:$0xff]  }
 0x345   :  { %11347 = vmatpush1.bf16.msra.mxu0 %v21475_v28  ;;  %11691 = vmatpush1.bf16.msra.mxu1 %v21478_v17  ;;  %v21532_v28 = vld [vmem:[#allocation2 + $0x15a0] ss:$52 sps:$4 sm:$0xff]   ;;  %v21537_v17 = vld [vmem:[#allocation2 + $0x1604] ss:$52 sps:$4 sm:$0xff]  }
 0x346   :  { %11348 = vmatprep.subr.bf16.mxu0 %v21483_v29  ;;  %11692 = vmatprep.subr.bf16.mxu1 %v21486_v2  ;;  %v21540_v29 = vld [vmem:[#allocation2 + $0x160c] ss:$52 sps:$4 sm:$0xff]  }
 0x349   :  { %11349 = vmatpush1.bf16.msra.mxu0 %v21481_v3  ;;  %11693 = vmatpush1.bf16.msra.mxu1 %v21484_v31 }
 0x34a   :  { %11350 = vmatprep.subr.bf16.mxu0 %v21489_v32  ;;  %11694 = vmatprep.subr.bf16.mxu1 %v21492_v37 }
 0x34d   :  { %11351 = vmatpush1.bf16.msra.mxu0 %v21487_v38  ;;  %11695 = vmatpush1.bf16.msra.mxu1 %v21490_v39 }
 0x34e   :  { %11352 = vmatprep.subr.bf16.mxu0 %v21495_v40  ;;  %11696 = vmatprep.subr.bf16.mxu1 %v21498_v25 }
 0x351   :  { %11353 = vmatpush1.bf16.msra.mxu0 %v21493_v26  ;;  %11697 = vmatpush1.bf16.msra.mxu1 %v21496_v42  ;;  %v21535_v42 = vld [vmem:[#allocation2 + $0x1600] ss:$52 sps:$4 sm:$0xff]  }
 0x352   :  { %11365 = vmatprep.subr.bf16.mxu0 %v21501_v43  ;;  %11709 = vmatprep.subr.bf16.mxu1 %v21504_v44  ;;  %v21538_v43 = vld [vmem:[#allocation2 + $0x1608] ss:$52 sps:$4 sm:$0xff]  }
 0x354   :  { %11355 = vmatmul.mubr.bf16.vlgmr.msra.gmra.mrb[4].mxu0 %v23955_v24  ;;  %11699 = vmatmul.mubr.bf16.vlgmr.msra.gmra.mrb[4].mxu1 %v23955_v24 }
 0x355   :  { %11366 = vmatpush1.bf16.msra.mxu0 %v21499_v46  ;;  %11710 = vmatpush1.bf16.msra.mxu1 %v21502_v51 }
 0x356   :  { %11367 = vmatprep.subr.bf16.mxu0 %v21507_v52  ;;  %11711 = vmatprep.subr.bf16.mxu1 %v21510_v53  ;;  %v21543_v53 = vld [vmem:[#allocation2 + $0x166c] ss:$52 sps:$4 sm:$0xff]  }
 0x357   :  { %11397 = vmatprep.mubr.bf16.mxu0 %v23969_v16  ;;  %11741 = vmatprep.mubr.bf16.mxu1 %v23969_v16 }
 0x359   :  { %11368 = vmatpush1.bf16.msra.mxu0 %v21505_v54  ;;  %11712 = vmatpush1.bf16.msra.mxu1 %v21508_v33  ;;  %v21546_v54 = vld [vmem:[#allocation2 + $0x1674] ss:$52 sps:$4 sm:$0xff]  }
 0x35a   :  { %11369 = vmatprep.subr.bf16.mxu0 %v21513_v21  ;;  %11713 = vmatprep.subr.bf16.mxu1 %v21516_v22 }
 0x35d   :  { %11370 = vmatpush1.bf16.msra.mxu0 %v21511_v56  ;;  %11714 = vmatpush1.bf16.msra.mxu1 %v21514_v57 }
 0x35e   :  { %11371 = vmatprep.subr.bf16.mxu0 %v21519_v58  ;;  %11715 = vmatprep.subr.bf16.mxu1 %v21522_v59 }
 0x361   :  { %11372 = vmatpush1.bf16.msra.mxu0 %v21517_v61  ;;  %11716 = vmatpush1.bf16.msra.mxu1 %v21520_v62 }
 0x362   :  { %11373 = vmatprep.subr.bf16.mxu0 %v21525_v63  ;;  %11717 = vmatprep.subr.bf16.mxu1 %v21528_v0  ;;  %v21544_v0 = vld [vmem:[#allocation2 + $0x1670] ss:$52 sps:$4 sm:$0xff]  }
 0x365   :  { %11374 = vmatpush1.bf16.msra.mxu0 %v21523_v4  ;;  %11718 = vmatpush1.bf16.msra.mxu1 %v21526_v7 }
 0x366   :  { %11375 = vmatprep.subr.bf16.mxu0 %v21531_v11  ;;  %11719 = vmatprep.subr.bf16.mxu1 %v21534_v12  ;;  %v21552_v11 = vld [vmem:[#allocation2 + $0x16dc] ss:$52 sps:$4 sm:$0xff]  }
 0x367   :  { %v10883_v2 = vpop.f32.mrb[0].mxu0  ;;  %v11227_v3 = vpop.f32.mrb[0].mxu1 }
 0x368   :  { %v20186_v31 = vadd.f32 %v10883_v2, %v1958_v14  ;;  %v20190_v32 = vadd.f32 %v11227_v3, %v1966_v15  ;;  %v10885_v37 = vpop.f32.mrb[1].mxu0  ;;  %v11229_v38 = vpop.f32.mrb[1].mxu1  ;;  %v21564_v2 = vld [vmem:[#allocation2 + $0x17ac] ss:$52 sps:$4 sm:$0xff]  }
 0x369   :  { %v20187_v39 = vadd.f32 %v10885_v37, %v1962_v19  ;;  %v20191_v40 = vadd.f32 %v11229_v38, %v1970_v20  ;;  %v10887_v25 = vpop.f32.mrb[2].mxu0  ;;  %v11231_v26 = vpop.f32.mrb[2].mxu1  ;;  %11376 = vmatpush1.bf16.msra.mxu0 %v21529_v27  ;;  %11720 = vmatpush1.bf16.msra.mxu1 %v21532_v28  ;;  %v21558_v27 = vld [vmem:[#allocation2 + $0x1744] ss:$52 sps:$4 sm:$0xff]   ;;  %v21559_v3 = vld [vmem:[#allocation2 + $0x17a0] ss:$52 sps:$4 sm:$0xff]  }
 0x36a   :  { %v20188_v44 = vadd.f32 %v10887_v25, %v1958_v14  ;;  %v20192_v46 = vadd.f32 %v11231_v26, %v1966_v15  ;;  %v10889_v51 = vpop.f32.mrb[3].mxu0  ;;  %v11233_v52 = vpop.f32.mrb[3].mxu1  ;;  %11377 = vmatprep.subr.bf16.mxu0 %v21537_v17  ;;  %11721 = vmatprep.subr.bf16.mxu1 %v21540_v29  ;;  %v12940_v33 = vmax.f32 %v20186_v31, 0.0  ;;  %v12942_v56 = vmax.f32 %v20190_v32, 0.0  ;;  %v21547_v15 = vld [vmem:[#allocation2 + $0x16d0] ss:$52 sps:$4 sm:$0xff]  }
 0x36b   :  { %v20189_v21 = vadd.f32 %v10889_v51, %v1962_v19  ;;  %v20193_v22 = vadd.f32 %v11233_v52, %v1970_v20  ;;  %v12941_v59 = vmax.f32 %v20187_v39, 0.0  ;;  %v12943_v61 = vmax.f32 %v20191_v40, 0.0  ;;  %v21550_v19 = vld [vmem:[#allocation2 + $0x16d8] ss:$52 sps:$4 sm:$0xff]   ;;  %v21555_v20 = vld [vmem:[#allocation2 + $0x173c] ss:$52 sps:$4 sm:$0xff]  }
 0x36c   :  { %v12953_v57 = vmax.f32 %v20188_v44, 0.0  ;;  %v12955_v58 = vmax.f32 %v20192_v46, 0.0  ;;  %v21553_v28 = vld [vmem:[#allocation2 + $0x1738] ss:$52 sps:$4 sm:$0xff]   ;;  %v21556_v17 = vld [vmem:[#allocation2 + $0x1740] ss:$52 sps:$4 sm:$0xff]  }
 0x36d   :  { %v12954_v62 = vmax.f32 %v20189_v21, 0.0  ;;  %v12956_v63 = vmax.f32 %v20193_v22, 0.0  ;;  %11378 = vmatpush1.bf16.msra.mxu0 %v21535_v42  ;;  %11722 = vmatpush1.bf16.msra.mxu1 %v21538_v43  ;;  %v21561_v29 = vld [vmem:[#allocation2 + $0x17a4] ss:$52 sps:$4 sm:$0xff]   ;;  %v21562_v31 = vld [vmem:[#allocation2 + $0x17a8] ss:$52 sps:$4 sm:$0xff]  }
 0x36e   :  { %v24101_v4 = vpack.c.bf16 %v12953_v57, %v12940_v33  ;;  %v24103_v7 = vpack.c.bf16 %v12955_v58, %v12942_v56  ;;  %11379 = vmatprep.subr.bf16.mxu0 %v21543_v53  ;;  %11723 = vmatprep.subr.bf16.mxu1 %v21546_v54  ;;  %v21567_v32 = vld [vmem:[#allocation2 + $0x180c] ss:$52 sps:$4 sm:$0xff]   ;;  %v21570_v37 = vld [vmem:[#allocation2 + $0x1814] ss:$52 sps:$4 sm:$0xff]   ;;  %v21568_v39 = vld [vmem:[#allocation2 + $0x1810] ss:$52 sps:$4 sm:$0xff]  }
 0x36f   :  { %v24105_v12 = vpack.c.bf16 %v12954_v62, %v12941_v59  ;;  %v24107_v14 = vpack.c.bf16 %v12956_v63, %v12943_v61  ;;  %v21565_v38 = vld [vmem:[#allocation2 + $0x1808] ss:$52 sps:$4 sm:$0xff]   ;;  %v21571_v26 = vld [vmem:[#allocation2 + $0x1870] ss:$52 sps:$4 sm:$0xff]   ;;  %v21574_v42 = vld [vmem:[#allocation2 + $0x1878] ss:$52 sps:$4 sm:$0xff]  }
 0x370   :  { %v21573_v40 = vld [vmem:[#allocation2 + $0x1874] ss:$52 sps:$4 sm:$0xff]   ;;  %v21576_v25 = vld [vmem:[#allocation2 + $0x187c] ss:$52 sps:$4 sm:$0xff]   ;;  %v21582_v44 = vld [vmem:[#allocation2 + $0x18e4] ss:$52 sps:$4 sm:$0xff]  }
 0x371   :  { %11380 = vmatpush1.bf16.msra.mxu0 %v21541_v36  ;;  %11724 = vmatpush1.bf16.msra.mxu1 %v21544_v0  ;;  %v21579_v43 = vld [vmem:[#allocation2 + $0x18dc] ss:$52 sps:$4 sm:$0xff]   ;;  %v21577_v46 = vld [vmem:[#allocation2 + $0x18d8] ss:$52 sps:$4 sm:$0xff]   ;;  %v21580_v51 = vld [vmem:[#allocation2 + $0x18e0] ss:$52 sps:$4 sm:$0xff]  }
 0x372   :  { %11381 = vmatprep.subr.bf16.mxu0 %v21549_v8  ;;  %11725 = vmatprep.subr.bf16.mxu1 %v21552_v11  ;;  %v21585_v52 = vld [vmem:[#allocation2 + $0x1944] ss:$52 sps:$4 sm:$0xff]   ;;  %v21588_v53 = vld [vmem:[#allocation2 + $0x194c] ss:$52 sps:$4 sm:$0xff]   ;;  %v21586_v33 = vld [vmem:[#allocation2 + $0x1948] ss:$52 sps:$4 sm:$0xff]  }
 0x373   :  { %v21583_v54 = vld [vmem:[#allocation2 + $0x1940] ss:$52 sps:$4 sm:$0xff]   ;;  %v21589_v36 = vld [vmem:[#allocation2 + $0x19a8] ss:$52 sps:$4 sm:$0xff]   ;;  %v21592_v56 = vld [vmem:[#allocation2 + $0x19b0] ss:$52 sps:$4 sm:$0xff]  }
 0x374   :  { %v21591_v21 = vld [vmem:[#allocation2 + $0x19ac] ss:$52 sps:$4 sm:$0xff]   ;;  %v21594_v22 = vld [vmem:[#allocation2 + $0x19b4] ss:$52 sps:$4 sm:$0xff]   ;;  %v21600_v58 = vld [vmem:[#allocation2 + $0x1a1c] ss:$52 sps:$4 sm:$0xff]  }
 0x375   :  { %11382 = vmatpush1.bf16.msra.mxu0 %v21547_v15  ;;  %11726 = vmatpush1.bf16.msra.mxu1 %v21550_v19  ;;  %v21597_v57 = vld [vmem:[#allocation2 + $0x1a14] ss:$52 sps:$4 sm:$0xff]   ;;  %v21595_v59 = vld [vmem:[#allocation2 + $0x1a10] ss:$52 sps:$4 sm:$0xff]   ;;  %v21598_v61 = vld [vmem:[#allocation2 + $0x1a18] ss:$52 sps:$4 sm:$0xff]  }
 0x376   :  { %11383 = vmatprep.subr.bf16.mxu0 %v21555_v20  ;;  %11727 = vmatprep.subr.bf16.mxu1 %v21558_v27  ;;  %v21603_v62 = vld [vmem:[#allocation2 + $0x1a7c] ss:$52 sps:$4 sm:$0xff]   ;;  %v21606_v63 = vld [vmem:[#allocation2 + $0x1a84] ss:$52 sps:$4 sm:$0xff]   ;;  %v21604_v8 = vld [vmem:[#allocation2 + $0x1a80] ss:$52 sps:$4 sm:$0xff]  }
 0x377   :  { %v21601_v0 = vld [vmem:[#allocation2 + $0x1a78] ss:$52 sps:$4 sm:$0xff]   ;;  %v21607_v19 = vld [vmem:[#allocation2 + $0x1ae0] ss:$52 sps:$4 sm:$0xff]   ;;  %v21610_v20 = vld [vmem:[#allocation2 + $0x1ae8] ss:$52 sps:$4 sm:$0xff]  }
 0x378   :  { %v21609_v11 = vld [vmem:[#allocation2 + $0x1ae4] ss:$52 sps:$4 sm:$0xff]   ;;  %v21612_v15 = vld [vmem:[#allocation2 + $0x1aec] ss:$52 sps:$4 sm:$0xff]  }
 0x379   :  { %11384 = vmatpush1.bf16.msra.mxu0 %v21553_v28  ;;  %11728 = vmatpush1.bf16.msra.mxu1 %v21556_v17  ;;  %v21615_v27 = vld [vmem:[#allocation2 + $0x1b4c] ss:$52 sps:$4 sm:$0xff]   ;;  %v21618_v28 = vld [vmem:[#allocation2 + $0x1b54] ss:$52 sps:$4 sm:$0xff]  }
 0x37a   :  { %11385 = vmatprep.subr.bf16.mxu0 %v21561_v29  ;;  %11729 = vmatprep.subr.bf16.mxu1 %v21564_v2  ;;  %v21613_v17 = vld [vmem:[#allocation2 + $0x1b48] ss:$52 sps:$4 sm:$0xff]   ;;  %v21616_v29 = vld [vmem:[#allocation2 + $0x1b50] ss:$52 sps:$4 sm:$0xff]  }
 0x37b   :  { %v21621_v2 = vld [vmem:[#allocation2 + $0x1bb4] ss:$52 sps:$4 sm:$0xff]  }
 0x37d   :  { %11386 = vmatpush1.bf16.msra.mxu0 %v21559_v3  ;;  %11730 = vmatpush1.bf16.msra.mxu1 %v21562_v31  ;;  %v21624_v3 = vld [vmem:[#allocation2 + $0x1bbc] ss:$52 sps:$4 sm:$0xff]  }
 0x37e   :  { %11387 = vmatprep.subr.bf16.mxu0 %v21567_v32  ;;  %11731 = vmatprep.subr.bf16.mxu1 %v21570_v37  ;;  %v21619_v31 = vld [vmem:[#allocation2 + $0x1bb0] ss:$52 sps:$4 sm:$0xff]   ;;  %v21622_v32 = vld [vmem:[#allocation2 + $0x1bb8] ss:$52 sps:$4 sm:$0xff]  }
 0x37f   :  { %v21627_v37 = vld [vmem:[#allocation2 + $0x1c1c] ss:$52 sps:$4 sm:$0xff]  }
 0x381   :  { %11388 = vmatpush1.bf16.msra.mxu0 %v21565_v38  ;;  %11732 = vmatpush1.bf16.msra.mxu1 %v21568_v39  ;;  %v21630_v38 = vld [vmem:[#allocation2 + $0x1c24] ss:$52 sps:$4 sm:$0xff]  }
 0x382   :  { %11389 = vmatprep.subr.bf16.mxu0 %v21573_v40  ;;  %11733 = vmatprep.subr.bf16.mxu1 %v21576_v25  ;;  %v21625_v39 = vld [vmem:[#allocation2 + $0x1c18] ss:$52 sps:$4 sm:$0xff]   ;;  %v21628_v40 = vld [vmem:[#allocation2 + $0x1c20] ss:$52 sps:$4 sm:$0xff]  }
 0x383   :  { %v21633_v25 = vld [vmem:[#allocation2 + $0x1c84] ss:$52 sps:$4 sm:$0xff]  }
 0x385   :  { %11390 = vmatpush1.bf16.msra.mxu0 %v21571_v26  ;;  %11734 = vmatpush1.bf16.msra.mxu1 %v21574_v42  ;;  %v21636_v26 = vld [vmem:[#allocation2 + $0x1c8c] ss:$52 sps:$4 sm:$0xff]  }
 0x386   :  { %11391 = vmatprep.subr.bf16.mxu0 %v21579_v43  ;;  %11735 = vmatprep.subr.bf16.mxu1 %v21582_v44  ;;  %v21631_v42 = vld [vmem:[#allocation2 + $0x1c80] ss:$52 sps:$4 sm:$0xff]   ;;  %v21634_v43 = vld [vmem:[#allocation2 + $0x1c88] ss:$52 sps:$4 sm:$0xff]  }
 0x387   :  { %v21639_v44 = vld [vmem:[#allocation2 + $0x1cec] ss:$52 sps:$4 sm:$0xff]  }
 0x389   :  { %11392 = vmatpush1.bf16.msra.mxu0 %v21577_v46  ;;  %11736 = vmatpush1.bf16.msra.mxu1 %v21580_v51  ;;  %v21642_v46 = vld [vmem:[#allocation2 + $0x1cf4] ss:$52 sps:$4 sm:$0xff]  }
 0x38a   :  { %11393 = vmatprep.subr.bf16.mxu0 %v21585_v52  ;;  %11737 = vmatprep.subr.bf16.mxu1 %v21588_v53  ;;  %v21637_v51 = vld [vmem:[#allocation2 + $0x1ce8] ss:$52 sps:$4 sm:$0xff]   ;;  %v21640_v52 = vld [vmem:[#allocation2 + $0x1cf0] ss:$52 sps:$4 sm:$0xff]  }
 0x38b   :  { %v21645_v53 = vld [vmem:[#allocation2 + $0x1d54] ss:$52 sps:$4 sm:$0xff]  }
 0x38d   :  { %11394 = vmatpush1.bf16.msra.mxu0 %v21583_v54  ;;  %11738 = vmatpush1.bf16.msra.mxu1 %v21586_v33  ;;  %v21648_v54 = vld [vmem:[#allocation2 + $0x1d5c] ss:$52 sps:$4 sm:$0xff]  }
 0x38e   :  { %11395 = vmatprep.subr.bf16.mxu0 %v21591_v21  ;;  %11739 = vmatprep.subr.bf16.mxu1 %v21594_v22  ;;  %v21643_v33 = vld [vmem:[#allocation2 + $0x1d50] ss:$52 sps:$4 sm:$0xff]   ;;  %v21646_v21 = vld [vmem:[#allocation2 + $0x1d58] ss:$52 sps:$4 sm:$0xff]  }
 0x38f   :  { %v21651_v22 = vld [vmem:[#allocation2 + $0x1dbc] ss:$52 sps:$4 sm:$0xff]  }
 0x391   :  { %11396 = vmatpush1.bf16.msra.mxu0 %v21589_v36  ;;  %11740 = vmatpush1.bf16.msra.mxu1 %v21592_v56  ;;  %v21654_v36 = vld [vmem:[#allocation2 + $0x1dc4] ss:$52 sps:$4 sm:$0xff]  }
 0x392   :  { %11408 = vmatprep.subr.bf16.mxu0 %v21597_v57  ;;  %11752 = vmatprep.subr.bf16.mxu1 %v21600_v58  ;;  %v21649_v56 = vld [vmem:[#allocation2 + $0x1db8] ss:$52 sps:$4 sm:$0xff]   ;;  %v21652_v57 = vld [vmem:[#allocation2 + $0x1dc0] ss:$52 sps:$4 sm:$0xff]  }
 0x393   :  { %v21657_v58 = vld [vmem:[#allocation2 + $0x1e24] ss:$52 sps:$4 sm:$0xff]  }
 0x394   :  { %11398 = vmatmul.mubr.bf16.vlgmr.msra.gmra.mrb[4].mxu0 %v23982_v35  ;;  %11742 = vmatmul.mubr.bf16.vlgmr.msra.gmra.mrb[4].mxu1 %v23982_v35 }
 0x395   :  { %11409 = vmatpush1.bf16.msra.mxu0 %v21595_v59  ;;  %11753 = vmatpush1.bf16.msra.mxu1 %v21598_v61  ;;  %v21660_v59 = vld [vmem:[#allocation2 + $0x1e2c] ss:$52 sps:$4 sm:$0xff]  }
 0x396   :  { %11410 = vmatprep.subr.bf16.mxu0 %v21603_v62  ;;  %11754 = vmatprep.subr.bf16.mxu1 %v21606_v63  ;;  %v21655_v61 = vld [vmem:[#allocation2 + $0x1e20] ss:$52 sps:$4 sm:$0xff]   ;;  %v21658_v62 = vld [vmem:[#allocation2 + $0x1e28] ss:$52 sps:$4 sm:$0xff]  }
 0x397   :  { %11440 = vmatprep.mubr.bf16.mxu0 %v23991_v41  ;;  %11784 = vmatprep.mubr.bf16.mxu1 %v23991_v41  ;;  %v21663_v63 = vld [vmem:[#allocation2 + $0x1e8c] ss:$52 sps:$4 sm:$0xff]  }
 0x399   :  { %11411 = vmatpush1.bf16.msra.mxu0 %v21601_v0  ;;  %11755 = vmatpush1.bf16.msra.mxu1 %v21604_v8  ;;  %v21666_v0 = vld [vmem:[#allocation2 + $0x1e94] ss:$52 sps:$4 sm:$0xff]  }
 0x39a   :  { %11412 = vmatprep.subr.bf16.mxu0 %v21609_v11  ;;  %11756 = vmatprep.subr.bf16.mxu1 %v21612_v15  ;;  %v21661_v8 = vld [vmem:[#allocation2 + $0x1e88] ss:$52 sps:$4 sm:$0xff]   ;;  %v21664_v11 = vld [vmem:[#allocation2 + $0x1e90] ss:$52 sps:$4 sm:$0xff]  }
 0x39b   :  { %v21669_v15 = vld [vmem:[#allocation2 + $0x1ef4] ss:$52 sps:$4 sm:$0xff]  }
 0x39d   :  { %11413 = vmatpush1.bf16.msra.mxu0 %v21607_v19  ;;  %11757 = vmatpush1.bf16.msra.mxu1 %v21610_v20  ;;  %v21672_v19 = vld [vmem:[#allocation2 + $0x1efc] ss:$52 sps:$4 sm:$0xff]  }
 0x39e   :  { %11414 = vmatprep.subr.bf16.mxu0 %v21615_v27  ;;  %11758 = vmatprep.subr.bf16.mxu1 %v21618_v28  ;;  %v21667_v20 = vld [vmem:[#allocation2 + $0x1ef0] ss:$52 sps:$4 sm:$0xff]   ;;  %v21670_v27 = vld [vmem:[#allocation2 + $0x1ef8] ss:$52 sps:$4 sm:$0xff]  }
 0x39f   :  { %v21675_v28 = vld [vmem:[#allocation2 + $0x1f5c] ss:$52 sps:$4 sm:$0xff]  }
 0x3a1   :  { %11415 = vmatpush1.bf16.msra.mxu0 %v21613_v17  ;;  %11759 = vmatpush1.bf16.msra.mxu1 %v21616_v29  ;;  %v21678_v17 = vld [vmem:[#allocation2 + $0x1f64] ss:$52 sps:$4 sm:$0xff]  }
 0x3a2   :  { %11416 = vmatprep.subr.bf16.mxu0 %v21621_v2  ;;  %11760 = vmatprep.subr.bf16.mxu1 %v21624_v3  ;;  %v21673_v29 = vld [vmem:[#allocation2 + $0x1f58] ss:$52 sps:$4 sm:$0xff]   ;;  %v21676_v2 = vld [vmem:[#allocation2 + $0x1f60] ss:$52 sps:$4 sm:$0xff]  }
 0x3a3   :  { %v21681_v3 = vld [vmem:[#allocation2 + $0x1fc4] ss:$52 sps:$4 sm:$0xff]  }
 0x3a5   :  { %11417 = vmatpush1.bf16.msra.mxu0 %v21619_v31  ;;  %11761 = vmatpush1.bf16.msra.mxu1 %v21622_v32  ;;  %v21684_v31 = vld [vmem:[#allocation2 + $0x1fcc] ss:$52 sps:$4 sm:$0xff]  }
 0x3a6   :  { %11418 = vmatprep.subr.bf16.mxu0 %v21627_v37  ;;  %11762 = vmatprep.subr.bf16.mxu1 %v21630_v38  ;;  %v21679_v32 = vld [vmem:[#allocation2 + $0x1fc0] ss:$52 sps:$4 sm:$0xff]   ;;  %v21682_v37 = vld [vmem:[#allocation2 + $0x1fc8] ss:$52 sps:$4 sm:$0xff]  }
 0x3a7   :  { %v21687_v38 = vld [vmem:[#allocation2 + $0x202c] ss:$52 sps:$4 sm:$0xff]  }
 0x3a9   :  { %11419 = vmatpush1.bf16.msra.mxu0 %v21625_v39  ;;  %11763 = vmatpush1.bf16.msra.mxu1 %v21628_v40  ;;  %v21690_v39 = vld [vmem:[#allocation2 + $0x2034] ss:$52 sps:$4 sm:$0xff]  }
 0x3aa   :  { %11420 = vmatprep.subr.bf16.mxu0 %v21633_v25  ;;  %11764 = vmatprep.subr.bf16.mxu1 %v21636_v26  ;;  %v21685_v40 = vld [vmem:[#allocation2 + $0x2028] ss:$52 sps:$4 sm:$0xff]   ;;  %v21688_v25 = vld [vmem:[#allocation2 + $0x2030] ss:$52 sps:$4 sm:$0xff]  }
 0x3ab   :  { %v21693_v26 = vld [vmem:[#allocation2 + $0x2094] ss:$52 sps:$4 sm:$0xff]  }
 0x3ad   :  { %11421 = vmatpush1.bf16.msra.mxu0 %v21631_v42  ;;  %11765 = vmatpush1.bf16.msra.mxu1 %v21634_v43  ;;  %v21696_v42 = vld [vmem:[#allocation2 + $0x209c] ss:$52 sps:$4 sm:$0xff]  }
 0x3ae   :  { %11422 = vmatprep.subr.bf16.mxu0 %v21639_v44  ;;  %11766 = vmatprep.subr.bf16.mxu1 %v21642_v46  ;;  %v21691_v43 = vld [vmem:[#allocation2 + $0x2090] ss:$52 sps:$4 sm:$0xff]   ;;  %v21694_v44 = vld [vmem:[#allocation2 + $0x2098] ss:$52 sps:$4 sm:$0xff]  }
 0x3af   :  { %v21699_v46 = vld [vmem:[#allocation2 + $0x20fc] ss:$52 sps:$4 sm:$0xff]  }
 0x3b1   :  { %11423 = vmatpush1.bf16.msra.mxu0 %v21637_v51  ;;  %11767 = vmatpush1.bf16.msra.mxu1 %v21640_v52  ;;  %v21702_v51 = vld [vmem:[#allocation2 + $0x2104] ss:$52 sps:$4 sm:$0xff]  }
 0x3b2   :  { %11424 = vmatprep.subr.bf16.mxu0 %v21645_v53  ;;  %11768 = vmatprep.subr.bf16.mxu1 %v21648_v54  ;;  %v21697_v52 = vld [vmem:[#allocation2 + $0x20f8] ss:$52 sps:$4 sm:$0xff]   ;;  %v21700_v53 = vld [vmem:[#allocation2 + $0x2100] ss:$52 sps:$4 sm:$0xff]  }
 0x3b3   :  { %v21705_v54 = vld [vmem:[#allocation2 + $0x2164] ss:$52 sps:$4 sm:$0xff]  }
 0x3b5   :  { %11425 = vmatpush1.bf16.msra.mxu0 %v21643_v33  ;;  %11769 = vmatpush1.bf16.msra.mxu1 %v21646_v21  ;;  %v21708_v33 = vld [vmem:[#allocation2 + $0x216c] ss:$52 sps:$4 sm:$0xff]  }
 0x3b6   :  { %11426 = vmatprep.subr.bf16.mxu0 %v21651_v22  ;;  %11770 = vmatprep.subr.bf16.mxu1 %v21654_v36  ;;  %v21703_v21 = vld [vmem:[#allocation2 + $0x2160] ss:$52 sps:$4 sm:$0xff]   ;;  %v21706_v22 = vld [vmem:[#allocation2 + $0x2168] ss:$52 sps:$4 sm:$0xff]  }
 0x3b7   :  { %v21711_v36 = vld [vmem:[#allocation2 + $0x21cc] ss:$52 sps:$4 sm:$0xff]  }
 0x3b9   :  { %11427 = vmatpush1.bf16.msra.mxu0 %v21649_v56  ;;  %11771 = vmatpush1.bf16.msra.mxu1 %v21652_v57  ;;  %v21714_v56 = vld [vmem:[#allocation2 + $0x21d4] ss:$52 sps:$4 sm:$0xff]  }
 0x3ba   :  { %11428 = vmatprep.subr.bf16.mxu0 %v21657_v58  ;;  %11772 = vmatprep.subr.bf16.mxu1 %v21660_v59  ;;  %v21709_v57 = vld [vmem:[#allocation2 + $0x21c8] ss:$52 sps:$4 sm:$0xff]   ;;  %v21712_v58 = vld [vmem:[#allocation2 + $0x21d0] ss:$52 sps:$4 sm:$0xff]  }
 0x3bb   :  { %v21717_v59 = vld [vmem:[#allocation2 + $0x2234] ss:$52 sps:$4 sm:$0xff]  }
 0x3bd   :  { %11429 = vmatpush1.bf16.msra.mxu0 %v21655_v61  ;;  %11773 = vmatpush1.bf16.msra.mxu1 %v21658_v62  ;;  %v21720_v61 = vld [vmem:[#allocation2 + $0x223c] ss:$52 sps:$4 sm:$0xff]  }
 0x3be   :  { %11430 = vmatprep.subr.bf16.mxu0 %v21663_v63  ;;  %11774 = vmatprep.subr.bf16.mxu1 %v21666_v0  ;;  %v21715_v62 = vld [vmem:[#allocation2 + $0x2230] ss:$52 sps:$4 sm:$0xff]   ;;  %v21718_v63 = vld [vmem:[#allocation2 + $0x2238] ss:$52 sps:$4 sm:$0xff]  }
 0x3bf   :  { %v21723_v0 = vld [vmem:[#allocation2 + $0x229c] ss:$52 sps:$4 sm:$0xff]  }
 0x3c1   :  { %11431 = vmatpush1.bf16.msra.mxu0 %v21661_v8  ;;  %11775 = vmatpush1.bf16.msra.mxu1 %v21664_v11  ;;  %v21726_v8 = vld [vmem:[#allocation2 + $0x22a4] ss:$52 sps:$4 sm:$0xff]  }
 0x3c2   :  { %11432 = vmatprep.subr.bf16.mxu0 %v21669_v15  ;;  %11776 = vmatprep.subr.bf16.mxu1 %v21672_v19  ;;  %v21721_v11 = vld [vmem:[#allocation2 + $0x2298] ss:$52 sps:$4 sm:$0xff]   ;;  %v21724_v15 = vld [vmem:[#allocation2 + $0x22a0] ss:$52 sps:$4 sm:$0xff]  }
 0x3c3   :  { %v21729_v19 = vld [vmem:[#allocation2 + $0x2304] ss:$52 sps:$4 sm:$0xff]  }
 0x3c5   :  { %11433 = vmatpush1.bf16.msra.mxu0 %v21667_v20  ;;  %11777 = vmatpush1.bf16.msra.mxu1 %v21670_v27  ;;  %v21732_v20 = vld [vmem:[#allocation2 + $0x230c] ss:$52 sps:$4 sm:$0xff]  }
 0x3c6   :  { %11434 = vmatprep.subr.bf16.mxu0 %v21675_v28  ;;  %11778 = vmatprep.subr.bf16.mxu1 %v21678_v17  ;;  %v21727_v27 = vld [vmem:[#allocation2 + $0x2300] ss:$52 sps:$4 sm:$0xff]   ;;  %v21730_v28 = vld [vmem:[#allocation2 + $0x2308] ss:$52 sps:$4 sm:$0xff]  }
 0x3c7   :  { %v21735_v17 = vld [vmem:[#allocation2 + $0x236c] ss:$52 sps:$4 sm:$0xff]  }
 0x3c9   :  { %11435 = vmatpush1.bf16.msra.mxu0 %v21673_v29  ;;  %11779 = vmatpush1.bf16.msra.mxu1 %v21676_v2  ;;  %v21738_v29 = vld [vmem:[#allocation2 + $0x2374] ss:$52 sps:$4 sm:$0xff]  }
 0x3ca   :  { %11436 = vmatprep.subr.bf16.mxu0 %v21681_v3  ;;  %11780 = vmatprep.subr.bf16.mxu1 %v21684_v31  ;;  %v21733_v2 = vld [vmem:[#allocation2 + $0x2368] ss:$52 sps:$4 sm:$0xff]   ;;  %v21736_v3 = vld [vmem:[#allocation2 + $0x2370] ss:$52 sps:$4 sm:$0xff]  }
 0x3cb   :  { %v21741_v31 = vld [vmem:[#allocation2 + $0x23d4] ss:$52 sps:$4 sm:$0xff]  }
 0x3cd   :  { %11437 = vmatpush1.bf16.msra.mxu0 %v21679_v32  ;;  %11781 = vmatpush1.bf16.msra.mxu1 %v21682_v37  ;;  %v21744_v32 = vld [vmem:[#allocation2 + $0x23dc] ss:$52 sps:$4 sm:$0xff]  }
 0x3ce   :  { %11438 = vmatprep.subr.bf16.mxu0 %v21687_v38  ;;  %11782 = vmatprep.subr.bf16.mxu1 %v21690_v39  ;;  %v21739_v37 = vld [vmem:[#allocation2 + $0x23d0] ss:$52 sps:$4 sm:$0xff]   ;;  %v21742_v38 = vld [vmem:[#allocation2 + $0x23d8] ss:$52 sps:$4 sm:$0xff]  }
 0x3cf   :  { %v21747_v39 = vld [vmem:[#allocation2 + $0x243c] ss:$52 sps:$4 sm:$0xff]  }
 0x3d1   :  { %11439 = vmatpush1.bf16.msra.mxu0 %v21685_v40  ;;  %11783 = vmatpush1.bf16.msra.mxu1 %v21688_v25  ;;  %v21750_v40 = vld [vmem:[#allocation2 + $0x2444] ss:$52 sps:$4 sm:$0xff]  }
 0x3d2   :  { %11451 = vmatprep.subr.bf16.mxu0 %v21693_v26  ;;  %11795 = vmatprep.subr.bf16.mxu1 %v21696_v42  ;;  %v21745_v25 = vld [vmem:[#allocation2 + $0x2438] ss:$52 sps:$4 sm:$0xff]   ;;  %v21748_v26 = vld [vmem:[#allocation2 + $0x2440] ss:$52 sps:$4 sm:$0xff]  }
 0x3d3   :  { %v21753_v42 = vld [vmem:[#allocation2 + $0x24a4] ss:$52 sps:$4 sm:$0xff]  }
 0x3d4   :  { %11441 = vmatmul.mubr.bf16.vlgmr.msra.gmra.mrb[4].mxu0 %v24009_v49  ;;  %11785 = vmatmul.mubr.bf16.vlgmr.msra.gmra.mrb[4].mxu1 %v24009_v49 }
 0x3d5   :  { %11452 = vmatpush1.bf16.msra.mxu0 %v21691_v43  ;;  %11796 = vmatpush1.bf16.msra.mxu1 %v21694_v44  ;;  %v21756_v43 = vld [vmem:[#allocation2 + $0x24ac] ss:$52 sps:$4 sm:$0xff]  }
 0x3d6   :  { %11453 = vmatprep.subr.bf16.mxu0 %v21699_v46  ;;  %11797 = vmatprep.subr.bf16.mxu1 %v21702_v51  ;;  %v21751_v44 = vld [vmem:[#allocation2 + $0x24a0] ss:$52 sps:$4 sm:$0xff]   ;;  %v21754_v46 = vld [vmem:[#allocation2 + $0x24a8] ss:$52 sps:$4 sm:$0xff]  }
 0x3d7   :  { %11483 = vmatprep.mubr.bf16.mxu0 %v24013_v55  ;;  %11827 = vmatprep.mubr.bf16.mxu1 %v24013_v55  ;;  %v21759_v51 = vld [vmem:[#allocation2 + $0x250c] ss:$52 sps:$4 sm:$0xff]  }
 0x3d9   :  { %11454 = vmatpush1.bf16.msra.mxu0 %v21697_v52  ;;  %11798 = vmatpush1.bf16.msra.mxu1 %v21700_v53  ;;  %v21762_v52 = vld [vmem:[#allocation2 + $0x2514] ss:$52 sps:$4 sm:$0xff]  }
 0x3da   :  { %11455 = vmatprep.subr.bf16.mxu0 %v21705_v54  ;;  %11799 = vmatprep.subr.bf16.mxu1 %v21708_v33  ;;  %v21757_v53 = vld [vmem:[#allocation2 + $0x2508] ss:$52 sps:$4 sm:$0xff]   ;;  %v21760_v54 = vld [vmem:[#allocation2 + $0x2510] ss:$52 sps:$4 sm:$0xff]  }
 0x3db   :  { %v21765_v33 = vld [vmem:[#allocation2 + $0x2574] ss:$52 sps:$4 sm:$0xff]  }
 0x3dd   :  { %11456 = vmatpush1.bf16.msra.mxu0 %v21703_v21  ;;  %11800 = vmatpush1.bf16.msra.mxu1 %v21706_v22  ;;  %v21768_v21 = vld [vmem:[#allocation2 + $0x257c] ss:$52 sps:$4 sm:$0xff]  }
 0x3de   :  { %11457 = vmatprep.subr.bf16.mxu0 %v21711_v36  ;;  %11801 = vmatprep.subr.bf16.mxu1 %v21714_v56  ;;  %v21763_v22 = vld [vmem:[#allocation2 + $0x2570] ss:$52 sps:$4 sm:$0xff]   ;;  %v21766_v36 = vld [vmem:[#allocation2 + $0x2578] ss:$52 sps:$4 sm:$0xff]  }
 0x3df   :  { %v21771_v56 = vld [vmem:[#allocation2 + $0x25dc] ss:$52 sps:$4 sm:$0xff]  }
 0x3e1   :  { %11458 = vmatpush1.bf16.msra.mxu0 %v21709_v57  ;;  %11802 = vmatpush1.bf16.msra.mxu1 %v21712_v58  ;;  %v21774_v57 = vld [vmem:[#allocation2 + $0x25e4] ss:$52 sps:$4 sm:$0xff]  }
 0x3e2   :  { %11459 = vmatprep.subr.bf16.mxu0 %v21717_v59  ;;  %11803 = vmatprep.subr.bf16.mxu1 %v21720_v61  ;;  %v21769_v58 = vld [vmem:[#allocation2 + $0x25d8] ss:$52 sps:$4 sm:$0xff]   ;;  %v21772_v59 = vld [vmem:[#allocation2 + $0x25e0] ss:$52 sps:$4 sm:$0xff]  }
 0x3e3   :  { %v21777_v61 = vld [vmem:[#allocation2 + $0x2644] ss:$52 sps:$4 sm:$0xff]  }
 0x3e5   :  { %11460 = vmatpush1.bf16.msra.mxu0 %v21715_v62  ;;  %11804 = vmatpush1.bf16.msra.mxu1 %v21718_v63  ;;  %v21780_v62 = vld [vmem:[#allocation2 + $0x264c] ss:$52 sps:$4 sm:$0xff]  }
 0x3e6   :  { %11461 = vmatprep.subr.bf16.mxu0 %v21723_v0  ;;  %11805 = vmatprep.subr.bf16.mxu1 %v21726_v8  ;;  %v21775_v63 = vld [vmem:[#allocation2 + $0x2640] ss:$52 sps:$4 sm:$0xff]   ;;  %v21778_v0 = vld [vmem:[#allocation2 + $0x2648] ss:$52 sps:$4 sm:$0xff]  }
 0x3e7   :  { %v21783_v8 = vld [vmem:[#allocation2 + $0x26ac] ss:$52 sps:$4 sm:$0xff]  }
 0x3e9   :  { %11462 = vmatpush1.bf16.msra.mxu0 %v21721_v11  ;;  %11806 = vmatpush1.bf16.msra.mxu1 %v21724_v15  ;;  %v21786_v11 = vld [vmem:[#allocation2 + $0x26b4] ss:$52 sps:$4 sm:$0xff]  }
 0x3ea   :  { %11463 = vmatprep.subr.bf16.mxu0 %v21729_v19  ;;  %11807 = vmatprep.subr.bf16.mxu1 %v21732_v20  ;;  %v21781_v15 = vld [vmem:[#allocation2 + $0x26a8] ss:$52 sps:$4 sm:$0xff]   ;;  %v21784_v19 = vld [vmem:[#allocation2 + $0x26b0] ss:$52 sps:$4 sm:$0xff]  }
 0x3eb   :  { %v21789_v20 = vld [vmem:[#allocation2 + $0x2714] ss:$52 sps:$4 sm:$0xff]  }
 0x3ed   :  { %11464 = vmatpush1.bf16.msra.mxu0 %v21727_v27  ;;  %11808 = vmatpush1.bf16.msra.mxu1 %v21730_v28  ;;  %v21792_v27 = vld [vmem:[#allocation2 + $0x271c] ss:$52 sps:$4 sm:$0xff]  }
 0x3ee   :  { %11465 = vmatprep.subr.bf16.mxu0 %v21735_v17  ;;  %11809 = vmatprep.subr.bf16.mxu1 %v21738_v29  ;;  %v21787_v28 = vld [vmem:[#allocation2 + $0x2710] ss:$52 sps:$4 sm:$0xff]   ;;  %v21790_v17 = vld [vmem:[#allocation2 + $0x2718] ss:$52 sps:$4 sm:$0xff]  }
 0x3ef   :  { %v21795_v29 = vld [vmem:[#allocation2 + $0x277c] ss:$52 sps:$4 sm:$0xff]  }
 0x3f1   :  { %11466 = vmatpush1.bf16.msra.mxu0 %v21733_v2  ;;  %11810 = vmatpush1.bf16.msra.mxu1 %v21736_v3  ;;  %v21798_v2 = vld [vmem:[#allocation2 + $0x2784] ss:$52 sps:$4 sm:$0xff]  }
 0x3f2   :  { %11467 = vmatprep.subr.bf16.mxu0 %v21741_v31  ;;  %11811 = vmatprep.subr.bf16.mxu1 %v21744_v32  ;;  %v21793_v3 = vld [vmem:[#allocation2 + $0x2778] ss:$52 sps:$4 sm:$0xff]   ;;  %v21796_v31 = vld [vmem:[#allocation2 + $0x2780] ss:$52 sps:$4 sm:$0xff]  }
 0x3f3   :  { %v21801_v32 = vld [vmem:[#allocation2 + $0x27e4] ss:$52 sps:$4 sm:$0xff]  }
 0x3f5   :  { %11468 = vmatpush1.bf16.msra.mxu0 %v21739_v37  ;;  %11812 = vmatpush1.bf16.msra.mxu1 %v21742_v38  ;;  %v21804_v37 = vld [vmem:[#allocation2 + $0x27ec] ss:$52 sps:$4 sm:$0xff]  }
 0x3f6   :  { %11469 = vmatprep.subr.bf16.mxu0 %v21747_v39  ;;  %11813 = vmatprep.subr.bf16.mxu1 %v21750_v40  ;;  %v21799_v38 = vld [vmem:[#allocation2 + $0x27e0] ss:$52 sps:$4 sm:$0xff]   ;;  %v21802_v39 = vld [vmem:[#allocation2 + $0x27e8] ss:$52 sps:$4 sm:$0xff]  }
 0x3f7   :  { %v21807_v40 = vld [vmem:[#allocation2 + $0x284c] ss:$52 sps:$4 sm:$0xff]  }
 0x3f9   :  { %11470 = vmatpush1.bf16.msra.mxu0 %v21745_v25  ;;  %11814 = vmatpush1.bf16.msra.mxu1 %v21748_v26  ;;  %v21810_v25 = vld [vmem:[#allocation2 + $0x2854] ss:$52 sps:$4 sm:$0xff]  }
 0x3fa   :  { %11471 = vmatprep.subr.bf16.mxu0 %v21753_v42  ;;  %11815 = vmatprep.subr.bf16.mxu1 %v21756_v43  ;;  %v21805_v26 = vld [vmem:[#allocation2 + $0x2848] ss:$52 sps:$4 sm:$0xff]   ;;  %v21808_v42 = vld [vmem:[#allocation2 + $0x2850] ss:$52 sps:$4 sm:$0xff]  }
 0x3fb   :  { %v21813_v43 = vld [vmem:[#allocation2 + $0x28b4] ss:$52 sps:$4 sm:$0xff]  }
 0x3fd   :  { %11472 = vmatpush1.bf16.msra.mxu0 %v21751_v44  ;;  %11816 = vmatpush1.bf16.msra.mxu1 %v21754_v46  ;;  %v21816_v44 = vld [vmem:[#allocation2 + $0x28bc] ss:$52 sps:$4 sm:$0xff]  }
 0x3fe   :  { %11473 = vmatprep.subr.bf16.mxu0 %v21759_v51  ;;  %11817 = vmatprep.subr.bf16.mxu1 %v21762_v52  ;;  %v21811_v46 = vld [vmem:[#allocation2 + $0x28b0] ss:$52 sps:$4 sm:$0xff]   ;;  %v21814_v51 = vld [vmem:[#allocation2 + $0x28b8] ss:$52 sps:$4 sm:$0xff]  }
 0x3ff   :  { %v21819_v52 = vld [vmem:[#allocation2 + $0x291c] ss:$52 sps:$4 sm:$0xff]  }
 0x401   :  { %11474 = vmatpush1.bf16.msra.mxu0 %v21757_v53  ;;  %11818 = vmatpush1.bf16.msra.mxu1 %v21760_v54  ;;  %v21822_v53 = vld [vmem:[#allocation2 + $0x2924] ss:$52 sps:$4 sm:$0xff]  }
 0x402   :  { %11475 = vmatprep.subr.bf16.mxu0 %v21765_v33  ;;  %11819 = vmatprep.subr.bf16.mxu1 %v21768_v21  ;;  %v21817_v54 = vld [vmem:[#allocation2 + $0x2918] ss:$52 sps:$4 sm:$0xff]   ;;  %v21820_v33 = vld [vmem:[#allocation2 + $0x2920] ss:$52 sps:$4 sm:$0xff]  }
 0x403   :  { %v21825_v21 = vld [vmem:[#allocation2 + $0x2984] ss:$52 sps:$4 sm:$0xff]  }
 0x405   :  { %11476 = vmatpush1.bf16.msra.mxu0 %v21763_v22  ;;  %11820 = vmatpush1.bf16.msra.mxu1 %v21766_v36  ;;  %v21828_v22 = vld [vmem:[#allocation2 + $0x298c] ss:$52 sps:$4 sm:$0xff]  }
 0x406   :  { %11477 = vmatprep.subr.bf16.mxu0 %v21771_v56  ;;  %11821 = vmatprep.subr.bf16.mxu1 %v21774_v57  ;;  %v21823_v36 = vld [vmem:[#allocation2 + $0x2980] ss:$52 sps:$4 sm:$0xff]   ;;  %v21826_v56 = vld [vmem:[#allocation2 + $0x2988] ss:$52 sps:$4 sm:$0xff]  }
 0x407   :  { %v21831_v57 = vld [vmem:[#allocation2 + $0x29ec] ss:$52 sps:$4 sm:$0xff]  }
 0x409   :  { %11478 = vmatpush1.bf16.msra.mxu0 %v21769_v58  ;;  %11822 = vmatpush1.bf16.msra.mxu1 %v21772_v59  ;;  %v21834_v58 = vld [vmem:[#allocation2 + $0x29f4] ss:$52 sps:$4 sm:$0xff]  }
 0x40a   :  { %11479 = vmatprep.subr.bf16.mxu0 %v21777_v61  ;;  %11823 = vmatprep.subr.bf16.mxu1 %v21780_v62  ;;  %v21829_v59 = vld [vmem:[#allocation2 + $0x29e8] ss:$52 sps:$4 sm:$0xff]   ;;  %v21832_v61 = vld [vmem:[#allocation2 + $0x29f0] ss:$52 sps:$4 sm:$0xff]  }
 0x40b   :  { %v21837_v62 = vld [vmem:[#allocation2 + $0x2a54] ss:$52 sps:$4 sm:$0xff]  }
 0x40d   :  { %11480 = vmatpush1.bf16.msra.mxu0 %v21775_v63  ;;  %11824 = vmatpush1.bf16.msra.mxu1 %v21778_v0  ;;  %v21840_v63 = vld [vmem:[#allocation2 + $0x2a5c] ss:$52 sps:$4 sm:$0xff]  }
 0x40e   :  { %11481 = vmatprep.subr.bf16.mxu0 %v21783_v8  ;;  %11825 = vmatprep.subr.bf16.mxu1 %v21786_v11  ;;  %v21835_v0 = vld [vmem:[#allocation2 + $0x2a50] ss:$52 sps:$4 sm:$0xff]   ;;  %v21838_v8 = vld [vmem:[#allocation2 + $0x2a58] ss:$52 sps:$4 sm:$0xff]  }
 0x40f   :  { %v21843_v11 = vld [vmem:[#allocation2 + $0x2abc] ss:$52 sps:$4 sm:$0xff]  }
 0x411   :  { %11482 = vmatpush1.bf16.msra.mxu0 %v21781_v15  ;;  %11826 = vmatpush1.bf16.msra.mxu1 %v21784_v19  ;;  %v21846_v15 = vld [vmem:[#allocation2 + $0x2ac4] ss:$52 sps:$4 sm:$0xff]  }
 0x412   :  { %11494 = vmatprep.subr.bf16.mxu0 %v21789_v20  ;;  %11838 = vmatprep.subr.bf16.mxu1 %v21792_v27  ;;  %v21841_v19 = vld [vmem:[#allocation2 + $0x2ab8] ss:$52 sps:$4 sm:$0xff]   ;;  %v21844_v20 = vld [vmem:[#allocation2 + $0x2ac0] ss:$52 sps:$4 sm:$0xff]  }
 0x413   :  { %v21849_v27 = vld [vmem:[#allocation2 + $0x2b24] ss:$52 sps:$4 sm:$0xff]  }
 0x414   :  { %11484 = vmatmul.mubr.bf16.vlgmr.msra.gmra.mrb[4].mxu0 %v24021_v1  ;;  %11828 = vmatmul.mubr.bf16.vlgmr.msra.gmra.mrb[4].mxu1 %v24021_v1 }
 0x415   :  { %11495 = vmatpush1.bf16.msra.mxu0 %v21787_v28  ;;  %11839 = vmatpush1.bf16.msra.mxu1 %v21790_v17  ;;  %v21852_v28 = vld [vmem:[#allocation2 + $0x2b2c] ss:$52 sps:$4 sm:$0xff]  }
 0x416   :  { %11496 = vmatprep.subr.bf16.mxu0 %v21795_v29  ;;  %11840 = vmatprep.subr.bf16.mxu1 %v21798_v2  ;;  %v21847_v17 = vld [vmem:[#allocation2 + $0x2b20] ss:$52 sps:$4 sm:$0xff]   ;;  %v21850_v29 = vld [vmem:[#allocation2 + $0x2b28] ss:$52 sps:$4 sm:$0xff]  }
 0x417   :  { %11526 = vmatprep.mubr.bf16.mxu0 %v24035_v47  ;;  %11870 = vmatprep.mubr.bf16.mxu1 %v24035_v47  ;;  %v21855_v2 = vld [vmem:[#allocation2 + $0x2b8c] ss:$52 sps:$4 sm:$0xff]  }
 0x419   :  { %11497 = vmatpush1.bf16.msra.mxu0 %v21793_v3  ;;  %11841 = vmatpush1.bf16.msra.mxu1 %v21796_v31  ;;  %v21858_v3 = vld [vmem:[#allocation2 + $0x2b94] ss:$52 sps:$4 sm:$0xff]  }
 0x41a   :  { %11498 = vmatprep.subr.bf16.mxu0 %v21801_v32  ;;  %11842 = vmatprep.subr.bf16.mxu1 %v21804_v37  ;;  %v21853_v31 = vld [vmem:[#allocation2 + $0x2b88] ss:$52 sps:$4 sm:$0xff]   ;;  %v21856_v32 = vld [vmem:[#allocation2 + $0x2b90] ss:$52 sps:$4 sm:$0xff]  }
 0x41b   :  { %v21861_v37 = vld [vmem:[#allocation2 + $0x2bf4] ss:$52 sps:$4 sm:$0xff]  }
 0x41d   :  { %11499 = vmatpush1.bf16.msra.mxu0 %v21799_v38  ;;  %11843 = vmatpush1.bf16.msra.mxu1 %v21802_v39  ;;  %v21864_v38 = vld [vmem:[#allocation2 + $0x2bfc] ss:$52 sps:$4 sm:$0xff]  }
 0x41e   :  { %11500 = vmatprep.subr.bf16.mxu0 %v21807_v40  ;;  %11844 = vmatprep.subr.bf16.mxu1 %v21810_v25  ;;  %v21859_v39 = vld [vmem:[#allocation2 + $0x2bf0] ss:$52 sps:$4 sm:$0xff]   ;;  %v21862_v40 = vld [vmem:[#allocation2 + $0x2bf8] ss:$52 sps:$4 sm:$0xff]  }
 0x41f   :  { %v21867_v25 = vld [vmem:[#allocation2 + $0x2c5c] ss:$52 sps:$4 sm:$0xff]  }
 0x421   :  { %11501 = vmatpush1.bf16.msra.mxu0 %v21805_v26  ;;  %11845 = vmatpush1.bf16.msra.mxu1 %v21808_v42  ;;  %v21870_v26 = vld [vmem:[#allocation2 + $0x2c64] ss:$52 sps:$4 sm:$0xff]  }
 0x422   :  { %11502 = vmatprep.subr.bf16.mxu0 %v21813_v43  ;;  %11846 = vmatprep.subr.bf16.mxu1 %v21816_v44  ;;  %v21865_v42 = vld [vmem:[#allocation2 + $0x2c58] ss:$52 sps:$4 sm:$0xff]   ;;  %v21868_v43 = vld [vmem:[#allocation2 + $0x2c60] ss:$52 sps:$4 sm:$0xff]  }
 0x423   :  { %v21873_v44 = vld [vmem:[#allocation2 + $0x2cc4] ss:$52 sps:$4 sm:$0xff]  }
 0x425   :  { %11503 = vmatpush1.bf16.msra.mxu0 %v21811_v46  ;;  %11847 = vmatpush1.bf16.msra.mxu1 %v21814_v51  ;;  %v21876_v46 = vld [vmem:[#allocation2 + $0x2ccc] ss:$52 sps:$4 sm:$0xff]  }
 0x426   :  { %11504 = vmatprep.subr.bf16.mxu0 %v21819_v52  ;;  %11848 = vmatprep.subr.bf16.mxu1 %v21822_v53  ;;  %v21871_v51 = vld [vmem:[#allocation2 + $0x2cc0] ss:$52 sps:$4 sm:$0xff]   ;;  %v21874_v52 = vld [vmem:[#allocation2 + $0x2cc8] ss:$52 sps:$4 sm:$0xff]  }
 0x427   :  { %v21879_v53 = vld [vmem:[#allocation2 + $0x2d2c] ss:$52 sps:$4 sm:$0xff]  }
 0x429   :  { %11505 = vmatpush1.bf16.msra.mxu0 %v21817_v54  ;;  %11849 = vmatpush1.bf16.msra.mxu1 %v21820_v33  ;;  %v21882_v54 = vld [vmem:[#allocation2 + $0x2d34] ss:$52 sps:$4 sm:$0xff]  }
 0x42a   :  { %11506 = vmatprep.subr.bf16.mxu0 %v21825_v21  ;;  %11850 = vmatprep.subr.bf16.mxu1 %v21828_v22  ;;  %v21877_v33 = vld [vmem:[#allocation2 + $0x2d28] ss:$52 sps:$4 sm:$0xff]   ;;  %v21880_v21 = vld [vmem:[#allocation2 + $0x2d30] ss:$52 sps:$4 sm:$0xff]  }
 0x42b   :  { %v21885_v22 = vld [vmem:[#allocation2 + $0x2d94] ss:$52 sps:$4 sm:$0xff]  }
 0x42d   :  { %11507 = vmatpush1.bf16.msra.mxu0 %v21823_v36  ;;  %11851 = vmatpush1.bf16.msra.mxu1 %v21826_v56  ;;  %v21888_v36 = vld [vmem:[#allocation2 + $0x2d9c] ss:$52 sps:$4 sm:$0xff]  }
 0x42e   :  { %11508 = vmatprep.subr.bf16.mxu0 %v21831_v57  ;;  %11852 = vmatprep.subr.bf16.mxu1 %v21834_v58  ;;  %v21883_v56 = vld [vmem:[#allocation2 + $0x2d90] ss:$52 sps:$4 sm:$0xff]   ;;  %v21886_v57 = vld [vmem:[#allocation2 + $0x2d98] ss:$52 sps:$4 sm:$0xff]  }
 0x42f   :  { %v21891_v58 = vld [vmem:[#allocation2 + $0x2dfc] ss:$52 sps:$4 sm:$0xff]  }
 0x431   :  { %11509 = vmatpush1.bf16.msra.mxu0 %v21829_v59  ;;  %11853 = vmatpush1.bf16.msra.mxu1 %v21832_v61  ;;  %v21894_v59 = vld [vmem:[#allocation2 + $0x2e04] ss:$52 sps:$4 sm:$0xff]  }
 0x432   :  { %11510 = vmatprep.subr.bf16.mxu0 %v21837_v62  ;;  %11854 = vmatprep.subr.bf16.mxu1 %v21840_v63  ;;  %v21889_v61 = vld [vmem:[#allocation2 + $0x2df8] ss:$52 sps:$4 sm:$0xff]   ;;  %v21892_v62 = vld [vmem:[#allocation2 + $0x2e00] ss:$52 sps:$4 sm:$0xff]  }
 0x433   :  { %v21897_v63 = vld [vmem:[#allocation2 + $0x2e64] ss:$52 sps:$4 sm:$0xff]  }
 0x435   :  { %11511 = vmatpush1.bf16.msra.mxu0 %v21835_v0  ;;  %11855 = vmatpush1.bf16.msra.mxu1 %v21838_v8  ;;  %v21900_v0 = vld [vmem:[#allocation2 + $0x2e6c] ss:$52 sps:$4 sm:$0xff]  }
 0x436   :  { %11512 = vmatprep.subr.bf16.mxu0 %v21843_v11  ;;  %11856 = vmatprep.subr.bf16.mxu1 %v21846_v15  ;;  %v21895_v8 = vld [vmem:[#allocation2 + $0x2e60] ss:$52 sps:$4 sm:$0xff]   ;;  %v21898_v11 = vld [vmem:[#allocation2 + $0x2e68] ss:$52 sps:$4 sm:$0xff]  }
 0x437   :  { %v21903_v15 = vld [vmem:[#allocation2 + $0x2ecc] ss:$52 sps:$4 sm:$0xff]  }
 0x439   :  { %11513 = vmatpush1.bf16.msra.mxu0 %v21841_v19  ;;  %11857 = vmatpush1.bf16.msra.mxu1 %v21844_v20  ;;  %v21906_v19 = vld [vmem:[#allocation2 + $0x2ed4] ss:$52 sps:$4 sm:$0xff]  }
 0x43a   :  { %11514 = vmatprep.subr.bf16.mxu0 %v21849_v27  ;;  %11858 = vmatprep.subr.bf16.mxu1 %v21852_v28  ;;  %v21901_v20 = vld [vmem:[#allocation2 + $0x2ec8] ss:$52 sps:$4 sm:$0xff]   ;;  %v21904_v27 = vld [vmem:[#allocation2 + $0x2ed0] ss:$52 sps:$4 sm:$0xff]  }
 0x43b   :  { %v21909_v28 = vld [vmem:[#allocation2 + $0x2f34] ss:$52 sps:$4 sm:$0xff]  }
 0x43d   :  { %11515 = vmatpush1.bf16.msra.mxu0 %v21847_v17  ;;  %11859 = vmatpush1.bf16.msra.mxu1 %v21850_v29  ;;  %v21912_v17 = vld [vmem:[#allocation2 + $0x2f3c] ss:$52 sps:$4 sm:$0xff]  }
 0x43e   :  { %11516 = vmatprep.subr.bf16.mxu0 %v21855_v2  ;;  %11860 = vmatprep.subr.bf16.mxu1 %v21858_v3  ;;  %v21907_v29 = vld [vmem:[#allocation2 + $0x2f30] ss:$52 sps:$4 sm:$0xff]   ;;  %v21910_v2 = vld [vmem:[#allocation2 + $0x2f38] ss:$52 sps:$4 sm:$0xff]  }
 0x43f   :  { %v21915_v3 = vld [vmem:[#allocation2 + $0x2f9c] ss:$52 sps:$4 sm:$0xff]  }
 0x441   :  { %11517 = vmatpush1.bf16.msra.mxu0 %v21853_v31  ;;  %11861 = vmatpush1.bf16.msra.mxu1 %v21856_v32  ;;  %v21918_v31 = vld [vmem:[#allocation2 + $0x2fa4] ss:$52 sps:$4 sm:$0xff]  }
 0x442   :  { %11518 = vmatprep.subr.bf16.mxu0 %v21861_v37  ;;  %11862 = vmatprep.subr.bf16.mxu1 %v21864_v38  ;;  %v21913_v32 = vld [vmem:[#allocation2 + $0x2f98] ss:$52 sps:$4 sm:$0xff]   ;;  %v21916_v37 = vld [vmem:[#allocation2 + $0x2fa0] ss:$52 sps:$4 sm:$0xff]  }
 0x443   :  { %v21921_v38 = vld [vmem:[#allocation2 + $0x3004] ss:$52 sps:$4 sm:$0xff]  }
 0x445   :  { %11519 = vmatpush1.bf16.msra.mxu0 %v21859_v39  ;;  %11863 = vmatpush1.bf16.msra.mxu1 %v21862_v40  ;;  %v21924_v39 = vld [vmem:[#allocation2 + $0x300c] ss:$52 sps:$4 sm:$0xff]  }
 0x446   :  { %11520 = vmatprep.subr.bf16.mxu0 %v21867_v25  ;;  %11864 = vmatprep.subr.bf16.mxu1 %v21870_v26  ;;  %v21919_v40 = vld [vmem:[#allocation2 + $0x3000] ss:$52 sps:$4 sm:$0xff]   ;;  %v21922_v25 = vld [vmem:[#allocation2 + $0x3008] ss:$52 sps:$4 sm:$0xff]  }
 0x447   :  { %v21927_v26 = vld [vmem:[#allocation2 + $0x306c] ss:$52 sps:$4 sm:$0xff]  }
 0x449   :  { %11521 = vmatpush1.bf16.msra.mxu0 %v21865_v42  ;;  %11865 = vmatpush1.bf16.msra.mxu1 %v21868_v43  ;;  %v21930_v42 = vld [vmem:[#allocation2 + $0x3074] ss:$52 sps:$4 sm:$0xff]  }
 0x44a   :  { %11522 = vmatprep.subr.bf16.mxu0 %v21873_v44  ;;  %11866 = vmatprep.subr.bf16.mxu1 %v21876_v46  ;;  %v21925_v43 = vld [vmem:[#allocation2 + $0x3068] ss:$52 sps:$4 sm:$0xff]   ;;  %v21928_v44 = vld [vmem:[#allocation2 + $0x3070] ss:$52 sps:$4 sm:$0xff]  }
 0x44b   :  { %v21933_v46 = vld [vmem:[#allocation2 + $0x30d4] ss:$52 sps:$4 sm:$0xff]  }
 0x44d   :  { %11523 = vmatpush1.bf16.msra.mxu0 %v21871_v51  ;;  %11867 = vmatpush1.bf16.msra.mxu1 %v21874_v52  ;;  %v21936_v51 = vld [vmem:[#allocation2 + $0x30dc] ss:$52 sps:$4 sm:$0xff]  }
 0x44e   :  { %11524 = vmatprep.subr.bf16.mxu0 %v21879_v53  ;;  %11868 = vmatprep.subr.bf16.mxu1 %v21882_v54  ;;  %v21931_v52 = vld [vmem:[#allocation2 + $0x30d0] ss:$52 sps:$4 sm:$0xff]   ;;  %v21934_v53 = vld [vmem:[#allocation2 + $0x30d8] ss:$52 sps:$4 sm:$0xff]  }
 0x44f   :  { %v21939_v54 = vld [vmem:[#allocation2 + $0x313c] ss:$52 sps:$4 sm:$0xff]  }
 0x451   :  { %11525 = vmatpush1.bf16.msra.mxu0 %v21877_v33  ;;  %11869 = vmatpush1.bf16.msra.mxu1 %v21880_v21  ;;  %v21942_v33 = vld [vmem:[#allocation2 + $0x3144] ss:$52 sps:$4 sm:$0xff]  }
 0x452   :  { %11537 = vmatprep.subr.bf16.mxu0 %v21885_v22  ;;  %11881 = vmatprep.subr.bf16.mxu1 %v21888_v36  ;;  %v21937_v21 = vld [vmem:[#allocation2 + $0x3138] ss:$52 sps:$4 sm:$0xff]   ;;  %v21940_v22 = vld [vmem:[#allocation2 + $0x3140] ss:$52 sps:$4 sm:$0xff]  }
 0x453   :  { %v21945_v36 = vld [vmem:[#allocation2 + $0x31a4] ss:$52 sps:$4 sm:$0xff]  }
 0x454   :  { %11527 = vmatmul.mubr.bf16.vlgmr.msra.gmra.mrb[4].mxu0 %v24053_v23  ;;  %11871 = vmatmul.mubr.bf16.vlgmr.msra.gmra.mrb[4].mxu1 %v24053_v23 }
 0x455   :  { %11538 = vmatpush1.bf16.msra.mxu0 %v21883_v56  ;;  %11882 = vmatpush1.bf16.msra.mxu1 %v21886_v57  ;;  %v21948_v56 = vld [vmem:[#allocation2 + $0x31ac] ss:$52 sps:$4 sm:$0xff]  }
 0x456   :  { %11539 = vmatprep.subr.bf16.mxu0 %v21891_v58  ;;  %11883 = vmatprep.subr.bf16.mxu1 %v21894_v59  ;;  %v21943_v57 = vld [vmem:[#allocation2 + $0x31a0] ss:$52 sps:$4 sm:$0xff]   ;;  %v21946_v58 = vld [vmem:[#allocation2 + $0x31a8] ss:$52 sps:$4 sm:$0xff]  }
 0x457   :  { %11569 = vmatprep.mubr.bf16.mxu0 %v24057_v30  ;;  %11913 = vmatprep.mubr.bf16.mxu1 %v24057_v30  ;;  %v21951_v59 = vld [vmem:[#allocation2 + $0x320c] ss:$52 sps:$4 sm:$0xff]  }
 0x459   :  { %11540 = vmatpush1.bf16.msra.mxu0 %v21889_v61  ;;  %11884 = vmatpush1.bf16.msra.mxu1 %v21892_v62  ;;  %v21954_v61 = vld [vmem:[#allocation2 + $0x3214] ss:$52 sps:$4 sm:$0xff]  }
 0x45a   :  { %11541 = vmatprep.subr.bf16.mxu0 %v21897_v63  ;;  %11885 = vmatprep.subr.bf16.mxu1 %v21900_v0  ;;  %v21949_v62 = vld [vmem:[#allocation2 + $0x3208] ss:$52 sps:$4 sm:$0xff]   ;;  %v21952_v63 = vld [vmem:[#allocation2 + $0x3210] ss:$52 sps:$4 sm:$0xff]  }
 0x45b   :  { %v21957_v0 = vld [vmem:[#allocation2 + $0x3274] ss:$52 sps:$4 sm:$0xff]  }
 0x45d   :  { %11542 = vmatpush1.bf16.msra.mxu0 %v21895_v8  ;;  %11886 = vmatpush1.bf16.msra.mxu1 %v21898_v11  ;;  %v21960_v8 = vld [vmem:[#allocation2 + $0x327c] ss:$52 sps:$4 sm:$0xff]  }
 0x45e   :  { %11543 = vmatprep.subr.bf16.mxu0 %v21903_v15  ;;  %11887 = vmatprep.subr.bf16.mxu1 %v21906_v19  ;;  %v21955_v11 = vld [vmem:[#allocation2 + $0x3270] ss:$52 sps:$4 sm:$0xff]   ;;  %v21958_v15 = vld [vmem:[#allocation2 + $0x3278] ss:$52 sps:$4 sm:$0xff]  }
 0x45f   :  { %v21963_v19 = vld [vmem:[#allocation2 + $0x32dc] ss:$52 sps:$4 sm:$0xff]  }
 0x461   :  { %11544 = vmatpush1.bf16.msra.mxu0 %v21901_v20  ;;  %11888 = vmatpush1.bf16.msra.mxu1 %v21904_v27  ;;  %v21966_v20 = vld [vmem:[#allocation2 + $0x32e4] ss:$52 sps:$4 sm:$0xff]  }
 0x462   :  { %11545 = vmatprep.subr.bf16.mxu0 %v21909_v28  ;;  %11889 = vmatprep.subr.bf16.mxu1 %v21912_v17  ;;  %v21961_v27 = vld [vmem:[#allocation2 + $0x32d8] ss:$52 sps:$4 sm:$0xff]   ;;  %v21964_v28 = vld [vmem:[#allocation2 + $0x32e0] ss:$52 sps:$4 sm:$0xff]  }
 0x463   :  { %v21969_v17 = vld [vmem:[#allocation2 + $0x3344] ss:$52 sps:$4 sm:$0xff]  }
 0x465   :  { %11546 = vmatpush1.bf16.msra.mxu0 %v21907_v29  ;;  %11890 = vmatpush1.bf16.msra.mxu1 %v21910_v2  ;;  %v21972_v29 = vld [vmem:[#allocation2 + $0x334c] ss:$52 sps:$4 sm:$0xff]  }
 0x466   :  { %11547 = vmatprep.subr.bf16.mxu0 %v21915_v3  ;;  %11891 = vmatprep.subr.bf16.mxu1 %v21918_v31  ;;  %v21967_v2 = vld [vmem:[#allocation2 + $0x3340] ss:$52 sps:$4 sm:$0xff]   ;;  %v21970_v3 = vld [vmem:[#allocation2 + $0x3348] ss:$52 sps:$4 sm:$0xff]  }
 0x467   :  { %v21975_v31 = vld [vmem:[#allocation2 + $0x33ac] ss:$52 sps:$4 sm:$0xff]  }
 0x469   :  { %11548 = vmatpush1.bf16.msra.mxu0 %v21913_v32  ;;  %11892 = vmatpush1.bf16.msra.mxu1 %v21916_v37  ;;  %v21978_v32 = vld [vmem:[#allocation2 + $0x33b4] ss:$52 sps:$4 sm:$0xff]  }
 0x46a   :  { %11549 = vmatprep.subr.bf16.mxu0 %v21921_v38  ;;  %11893 = vmatprep.subr.bf16.mxu1 %v21924_v39  ;;  %v21973_v37 = vld [vmem:[#allocation2 + $0x33a8] ss:$52 sps:$4 sm:$0xff]   ;;  %v21976_v38 = vld [vmem:[#allocation2 + $0x33b0] ss:$52 sps:$4 sm:$0xff]  }
 0x46b   :  { %v21981_v39 = vld [vmem:[#allocation2 + $0x24] ss:$52 sps:$4 sm:$0xff]  }
 0x46d   :  { %11550 = vmatpush1.bf16.msra.mxu0 %v21919_v40  ;;  %11894 = vmatpush1.bf16.msra.mxu1 %v21922_v25  ;;  %v21984_v40 = vld [vmem:[#allocation2 + $0x2c] ss:$52 sps:$4 sm:$0xff]  }
 0x46e   :  { %11551 = vmatprep.subr.bf16.mxu0 %v21927_v26  ;;  %11895 = vmatprep.subr.bf16.mxu1 %v21930_v42  ;;  %v21979_v25 = vld [vmem:[#allocation2 + $0x20] ss:$52 sps:$4 sm:$0xff]   ;;  %v21982_v26 = vld [vmem:[#allocation2 + $0x28] ss:$52 sps:$4 sm:$0xff]  }
 0x46f   :  { %v21987_v42 = vld [vmem:[#allocation2 + $0x8c] ss:$52 sps:$4 sm:$0xff]  }
 0x471   :  { %11552 = vmatpush1.bf16.msra.mxu0 %v21925_v43  ;;  %11896 = vmatpush1.bf16.msra.mxu1 %v21928_v44  ;;  %v21990_v43 = vld [vmem:[#allocation2 + $0x94] ss:$52 sps:$4 sm:$0xff]  }
 0x472   :  { %11553 = vmatprep.subr.bf16.mxu0 %v21933_v46  ;;  %11897 = vmatprep.subr.bf16.mxu1 %v21936_v51  ;;  %v21985_v44 = vld [vmem:[#allocation2 + $0x88] ss:$52 sps:$4 sm:$0xff]   ;;  %v21988_v46 = vld [vmem:[#allocation2 + $0x90] ss:$52 sps:$4 sm:$0xff]  }
 0x473   :  { %v21993_v51 = vld [vmem:[#allocation2 + $0xf4] ss:$52 sps:$4 sm:$0xff]  }
 0x475   :  { %11554 = vmatpush1.bf16.msra.mxu0 %v21931_v52  ;;  %11898 = vmatpush1.bf16.msra.mxu1 %v21934_v53  ;;  %v21996_v52 = vld [vmem:[#allocation2 + $0xfc] ss:$52 sps:$4 sm:$0xff]  }
 0x476   :  { %11555 = vmatprep.subr.bf16.mxu0 %v21939_v54  ;;  %11899 = vmatprep.subr.bf16.mxu1 %v21942_v33  ;;  %v21991_v53 = vld [vmem:[#allocation2 + $0xf0] ss:$52 sps:$4 sm:$0xff]   ;;  %v21994_v54 = vld [vmem:[#allocation2 + $0xf8] ss:$52 sps:$4 sm:$0xff]  }
 0x477   :  { %v21999_v33 = vld [vmem:[#allocation2 + $0x15c] ss:$52 sps:$4 sm:$0xff]  }
 0x479   :  { %11556 = vmatpush1.bf16.msra.mxu0 %v21937_v21  ;;  %11900 = vmatpush1.bf16.msra.mxu1 %v21940_v22  ;;  %v22002_v21 = vld [vmem:[#allocation2 + $0x164] ss:$52 sps:$4 sm:$0xff]  }
 0x47a   :  { %11557 = vmatprep.subr.bf16.mxu0 %v21945_v36  ;;  %11901 = vmatprep.subr.bf16.mxu1 %v21948_v56  ;;  %v21997_v22 = vld [vmem:[#allocation2 + $0x158] ss:$52 sps:$4 sm:$0xff]   ;;  %v22000_v36 = vld [vmem:[#allocation2 + $0x160] ss:$52 sps:$4 sm:$0xff]  }
 0x47b   :  { %v22005_v56 = vld [vmem:[#allocation2 + $0x1c4] ss:$52 sps:$4 sm:$0xff]  }
 0x47d   :  { %11558 = vmatpush1.bf16.msra.mxu0 %v21943_v57  ;;  %11902 = vmatpush1.bf16.msra.mxu1 %v21946_v58  ;;  %v22008_v57 = vld [vmem:[#allocation2 + $0x1cc] ss:$52 sps:$4 sm:$0xff]  }
 0x47e   :  { %11559 = vmatprep.subr.bf16.mxu0 %v21951_v59  ;;  %11903 = vmatprep.subr.bf16.mxu1 %v21954_v61  ;;  %v22003_v58 = vld [vmem:[#allocation2 + $0x1c0] ss:$52 sps:$4 sm:$0xff]   ;;  %v22006_v59 = vld [vmem:[#allocation2 + $0x1c8] ss:$52 sps:$4 sm:$0xff]  }
 0x47f   :  { %v22011_v61 = vld [vmem:[#allocation2 + $0x22c] ss:$52 sps:$4 sm:$0xff]  }
 0x481   :  { %11560 = vmatpush1.bf16.msra.mxu0 %v21949_v62  ;;  %11904 = vmatpush1.bf16.msra.mxu1 %v21952_v63  ;;  %v22014_v62 = vld [vmem:[#allocation2 + $0x234] ss:$52 sps:$4 sm:$0xff]  }
 0x482   :  { %11561 = vmatprep.subr.bf16.mxu0 %v21957_v0  ;;  %11905 = vmatprep.subr.bf16.mxu1 %v21960_v8  ;;  %v22009_v63 = vld [vmem:[#allocation2 + $0x228] ss:$52 sps:$4 sm:$0xff]   ;;  %v22012_v0 = vld [vmem:[#allocation2 + $0x230] ss:$52 sps:$4 sm:$0xff]  }
 0x483   :  { %v22017_v8 = vld [vmem:[#allocation2 + $0x294] ss:$52 sps:$4 sm:$0xff]  }
 0x485   :  { %11562 = vmatpush1.bf16.msra.mxu0 %v21955_v11  ;;  %11906 = vmatpush1.bf16.msra.mxu1 %v21958_v15  ;;  %v22020_v11 = vld [vmem:[#allocation2 + $0x29c] ss:$52 sps:$4 sm:$0xff]  }
 0x486   :  { %11563 = vmatprep.subr.bf16.mxu0 %v21963_v19  ;;  %11907 = vmatprep.subr.bf16.mxu1 %v21966_v20  ;;  %v22015_v15 = vld [vmem:[#allocation2 + $0x290] ss:$52 sps:$4 sm:$0xff]   ;;  %v22018_v19 = vld [vmem:[#allocation2 + $0x298] ss:$52 sps:$4 sm:$0xff]  }
 0x487   :  { %v22023_v20 = vld [vmem:[#allocation2 + $0x2fc] ss:$52 sps:$4 sm:$0xff]  }
 0x489   :  { %11564 = vmatpush1.bf16.msra.mxu0 %v21961_v27  ;;  %11908 = vmatpush1.bf16.msra.mxu1 %v21964_v28  ;;  %v22026_v27 = vld [vmem:[#allocation2 + $0x304] ss:$52 sps:$4 sm:$0xff]  }
 0x48a   :  { %11565 = vmatprep.subr.bf16.mxu0 %v21969_v17  ;;  %11909 = vmatprep.subr.bf16.mxu1 %v21972_v29  ;;  %v22021_v28 = vld [vmem:[#allocation2 + $0x2f8] ss:$52 sps:$4 sm:$0xff]   ;;  %v22024_v17 = vld [vmem:[#allocation2 + $0x300] ss:$52 sps:$4 sm:$0xff]  }
 0x48b   :  { %v22029_v29 = vld [vmem:[#allocation2 + $0x364] ss:$52 sps:$4 sm:$0xff]  }
 0x48d   :  { %11566 = vmatpush1.bf16.msra.mxu0 %v21967_v2  ;;  %11910 = vmatpush1.bf16.msra.mxu1 %v21970_v3  ;;  %v22032_v2 = vld [vmem:[#allocation2 + $0x36c] ss:$52 sps:$4 sm:$0xff]  }
 0x48e   :  { %11567 = vmatprep.subr.bf16.mxu0 %v21975_v31  ;;  %11911 = vmatprep.subr.bf16.mxu1 %v21978_v32  ;;  %v22027_v3 = vld [vmem:[#allocation2 + $0x360] ss:$52 sps:$4 sm:$0xff]   ;;  %v22030_v31 = vld [vmem:[#allocation2 + $0x368] ss:$52 sps:$4 sm:$0xff]  }
 0x48f   :  { %v22035_v32 = vld [vmem:[#allocation2 + $0x3cc] ss:$52 sps:$4 sm:$0xff]  }
 0x491   :  { %11568 = vmatpush1.bf16.msra.mxu0 %v21973_v37  ;;  %11912 = vmatpush1.bf16.msra.mxu1 %v21976_v38  ;;  %v22038_v37 = vld [vmem:[#allocation2 + $0x3d4] ss:$52 sps:$4 sm:$0xff]  }
 0x492   :  { %11924 = vmatprep.subr.bf16.mxu0 %v21981_v39  ;;  %12268 = vmatprep.subr.bf16.mxu1 %v21984_v40  ;;  %v22033_v38 = vld [vmem:[#allocation2 + $0x3c8] ss:$52 sps:$4 sm:$0xff]   ;;  %v22036_v39 = vld [vmem:[#allocation2 + $0x3d0] ss:$52 sps:$4 sm:$0xff]  }
 0x493   :  { %v22041_v40 = vld [vmem:[#allocation2 + $0x434] ss:$52 sps:$4 sm:$0xff]  }
 0x494   :  { %11570 = vmatmul.mubr.bf16.vlgmr.msra.gmra.mrb[4].mxu0 %v24065_v45  ;;  %11914 = vmatmul.mubr.bf16.vlgmr.msra.gmra.mrb[4].mxu1 %v24065_v45 }
 0x495   :  { %11925 = vmatpush1.bf16.msra.mxu0 %v21979_v25  ;;  %12269 = vmatpush1.bf16.msra.mxu1 %v21982_v26  ;;  %v22044_v25 = vld [vmem:[#allocation2 + $0x43c] ss:$52 sps:$4 sm:$0xff]  }
 0x496   :  { %11926 = vmatprep.subr.bf16.mxu0 %v21987_v42  ;;  %12270 = vmatprep.subr.bf16.mxu1 %v21990_v43  ;;  %v22039_v26 = vld [vmem:[#allocation2 + $0x430] ss:$52 sps:$4 sm:$0xff]   ;;  %v22042_v42 = vld [vmem:[#allocation2 + $0x438] ss:$52 sps:$4 sm:$0xff]  }
 0x497   :  { %11956 = vmatprep.mubr.bf16.mxu0 %v23907_v50  ;;  %12300 = vmatprep.mubr.bf16.mxu1 %v23907_v50  ;;  %v22047_v43 = vld [vmem:[#allocation2 + $0x49c] ss:$52 sps:$4 sm:$0xff]  }
 0x499   :  { %11927 = vmatpush1.bf16.msra.mxu0 %v21985_v44  ;;  %12271 = vmatpush1.bf16.msra.mxu1 %v21988_v46  ;;  %v22050_v44 = vld [vmem:[#allocation2 + $0x4a4] ss:$52 sps:$4 sm:$0xff]  }
 0x49a   :  { %11928 = vmatprep.subr.bf16.mxu0 %v21993_v51  ;;  %12272 = vmatprep.subr.bf16.mxu1 %v21996_v52  ;;  %v22045_v46 = vld [vmem:[#allocation2 + $0x498] ss:$52 sps:$4 sm:$0xff]   ;;  %v22048_v51 = vld [vmem:[#allocation2 + $0x4a0] ss:$52 sps:$4 sm:$0xff]  }
 0x49b   :  { %v22053_v52 = vld [vmem:[#allocation2 + $0x504] ss:$52 sps:$4 sm:$0xff]  }
 0x49d   :  { %11929 = vmatpush1.bf16.msra.mxu0 %v21991_v53  ;;  %12273 = vmatpush1.bf16.msra.mxu1 %v21994_v54  ;;  %v22056_v53 = vld [vmem:[#allocation2 + $0x50c] ss:$52 sps:$4 sm:$0xff]  }
 0x49e   :  { %11930 = vmatprep.subr.bf16.mxu0 %v21999_v33  ;;  %12274 = vmatprep.subr.bf16.mxu1 %v22002_v21  ;;  %v22051_v54 = vld [vmem:[#allocation2 + $0x500] ss:$52 sps:$4 sm:$0xff]   ;;  %v22054_v33 = vld [vmem:[#allocation2 + $0x508] ss:$52 sps:$4 sm:$0xff]  }
 0x49f   :  { %v22059_v21 = vld [vmem:[#allocation2 + $0x56c] ss:$52 sps:$4 sm:$0xff]  }
 0x4a1   :  { %11931 = vmatpush1.bf16.msra.mxu0 %v21997_v22  ;;  %12275 = vmatpush1.bf16.msra.mxu1 %v22000_v36  ;;  %v22062_v22 = vld [vmem:[#allocation2 + $0x574] ss:$52 sps:$4 sm:$0xff]  }
 0x4a2   :  { %11932 = vmatprep.subr.bf16.mxu0 %v22005_v56  ;;  %12276 = vmatprep.subr.bf16.mxu1 %v22008_v57  ;;  %v22057_v36 = vld [vmem:[#allocation2 + $0x568] ss:$52 sps:$4 sm:$0xff]   ;;  %v22060_v56 = vld [vmem:[#allocation2 + $0x570] ss:$52 sps:$4 sm:$0xff]  }
 0x4a3   :  { %v22065_v57 = vld [vmem:[#allocation2 + $0x5d4] ss:$52 sps:$4 sm:$0xff]  }
 0x4a5   :  { %11933 = vmatpush1.bf16.msra.mxu0 %v22003_v58  ;;  %12277 = vmatpush1.bf16.msra.mxu1 %v22006_v59  ;;  %v22068_v58 = vld [vmem:[#allocation2 + $0x5dc] ss:$52 sps:$4 sm:$0xff]  }
 0x4a6   :  { %11934 = vmatprep.subr.bf16.mxu0 %v22011_v61  ;;  %12278 = vmatprep.subr.bf16.mxu1 %v22014_v62  ;;  %v22063_v59 = vld [vmem:[#allocation2 + $0x5d0] ss:$52 sps:$4 sm:$0xff]   ;;  %v22066_v61 = vld [vmem:[#allocation2 + $0x5d8] ss:$52 sps:$4 sm:$0xff]  }
 0x4a7   :  { %v22071_v62 = vld [vmem:[#allocation2 + $0x63c] ss:$52 sps:$4 sm:$0xff]  }
 0x4a9   :  { %11935 = vmatpush1.bf16.msra.mxu0 %v22009_v63  ;;  %12279 = vmatpush1.bf16.msra.mxu1 %v22012_v0  ;;  %v22074_v63 = vld [vmem:[#allocation2 + $0x644] ss:$52 sps:$4 sm:$0xff]  }
 0x4aa   :  { %11936 = vmatprep.subr.bf16.mxu0 %v22017_v8  ;;  %12280 = vmatprep.subr.bf16.mxu1 %v22020_v11  ;;  %v22069_v0 = vld [vmem:[#allocation2 + $0x638] ss:$52 sps:$4 sm:$0xff]   ;;  %v22072_v8 = vld [vmem:[#allocation2 + $0x640] ss:$52 sps:$4 sm:$0xff]  }
 0x4ab   :  { %v22077_v11 = vld [vmem:[#allocation2 + $0x6a4] ss:$52 sps:$4 sm:$0xff]  }
 0x4ad   :  { %11937 = vmatpush1.bf16.msra.mxu0 %v22015_v15  ;;  %12281 = vmatpush1.bf16.msra.mxu1 %v22018_v19  ;;  %v22080_v15 = vld [vmem:[#allocation2 + $0x6ac] ss:$52 sps:$4 sm:$0xff]  }
 0x4ae   :  { %11938 = vmatprep.subr.bf16.mxu0 %v22023_v20  ;;  %12282 = vmatprep.subr.bf16.mxu1 %v22026_v27  ;;  %v22075_v19 = vld [vmem:[#allocation2 + $0x6a0] ss:$52 sps:$4 sm:$0xff]   ;;  %v22078_v20 = vld [vmem:[#allocation2 + $0x6a8] ss:$52 sps:$4 sm:$0xff]  }
 0x4af   :  { %v22083_v27 = vld [vmem:[#allocation2 + $0x70c] ss:$52 sps:$4 sm:$0xff]  }
 0x4b1   :  { %11939 = vmatpush1.bf16.msra.mxu0 %v22021_v28  ;;  %12283 = vmatpush1.bf16.msra.mxu1 %v22024_v17  ;;  %v22086_v28 = vld [vmem:[#allocation2 + $0x714] ss:$52 sps:$4 sm:$0xff]  }
 0x4b2   :  { %11940 = vmatprep.subr.bf16.mxu0 %v22029_v29  ;;  %12284 = vmatprep.subr.bf16.mxu1 %v22032_v2  ;;  %v22081_v17 = vld [vmem:[#allocation2 + $0x708] ss:$52 sps:$4 sm:$0xff]   ;;  %v22084_v29 = vld [vmem:[#allocation2 + $0x710] ss:$52 sps:$4 sm:$0xff]  }
 0x4b3   :  { %v22089_v2 = vld [vmem:[#allocation2 + $0x774] ss:$52 sps:$4 sm:$0xff]  }
 0x4b5   :  { %11941 = vmatpush1.bf16.msra.mxu0 %v22027_v3  ;;  %12285 = vmatpush1.bf16.msra.mxu1 %v22030_v31  ;;  %v22092_v3 = vld [vmem:[#allocation2 + $0x77c] ss:$52 sps:$4 sm:$0xff]  }
 0x4b6   :  { %11942 = vmatprep.subr.bf16.mxu0 %v22035_v32  ;;  %12286 = vmatprep.subr.bf16.mxu1 %v22038_v37  ;;  %v22087_v31 = vld [vmem:[#allocation2 + $0x770] ss:$52 sps:$4 sm:$0xff]   ;;  %v22090_v32 = vld [vmem:[#allocation2 + $0x778] ss:$52 sps:$4 sm:$0xff]  }
 0x4b7   :  { %v22095_v37 = vld [vmem:[#allocation2 + $0x7dc] ss:$52 sps:$4 sm:$0xff]  }
 0x4b9   :  { %11943 = vmatpush1.bf16.msra.mxu0 %v22033_v38  ;;  %12287 = vmatpush1.bf16.msra.mxu1 %v22036_v39  ;;  %v22098_v38 = vld [vmem:[#allocation2 + $0x7e4] ss:$52 sps:$4 sm:$0xff]  }
 0x4ba   :  { %11944 = vmatprep.subr.bf16.mxu0 %v22041_v40  ;;  %12288 = vmatprep.subr.bf16.mxu1 %v22044_v25  ;;  %v22093_v39 = vld [vmem:[#allocation2 + $0x7d8] ss:$52 sps:$4 sm:$0xff]   ;;  %v22096_v40 = vld [vmem:[#allocation2 + $0x7e0] ss:$52 sps:$4 sm:$0xff]  }
 0x4bb   :  { %v22101_v25 = vld [vmem:[#allocation2 + $0x844] ss:$52 sps:$4 sm:$0xff]  }
 0x4bd   :  { %11945 = vmatpush1.bf16.msra.mxu0 %v22039_v26  ;;  %12289 = vmatpush1.bf16.msra.mxu1 %v22042_v42  ;;  %v22104_v26 = vld [vmem:[#allocation2 + $0x84c] ss:$52 sps:$4 sm:$0xff]  }
 0x4be   :  { %11946 = vmatprep.subr.bf16.mxu0 %v22047_v43  ;;  %12290 = vmatprep.subr.bf16.mxu1 %v22050_v44  ;;  %v22099_v42 = vld [vmem:[#allocation2 + $0x840] ss:$52 sps:$4 sm:$0xff]   ;;  %v22102_v43 = vld [vmem:[#allocation2 + $0x848] ss:$52 sps:$4 sm:$0xff]  }
 0x4bf   :  { %v22107_v44 = vld [vmem:[#allocation2 + $0x8ac] ss:$52 sps:$4 sm:$0xff]  }
 0x4c1   :  { %11947 = vmatpush1.bf16.msra.mxu0 %v22045_v46  ;;  %12291 = vmatpush1.bf16.msra.mxu1 %v22048_v51  ;;  %v22110_v46 = vld [vmem:[#allocation2 + $0x8b4] ss:$52 sps:$4 sm:$0xff]  }
 0x4c2   :  { %11948 = vmatprep.subr.bf16.mxu0 %v22053_v52  ;;  %12292 = vmatprep.subr.bf16.mxu1 %v22056_v53  ;;  %v22105_v51 = vld [vmem:[#allocation2 + $0x8a8] ss:$52 sps:$4 sm:$0xff]   ;;  %v22108_v52 = vld [vmem:[#allocation2 + $0x8b0] ss:$52 sps:$4 sm:$0xff]  }
 0x4c3   :  { %v22113_v53 = vld [vmem:[#allocation2 + $0x914] ss:$52 sps:$4 sm:$0xff]  }
 0x4c5   :  { %11949 = vmatpush1.bf16.msra.mxu0 %v22051_v54  ;;  %12293 = vmatpush1.bf16.msra.mxu1 %v22054_v33  ;;  %v22116_v54 = vld [vmem:[#allocation2 + $0x91c] ss:$52 sps:$4 sm:$0xff]  }
 0x4c6   :  { %11950 = vmatprep.subr.bf16.mxu0 %v22059_v21  ;;  %12294 = vmatprep.subr.bf16.mxu1 %v22062_v22  ;;  %v22111_v33 = vld [vmem:[#allocation2 + $0x910] ss:$52 sps:$4 sm:$0xff]   ;;  %v22114_v21 = vld [vmem:[#allocation2 + $0x918] ss:$52 sps:$4 sm:$0xff]  }
 0x4c7   :  { %v22119_v22 = vld [vmem:[#allocation2 + $0x97c] ss:$52 sps:$4 sm:$0xff]  }
 0x4c9   :  { %11951 = vmatpush1.bf16.msra.mxu0 %v22057_v36  ;;  %12295 = vmatpush1.bf16.msra.mxu1 %v22060_v56  ;;  %v22122_v36 = vld [vmem:[#allocation2 + $0x984] ss:$52 sps:$4 sm:$0xff]  }
 0x4ca   :  { %11952 = vmatprep.subr.bf16.mxu0 %v22065_v57  ;;  %12296 = vmatprep.subr.bf16.mxu1 %v22068_v58  ;;  %v22117_v56 = vld [vmem:[#allocation2 + $0x978] ss:$52 sps:$4 sm:$0xff]   ;;  %v22120_v57 = vld [vmem:[#allocation2 + $0x980] ss:$52 sps:$4 sm:$0xff]  }
 0x4cb   :  { %v22125_v58 = vld [vmem:[#allocation2 + $0x9e4] ss:$52 sps:$4 sm:$0xff]  }
 0x4cd   :  { %11953 = vmatpush1.bf16.msra.mxu0 %v22063_v59  ;;  %12297 = vmatpush1.bf16.msra.mxu1 %v22066_v61  ;;  %v22128_v59 = vld [vmem:[#allocation2 + $0x9ec] ss:$52 sps:$4 sm:$0xff]  }
 0x4ce   :  { %11954 = vmatprep.subr.bf16.mxu0 %v22071_v62  ;;  %12298 = vmatprep.subr.bf16.mxu1 %v22074_v63  ;;  %v22123_v61 = vld [vmem:[#allocation2 + $0x9e0] ss:$52 sps:$4 sm:$0xff]   ;;  %v22126_v62 = vld [vmem:[#allocation2 + $0x9e8] ss:$52 sps:$4 sm:$0xff]  }
 0x4cf   :  { %v22131_v63 = vld [vmem:[#allocation2 + $0xa4c] ss:$52 sps:$4 sm:$0xff]  }
 0x4d1   :  { %11955 = vmatpush1.bf16.msra.mxu0 %v22069_v0  ;;  %12299 = vmatpush1.bf16.msra.mxu1 %v22072_v8  ;;  %v22134_v0 = vld [vmem:[#allocation2 + $0xa54] ss:$52 sps:$4 sm:$0xff]  }
 0x4d2   :  { %11967 = vmatprep.subr.bf16.mxu0 %v22077_v11  ;;  %12311 = vmatprep.subr.bf16.mxu1 %v22080_v15  ;;  %v22129_v8 = vld [vmem:[#allocation2 + $0xa48] ss:$52 sps:$4 sm:$0xff]   ;;  %v22132_v11 = vld [vmem:[#allocation2 + $0xa50] ss:$52 sps:$4 sm:$0xff]  }
 0x4d3   :  { %v22137_v15 = vld [vmem:[#allocation2 + $0xab4] ss:$52 sps:$4 sm:$0xff]  }
 0x4d4   :  { %11957 = vmatmul.mubr.bf16.vlgmr.msra.gmra.mrb[8].mxu0 %v23911_v5  ;;  %12301 = vmatmul.mubr.bf16.vlgmr.msra.gmra.mrb[8].mxu1 %v23911_v5 }
 0x4d5   :  { %11968 = vmatpush1.bf16.msra.mxu0 %v22075_v19  ;;  %12312 = vmatpush1.bf16.msra.mxu1 %v22078_v20  ;;  %v22140_v19 = vld [vmem:[#allocation2 + $0xabc] ss:$52 sps:$4 sm:$0xff]  }
 0x4d6   :  { %11969 = vmatprep.subr.bf16.mxu0 %v22083_v27  ;;  %12313 = vmatprep.subr.bf16.mxu1 %v22086_v28  ;;  %v22135_v20 = vld [vmem:[#allocation2 + $0xab0] ss:$52 sps:$4 sm:$0xff]   ;;  %v22138_v27 = vld [vmem:[#allocation2 + $0xab8] ss:$52 sps:$4 sm:$0xff]  }
 0x4d7   :  { %11999 = vmatprep.mubr.bf16.mxu0 %v23927_v34  ;;  %12343 = vmatprep.mubr.bf16.mxu1 %v23927_v34  ;;  %v22143_v28 = vld [vmem:[#allocation2 + $0xb1c] ss:$52 sps:$4 sm:$0xff]  }
 0x4d9   :  { %11970 = vmatpush1.bf16.msra.mxu0 %v22081_v17  ;;  %12314 = vmatpush1.bf16.msra.mxu1 %v22084_v29  ;;  %v22146_v17 = vld [vmem:[#allocation2 + $0xb24] ss:$52 sps:$4 sm:$0xff]  }
 0x4da   :  { %11971 = vmatprep.subr.bf16.mxu0 %v22089_v2  ;;  %12315 = vmatprep.subr.bf16.mxu1 %v22092_v3  ;;  %v22141_v29 = vld [vmem:[#allocation2 + $0xb18] ss:$52 sps:$4 sm:$0xff]   ;;  %v22144_v2 = vld [vmem:[#allocation2 + $0xb20] ss:$52 sps:$4 sm:$0xff]  }
 0x4db   :  { %v22149_v3 = vld [vmem:[#allocation2 + $0xb84] ss:$52 sps:$4 sm:$0xff]  }
 0x4dd   :  { %11972 = vmatpush1.bf16.msra.mxu0 %v22087_v31  ;;  %12316 = vmatpush1.bf16.msra.mxu1 %v22090_v32  ;;  %v22152_v31 = vld [vmem:[#allocation2 + $0xb8c] ss:$52 sps:$4 sm:$0xff]  }
 0x4de   :  { %11973 = vmatprep.subr.bf16.mxu0 %v22095_v37  ;;  %12317 = vmatprep.subr.bf16.mxu1 %v22098_v38  ;;  %v22147_v32 = vld [vmem:[#allocation2 + $0xb80] ss:$52 sps:$4 sm:$0xff]   ;;  %v22150_v37 = vld [vmem:[#allocation2 + $0xb88] ss:$52 sps:$4 sm:$0xff]  }
 0x4df   :  { %v22155_v38 = vld [vmem:[#allocation2 + $0xbec] ss:$52 sps:$4 sm:$0xff]  }
 0x4e1   :  { %11974 = vmatpush1.bf16.msra.mxu0 %v22093_v39  ;;  %12318 = vmatpush1.bf16.msra.mxu1 %v22096_v40  ;;  %v22158_v39 = vld [vmem:[#allocation2 + $0xbf4] ss:$52 sps:$4 sm:$0xff]  }
 0x4e2   :  { %11975 = vmatprep.subr.bf16.mxu0 %v22101_v25  ;;  %12319 = vmatprep.subr.bf16.mxu1 %v22104_v26  ;;  %v22153_v40 = vld [vmem:[#allocation2 + $0xbe8] ss:$52 sps:$4 sm:$0xff]   ;;  %v22156_v25 = vld [vmem:[#allocation2 + $0xbf0] ss:$52 sps:$4 sm:$0xff]  }
 0x4e3   :  { %v22161_v26 = vld [vmem:[#allocation2 + $0xc54] ss:$52 sps:$4 sm:$0xff]  }
 0x4e5   :  { %11976 = vmatpush1.bf16.msra.mxu0 %v22099_v42  ;;  %12320 = vmatpush1.bf16.msra.mxu1 %v22102_v43  ;;  %v22164_v42 = vld [vmem:[#allocation2 + $0xc5c] ss:$52 sps:$4 sm:$0xff]  }
 0x4e6   :  { %11977 = vmatprep.subr.bf16.mxu0 %v22107_v44  ;;  %12321 = vmatprep.subr.bf16.mxu1 %v22110_v46  ;;  %v22159_v43 = vld [vmem:[#allocation2 + $0xc50] ss:$52 sps:$4 sm:$0xff]   ;;  %v22162_v44 = vld [vmem:[#allocation2 + $0xc58] ss:$52 sps:$4 sm:$0xff]  }
 0x4e7   :  { %v22167_v46 = vld [vmem:[#allocation2 + $0xcbc] ss:$52 sps:$4 sm:$0xff]  }
 0x4e9   :  { %11978 = vmatpush1.bf16.msra.mxu0 %v22105_v51  ;;  %12322 = vmatpush1.bf16.msra.mxu1 %v22108_v52  ;;  %v22170_v51 = vld [vmem:[#allocation2 + $0xcc4] ss:$52 sps:$4 sm:$0xff]  }
 0x4ea   :  { %11979 = vmatprep.subr.bf16.mxu0 %v22113_v53  ;;  %12323 = vmatprep.subr.bf16.mxu1 %v22116_v54  ;;  %v22165_v52 = vld [vmem:[#allocation2 + $0xcb8] ss:$52 sps:$4 sm:$0xff]   ;;  %v22168_v53 = vld [vmem:[#allocation2 + $0xcc0] ss:$52 sps:$4 sm:$0xff]  }
 0x4eb   :  { %v22173_v54 = vld [vmem:[#allocation2 + $0xd24] ss:$52 sps:$4 sm:$0xff]  }
 0x4ed   :  { %11980 = vmatpush1.bf16.msra.mxu0 %v22111_v33  ;;  %12324 = vmatpush1.bf16.msra.mxu1 %v22114_v21  ;;  %v22176_v33 = vld [vmem:[#allocation2 + $0xd2c] ss:$52 sps:$4 sm:$0xff]  }
 0x4ee   :  { %11981 = vmatprep.subr.bf16.mxu0 %v22119_v22  ;;  %12325 = vmatprep.subr.bf16.mxu1 %v22122_v36  ;;  %v22171_v21 = vld [vmem:[#allocation2 + $0xd20] ss:$52 sps:$4 sm:$0xff]   ;;  %v22174_v22 = vld [vmem:[#allocation2 + $0xd28] ss:$52 sps:$4 sm:$0xff]  }
 0x4ef   :  { %v22179_v36 = vld [vmem:[#allocation2 + $0xd8c] ss:$52 sps:$4 sm:$0xff]  }
 0x4f1   :  { %11982 = vmatpush1.bf16.msra.mxu0 %v22117_v56  ;;  %12326 = vmatpush1.bf16.msra.mxu1 %v22120_v57  ;;  %v22182_v56 = vld [vmem:[#allocation2 + $0xd94] ss:$52 sps:$4 sm:$0xff]  }
 0x4f2   :  { %11983 = vmatprep.subr.bf16.mxu0 %v22125_v58  ;;  %12327 = vmatprep.subr.bf16.mxu1 %v22128_v59  ;;  %v22177_v57 = vld [vmem:[#allocation2 + $0xd88] ss:$52 sps:$4 sm:$0xff]   ;;  %v22180_v58 = vld [vmem:[#allocation2 + $0xd90] ss:$52 sps:$4 sm:$0xff]  }
 0x4f3   :  { %v22185_v59 = vld [vmem:[#allocation2 + $0xdf4] ss:$52 sps:$4 sm:$0xff]  }
 0x4f5   :  { %11984 = vmatpush1.bf16.msra.mxu0 %v22123_v61  ;;  %12328 = vmatpush1.bf16.msra.mxu1 %v22126_v62  ;;  %v22188_v61 = vld [vmem:[#allocation2 + $0xdfc] ss:$52 sps:$4 sm:$0xff]  }
 0x4f6   :  { %11985 = vmatprep.subr.bf16.mxu0 %v22131_v63  ;;  %12329 = vmatprep.subr.bf16.mxu1 %v22134_v0  ;;  %v22183_v62 = vld [vmem:[#allocation2 + $0xdf0] ss:$52 sps:$4 sm:$0xff]   ;;  %v22186_v63 = vld [vmem:[#allocation2 + $0xdf8] ss:$52 sps:$4 sm:$0xff]  }
 0x4f7   :  { %v22191_v0 = vld [vmem:[#allocation2 + $0xe5c] ss:$52 sps:$4 sm:$0xff]  }
 0x4f9   :  { %11986 = vmatpush1.bf16.msra.mxu0 %v22129_v8  ;;  %12330 = vmatpush1.bf16.msra.mxu1 %v22132_v11  ;;  %v22194_v8 = vld [vmem:[#allocation2 + $0xe64] ss:$52 sps:$4 sm:$0xff]  }
 0x4fa   :  { %11987 = vmatprep.subr.bf16.mxu0 %v22137_v15  ;;  %12331 = vmatprep.subr.bf16.mxu1 %v22140_v19  ;;  %v22189_v11 = vld [vmem:[#allocation2 + $0xe58] ss:$52 sps:$4 sm:$0xff]   ;;  %v22192_v15 = vld [vmem:[#allocation2 + $0xe60] ss:$52 sps:$4 sm:$0xff]  }
 0x4fb   :  { %v22197_v19 = vld [vmem:[#allocation2 + $0xec4] ss:$52 sps:$4 sm:$0xff]  }
 0x4fd   :  { %11988 = vmatpush1.bf16.msra.mxu0 %v22135_v20  ;;  %12332 = vmatpush1.bf16.msra.mxu1 %v22138_v27  ;;  %v22200_v20 = vld [vmem:[#allocation2 + $0xecc] ss:$52 sps:$4 sm:$0xff]  }
 0x4fe   :  { %11989 = vmatprep.subr.bf16.mxu0 %v22143_v28  ;;  %12333 = vmatprep.subr.bf16.mxu1 %v22146_v17  ;;  %v22195_v27 = vld [vmem:[#allocation2 + $0xec0] ss:$52 sps:$4 sm:$0xff]   ;;  %v22198_v28 = vld [vmem:[#allocation2 + $0xec8] ss:$52 sps:$4 sm:$0xff]  }
 0x4ff   :  { %v22203_v17 = vld [vmem:[#allocation2 + $0xf2c] ss:$52 sps:$4 sm:$0xff]  }
 0x501   :  { %11990 = vmatpush1.bf16.msra.mxu0 %v22141_v29  ;;  %12334 = vmatpush1.bf16.msra.mxu1 %v22144_v2  ;;  %v22206_v29 = vld [vmem:[#allocation2 + $0xf34] ss:$52 sps:$4 sm:$0xff]  }
 0x502   :  { %11991 = vmatprep.subr.bf16.mxu0 %v22149_v3  ;;  %12335 = vmatprep.subr.bf16.mxu1 %v22152_v31  ;;  %v22201_v2 = vld [vmem:[#allocation2 + $0xf28] ss:$52 sps:$4 sm:$0xff]   ;;  %v22204_v3 = vld [vmem:[#allocation2 + $0xf30] ss:$52 sps:$4 sm:$0xff]  }
 0x503   :  { %v22209_v31 = vld [vmem:[#allocation2 + $0xf94] ss:$52 sps:$4 sm:$0xff]  }
 0x505   :  { %11992 = vmatpush1.bf16.msra.mxu0 %v22147_v32  ;;  %12336 = vmatpush1.bf16.msra.mxu1 %v22150_v37  ;;  %v22212_v32 = vld [vmem:[#allocation2 + $0xf9c] ss:$52 sps:$4 sm:$0xff]  }
 0x506   :  { %11993 = vmatprep.subr.bf16.mxu0 %v22155_v38  ;;  %12337 = vmatprep.subr.bf16.mxu1 %v22158_v39  ;;  %v22207_v37 = vld [vmem:[#allocation2 + $0xf90] ss:$52 sps:$4 sm:$0xff]   ;;  %v22210_v38 = vld [vmem:[#allocation2 + $0xf98] ss:$52 sps:$4 sm:$0xff]  }
 0x507   :  { %v22215_v39 = vld [vmem:[#allocation2 + $0xffc] ss:$52 sps:$4 sm:$0xff]  }
 0x509   :  { %11994 = vmatpush1.bf16.msra.mxu0 %v22153_v40  ;;  %12338 = vmatpush1.bf16.msra.mxu1 %v22156_v25  ;;  %v22218_v40 = vld [vmem:[#allocation2 + $0x1004] ss:$52 sps:$4 sm:$0xff]  }
 0x50a   :  { %11995 = vmatprep.subr.bf16.mxu0 %v22161_v26  ;;  %12339 = vmatprep.subr.bf16.mxu1 %v22164_v42  ;;  %v22213_v25 = vld [vmem:[#allocation2 + $0xff8] ss:$52 sps:$4 sm:$0xff]   ;;  %v22216_v26 = vld [vmem:[#allocation2 + $0x1000] ss:$52 sps:$4 sm:$0xff]  }
 0x50b   :  { %v22221_v42 = vld [vmem:[#allocation2 + $0x1064] ss:$52 sps:$4 sm:$0xff]  }
 0x50d   :  { %11996 = vmatpush1.bf16.msra.mxu0 %v22159_v43  ;;  %12340 = vmatpush1.bf16.msra.mxu1 %v22162_v44  ;;  %v22224_v43 = vld [vmem:[#allocation2 + $0x106c] ss:$52 sps:$4 sm:$0xff]  }
 0x50e   :  { %11997 = vmatprep.subr.bf16.mxu0 %v22167_v46  ;;  %12341 = vmatprep.subr.bf16.mxu1 %v22170_v51  ;;  %v22219_v44 = vld [vmem:[#allocation2 + $0x1060] ss:$52 sps:$4 sm:$0xff]   ;;  %v22222_v46 = vld [vmem:[#allocation2 + $0x1068] ss:$52 sps:$4 sm:$0xff]  }
 0x50f   :  { %v22227_v51 = vld [vmem:[#allocation2 + $0x10cc] ss:$52 sps:$4 sm:$0xff]  }
 0x511   :  { %11998 = vmatpush1.bf16.msra.mxu0 %v22165_v52  ;;  %12342 = vmatpush1.bf16.msra.mxu1 %v22168_v53  ;;  %v22230_v52 = vld [vmem:[#allocation2 + $0x10d4] ss:$52 sps:$4 sm:$0xff]  }
 0x512   :  { %12010 = vmatprep.subr.bf16.mxu0 %v22173_v54  ;;  %12354 = vmatprep.subr.bf16.mxu1 %v22176_v33  ;;  %v22225_v53 = vld [vmem:[#allocation2 + $0x10c8] ss:$52 sps:$4 sm:$0xff]   ;;  %v22228_v54 = vld [vmem:[#allocation2 + $0x10d0] ss:$52 sps:$4 sm:$0xff]  }
 0x513   :  { %v22233_v33 = vld [vmem:[#allocation2 + $0x1134] ss:$52 sps:$4 sm:$0xff]  }
 0x514   :  { %12000 = vmatmul.mubr.bf16.vlgmr.msra.gmra.mrb[8].mxu0 %v23933_v13  ;;  %12344 = vmatmul.mubr.bf16.vlgmr.msra.gmra.mrb[8].mxu1 %v23933_v13 }
 0x515   :  { %12011 = vmatpush1.bf16.msra.mxu0 %v22171_v21  ;;  %12355 = vmatpush1.bf16.msra.mxu1 %v22174_v22  ;;  %v22236_v21 = vld [vmem:[#allocation2 + $0x113c] ss:$52 sps:$4 sm:$0xff]  }
 0x516   :  { %12012 = vmatprep.subr.bf16.mxu0 %v22179_v36  ;;  %12356 = vmatprep.subr.bf16.mxu1 %v22182_v56  ;;  %v22231_v22 = vld [vmem:[#allocation2 + $0x1130] ss:$52 sps:$4 sm:$0xff]   ;;  %v22234_v36 = vld [vmem:[#allocation2 + $0x1138] ss:$52 sps:$4 sm:$0xff]  }
 0x517   :  { %12042 = vmatprep.mubr.bf16.mxu0 %v23947_v18  ;;  %12386 = vmatprep.mubr.bf16.mxu1 %v23947_v18  ;;  %v22239_v56 = vld [vmem:[#allocation2 + $0x119c] ss:$52 sps:$4 sm:$0xff]  }
 0x519   :  { %12013 = vmatpush1.bf16.msra.mxu0 %v22177_v57  ;;  %12357 = vmatpush1.bf16.msra.mxu1 %v22180_v58  ;;  %v22242_v57 = vld [vmem:[#allocation2 + $0x11a4] ss:$52 sps:$4 sm:$0xff]  }
 0x51a   :  { %12014 = vmatprep.subr.bf16.mxu0 %v22185_v59  ;;  %12358 = vmatprep.subr.bf16.mxu1 %v22188_v61  ;;  %v22237_v58 = vld [vmem:[#allocation2 + $0x1198] ss:$52 sps:$4 sm:$0xff]   ;;  %v22240_v59 = vld [vmem:[#allocation2 + $0x11a0] ss:$52 sps:$4 sm:$0xff]  }
 0x51b   :  { %v22245_v61 = vld [vmem:[#allocation2 + $0x1204] ss:$52 sps:$4 sm:$0xff]  }
 0x51d   :  { %12015 = vmatpush1.bf16.msra.mxu0 %v22183_v62  ;;  %12359 = vmatpush1.bf16.msra.mxu1 %v22186_v63  ;;  %v22248_v62 = vld [vmem:[#allocation2 + $0x120c] ss:$52 sps:$4 sm:$0xff]  }
 0x51e   :  { %12016 = vmatprep.subr.bf16.mxu0 %v22191_v0  ;;  %12360 = vmatprep.subr.bf16.mxu1 %v22194_v8  ;;  %v22243_v63 = vld [vmem:[#allocation2 + $0x1200] ss:$52 sps:$4 sm:$0xff]   ;;  %v22246_v0 = vld [vmem:[#allocation2 + $0x1208] ss:$52 sps:$4 sm:$0xff]  }
 0x51f   :  { %v22251_v8 = vld [vmem:[#allocation2 + $0x126c] ss:$52 sps:$4 sm:$0xff]  }
 0x521   :  { %12017 = vmatpush1.bf16.msra.mxu0 %v22189_v11  ;;  %12361 = vmatpush1.bf16.msra.mxu1 %v22192_v15  ;;  %v22254_v11 = vld [vmem:[#allocation2 + $0x1274] ss:$52 sps:$4 sm:$0xff]  }
 0x522   :  { %12018 = vmatprep.subr.bf16.mxu0 %v22197_v19  ;;  %12362 = vmatprep.subr.bf16.mxu1 %v22200_v20  ;;  %v22249_v15 = vld [vmem:[#allocation2 + $0x1268] ss:$52 sps:$4 sm:$0xff]   ;;  %v22252_v19 = vld [vmem:[#allocation2 + $0x1270] ss:$52 sps:$4 sm:$0xff]  }
 0x523   :  { %v22257_v20 = vld [vmem:[#allocation2 + $0x12d4] ss:$52 sps:$4 sm:$0xff]  }
 0x525   :  { %12019 = vmatpush1.bf16.msra.mxu0 %v22195_v27  ;;  %12363 = vmatpush1.bf16.msra.mxu1 %v22198_v28  ;;  %v22260_v27 = vld [vmem:[#allocation2 + $0x12dc] ss:$52 sps:$4 sm:$0xff]  }
 0x526   :  { %12020 = vmatprep.subr.bf16.mxu0 %v22203_v17  ;;  %12364 = vmatprep.subr.bf16.mxu1 %v22206_v29  ;;  %v22255_v28 = vld [vmem:[#allocation2 + $0x12d0] ss:$52 sps:$4 sm:$0xff]   ;;  %v22258_v17 = vld [vmem:[#allocation2 + $0x12d8] ss:$52 sps:$4 sm:$0xff]  }
 0x527   :  { %v22263_v29 = vld [vmem:[#allocation2 + $0x133c] ss:$52 sps:$4 sm:$0xff]  }
 0x529   :  { %12021 = vmatpush1.bf16.msra.mxu0 %v22201_v2  ;;  %12365 = vmatpush1.bf16.msra.mxu1 %v22204_v3  ;;  %v22266_v2 = vld [vmem:[#allocation2 + $0x1344] ss:$52 sps:$4 sm:$0xff]  }
 0x52a   :  { %12022 = vmatprep.subr.bf16.mxu0 %v22209_v31  ;;  %12366 = vmatprep.subr.bf16.mxu1 %v22212_v32  ;;  %v22261_v3 = vld [vmem:[#allocation2 + $0x1338] ss:$52 sps:$4 sm:$0xff]   ;;  %v22264_v31 = vld [vmem:[#allocation2 + $0x1340] ss:$52 sps:$4 sm:$0xff]  }
 0x52b   :  { %v22269_v32 = vld [vmem:[#allocation2 + $0x13a4] ss:$52 sps:$4 sm:$0xff]  }
 0x52d   :  { %12023 = vmatpush1.bf16.msra.mxu0 %v22207_v37  ;;  %12367 = vmatpush1.bf16.msra.mxu1 %v22210_v38  ;;  %v22272_v37 = vld [vmem:[#allocation2 + $0x13ac] ss:$52 sps:$4 sm:$0xff]  }
 0x52e   :  { %12024 = vmatprep.subr.bf16.mxu0 %v22215_v39  ;;  %12368 = vmatprep.subr.bf16.mxu1 %v22218_v40  ;;  %v22267_v38 = vld [vmem:[#allocation2 + $0x13a0] ss:$52 sps:$4 sm:$0xff]   ;;  %v22270_v39 = vld [vmem:[#allocation2 + $0x13a8] ss:$52 sps:$4 sm:$0xff]  }
 0x52f   :  { %v22275_v40 = vld [vmem:[#allocation2 + $0x140c] ss:$52 sps:$4 sm:$0xff]  }
 0x531   :  { %12025 = vmatpush1.bf16.msra.mxu0 %v22213_v25  ;;  %12369 = vmatpush1.bf16.msra.mxu1 %v22216_v26  ;;  %v22278_v25 = vld [vmem:[#allocation2 + $0x1414] ss:$52 sps:$4 sm:$0xff]  }
 0x532   :  { %12026 = vmatprep.subr.bf16.mxu0 %v22221_v42  ;;  %12370 = vmatprep.subr.bf16.mxu1 %v22224_v43  ;;  %v22273_v26 = vld [vmem:[#allocation2 + $0x1408] ss:$52 sps:$4 sm:$0xff]   ;;  %v22276_v42 = vld [vmem:[#allocation2 + $0x1410] ss:$52 sps:$4 sm:$0xff]  }
 0x533   :  { %v22281_v43 = vld [vmem:[#allocation2 + $0x1474] ss:$52 sps:$4 sm:$0xff]  }
 0x535   :  { %12027 = vmatpush1.bf16.msra.mxu0 %v22219_v44  ;;  %12371 = vmatpush1.bf16.msra.mxu1 %v22222_v46  ;;  %v22284_v44 = vld [vmem:[#allocation2 + $0x147c] ss:$52 sps:$4 sm:$0xff]  }
 0x536   :  { %12028 = vmatprep.subr.bf16.mxu0 %v22227_v51  ;;  %12372 = vmatprep.subr.bf16.mxu1 %v22230_v52  ;;  %v22279_v46 = vld [vmem:[#allocation2 + $0x1470] ss:$52 sps:$4 sm:$0xff]   ;;  %v22282_v51 = vld [vmem:[#allocation2 + $0x1478] ss:$52 sps:$4 sm:$0xff]  }
 0x537   :  { %v22287_v52 = vld [vmem:[#allocation2 + $0x14dc] ss:$52 sps:$4 sm:$0xff]  }
 0x539   :  { %12029 = vmatpush1.bf16.msra.mxu0 %v22225_v53  ;;  %12373 = vmatpush1.bf16.msra.mxu1 %v22228_v54  ;;  %v22290_v53 = vld [vmem:[#allocation2 + $0x14e4] ss:$52 sps:$4 sm:$0xff]  }
 0x53a   :  { %12030 = vmatprep.subr.bf16.mxu0 %v22233_v33  ;;  %12374 = vmatprep.subr.bf16.mxu1 %v22236_v21  ;;  %v22285_v54 = vld [vmem:[#allocation2 + $0x14d8] ss:$52 sps:$4 sm:$0xff]   ;;  %v22288_v33 = vld [vmem:[#allocation2 + $0x14e0] ss:$52 sps:$4 sm:$0xff]  }
 0x53b   :  { %v22293_v21 = vld [vmem:[#allocation2 + $0x1544] ss:$52 sps:$4 sm:$0xff]  }
 0x53d   :  { %12031 = vmatpush1.bf16.msra.mxu0 %v22231_v22  ;;  %12375 = vmatpush1.bf16.msra.mxu1 %v22234_v36  ;;  %v22296_v22 = vld [vmem:[#allocation2 + $0x154c] ss:$52 sps:$4 sm:$0xff]  }
 0x53e   :  { %12032 = vmatprep.subr.bf16.mxu0 %v22239_v56  ;;  %12376 = vmatprep.subr.bf16.mxu1 %v22242_v57  ;;  %v22291_v36 = vld [vmem:[#allocation2 + $0x1540] ss:$52 sps:$4 sm:$0xff]   ;;  %v24142_v56 = vsub.s32 4, %v24083_v60  ;;  %v1981_v57 = vsub.s32 6, %v24083_v60 }
 0x541   :  { %12033 = vmatpush1.bf16.msra.mxu0 %v22237_v58  ;;  %12377 = vmatpush1.bf16.msra.mxu1 %v22240_v59  ;;  %v22294_v58 = vld [vmem:[#allocation2 + $0x1548] ss:$52 sps:$4 sm:$0xff]   ;;  %v1977_v59 = vsub.s32 5, %v24083_v60 }
 0x542   :  { %12034 = vmatprep.subr.bf16.mxu0 %v22245_v61  ;;  %12378 = vmatprep.subr.bf16.mxu1 %v22248_v62  ;;  %v1985_v61 = vsub.s32 7, %v24083_v60  ;;  %v22299_v62 = vld [vmem:[#allocation2 + $0x15ac] ss:$52 sps:$4 sm:$0xff]  }
 0x545   :  { %12035 = vmatpush1.bf16.msra.mxu0 %v22243_v63  ;;  %12379 = vmatpush1.bf16.msra.mxu1 %v22246_v0  ;;  %v22302_v63 = vld [vmem:[#allocation2 + $0x15b4] ss:$52 sps:$4 sm:$0xff]   ;;  %v23515_v0 = vld [vmem:[#allocation4] sm:$0xff] }
 0x546   :  { %12036 = vmatprep.subr.bf16.mxu0 %v22251_v8  ;;  %12380 = vmatprep.subr.bf16.mxu1 %v22254_v11  ;;  %v1974_v8 = vrot.slane %v23515_v0, %v24142_v56  ;;  %v1982_v11 = vrot.slane %v23515_v0, %v1981_v57 }
 0x549   :  { %12037 = vmatpush1.bf16.msra.mxu0 %v22249_v15  ;;  %12381 = vmatpush1.bf16.msra.mxu1 %v22252_v19  ;;  %v1978_v15 = vrot.slane %v23515_v0, %v1977_v59  ;;  %v1986_v19 = vrot.slane %v23515_v0, %v1985_v61 }
 0x54a   :  { %12038 = vmatprep.subr.bf16.mxu0 %v22257_v20  ;;  %12382 = vmatprep.subr.bf16.mxu1 %v22260_v27  ;;  %v22297_v20 = vld [vmem:[#allocation2 + $0x15a8] ss:$52 sps:$4 sm:$0xff]   ;;  %v22300_v27 = vld [vmem:[#allocation2 + $0x15b0] ss:$52 sps:$4 sm:$0xff]  }
 0x54d   :  { %12039 = vmatpush1.bf16.msra.mxu0 %v22255_v28  ;;  %12383 = vmatpush1.bf16.msra.mxu1 %v22258_v17  ;;  %v22305_v28 = vld [vmem:[#allocation2 + $0x1614] ss:$52 sps:$4 sm:$0xff]   ;;  %v22308_v17 = vld [vmem:[#allocation2 + $0x161c] ss:$52 sps:$4 sm:$0xff]  }
 0x54e   :  { %12040 = vmatprep.subr.bf16.mxu0 %v22263_v29  ;;  %12384 = vmatprep.subr.bf16.mxu1 %v22266_v2 }
 0x551   :  { %12041 = vmatpush1.bf16.msra.mxu0 %v22261_v3  ;;  %12385 = vmatpush1.bf16.msra.mxu1 %v22264_v31 }
 0x552   :  { %12053 = vmatprep.subr.bf16.mxu0 %v22269_v32  ;;  %12397 = vmatprep.subr.bf16.mxu1 %v22272_v37 }
 0x554   :  { %12043 = vmatmul.mubr.bf16.vlgmr.msra.gmra.mrb[8].mxu0 %v23955_v24  ;;  %12387 = vmatmul.mubr.bf16.vlgmr.msra.gmra.mrb[8].mxu1 %v23955_v24 }
 0x555   :  { %12054 = vmatpush1.bf16.msra.mxu0 %v22267_v38  ;;  %12398 = vmatpush1.bf16.msra.mxu1 %v22270_v39 }
 0x556   :  { %12055 = vmatprep.subr.bf16.mxu0 %v22275_v40  ;;  %12399 = vmatprep.subr.bf16.mxu1 %v22278_v25 }
 0x557   :  { %12085 = vmatprep.mubr.bf16.mxu0 %v23969_v16  ;;  %12429 = vmatprep.mubr.bf16.mxu1 %v23969_v16 }
 0x559   :  { %12056 = vmatpush1.bf16.msra.mxu0 %v22273_v26  ;;  %12400 = vmatpush1.bf16.msra.mxu1 %v22276_v42  ;;  %v22303_v26 = vld [vmem:[#allocation2 + $0x1610] ss:$52 sps:$4 sm:$0xff]   ;;  %v22306_v42 = vld [vmem:[#allocation2 + $0x1618] ss:$52 sps:$4 sm:$0xff]  }
 0x55a   :  { %12057 = vmatprep.subr.bf16.mxu0 %v22281_v43  ;;  %12401 = vmatprep.subr.bf16.mxu1 %v22284_v44 }
 0x55d   :  { %12058 = vmatpush1.bf16.msra.mxu0 %v22279_v46  ;;  %12402 = vmatpush1.bf16.msra.mxu1 %v22282_v51 }
 0x55e   :  { %12059 = vmatprep.subr.bf16.mxu0 %v22287_v52  ;;  %12403 = vmatprep.subr.bf16.mxu1 %v22290_v53  ;;  %v22311_v52 = vld [vmem:[#allocation2 + $0x167c] ss:$52 sps:$4 sm:$0xff]   ;;  %v22314_v53 = vld [vmem:[#allocation2 + $0x1684] ss:$52 sps:$4 sm:$0xff]  }
 0x561   :  { %12060 = vmatpush1.bf16.msra.mxu0 %v22285_v54  ;;  %12404 = vmatpush1.bf16.msra.mxu1 %v22288_v33 }
 0x562   :  { %12061 = vmatprep.subr.bf16.mxu0 %v22293_v21  ;;  %12405 = vmatprep.subr.bf16.mxu1 %v22296_v22 }
 0x565   :  { %12062 = vmatpush1.bf16.msra.mxu0 %v22291_v36  ;;  %12406 = vmatpush1.bf16.msra.mxu1 %v22294_v58  ;;  %v22309_v36 = vld [vmem:[#allocation2 + $0x1678] ss:$52 sps:$4 sm:$0xff]  }
 0x566   :  { %12063 = vmatprep.subr.bf16.mxu0 %v22299_v62  ;;  %12407 = vmatprep.subr.bf16.mxu1 %v22302_v63 }
 0x567   :  { %v11571_v29 = vpop.f32.mrb[4].mxu0  ;;  %v11915_v2 = vpop.f32.mrb[4].mxu1 }
 0x568   :  { %v20194_v3 = vadd.f32 %v11571_v29, %v1974_v8  ;;  %v20198_v31 = vadd.f32 %v11915_v2, %v1982_v11  ;;  %v11573_v32 = vpop.f32.mrb[5].mxu0  ;;  %v11917_v37 = vpop.f32.mrb[5].mxu1  ;;  %v22320_v29 = vld [vmem:[#allocation2 + $0x16ec] ss:$52 sps:$4 sm:$0xff]  }
 0x569   :  { %v20195_v38 = vadd.f32 %v11573_v32, %v1978_v15  ;;  %v20199_v39 = vadd.f32 %v11917_v37, %v1986_v19  ;;  %v11575_v40 = vpop.f32.mrb[6].mxu0  ;;  %v11919_v25 = vpop.f32.mrb[6].mxu1  ;;  %12064 = vmatpush1.bf16.msra.mxu0 %v22297_v20  ;;  %12408 = vmatpush1.bf16.msra.mxu1 %v22300_v27  ;;  %v22315_v2 = vld [vmem:[#allocation2 + $0x16e0] ss:$52 sps:$4 sm:$0xff]   ;;  %v22321_v37 = vld [vmem:[#allocation2 + $0x1748] ss:$52 sps:$4 sm:$0xff]  }
 0x56a   :  { %v20196_v43 = vadd.f32 %v11575_v40, %v1974_v8  ;;  %v20200_v44 = vadd.f32 %v11919_v25, %v1982_v11  ;;  %v11577_v46 = vpop.f32.mrb[7].mxu0  ;;  %v11921_v51 = vpop.f32.mrb[7].mxu1  ;;  %12065 = vmatprep.subr.bf16.mxu0 %v22305_v28  ;;  %12409 = vmatprep.subr.bf16.mxu1 %v22308_v17  ;;  %v12944_v54 = vmax.f32 %v20194_v3, 0.0  ;;  %v12946_v33 = vmax.f32 %v20198_v31, 0.0  ;;  %v22312_v8 = vld [vmem:[#allocation2 + $0x1680] ss:$52 sps:$4 sm:$0xff]  }
 0x56b   :  { %v20197_v21 = vadd.f32 %v11577_v46, %v1978_v15  ;;  %v20201_v22 = vadd.f32 %v11921_v51, %v1986_v19  ;;  %v12945_v63 = vmax.f32 %v20195_v38, 0.0  ;;  %v12947_v0 = vmax.f32 %v20199_v39, 0.0  ;;  %v22317_v17 = vld [vmem:[#allocation2 + $0x16e4] ss:$52 sps:$4 sm:$0xff]   ;;  %v22318_v3 = vld [vmem:[#allocation2 + $0x16e8] ss:$52 sps:$4 sm:$0xff]  }
 0x56c   :  { %v12957_v58 = vmax.f32 %v20196_v43, 0.0  ;;  %v12959_v62 = vmax.f32 %v20200_v44, 0.0  ;;  %v22323_v31 = vld [vmem:[#allocation2 + $0x174c] ss:$52 sps:$4 sm:$0xff]   ;;  %v22326_v32 = vld [vmem:[#allocation2 + $0x1754] ss:$52 sps:$4 sm:$0xff]  }
 0x56d   :  { %v12958_v20 = vmax.f32 %v20197_v21, 0.0  ;;  %v12960_v27 = vmax.f32 %v20201_v22, 0.0  ;;  %12066 = vmatpush1.bf16.msra.mxu0 %v22303_v26  ;;  %12410 = vmatpush1.bf16.msra.mxu1 %v22306_v42  ;;  %v22324_v38 = vld [vmem:[#allocation2 + $0x1750] ss:$52 sps:$4 sm:$0xff]   ;;  %v22329_v39 = vld [vmem:[#allocation2 + $0x17b4] ss:$52 sps:$4 sm:$0xff]  }
 0x56e   :  { %v24154_v11 = vpack.c.bf16 %v12957_v58, %v12944_v54  ;;  %v24156_v28 = vpack.c.bf16 %v12959_v62, %v12946_v33  ;;  %12067 = vmatprep.subr.bf16.mxu0 %v22311_v52  ;;  %12411 = vmatprep.subr.bf16.mxu1 %v22314_v53  ;;  %v22332_v40 = vld [vmem:[#allocation2 + $0x17bc] ss:$52 sps:$4 sm:$0xff]   ;;  %v22330_v26 = vld [vmem:[#allocation2 + $0x17b8] ss:$52 sps:$4 sm:$0xff]   ;;  %v22336_v46 = vld [vmem:[#allocation2 + $0x1820] ss:$52 sps:$4 sm:$0xff]  }
 0x56f   :  { %v24158_v15 = vpack.c.bf16 %v12958_v20, %v12945_v63  ;;  %v24160_v19 = vpack.c.bf16 %v12960_v27, %v12947_v0  ;;  %v22327_v25 = vld [vmem:[#allocation2 + $0x17b0] ss:$52 sps:$4 sm:$0xff]   ;;  %v22333_v44 = vld [vmem:[#allocation2 + $0x1818] ss:$52 sps:$4 sm:$0xff]   ;;  %v22339_v53 = vld [vmem:[#allocation2 + $0x1880] ss:$52 sps:$4 sm:$0xff]  }
 0x570   :  { %v22335_v42 = vld [vmem:[#allocation2 + $0x181c] ss:$52 sps:$4 sm:$0xff]   ;;  %v22338_v43 = vld [vmem:[#allocation2 + $0x1824] ss:$52 sps:$4 sm:$0xff]   ;;  %v22344_v52 = vld [vmem:[#allocation2 + $0x188c] ss:$52 sps:$4 sm:$0xff]  }
 0x571   :  { %12068 = vmatpush1.bf16.msra.mxu0 %v22309_v36  ;;  %12412 = vmatpush1.bf16.msra.mxu1 %v22312_v8  ;;  %v22341_v51 = vld [vmem:[#allocation2 + $0x1884] ss:$52 sps:$4 sm:$0xff]   ;;  %v22342_v54 = vld [vmem:[#allocation2 + $0x1888] ss:$52 sps:$4 sm:$0xff]   ;;  %v22347_v33 = vld [vmem:[#allocation2 + $0x18ec] ss:$52 sps:$4 sm:$0xff]  }
 0x572   :  { %12069 = vmatprep.subr.bf16.mxu0 %v22317_v17  ;;  %12413 = vmatprep.subr.bf16.mxu1 %v22320_v29  ;;  %v22350_v21 = vld [vmem:[#allocation2 + $0x18f4] ss:$52 sps:$4 sm:$0xff]   ;;  %v22348_v36 = vld [vmem:[#allocation2 + $0x18f0] ss:$52 sps:$4 sm:$0xff]   ;;  %v22354_v0 = vld [vmem:[#allocation2 + $0x1958] ss:$52 sps:$4 sm:$0xff]  }
 0x573   :  { %v22345_v22 = vld [vmem:[#allocation2 + $0x18e8] ss:$52 sps:$4 sm:$0xff]   ;;  %v22351_v63 = vld [vmem:[#allocation2 + $0x1950] ss:$52 sps:$4 sm:$0xff]   ;;  %v22357_v8 = vld [vmem:[#allocation2 + $0x19b8] ss:$52 sps:$4 sm:$0xff]  }
 0x574   :  { %v22353_v58 = vld [vmem:[#allocation2 + $0x1954] ss:$52 sps:$4 sm:$0xff]   ;;  %v22356_v62 = vld [vmem:[#allocation2 + $0x195c] ss:$52 sps:$4 sm:$0xff]   ;;  %v22362_v27 = vld [vmem:[#allocation2 + $0x19c4] ss:$52 sps:$4 sm:$0xff]  }
 0x575   :  { %12070 = vmatpush1.bf16.msra.mxu0 %v22315_v2  ;;  %12414 = vmatpush1.bf16.msra.mxu1 %v22318_v3  ;;  %v22359_v20 = vld [vmem:[#allocation2 + $0x19bc] ss:$52 sps:$4 sm:$0xff]   ;;  %v22360_v17 = vld [vmem:[#allocation2 + $0x19c0] ss:$52 sps:$4 sm:$0xff]   ;;  %v22365_v29 = vld [vmem:[#allocation2 + $0x1a24] ss:$52 sps:$4 sm:$0xff]  }
 0x576   :  { %12071 = vmatprep.subr.bf16.mxu0 %v22323_v31  ;;  %12415 = vmatprep.subr.bf16.mxu1 %v22326_v32  ;;  %v22368_v2 = vld [vmem:[#allocation2 + $0x1a2c] ss:$52 sps:$4 sm:$0xff]   ;;  %v22366_v31 = vld [vmem:[#allocation2 + $0x1a28] ss:$52 sps:$4 sm:$0xff]  }
 0x577   :  { %v22363_v3 = vld [vmem:[#allocation2 + $0x1a20] ss:$52 sps:$4 sm:$0xff]  }
 0x578   :  { %v22371_v32 = vld [vmem:[#allocation2 + $0x1a8c] ss:$52 sps:$4 sm:$0xff]  }
 0x579   :  { %12072 = vmatpush1.bf16.msra.mxu0 %v22321_v37  ;;  %12416 = vmatpush1.bf16.msra.mxu1 %v22324_v38  ;;  %v22374_v37 = vld [vmem:[#allocation2 + $0x1a94] ss:$52 sps:$4 sm:$0xff]  }
 0x57a   :  { %12073 = vmatprep.subr.bf16.mxu0 %v22329_v39  ;;  %12417 = vmatprep.subr.bf16.mxu1 %v22332_v40  ;;  %v22369_v38 = vld [vmem:[#allocation2 + $0x1a88] ss:$52 sps:$4 sm:$0xff]   ;;  %v22372_v39 = vld [vmem:[#allocation2 + $0x1a90] ss:$52 sps:$4 sm:$0xff]  }
 0x57b   :  { %v22377_v40 = vld [vmem:[#allocation2 + $0x1af4] ss:$52 sps:$4 sm:$0xff]  }
 0x57d   :  { %12074 = vmatpush1.bf16.msra.mxu0 %v22327_v25  ;;  %12418 = vmatpush1.bf16.msra.mxu1 %v22330_v26  ;;  %v22380_v25 = vld [vmem:[#allocation2 + $0x1afc] ss:$52 sps:$4 sm:$0xff]  }
 0x57e   :  { %12075 = vmatprep.subr.bf16.mxu0 %v22335_v42  ;;  %12419 = vmatprep.subr.bf16.mxu1 %v22338_v43  ;;  %v22375_v26 = vld [vmem:[#allocation2 + $0x1af0] ss:$52 sps:$4 sm:$0xff]   ;;  %v22378_v42 = vld [vmem:[#allocation2 + $0x1af8] ss:$52 sps:$4 sm:$0xff]  }
 0x57f   :  { %v22383_v43 = vld [vmem:[#allocation2 + $0x1b5c] ss:$52 sps:$4 sm:$0xff]  }
 0x581   :  { %12076 = vmatpush1.bf16.msra.mxu0 %v22333_v44  ;;  %12420 = vmatpush1.bf16.msra.mxu1 %v22336_v46  ;;  %v22386_v44 = vld [vmem:[#allocation2 + $0x1b64] ss:$52 sps:$4 sm:$0xff]  }
 0x582   :  { %12077 = vmatprep.subr.bf16.mxu0 %v22341_v51  ;;  %12421 = vmatprep.subr.bf16.mxu1 %v22344_v52  ;;  %v22381_v46 = vld [vmem:[#allocation2 + $0x1b58] ss:$52 sps:$4 sm:$0xff]   ;;  %v22384_v51 = vld [vmem:[#allocation2 + $0x1b60] ss:$52 sps:$4 sm:$0xff]  }
 0x583   :  { %v22389_v52 = vld [vmem:[#allocation2 + $0x1bc4] ss:$52 sps:$4 sm:$0xff]  }
 0x585   :  { %12078 = vmatpush1.bf16.msra.mxu0 %v22339_v53  ;;  %12422 = vmatpush1.bf16.msra.mxu1 %v22342_v54  ;;  %v22392_v53 = vld [vmem:[#allocation2 + $0x1bcc] ss:$52 sps:$4 sm:$0xff]  }
 0x586   :  { %12079 = vmatprep.subr.bf16.mxu0 %v22347_v33  ;;  %12423 = vmatprep.subr.bf16.mxu1 %v22350_v21  ;;  %v22387_v54 = vld [vmem:[#allocation2 + $0x1bc0] ss:$52 sps:$4 sm:$0xff]   ;;  %v22390_v33 = vld [vmem:[#allocation2 + $0x1bc8] ss:$52 sps:$4 sm:$0xff]  }
 0x587   :  { %v22395_v21 = vld [vmem:[#allocation2 + $0x1c2c] ss:$52 sps:$4 sm:$0xff]  }
 0x589   :  { %12080 = vmatpush1.bf16.msra.mxu0 %v22345_v22  ;;  %12424 = vmatpush1.bf16.msra.mxu1 %v22348_v36  ;;  %v22398_v22 = vld [vmem:[#allocation2 + $0x1c34] ss:$52 sps:$4 sm:$0xff]  }
 0x58a   :  { %12081 = vmatprep.subr.bf16.mxu0 %v22353_v58  ;;  %12425 = vmatprep.subr.bf16.mxu1 %v22356_v62  ;;  %v22393_v36 = vld [vmem:[#allocation2 + $0x1c28] ss:$52 sps:$4 sm:$0xff]   ;;  %v22396_v58 = vld [vmem:[#allocation2 + $0x1c30] ss:$52 sps:$4 sm:$0xff]  }
 0x58b   :  { %v22401_v62 = vld [vmem:[#allocation2 + $0x1c94] ss:$52 sps:$4 sm:$0xff]  }
 0x58d   :  { %12082 = vmatpush1.bf16.msra.mxu0 %v22351_v63  ;;  %12426 = vmatpush1.bf16.msra.mxu1 %v22354_v0  ;;  %v22404_v63 = vld [vmem:[#allocation2 + $0x1c9c] ss:$52 sps:$4 sm:$0xff]  }
 0x58e   :  { %12083 = vmatprep.subr.bf16.mxu0 %v22359_v20  ;;  %12427 = vmatprep.subr.bf16.mxu1 %v22362_v27  ;;  %v22399_v0 = vld [vmem:[#allocation2 + $0x1c90] ss:$52 sps:$4 sm:$0xff]   ;;  %v22402_v20 = vld [vmem:[#allocation2 + $0x1c98] ss:$52 sps:$4 sm:$0xff]  }
 0x58f   :  { %v22407_v27 = vld [vmem:[#allocation2 + $0x1cfc] ss:$52 sps:$4 sm:$0xff]  }
 0x591   :  { %12084 = vmatpush1.bf16.msra.mxu0 %v22357_v8  ;;  %12428 = vmatpush1.bf16.msra.mxu1 %v22360_v17  ;;  %v22410_v8 = vld [vmem:[#allocation2 + $0x1d04] ss:$52 sps:$4 sm:$0xff]  }
 0x592   :  { %12096 = vmatprep.subr.bf16.mxu0 %v22365_v29  ;;  %12440 = vmatprep.subr.bf16.mxu1 %v22368_v2  ;;  %v22405_v17 = vld [vmem:[#allocation2 + $0x1cf8] ss:$52 sps:$4 sm:$0xff]   ;;  %v22408_v29 = vld [vmem:[#allocation2 + $0x1d00] ss:$52 sps:$4 sm:$0xff]  }
 0x593   :  { %v22413_v2 = vld [vmem:[#allocation2 + $0x1d64] ss:$52 sps:$4 sm:$0xff]  }
 0x594   :  { %12086 = vmatmul.mubr.bf16.vlgmr.msra.gmra.mrb[8].mxu0 %v23982_v35  ;;  %12430 = vmatmul.mubr.bf16.vlgmr.msra.gmra.mrb[8].mxu1 %v23982_v35 }
 0x595   :  { %12097 = vmatpush1.bf16.msra.mxu0 %v22363_v3  ;;  %12441 = vmatpush1.bf16.msra.mxu1 %v22366_v31  ;;  %v22416_v3 = vld [vmem:[#allocation2 + $0x1d6c] ss:$52 sps:$4 sm:$0xff]  }
 0x596   :  { %12098 = vmatprep.subr.bf16.mxu0 %v22371_v32  ;;  %12442 = vmatprep.subr.bf16.mxu1 %v22374_v37  ;;  %v22411_v31 = vld [vmem:[#allocation2 + $0x1d60] ss:$52 sps:$4 sm:$0xff]   ;;  %v22414_v32 = vld [vmem:[#allocation2 + $0x1d68] ss:$52 sps:$4 sm:$0xff]  }
 0x597   :  { %12128 = vmatprep.mubr.bf16.mxu0 %v23991_v41  ;;  %12472 = vmatprep.mubr.bf16.mxu1 %v23991_v41  ;;  %v22419_v37 = vld [vmem:[#allocation2 + $0x1dcc] ss:$52 sps:$4 sm:$0xff]  }
 0x599   :  { %12099 = vmatpush1.bf16.msra.mxu0 %v22369_v38  ;;  %12443 = vmatpush1.bf16.msra.mxu1 %v22372_v39  ;;  %v22422_v38 = vld [vmem:[#allocation2 + $0x1dd4] ss:$52 sps:$4 sm:$0xff]  }
 0x59a   :  { %12100 = vmatprep.subr.bf16.mxu0 %v22377_v40  ;;  %12444 = vmatprep.subr.bf16.mxu1 %v22380_v25  ;;  %v22417_v39 = vld [vmem:[#allocation2 + $0x1dc8] ss:$52 sps:$4 sm:$0xff]   ;;  %v22420_v40 = vld [vmem:[#allocation2 + $0x1dd0] ss:$52 sps:$4 sm:$0xff]  }
 0x59b   :  { %v22425_v25 = vld [vmem:[#allocation2 + $0x1e34] ss:$52 sps:$4 sm:$0xff]  }
 0x59d   :  { %12101 = vmatpush1.bf16.msra.mxu0 %v22375_v26  ;;  %12445 = vmatpush1.bf16.msra.mxu1 %v22378_v42  ;;  %v22428_v26 = vld [vmem:[#allocation2 + $0x1e3c] ss:$52 sps:$4 sm:$0xff]  }
 0x59e   :  { %12102 = vmatprep.subr.bf16.mxu0 %v22383_v43  ;;  %12446 = vmatprep.subr.bf16.mxu1 %v22386_v44  ;;  %v22423_v42 = vld [vmem:[#allocation2 + $0x1e30] ss:$52 sps:$4 sm:$0xff]   ;;  %v22426_v43 = vld [vmem:[#allocation2 + $0x1e38] ss:$52 sps:$4 sm:$0xff]  }
 0x59f   :  { %v22431_v44 = vld [vmem:[#allocation2 + $0x1e9c] ss:$52 sps:$4 sm:$0xff]  }
 0x5a1   :  { %12103 = vmatpush1.bf16.msra.mxu0 %v22381_v46  ;;  %12447 = vmatpush1.bf16.msra.mxu1 %v22384_v51  ;;  %v22434_v46 = vld [vmem:[#allocation2 + $0x1ea4] ss:$52 sps:$4 sm:$0xff]  }
 0x5a2   :  { %12104 = vmatprep.subr.bf16.mxu0 %v22389_v52  ;;  %12448 = vmatprep.subr.bf16.mxu1 %v22392_v53  ;;  %v22429_v51 = vld [vmem:[#allocation2 + $0x1e98] ss:$52 sps:$4 sm:$0xff]   ;;  %v22432_v52 = vld [vmem:[#allocation2 + $0x1ea0] ss:$52 sps:$4 sm:$0xff]  }
 0x5a3   :  { %v22437_v53 = vld [vmem:[#allocation2 + $0x1f04] ss:$52 sps:$4 sm:$0xff]  }
 0x5a5   :  { %12105 = vmatpush1.bf16.msra.mxu0 %v22387_v54  ;;  %12449 = vmatpush1.bf16.msra.mxu1 %v22390_v33  ;;  %v22440_v54 = vld [vmem:[#allocation2 + $0x1f0c] ss:$52 sps:$4 sm:$0xff]  }
 0x5a6   :  { %12106 = vmatprep.subr.bf16.mxu0 %v22395_v21  ;;  %12450 = vmatprep.subr.bf16.mxu1 %v22398_v22  ;;  %v22435_v33 = vld [vmem:[#allocation2 + $0x1f00] ss:$52 sps:$4 sm:$0xff]   ;;  %v22438_v21 = vld [vmem:[#allocation2 + $0x1f08] ss:$52 sps:$4 sm:$0xff]  }
 0x5a7   :  { %v22443_v22 = vld [vmem:[#allocation2 + $0x1f6c] ss:$52 sps:$4 sm:$0xff]  }
 0x5a9   :  { %12107 = vmatpush1.bf16.msra.mxu0 %v22393_v36  ;;  %12451 = vmatpush1.bf16.msra.mxu1 %v22396_v58  ;;  %v22446_v36 = vld [vmem:[#allocation2 + $0x1f74] ss:$52 sps:$4 sm:$0xff]  }
 0x5aa   :  { %12108 = vmatprep.subr.bf16.mxu0 %v22401_v62  ;;  %12452 = vmatprep.subr.bf16.mxu1 %v22404_v63  ;;  %v22441_v58 = vld [vmem:[#allocation2 + $0x1f68] ss:$52 sps:$4 sm:$0xff]   ;;  %v22444_v62 = vld [vmem:[#allocation2 + $0x1f70] ss:$52 sps:$4 sm:$0xff]  }
 0x5ab   :  { %v22449_v63 = vld [vmem:[#allocation2 + $0x1fd4] ss:$52 sps:$4 sm:$0xff]  }
 0x5ad   :  { %12109 = vmatpush1.bf16.msra.mxu0 %v22399_v0  ;;  %12453 = vmatpush1.bf16.msra.mxu1 %v22402_v20  ;;  %v22452_v0 = vld [vmem:[#allocation2 + $0x1fdc] ss:$52 sps:$4 sm:$0xff]  }
 0x5ae   :  { %12110 = vmatprep.subr.bf16.mxu0 %v22407_v27  ;;  %12454 = vmatprep.subr.bf16.mxu1 %v22410_v8  ;;  %v22447_v20 = vld [vmem:[#allocation2 + $0x1fd0] ss:$52 sps:$4 sm:$0xff]   ;;  %v22450_v27 = vld [vmem:[#allocation2 + $0x1fd8] ss:$52 sps:$4 sm:$0xff]  }
 0x5af   :  { %v22455_v8 = vld [vmem:[#allocation2 + $0x203c] ss:$52 sps:$4 sm:$0xff]  }
 0x5b1   :  { %12111 = vmatpush1.bf16.msra.mxu0 %v22405_v17  ;;  %12455 = vmatpush1.bf16.msra.mxu1 %v22408_v29  ;;  %v22458_v17 = vld [vmem:[#allocation2 + $0x2044] ss:$52 sps:$4 sm:$0xff]  }
 0x5b2   :  { %12112 = vmatprep.subr.bf16.mxu0 %v22413_v2  ;;  %12456 = vmatprep.subr.bf16.mxu1 %v22416_v3  ;;  %v22453_v29 = vld [vmem:[#allocation2 + $0x2038] ss:$52 sps:$4 sm:$0xff]   ;;  %v22456_v2 = vld [vmem:[#allocation2 + $0x2040] ss:$52 sps:$4 sm:$0xff]  }
 0x5b3   :  { %v22461_v3 = vld [vmem:[#allocation2 + $0x20a4] ss:$52 sps:$4 sm:$0xff]  }
 0x5b5   :  { %12113 = vmatpush1.bf16.msra.mxu0 %v22411_v31  ;;  %12457 = vmatpush1.bf16.msra.mxu1 %v22414_v32  ;;  %v22464_v31 = vld [vmem:[#allocation2 + $0x20ac] ss:$52 sps:$4 sm:$0xff]  }
 0x5b6   :  { %12114 = vmatprep.subr.bf16.mxu0 %v22419_v37  ;;  %12458 = vmatprep.subr.bf16.mxu1 %v22422_v38  ;;  %v22459_v32 = vld [vmem:[#allocation2 + $0x20a0] ss:$52 sps:$4 sm:$0xff]   ;;  %v22462_v37 = vld [vmem:[#allocation2 + $0x20a8] ss:$52 sps:$4 sm:$0xff]  }
 0x5b7   :  { %v22467_v38 = vld [vmem:[#allocation2 + $0x210c] ss:$52 sps:$4 sm:$0xff]  }
 0x5b9   :  { %12115 = vmatpush1.bf16.msra.mxu0 %v22417_v39  ;;  %12459 = vmatpush1.bf16.msra.mxu1 %v22420_v40  ;;  %v22470_v39 = vld [vmem:[#allocation2 + $0x2114] ss:$52 sps:$4 sm:$0xff]  }
 0x5ba   :  { %12116 = vmatprep.subr.bf16.mxu0 %v22425_v25  ;;  %12460 = vmatprep.subr.bf16.mxu1 %v22428_v26  ;;  %v22465_v40 = vld [vmem:[#allocation2 + $0x2108] ss:$52 sps:$4 sm:$0xff]   ;;  %v22468_v25 = vld [vmem:[#allocation2 + $0x2110] ss:$52 sps:$4 sm:$0xff]  }
 0x5bb   :  { %v22473_v26 = vld [vmem:[#allocation2 + $0x2174] ss:$52 sps:$4 sm:$0xff]  }
 0x5bd   :  { %12117 = vmatpush1.bf16.msra.mxu0 %v22423_v42  ;;  %12461 = vmatpush1.bf16.msra.mxu1 %v22426_v43  ;;  %v22476_v42 = vld [vmem:[#allocation2 + $0x217c] ss:$52 sps:$4 sm:$0xff]  }
 0x5be   :  { %12118 = vmatprep.subr.bf16.mxu0 %v22431_v44  ;;  %12462 = vmatprep.subr.bf16.mxu1 %v22434_v46  ;;  %v22471_v43 = vld [vmem:[#allocation2 + $0x2170] ss:$52 sps:$4 sm:$0xff]   ;;  %v22474_v44 = vld [vmem:[#allocation2 + $0x2178] ss:$52 sps:$4 sm:$0xff]  }
 0x5bf   :  { %v22479_v46 = vld [vmem:[#allocation2 + $0x21dc] ss:$52 sps:$4 sm:$0xff]  }
 0x5c1   :  { %12119 = vmatpush1.bf16.msra.mxu0 %v22429_v51  ;;  %12463 = vmatpush1.bf16.msra.mxu1 %v22432_v52  ;;  %v22482_v51 = vld [vmem:[#allocation2 + $0x21e4] ss:$52 sps:$4 sm:$0xff]  }
 0x5c2   :  { %12120 = vmatprep.subr.bf16.mxu0 %v22437_v53  ;;  %12464 = vmatprep.subr.bf16.mxu1 %v22440_v54  ;;  %v22477_v52 = vld [vmem:[#allocation2 + $0x21d8] ss:$52 sps:$4 sm:$0xff]   ;;  %v22480_v53 = vld [vmem:[#allocation2 + $0x21e0] ss:$52 sps:$4 sm:$0xff]  }
 0x5c3   :  { %v22485_v54 = vld [vmem:[#allocation2 + $0x2244] ss:$52 sps:$4 sm:$0xff]  }
 0x5c5   :  { %12121 = vmatpush1.bf16.msra.mxu0 %v22435_v33  ;;  %12465 = vmatpush1.bf16.msra.mxu1 %v22438_v21  ;;  %v22488_v33 = vld [vmem:[#allocation2 + $0x224c] ss:$52 sps:$4 sm:$0xff]  }
 0x5c6   :  { %12122 = vmatprep.subr.bf16.mxu0 %v22443_v22  ;;  %12466 = vmatprep.subr.bf16.mxu1 %v22446_v36  ;;  %v22483_v21 = vld [vmem:[#allocation2 + $0x2240] ss:$52 sps:$4 sm:$0xff]   ;;  %v22486_v22 = vld [vmem:[#allocation2 + $0x2248] ss:$52 sps:$4 sm:$0xff]  }
 0x5c7   :  { %v22491_v36 = vld [vmem:[#allocation2 + $0x22ac] ss:$52 sps:$4 sm:$0xff]  }
 0x5c9   :  { %12123 = vmatpush1.bf16.msra.mxu0 %v22441_v58  ;;  %12467 = vmatpush1.bf16.msra.mxu1 %v22444_v62  ;;  %v22494_v58 = vld [vmem:[#allocation2 + $0x22b4] ss:$52 sps:$4 sm:$0xff]  }
 0x5ca   :  { %12124 = vmatprep.subr.bf16.mxu0 %v22449_v63  ;;  %12468 = vmatprep.subr.bf16.mxu1 %v22452_v0  ;;  %v22489_v62 = vld [vmem:[#allocation2 + $0x22a8] ss:$52 sps:$4 sm:$0xff]   ;;  %v22492_v63 = vld [vmem:[#allocation2 + $0x22b0] ss:$52 sps:$4 sm:$0xff]  }
 0x5cb   :  { %v22497_v0 = vld [vmem:[#allocation2 + $0x2314] ss:$52 sps:$4 sm:$0xff]  }
 0x5cd   :  { %12125 = vmatpush1.bf16.msra.mxu0 %v22447_v20  ;;  %12469 = vmatpush1.bf16.msra.mxu1 %v22450_v27  ;;  %v22500_v20 = vld [vmem:[#allocation2 + $0x231c] ss:$52 sps:$4 sm:$0xff]  }
 0x5ce   :  { %12126 = vmatprep.subr.bf16.mxu0 %v22455_v8  ;;  %12470 = vmatprep.subr.bf16.mxu1 %v22458_v17  ;;  %v22495_v27 = vld [vmem:[#allocation2 + $0x2310] ss:$52 sps:$4 sm:$0xff]   ;;  %v22498_v8 = vld [vmem:[#allocation2 + $0x2318] ss:$52 sps:$4 sm:$0xff]  }
 0x5cf   :  { %v22503_v17 = vld [vmem:[#allocation2 + $0x237c] ss:$52 sps:$4 sm:$0xff]  }
 0x5d1   :  { %12127 = vmatpush1.bf16.msra.mxu0 %v22453_v29  ;;  %12471 = vmatpush1.bf16.msra.mxu1 %v22456_v2  ;;  %v22506_v29 = vld [vmem:[#allocation2 + $0x2384] ss:$52 sps:$4 sm:$0xff]  }
 0x5d2   :  { %12139 = vmatprep.subr.bf16.mxu0 %v22461_v3  ;;  %12483 = vmatprep.subr.bf16.mxu1 %v22464_v31  ;;  %v22501_v2 = vld [vmem:[#allocation2 + $0x2378] ss:$52 sps:$4 sm:$0xff]   ;;  %v22504_v3 = vld [vmem:[#allocation2 + $0x2380] ss:$52 sps:$4 sm:$0xff]  }
 0x5d3   :  { %v22509_v31 = vld [vmem:[#allocation2 + $0x23e4] ss:$52 sps:$4 sm:$0xff]  }
 0x5d4   :  { %12129 = vmatmul.mubr.bf16.vlgmr.msra.gmra.mrb[8].mxu0 %v24009_v49  ;;  %12473 = vmatmul.mubr.bf16.vlgmr.msra.gmra.mrb[8].mxu1 %v24009_v49 }
 0x5d5   :  { %12140 = vmatpush1.bf16.msra.mxu0 %v22459_v32  ;;  %12484 = vmatpush1.bf16.msra.mxu1 %v22462_v37  ;;  %v22512_v32 = vld [vmem:[#allocation2 + $0x23ec] ss:$52 sps:$4 sm:$0xff]  }
 0x5d6   :  { %12141 = vmatprep.subr.bf16.mxu0 %v22467_v38  ;;  %12485 = vmatprep.subr.bf16.mxu1 %v22470_v39  ;;  %v22507_v37 = vld [vmem:[#allocation2 + $0x23e0] ss:$52 sps:$4 sm:$0xff]   ;;  %v22510_v38 = vld [vmem:[#allocation2 + $0x23e8] ss:$52 sps:$4 sm:$0xff]  }
 0x5d7   :  { %12171 = vmatprep.mubr.bf16.mxu0 %v24013_v55  ;;  %12515 = vmatprep.mubr.bf16.mxu1 %v24013_v55  ;;  %v22515_v39 = vld [vmem:[#allocation2 + $0x244c] ss:$52 sps:$4 sm:$0xff]  }
 0x5d9   :  { %12142 = vmatpush1.bf16.msra.mxu0 %v22465_v40  ;;  %12486 = vmatpush1.bf16.msra.mxu1 %v22468_v25  ;;  %v22518_v40 = vld [vmem:[#allocation2 + $0x2454] ss:$52 sps:$4 sm:$0xff]  }
 0x5da   :  { %12143 = vmatprep.subr.bf16.mxu0 %v22473_v26  ;;  %12487 = vmatprep.subr.bf16.mxu1 %v22476_v42  ;;  %v22513_v25 = vld [vmem:[#allocation2 + $0x2448] ss:$52 sps:$4 sm:$0xff]   ;;  %v22516_v26 = vld [vmem:[#allocation2 + $0x2450] ss:$52 sps:$4 sm:$0xff]  }
 0x5db   :  { %v22521_v42 = vld [vmem:[#allocation2 + $0x24b4] ss:$52 sps:$4 sm:$0xff]  }
 0x5dd   :  { %12144 = vmatpush1.bf16.msra.mxu0 %v22471_v43  ;;  %12488 = vmatpush1.bf16.msra.mxu1 %v22474_v44  ;;  %v22524_v43 = vld [vmem:[#allocation2 + $0x24bc] ss:$52 sps:$4 sm:$0xff]  }
 0x5de   :  { %12145 = vmatprep.subr.bf16.mxu0 %v22479_v46  ;;  %12489 = vmatprep.subr.bf16.mxu1 %v22482_v51  ;;  %v22519_v44 = vld [vmem:[#allocation2 + $0x24b0] ss:$52 sps:$4 sm:$0xff]   ;;  %v22522_v46 = vld [vmem:[#allocation2 + $0x24b8] ss:$52 sps:$4 sm:$0xff]  }
 0x5df   :  { %v22527_v51 = vld [vmem:[#allocation2 + $0x251c] ss:$52 sps:$4 sm:$0xff]  }
 0x5e1   :  { %12146 = vmatpush1.bf16.msra.mxu0 %v22477_v52  ;;  %12490 = vmatpush1.bf16.msra.mxu1 %v22480_v53  ;;  %v22530_v52 = vld [vmem:[#allocation2 + $0x2524] ss:$52 sps:$4 sm:$0xff]  }
 0x5e2   :  { %12147 = vmatprep.subr.bf16.mxu0 %v22485_v54  ;;  %12491 = vmatprep.subr.bf16.mxu1 %v22488_v33  ;;  %v22525_v53 = vld [vmem:[#allocation2 + $0x2518] ss:$52 sps:$4 sm:$0xff]   ;;  %v22528_v54 = vld [vmem:[#allocation2 + $0x2520] ss:$52 sps:$4 sm:$0xff]  }
 0x5e3   :  { %v22533_v33 = vld [vmem:[#allocation2 + $0x2584] ss:$52 sps:$4 sm:$0xff]  }
 0x5e5   :  { %12148 = vmatpush1.bf16.msra.mxu0 %v22483_v21  ;;  %12492 = vmatpush1.bf16.msra.mxu1 %v22486_v22  ;;  %v22536_v21 = vld [vmem:[#allocation2 + $0x258c] ss:$52 sps:$4 sm:$0xff]  }
 0x5e6   :  { %12149 = vmatprep.subr.bf16.mxu0 %v22491_v36  ;;  %12493 = vmatprep.subr.bf16.mxu1 %v22494_v58  ;;  %v22531_v22 = vld [vmem:[#allocation2 + $0x2580] ss:$52 sps:$4 sm:$0xff]   ;;  %v22534_v36 = vld [vmem:[#allocation2 + $0x2588] ss:$52 sps:$4 sm:$0xff]  }
 0x5e7   :  { %v22539_v58 = vld [vmem:[#allocation2 + $0x25ec] ss:$52 sps:$4 sm:$0xff]  }
 0x5e9   :  { %12150 = vmatpush1.bf16.msra.mxu0 %v22489_v62  ;;  %12494 = vmatpush1.bf16.msra.mxu1 %v22492_v63  ;;  %v22542_v62 = vld [vmem:[#allocation2 + $0x25f4] ss:$52 sps:$4 sm:$0xff]  }
 0x5ea   :  { %12151 = vmatprep.subr.bf16.mxu0 %v22497_v0  ;;  %12495 = vmatprep.subr.bf16.mxu1 %v22500_v20  ;;  %v22537_v63 = vld [vmem:[#allocation2 + $0x25e8] ss:$52 sps:$4 sm:$0xff]   ;;  %v22540_v0 = vld [vmem:[#allocation2 + $0x25f0] ss:$52 sps:$4 sm:$0xff]  }
 0x5eb   :  { %v22545_v20 = vld [vmem:[#allocation2 + $0x2654] ss:$52 sps:$4 sm:$0xff]  }
 0x5ed   :  { %12152 = vmatpush1.bf16.msra.mxu0 %v22495_v27  ;;  %12496 = vmatpush1.bf16.msra.mxu1 %v22498_v8  ;;  %v22548_v27 = vld [vmem:[#allocation2 + $0x265c] ss:$52 sps:$4 sm:$0xff]  }
 0x5ee   :  { %12153 = vmatprep.subr.bf16.mxu0 %v22503_v17  ;;  %12497 = vmatprep.subr.bf16.mxu1 %v22506_v29  ;;  %v22543_v8 = vld [vmem:[#allocation2 + $0x2650] ss:$52 sps:$4 sm:$0xff]   ;;  %v22546_v17 = vld [vmem:[#allocation2 + $0x2658] ss:$52 sps:$4 sm:$0xff]  }
 0x5ef   :  { %v22551_v29 = vld [vmem:[#allocation2 + $0x26bc] ss:$52 sps:$4 sm:$0xff]  }
 0x5f1   :  { %12154 = vmatpush1.bf16.msra.mxu0 %v22501_v2  ;;  %12498 = vmatpush1.bf16.msra.mxu1 %v22504_v3  ;;  %v22554_v2 = vld [vmem:[#allocation2 + $0x26c4] ss:$52 sps:$4 sm:$0xff]  }
 0x5f2   :  { %12155 = vmatprep.subr.bf16.mxu0 %v22509_v31  ;;  %12499 = vmatprep.subr.bf16.mxu1 %v22512_v32  ;;  %v22549_v3 = vld [vmem:[#allocation2 + $0x26b8] ss:$52 sps:$4 sm:$0xff]   ;;  %v22552_v31 = vld [vmem:[#allocation2 + $0x26c0] ss:$52 sps:$4 sm:$0xff]  }
 0x5f3   :  { %v22557_v32 = vld [vmem:[#allocation2 + $0x2724] ss:$52 sps:$4 sm:$0xff]  }
 0x5f5   :  { %12156 = vmatpush1.bf16.msra.mxu0 %v22507_v37  ;;  %12500 = vmatpush1.bf16.msra.mxu1 %v22510_v38  ;;  %v22560_v37 = vld [vmem:[#allocation2 + $0x272c] ss:$52 sps:$4 sm:$0xff]  }
 0x5f6   :  { %12157 = vmatprep.subr.bf16.mxu0 %v22515_v39  ;;  %12501 = vmatprep.subr.bf16.mxu1 %v22518_v40  ;;  %v22555_v38 = vld [vmem:[#allocation2 + $0x2720] ss:$52 sps:$4 sm:$0xff]   ;;  %v22558_v39 = vld [vmem:[#allocation2 + $0x2728] ss:$52 sps:$4 sm:$0xff]  }
 0x5f7   :  { %v22563_v40 = vld [vmem:[#allocation2 + $0x278c] ss:$52 sps:$4 sm:$0xff]  }
 0x5f9   :  { %12158 = vmatpush1.bf16.msra.mxu0 %v22513_v25  ;;  %12502 = vmatpush1.bf16.msra.mxu1 %v22516_v26  ;;  %v22566_v25 = vld [vmem:[#allocation2 + $0x2794] ss:$52 sps:$4 sm:$0xff]  }
 0x5fa   :  { %12159 = vmatprep.subr.bf16.mxu0 %v22521_v42  ;;  %12503 = vmatprep.subr.bf16.mxu1 %v22524_v43  ;;  %v22561_v26 = vld [vmem:[#allocation2 + $0x2788] ss:$52 sps:$4 sm:$0xff]   ;;  %v22564_v42 = vld [vmem:[#allocation2 + $0x2790] ss:$52 sps:$4 sm:$0xff]  }
 0x5fb   :  { %v22569_v43 = vld [vmem:[#allocation2 + $0x27f4] ss:$52 sps:$4 sm:$0xff]  }
 0x5fd   :  { %12160 = vmatpush1.bf16.msra.mxu0 %v22519_v44  ;;  %12504 = vmatpush1.bf16.msra.mxu1 %v22522_v46  ;;  %v22572_v44 = vld [vmem:[#allocation2 + $0x27fc] ss:$52 sps:$4 sm:$0xff]  }
 0x5fe   :  { %12161 = vmatprep.subr.bf16.mxu0 %v22527_v51  ;;  %12505 = vmatprep.subr.bf16.mxu1 %v22530_v52  ;;  %v22567_v46 = vld [vmem:[#allocation2 + $0x27f0] ss:$52 sps:$4 sm:$0xff]   ;;  %v22570_v51 = vld [vmem:[#allocation2 + $0x27f8] ss:$52 sps:$4 sm:$0xff]  }
 0x5ff   :  { %v22575_v52 = vld [vmem:[#allocation2 + $0x285c] ss:$52 sps:$4 sm:$0xff]  }
 0x601   :  { %12162 = vmatpush1.bf16.msra.mxu0 %v22525_v53  ;;  %12506 = vmatpush1.bf16.msra.mxu1 %v22528_v54  ;;  %v22578_v53 = vld [vmem:[#allocation2 + $0x2864] ss:$52 sps:$4 sm:$0xff]  }
 0x602   :  { %12163 = vmatprep.subr.bf16.mxu0 %v22533_v33  ;;  %12507 = vmatprep.subr.bf16.mxu1 %v22536_v21  ;;  %v22573_v54 = vld [vmem:[#allocation2 + $0x2858] ss:$52 sps:$4 sm:$0xff]   ;;  %v22576_v33 = vld [vmem:[#allocation2 + $0x2860] ss:$52 sps:$4 sm:$0xff]  }
 0x603   :  { %v22581_v21 = vld [vmem:[#allocation2 + $0x28c4] ss:$52 sps:$4 sm:$0xff]  }
 0x605   :  { %12164 = vmatpush1.bf16.msra.mxu0 %v22531_v22  ;;  %12508 = vmatpush1.bf16.msra.mxu1 %v22534_v36  ;;  %v22584_v22 = vld [vmem:[#allocation2 + $0x28cc] ss:$52 sps:$4 sm:$0xff]  }
 0x606   :  { %12165 = vmatprep.subr.bf16.mxu0 %v22539_v58  ;;  %12509 = vmatprep.subr.bf16.mxu1 %v22542_v62  ;;  %v22579_v36 = vld [vmem:[#allocation2 + $0x28c0] ss:$52 sps:$4 sm:$0xff]   ;;  %v22582_v58 = vld [vmem:[#allocation2 + $0x28c8] ss:$52 sps:$4 sm:$0xff]  }
 0x607   :  { %v22587_v62 = vld [vmem:[#allocation2 + $0x292c] ss:$52 sps:$4 sm:$0xff]  }
 0x609   :  { %12166 = vmatpush1.bf16.msra.mxu0 %v22537_v63  ;;  %12510 = vmatpush1.bf16.msra.mxu1 %v22540_v0  ;;  %v22590_v63 = vld [vmem:[#allocation2 + $0x2934] ss:$52 sps:$4 sm:$0xff]  }
 0x60a   :  { %12167 = vmatprep.subr.bf16.mxu0 %v22545_v20  ;;  %12511 = vmatprep.subr.bf16.mxu1 %v22548_v27  ;;  %v22585_v0 = vld [vmem:[#allocation2 + $0x2928] ss:$52 sps:$4 sm:$0xff]   ;;  %v22588_v20 = vld [vmem:[#allocation2 + $0x2930] ss:$52 sps:$4 sm:$0xff]  }
 0x60b   :  { %v22593_v27 = vld [vmem:[#allocation2 + $0x2994] ss:$52 sps:$4 sm:$0xff]  }
 0x60d   :  { %12168 = vmatpush1.bf16.msra.mxu0 %v22543_v8  ;;  %12512 = vmatpush1.bf16.msra.mxu1 %v22546_v17  ;;  %v22596_v8 = vld [vmem:[#allocation2 + $0x299c] ss:$52 sps:$4 sm:$0xff]  }
 0x60e   :  { %12169 = vmatprep.subr.bf16.mxu0 %v22551_v29  ;;  %12513 = vmatprep.subr.bf16.mxu1 %v22554_v2  ;;  %v22591_v17 = vld [vmem:[#allocation2 + $0x2990] ss:$52 sps:$4 sm:$0xff]   ;;  %v22594_v29 = vld [vmem:[#allocation2 + $0x2998] ss:$52 sps:$4 sm:$0xff]  }
 0x60f   :  { %v22599_v2 = vld [vmem:[#allocation2 + $0x29fc] ss:$52 sps:$4 sm:$0xff]  }
 0x611   :  { %12170 = vmatpush1.bf16.msra.mxu0 %v22549_v3  ;;  %12514 = vmatpush1.bf16.msra.mxu1 %v22552_v31  ;;  %v22602_v3 = vld [vmem:[#allocation2 + $0x2a04] ss:$52 sps:$4 sm:$0xff]  }
 0x612   :  { %12182 = vmatprep.subr.bf16.mxu0 %v22557_v32  ;;  %12526 = vmatprep.subr.bf16.mxu1 %v22560_v37  ;;  %v22597_v31 = vld [vmem:[#allocation2 + $0x29f8] ss:$52 sps:$4 sm:$0xff]   ;;  %v22600_v32 = vld [vmem:[#allocation2 + $0x2a00] ss:$52 sps:$4 sm:$0xff]  }
 0x613   :  { %v22605_v37 = vld [vmem:[#allocation2 + $0x2a64] ss:$52 sps:$4 sm:$0xff]  }
 0x614   :  { %12172 = vmatmul.mubr.bf16.vlgmr.msra.gmra.mrb[8].mxu0 %v24021_v1  ;;  %12516 = vmatmul.mubr.bf16.vlgmr.msra.gmra.mrb[8].mxu1 %v24021_v1 }
 0x615   :  { %12183 = vmatpush1.bf16.msra.mxu0 %v22555_v38  ;;  %12527 = vmatpush1.bf16.msra.mxu1 %v22558_v39  ;;  %v22608_v38 = vld [vmem:[#allocation2 + $0x2a6c] ss:$52 sps:$4 sm:$0xff]  }
 0x616   :  { %12184 = vmatprep.subr.bf16.mxu0 %v22563_v40  ;;  %12528 = vmatprep.subr.bf16.mxu1 %v22566_v25  ;;  %v22603_v39 = vld [vmem:[#allocation2 + $0x2a60] ss:$52 sps:$4 sm:$0xff]   ;;  %v22606_v40 = vld [vmem:[#allocation2 + $0x2a68] ss:$52 sps:$4 sm:$0xff]  }
 0x617   :  { %12214 = vmatprep.mubr.bf16.mxu0 %v24035_v47  ;;  %12558 = vmatprep.mubr.bf16.mxu1 %v24035_v47  ;;  %v22611_v25 = vld [vmem:[#allocation2 + $0x2acc] ss:$52 sps:$4 sm:$0xff]  }
 0x619   :  { %12185 = vmatpush1.bf16.msra.mxu0 %v22561_v26  ;;  %12529 = vmatpush1.bf16.msra.mxu1 %v22564_v42  ;;  %v22614_v26 = vld [vmem:[#allocation2 + $0x2ad4] ss:$52 sps:$4 sm:$0xff]  }
 0x61a   :  { %12186 = vmatprep.subr.bf16.mxu0 %v22569_v43  ;;  %12530 = vmatprep.subr.bf16.mxu1 %v22572_v44  ;;  %v22609_v42 = vld [vmem:[#allocation2 + $0x2ac8] ss:$52 sps:$4 sm:$0xff]   ;;  %v22612_v43 = vld [vmem:[#allocation2 + $0x2ad0] ss:$52 sps:$4 sm:$0xff]  }
 0x61b   :  { %v22617_v44 = vld [vmem:[#allocation2 + $0x2b34] ss:$52 sps:$4 sm:$0xff]  }
 0x61d   :  { %12187 = vmatpush1.bf16.msra.mxu0 %v22567_v46  ;;  %12531 = vmatpush1.bf16.msra.mxu1 %v22570_v51  ;;  %v22620_v46 = vld [vmem:[#allocation2 + $0x2b3c] ss:$52 sps:$4 sm:$0xff]  }
 0x61e   :  { %12188 = vmatprep.subr.bf16.mxu0 %v22575_v52  ;;  %12532 = vmatprep.subr.bf16.mxu1 %v22578_v53  ;;  %v22615_v51 = vld [vmem:[#allocation2 + $0x2b30] ss:$52 sps:$4 sm:$0xff]   ;;  %v22618_v52 = vld [vmem:[#allocation2 + $0x2b38] ss:$52 sps:$4 sm:$0xff]  }
 0x61f   :  { %v22623_v53 = vld [vmem:[#allocation2 + $0x2b9c] ss:$52 sps:$4 sm:$0xff]  }
 0x621   :  { %12189 = vmatpush1.bf16.msra.mxu0 %v22573_v54  ;;  %12533 = vmatpush1.bf16.msra.mxu1 %v22576_v33  ;;  %v22626_v54 = vld [vmem:[#allocation2 + $0x2ba4] ss:$52 sps:$4 sm:$0xff]  }
 0x622   :  { %12190 = vmatprep.subr.bf16.mxu0 %v22581_v21  ;;  %12534 = vmatprep.subr.bf16.mxu1 %v22584_v22  ;;  %v22621_v33 = vld [vmem:[#allocation2 + $0x2b98] ss:$52 sps:$4 sm:$0xff]   ;;  %v22624_v21 = vld [vmem:[#allocation2 + $0x2ba0] ss:$52 sps:$4 sm:$0xff]  }
 0x623   :  { %v22629_v22 = vld [vmem:[#allocation2 + $0x2c04] ss:$52 sps:$4 sm:$0xff]  }
 0x625   :  { %12191 = vmatpush1.bf16.msra.mxu0 %v22579_v36  ;;  %12535 = vmatpush1.bf16.msra.mxu1 %v22582_v58  ;;  %v22632_v36 = vld [vmem:[#allocation2 + $0x2c0c] ss:$52 sps:$4 sm:$0xff]  }
 0x626   :  { %12192 = vmatprep.subr.bf16.mxu0 %v22587_v62  ;;  %12536 = vmatprep.subr.bf16.mxu1 %v22590_v63  ;;  %v22627_v58 = vld [vmem:[#allocation2 + $0x2c00] ss:$52 sps:$4 sm:$0xff]   ;;  %v22630_v62 = vld [vmem:[#allocation2 + $0x2c08] ss:$52 sps:$4 sm:$0xff]  }
 0x627   :  { %v22635_v63 = vld [vmem:[#allocation2 + $0x2c6c] ss:$52 sps:$4 sm:$0xff]  }
 0x629   :  { %12193 = vmatpush1.bf16.msra.mxu0 %v22585_v0  ;;  %12537 = vmatpush1.bf16.msra.mxu1 %v22588_v20  ;;  %v22638_v0 = vld [vmem:[#allocation2 + $0x2c74] ss:$52 sps:$4 sm:$0xff]  }
 0x62a   :  { %12194 = vmatprep.subr.bf16.mxu0 %v22593_v27  ;;  %12538 = vmatprep.subr.bf16.mxu1 %v22596_v8  ;;  %v22633_v20 = vld [vmem:[#allocation2 + $0x2c68] ss:$52 sps:$4 sm:$0xff]   ;;  %v22636_v27 = vld [vmem:[#allocation2 + $0x2c70] ss:$52 sps:$4 sm:$0xff]  }
 0x62b   :  { %v22641_v8 = vld [vmem:[#allocation2 + $0x2cd4] ss:$52 sps:$4 sm:$0xff]  }
 0x62d   :  { %12195 = vmatpush1.bf16.msra.mxu0 %v22591_v17  ;;  %12539 = vmatpush1.bf16.msra.mxu1 %v22594_v29  ;;  %v22644_v17 = vld [vmem:[#allocation2 + $0x2cdc] ss:$52 sps:$4 sm:$0xff]  }
 0x62e   :  { %12196 = vmatprep.subr.bf16.mxu0 %v22599_v2  ;;  %12540 = vmatprep.subr.bf16.mxu1 %v22602_v3  ;;  %v22639_v29 = vld [vmem:[#allocation2 + $0x2cd0] ss:$52 sps:$4 sm:$0xff]   ;;  %v22642_v2 = vld [vmem:[#allocation2 + $0x2cd8] ss:$52 sps:$4 sm:$0xff]  }
 0x62f   :  { %v22647_v3 = vld [vmem:[#allocation2 + $0x2d3c] ss:$52 sps:$4 sm:$0xff]  }
 0x631   :  { %12197 = vmatpush1.bf16.msra.mxu0 %v22597_v31  ;;  %12541 = vmatpush1.bf16.msra.mxu1 %v22600_v32  ;;  %v22650_v31 = vld [vmem:[#allocation2 + $0x2d44] ss:$52 sps:$4 sm:$0xff]  }
 0x632   :  { %12198 = vmatprep.subr.bf16.mxu0 %v22605_v37  ;;  %12542 = vmatprep.subr.bf16.mxu1 %v22608_v38  ;;  %v22645_v32 = vld [vmem:[#allocation2 + $0x2d38] ss:$52 sps:$4 sm:$0xff]   ;;  %v22648_v37 = vld [vmem:[#allocation2 + $0x2d40] ss:$52 sps:$4 sm:$0xff]  }
 0x633   :  { %v22653_v38 = vld [vmem:[#allocation2 + $0x2da4] ss:$52 sps:$4 sm:$0xff]  }
 0x635   :  { %12199 = vmatpush1.bf16.msra.mxu0 %v22603_v39  ;;  %12543 = vmatpush1.bf16.msra.mxu1 %v22606_v40  ;;  %v22656_v39 = vld [vmem:[#allocation2 + $0x2dac] ss:$52 sps:$4 sm:$0xff]  }
 0x636   :  { %12200 = vmatprep.subr.bf16.mxu0 %v22611_v25  ;;  %12544 = vmatprep.subr.bf16.mxu1 %v22614_v26  ;;  %v22651_v40 = vld [vmem:[#allocation2 + $0x2da0] ss:$52 sps:$4 sm:$0xff]   ;;  %v22654_v25 = vld [vmem:[#allocation2 + $0x2da8] ss:$52 sps:$4 sm:$0xff]  }
 0x637   :  { %v22659_v26 = vld [vmem:[#allocation2 + $0x2e0c] ss:$52 sps:$4 sm:$0xff]  }
 0x639   :  { %12201 = vmatpush1.bf16.msra.mxu0 %v22609_v42  ;;  %12545 = vmatpush1.bf16.msra.mxu1 %v22612_v43  ;;  %v22662_v42 = vld [vmem:[#allocation2 + $0x2e14] ss:$52 sps:$4 sm:$0xff]  }
 0x63a   :  { %12202 = vmatprep.subr.bf16.mxu0 %v22617_v44  ;;  %12546 = vmatprep.subr.bf16.mxu1 %v22620_v46  ;;  %v22657_v43 = vld [vmem:[#allocation2 + $0x2e08] ss:$52 sps:$4 sm:$0xff]   ;;  %v22660_v44 = vld [vmem:[#allocation2 + $0x2e10] ss:$52 sps:$4 sm:$0xff]  }
 0x63b   :  { %v22665_v46 = vld [vmem:[#allocation2 + $0x2e74] ss:$52 sps:$4 sm:$0xff]  }
 0x63d   :  { %12203 = vmatpush1.bf16.msra.mxu0 %v22615_v51  ;;  %12547 = vmatpush1.bf16.msra.mxu1 %v22618_v52  ;;  %v22668_v51 = vld [vmem:[#allocation2 + $0x2e7c] ss:$52 sps:$4 sm:$0xff]  }
 0x63e   :  { %12204 = vmatprep.subr.bf16.mxu0 %v22623_v53  ;;  %12548 = vmatprep.subr.bf16.mxu1 %v22626_v54  ;;  %v22663_v52 = vld [vmem:[#allocation2 + $0x2e70] ss:$52 sps:$4 sm:$0xff]   ;;  %v22666_v53 = vld [vmem:[#allocation2 + $0x2e78] ss:$52 sps:$4 sm:$0xff]  }
 0x63f   :  { %v22671_v54 = vld [vmem:[#allocation2 + $0x2edc] ss:$52 sps:$4 sm:$0xff]  }
 0x641   :  { %12205 = vmatpush1.bf16.msra.mxu0 %v22621_v33  ;;  %12549 = vmatpush1.bf16.msra.mxu1 %v22624_v21  ;;  %v22674_v33 = vld [vmem:[#allocation2 + $0x2ee4] ss:$52 sps:$4 sm:$0xff]  }
 0x642   :  { %12206 = vmatprep.subr.bf16.mxu0 %v22629_v22  ;;  %12550 = vmatprep.subr.bf16.mxu1 %v22632_v36  ;;  %v22669_v21 = vld [vmem:[#allocation2 + $0x2ed8] ss:$52 sps:$4 sm:$0xff]   ;;  %v22672_v22 = vld [vmem:[#allocation2 + $0x2ee0] ss:$52 sps:$4 sm:$0xff]  }
 0x643   :  { %v22677_v36 = vld [vmem:[#allocation2 + $0x2f44] ss:$52 sps:$4 sm:$0xff]  }
 0x645   :  { %12207 = vmatpush1.bf16.msra.mxu0 %v22627_v58  ;;  %12551 = vmatpush1.bf16.msra.mxu1 %v22630_v62  ;;  %v22680_v58 = vld [vmem:[#allocation2 + $0x2f4c] ss:$52 sps:$4 sm:$0xff]  }
 0x646   :  { %12208 = vmatprep.subr.bf16.mxu0 %v22635_v63  ;;  %12552 = vmatprep.subr.bf16.mxu1 %v22638_v0  ;;  %v22675_v62 = vld [vmem:[#allocation2 + $0x2f40] ss:$52 sps:$4 sm:$0xff]   ;;  %v22678_v63 = vld [vmem:[#allocation2 + $0x2f48] ss:$52 sps:$4 sm:$0xff]  }
 0x647   :  { %v22683_v0 = vld [vmem:[#allocation2 + $0x2fac] ss:$52 sps:$4 sm:$0xff]  }
 0x649   :  { %12209 = vmatpush1.bf16.msra.mxu0 %v22633_v20  ;;  %12553 = vmatpush1.bf16.msra.mxu1 %v22636_v27  ;;  %v22686_v20 = vld [vmem:[#allocation2 + $0x2fb4] ss:$52 sps:$4 sm:$0xff]  }
 0x64a   :  { %12210 = vmatprep.subr.bf16.mxu0 %v22641_v8  ;;  %12554 = vmatprep.subr.bf16.mxu1 %v22644_v17  ;;  %v22681_v27 = vld [vmem:[#allocation2 + $0x2fa8] ss:$52 sps:$4 sm:$0xff]   ;;  %v22684_v8 = vld [vmem:[#allocation2 + $0x2fb0] ss:$52 sps:$4 sm:$0xff]  }
 0x64b   :  { %v22689_v17 = vld [vmem:[#allocation2 + $0x3014] ss:$52 sps:$4 sm:$0xff]  }
 0x64d   :  { %12211 = vmatpush1.bf16.msra.mxu0 %v22639_v29  ;;  %12555 = vmatpush1.bf16.msra.mxu1 %v22642_v2  ;;  %v22692_v29 = vld [vmem:[#allocation2 + $0x301c] ss:$52 sps:$4 sm:$0xff]  }
 0x64e   :  { %12212 = vmatprep.subr.bf16.mxu0 %v22647_v3  ;;  %12556 = vmatprep.subr.bf16.mxu1 %v22650_v31  ;;  %v22687_v2 = vld [vmem:[#allocation2 + $0x3010] ss:$52 sps:$4 sm:$0xff]   ;;  %v22690_v3 = vld [vmem:[#allocation2 + $0x3018] ss:$52 sps:$4 sm:$0xff]  }
 0x64f   :  { %v22695_v31 = vld [vmem:[#allocation2 + $0x307c] ss:$52 sps:$4 sm:$0xff]  }
 0x651   :  { %12213 = vmatpush1.bf16.msra.mxu0 %v22645_v32  ;;  %12557 = vmatpush1.bf16.msra.mxu1 %v22648_v37  ;;  %v22698_v32 = vld [vmem:[#allocation2 + $0x3084] ss:$52 sps:$4 sm:$0xff]  }
 0x652   :  { %12225 = vmatprep.subr.bf16.mxu0 %v22653_v38  ;;  %12569 = vmatprep.subr.bf16.mxu1 %v22656_v39  ;;  %v22693_v37 = vld [vmem:[#allocation2 + $0x3078] ss:$52 sps:$4 sm:$0xff]   ;;  %v22696_v38 = vld [vmem:[#allocation2 + $0x3080] ss:$52 sps:$4 sm:$0xff]  }
 0x653   :  { %v22701_v39 = vld [vmem:[#allocation2 + $0x30e4] ss:$52 sps:$4 sm:$0xff]  }
 0x654   :  { %12215 = vmatmul.mubr.bf16.vlgmr.msra.gmra.mrb[8].mxu0 %v24053_v23  ;;  %12559 = vmatmul.mubr.bf16.vlgmr.msra.gmra.mrb[8].mxu1 %v24053_v23 }
 0x655   :  { %12226 = vmatpush1.bf16.msra.mxu0 %v22651_v40  ;;  %12570 = vmatpush1.bf16.msra.mxu1 %v22654_v25  ;;  %v22704_v40 = vld [vmem:[#allocation2 + $0x30ec] ss:$52 sps:$4 sm:$0xff]  }
 0x656   :  { %12227 = vmatprep.subr.bf16.mxu0 %v22659_v26  ;;  %12571 = vmatprep.subr.bf16.mxu1 %v22662_v42  ;;  %v22699_v25 = vld [vmem:[#allocation2 + $0x30e0] ss:$52 sps:$4 sm:$0xff]   ;;  %v22702_v26 = vld [vmem:[#allocation2 + $0x30e8] ss:$52 sps:$4 sm:$0xff]  }
 0x657   :  { %12257 = vmatprep.mubr.bf16.mxu0 %v24057_v30  ;;  %12601 = vmatprep.mubr.bf16.mxu1 %v24057_v30  ;;  %v22707_v42 = vld [vmem:[#allocation2 + $0x314c] ss:$52 sps:$4 sm:$0xff]  }
 0x659   :  { %12228 = vmatpush1.bf16.msra.mxu0 %v22657_v43  ;;  %12572 = vmatpush1.bf16.msra.mxu1 %v22660_v44  ;;  %v22710_v43 = vld [vmem:[#allocation2 + $0x3154] ss:$52 sps:$4 sm:$0xff]  }
 0x65a   :  { %12229 = vmatprep.subr.bf16.mxu0 %v22665_v46  ;;  %12573 = vmatprep.subr.bf16.mxu1 %v22668_v51  ;;  %v22705_v44 = vld [vmem:[#allocation2 + $0x3148] ss:$52 sps:$4 sm:$0xff]   ;;  %v22708_v46 = vld [vmem:[#allocation2 + $0x3150] ss:$52 sps:$4 sm:$0xff]  }
 0x65b   :  { %v22713_v51 = vld [vmem:[#allocation2 + $0x31b4] ss:$52 sps:$4 sm:$0xff]  }
 0x65d   :  { %12230 = vmatpush1.bf16.msra.mxu0 %v22663_v52  ;;  %12574 = vmatpush1.bf16.msra.mxu1 %v22666_v53  ;;  %v22716_v52 = vld [vmem:[#allocation2 + $0x31bc] ss:$52 sps:$4 sm:$0xff]  }
 0x65e   :  { %12231 = vmatprep.subr.bf16.mxu0 %v22671_v54  ;;  %12575 = vmatprep.subr.bf16.mxu1 %v22674_v33  ;;  %v22711_v53 = vld [vmem:[#allocation2 + $0x31b0] ss:$52 sps:$4 sm:$0xff]   ;;  %v22714_v54 = vld [vmem:[#allocation2 + $0x31b8] ss:$52 sps:$4 sm:$0xff]  }
 0x65f   :  { %v22719_v33 = vld [vmem:[#allocation2 + $0x321c] ss:$52 sps:$4 sm:$0xff]  }
 0x661   :  { %12232 = vmatpush1.bf16.msra.mxu0 %v22669_v21  ;;  %12576 = vmatpush1.bf16.msra.mxu1 %v22672_v22  ;;  %v22722_v21 = vld [vmem:[#allocation2 + $0x3224] ss:$52 sps:$4 sm:$0xff]  }
 0x662   :  { %12233 = vmatprep.subr.bf16.mxu0 %v22677_v36  ;;  %12577 = vmatprep.subr.bf16.mxu1 %v22680_v58  ;;  %v22717_v22 = vld [vmem:[#allocation2 + $0x3218] ss:$52 sps:$4 sm:$0xff]   ;;  %v22720_v36 = vld [vmem:[#allocation2 + $0x3220] ss:$52 sps:$4 sm:$0xff]  }
 0x663   :  { %v22725_v58 = vld [vmem:[#allocation2 + $0x3284] ss:$52 sps:$4 sm:$0xff]  }
 0x665   :  { %12234 = vmatpush1.bf16.msra.mxu0 %v22675_v62  ;;  %12578 = vmatpush1.bf16.msra.mxu1 %v22678_v63  ;;  %v22728_v62 = vld [vmem:[#allocation2 + $0x328c] ss:$52 sps:$4 sm:$0xff]  }
 0x666   :  { %12235 = vmatprep.subr.bf16.mxu0 %v22683_v0  ;;  %12579 = vmatprep.subr.bf16.mxu1 %v22686_v20  ;;  %v22723_v63 = vld [vmem:[#allocation2 + $0x3280] ss:$52 sps:$4 sm:$0xff]   ;;  %v22726_v0 = vld [vmem:[#allocation2 + $0x3288] ss:$52 sps:$4 sm:$0xff]  }
 0x667   :  { %v22731_v20 = vld [vmem:[#allocation2 + $0x32ec] ss:$52 sps:$4 sm:$0xff]  }
 0x669   :  { %12236 = vmatpush1.bf16.msra.mxu0 %v22681_v27  ;;  %12580 = vmatpush1.bf16.msra.mxu1 %v22684_v8  ;;  %v22734_v27 = vld [vmem:[#allocation2 + $0x32f4] ss:$52 sps:$4 sm:$0xff]  }
 0x66a   :  { %12237 = vmatprep.subr.bf16.mxu0 %v22689_v17  ;;  %12581 = vmatprep.subr.bf16.mxu1 %v22692_v29  ;;  %v22729_v8 = vld [vmem:[#allocation2 + $0x32e8] ss:$52 sps:$4 sm:$0xff]   ;;  %v22732_v17 = vld [vmem:[#allocation2 + $0x32f0] ss:$52 sps:$4 sm:$0xff]  }
 0x66b   :  { %v22737_v29 = vld [vmem:[#allocation2 + $0x3354] ss:$52 sps:$4 sm:$0xff]  }
 0x66d   :  { %12238 = vmatpush1.bf16.msra.mxu0 %v22687_v2  ;;  %12582 = vmatpush1.bf16.msra.mxu1 %v22690_v3  ;;  %v22740_v2 = vld [vmem:[#allocation2 + $0x335c] ss:$52 sps:$4 sm:$0xff]  }
 0x66e   :  { %12239 = vmatprep.subr.bf16.mxu0 %v22695_v31  ;;  %12583 = vmatprep.subr.bf16.mxu1 %v22698_v32  ;;  %v22735_v3 = vld [vmem:[#allocation2 + $0x3350] ss:$52 sps:$4 sm:$0xff]   ;;  %v22738_v31 = vld [vmem:[#allocation2 + $0x3358] ss:$52 sps:$4 sm:$0xff]  }
 0x66f   :  { %v22743_v32 = vld [vmem:[#allocation2 + $0x33bc] ss:$52 sps:$4 sm:$0xff]  }
 0x671   :  { %12240 = vmatpush1.bf16.msra.mxu0 %v22693_v37  ;;  %12584 = vmatpush1.bf16.msra.mxu1 %v22696_v38  ;;  %v22746_v37 = vld [vmem:[#allocation2 + $0x33c4] ss:$52 sps:$4 sm:$0xff]  }
 0x672   :  { %12241 = vmatprep.subr.bf16.mxu0 %v22701_v39  ;;  %12585 = vmatprep.subr.bf16.mxu1 %v22704_v40  ;;  %v22741_v38 = vld [vmem:[#allocation2 + $0x33b8] ss:$52 sps:$4 sm:$0xff]   ;;  %v22744_v39 = vld [vmem:[#allocation2 + $0x33c0] ss:$52 sps:$4 sm:$0xff]   ;;  %v22747_v40 = vld [vmem:[#allocation2 + $0x370] ss:$52 sps:$4 sm:$0xff]  }
 0x675   :  { %12242 = vmatpush1.bf16.msra.mxu0 %v22699_v25  ;;  %12586 = vmatpush1.bf16.msra.mxu1 %v22702_v26  ;;  %v22748_v25 = vld [vmem:[#allocation2 + $0x9f0] ss:$52 sps:$4 sm:$0xff]  }
 0x676   :  { %12243 = vmatprep.subr.bf16.mxu0 %v22707_v42  ;;  %12587 = vmatprep.subr.bf16.mxu1 %v22710_v43  ;;  %v22749_v26 = vld [vmem:[#allocation2 + $0x30] ss:$52 sps:$4 sm:$0xff]   ;;  %v22751_v43 = vld [vmem:[#allocation2 + $0x3d8] ss:$52 sps:$4 sm:$0xff]  }
 0x677   :  { %v22750_v42 = vld [vmem:[#allocation2 + $0x6b0] ss:$52 sps:$4 sm:$0xff]  }
 0x679   :  { %12244 = vmatpush1.bf16.msra.mxu0 %v22705_v44  ;;  %12588 = vmatpush1.bf16.msra.mxu1 %v22708_v46  ;;  %v22752_v44 = vld [vmem:[#allocation2 + $0xa58] ss:$52 sps:$4 sm:$0xff]  }
 0x67a   :  { %12245 = vmatprep.subr.bf16.mxu0 %v22713_v51  ;;  %12589 = vmatprep.subr.bf16.mxu1 %v22716_v52  ;;  %v22753_v46 = vld [vmem:[#allocation2 + $0x98] ss:$52 sps:$4 sm:$0xff]   ;;  %v22755_v52 = vld [vmem:[#allocation2 + $0x440] ss:$52 sps:$4 sm:$0xff]  }
 0x67b   :  { %v22754_v51 = vld [vmem:[#allocation2 + $0x718] ss:$52 sps:$4 sm:$0xff]  }
 0x67d   :  { %12246 = vmatpush1.bf16.msra.mxu0 %v22711_v53  ;;  %12590 = vmatpush1.bf16.msra.mxu1 %v22714_v54  ;;  %v22756_v53 = vld [vmem:[#allocation2 + $0xac0] ss:$52 sps:$4 sm:$0xff]  }
 0x67e   :  { %12247 = vmatprep.subr.bf16.mxu0 %v22719_v33  ;;  %12591 = vmatprep.subr.bf16.mxu1 %v22722_v21  ;;  %v22757_v54 = vld [vmem:[#allocation2 + $0x100] ss:$52 sps:$4 sm:$0xff]   ;;  %v22759_v21 = vld [vmem:[#allocation2 + $0x4a8] ss:$52 sps:$4 sm:$0xff]  }
 0x67f   :  { %v22758_v33 = vld [vmem:[#allocation2 + $0x780] ss:$52 sps:$4 sm:$0xff]  }
 0x681   :  { %12248 = vmatpush1.bf16.msra.mxu0 %v22717_v22  ;;  %12592 = vmatpush1.bf16.msra.mxu1 %v22720_v36  ;;  %v22760_v22 = vld [vmem:[#allocation2 + $0xb28] ss:$52 sps:$4 sm:$0xff]  }
 0x682   :  { %12249 = vmatprep.subr.bf16.mxu0 %v22725_v58  ;;  %12593 = vmatprep.subr.bf16.mxu1 %v22728_v62  ;;  %v22761_v36 = vld [vmem:[#allocation2 + $0x168] ss:$52 sps:$4 sm:$0xff]   ;;  %v22763_v62 = vld [vmem:[#allocation2 + $0x510] ss:$52 sps:$4 sm:$0xff]  }
 0x683   :  { %v22762_v58 = vld [vmem:[#allocation2 + $0x7e8] ss:$52 sps:$4 sm:$0xff]  }
 0x685   :  { %12250 = vmatpush1.bf16.msra.mxu0 %v22723_v63  ;;  %12594 = vmatpush1.bf16.msra.mxu1 %v22726_v0  ;;  %v22764_v63 = vld [vmem:[#allocation2 + $0xb90] ss:$52 sps:$4 sm:$0xff]   ;;  %v22767_v0 = vld [vmem:[#allocation2 + $0x578] ss:$52 sps:$4 sm:$0xff]  }
 0x686   :  { %12251 = vmatprep.subr.bf16.mxu0 %v22731_v20  ;;  %12595 = vmatprep.subr.bf16.mxu1 %v22734_v27  ;;  %v22768_v20 = vld [vmem:[#allocation2 + $0xbf8] ss:$52 sps:$4 sm:$0xff]  }
 0x687   :  { %v22769_v27 = vld [vmem:[#allocation2 + $0x238] ss:$52 sps:$4 sm:$0xff]  }
 0x689   :  { %12252 = vmatpush1.bf16.msra.mxu0 %v22729_v8  ;;  %12596 = vmatpush1.bf16.msra.mxu1 %v22732_v17  ;;  %v22770_v8 = vld [vmem:[#allocation2 + $0x8b8] ss:$52 sps:$4 sm:$0xff]   ;;  %v22771_v17 = vld [vmem:[#allocation2 + $0x5e0] ss:$52 sps:$4 sm:$0xff]  }
 0x68a   :  { %12253 = vmatprep.subr.bf16.mxu0 %v22737_v29  ;;  %12597 = vmatprep.subr.bf16.mxu1 %v22740_v2  ;;  %v22772_v29 = vld [vmem:[#allocation2 + $0xc60] ss:$52 sps:$4 sm:$0xff]  }
 0x68b   :  { %v22773_v2 = vld [vmem:[#allocation2 + $0x2a0] ss:$52 sps:$4 sm:$0xff]  }
 0x68d   :  { %12254 = vmatpush1.bf16.msra.mxu0 %v22735_v3  ;;  %12598 = vmatpush1.bf16.msra.mxu1 %v22738_v31  ;;  %v22774_v3 = vld [vmem:[#allocation2 + $0x920] ss:$52 sps:$4 sm:$0xff]   ;;  %v22775_v31 = vld [vmem:[#allocation2 + $0x648] ss:$52 sps:$4 sm:$0xff]  }
 0x68e   :  { %12255 = vmatprep.subr.bf16.mxu0 %v22743_v32  ;;  %12599 = vmatprep.subr.bf16.mxu1 %v22746_v37  ;;  %v22776_v32 = vld [vmem:[#allocation2 + $0xcc8] ss:$52 sps:$4 sm:$0xff]  }
 0x68f   :  { %v22777_v37 = vld [vmem:[#allocation2 + $0x308] ss:$52 sps:$4 sm:$0xff]  }
 0x691   :  { %12256 = vmatpush1.bf16.msra.mxu0 %v22741_v38  ;;  %12600 = vmatpush1.bf16.msra.mxu1 %v22744_v39  ;;  %v22778_v38 = vld [vmem:[#allocation2 + $0x988] ss:$52 sps:$4 sm:$0xff]   ;;  %v22779_v39 = vld [vmem:[#allocation2 + $0x1070] ss:$52 sps:$4 sm:$0xff]  }
 0x692   :  { %19717 = vmatprep.subr.bf16.mxu0 %v22747_v40  ;;  %19739 = vmatprep.subr.bf16.mxu1 %v22748_v25  ;;  %v22780_v40 = vld [vmem:[#allocation2 + $0x16f0] ss:$52 sps:$4 sm:$0xff]  }
 0x693   :  { %v22781_v25 = vld [vmem:[#allocation2 + $0xd30] ss:$52 sps:$4 sm:$0xff]  }
 0x694   :  { %12258 = vmatmul.mubr.bf16.vlgmr.msra.gmra.mrb[8].mxu0 %v24065_v45  ;;  %12602 = vmatmul.mubr.bf16.vlgmr.msra.gmra.mrb[8].mxu1 %v24065_v45 }
 0x695   :  { %19718 = vmatpush3.bf16.msra.mxu0 %v22749_v26  ;;  %19740 = vmatpush3.bf16.msra.mxu1 %v22750_v42  ;;  %v22782_v26 = vld [vmem:[#allocation2 + $0x13b0] ss:$52 sps:$4 sm:$0xff]   ;;  %v22783_v42 = vld [vmem:[#allocation2 + $0x10d8] ss:$52 sps:$4 sm:$0xff]  }
 0x696   :  { %19719 = vmatprep.subr.bf16.mxu0 %v22751_v43  ;;  %19741 = vmatprep.subr.bf16.mxu1 %v22752_v44  ;;  %v22784_v43 = vld [vmem:[#allocation2 + $0x1758] ss:$52 sps:$4 sm:$0xff]  }
 0x697   :  { %12644 = vmatprep.mubr.bf16.mxu0 %v23907_v50  ;;  %12685 = vmatprep.mubr.bf16.mxu1 %v23927_v34  ;;  %v22765_v50 = vld [vmem:[#allocation2 + $0x1d0] ss:$52 sps:$4 sm:$0xff]   ;;  %v22785_v44 = vld [vmem:[#allocation2 + $0xd98] ss:$52 sps:$4 sm:$0xff]  }
 0x698   :  { %v22766_v34 = vld [vmem:[#allocation2 + $0x850] ss:$52 sps:$4 sm:$0xff]  }
 0x699   :  { %19720 = vmatpush3.bf16.msra.mxu0 %v22753_v46  ;;  %19742 = vmatpush3.bf16.msra.mxu1 %v22754_v51  ;;  %v22786_v46 = vld [vmem:[#allocation2 + $0x1418] ss:$52 sps:$4 sm:$0xff]   ;;  %v22787_v51 = vld [vmem:[#allocation2 + $0x1140] ss:$52 sps:$4 sm:$0xff]  }
 0x69a   :  { %19721 = vmatprep.subr.bf16.mxu0 %v22755_v52  ;;  %19743 = vmatprep.subr.bf16.mxu1 %v22756_v53  ;;  %v22788_v52 = vld [vmem:[#allocation2 + $0x17c0] ss:$52 sps:$4 sm:$0xff]  }
 0x69b   :  { %v22789_v53 = vld [vmem:[#allocation2 + $0xe00] ss:$52 sps:$4 sm:$0xff]  }
 0x69d   :  { %19722 = vmatpush3.bf16.msra.mxu0 %v22757_v54  ;;  %19744 = vmatpush3.bf16.msra.mxu1 %v22758_v33  ;;  %v22790_v54 = vld [vmem:[#allocation2 + $0x1480] ss:$52 sps:$4 sm:$0xff]   ;;  %v22793_v33 = vld [vmem:[#allocation2 + $0xe68] ss:$52 sps:$4 sm:$0xff]  }
 0x69e   :  { %19723 = vmatprep.subr.bf16.mxu0 %v22759_v21  ;;  %19745 = vmatprep.subr.bf16.mxu1 %v22760_v22  ;;  %v22794_v21 = vld [vmem:[#allocation2 + $0x14e8] ss:$52 sps:$4 sm:$0xff]   ;;  %v22795_v22 = vld [vmem:[#allocation2 + $0x1210] ss:$52 sps:$4 sm:$0xff]  }
 0x6a1   :  { %19724 = vmatpush3.bf16.msra.mxu0 %v22761_v36  ;;  %19746 = vmatpush3.bf16.msra.mxu1 %v22762_v58  ;;  %v22796_v36 = vld [vmem:[#allocation2 + $0x1890] ss:$52 sps:$4 sm:$0xff]   ;;  %v22799_v58 = vld [vmem:[#allocation2 + $0x1278] ss:$52 sps:$4 sm:$0xff]  }
 0x6a2   :  { %19725 = vmatprep.subr.bf16.mxu0 %v22763_v62  ;;  %19747 = vmatprep.subr.bf16.mxu1 %v22764_v63  ;;  %v22800_v62 = vld [vmem:[#allocation2 + $0x18f8] ss:$52 sps:$4 sm:$0xff]  }
 0x6a3   :  { %v22801_v63 = vld [vmem:[#allocation2 + $0xf38] ss:$52 sps:$4 sm:$0xff]  }
 0x6a5   :  { %19726 = vmatpush3.bf16.msra.mxu0 %v22765_v50  ;;  %19748 = vmatpush3.bf16.msra.mxu1 %v22766_v34  ;;  %v22802_v50 = vld [vmem:[#allocation2 + $0x15b8] ss:$52 sps:$4 sm:$0xff]   ;;  %v22803_v34 = vld [vmem:[#allocation2 + $0x12e0] ss:$52 sps:$4 sm:$0xff]  }
 0x6a6   :  { %19727 = vmatprep.subr.bf16.mxu0 %v22767_v0  ;;  %19749 = vmatprep.subr.bf16.mxu1 %v22768_v20  ;;  %v22804_v0 = vld [vmem:[#allocation2 + $0x1960] ss:$52 sps:$4 sm:$0xff]  }
 0x6a7   :  { %v22805_v20 = vld [vmem:[#allocation2 + $0xfa0] ss:$52 sps:$4 sm:$0xff]  }
 0x6a9   :  { %19728 = vmatpush3.bf16.msra.mxu0 %v22769_v27  ;;  %19750 = vmatpush3.bf16.msra.mxu1 %v22770_v8  ;;  %v22806_v27 = vld [vmem:[#allocation2 + $0x1620] ss:$52 sps:$4 sm:$0xff]   ;;  %v22807_v8 = vld [vmem:[#allocation2 + $0x1348] ss:$52 sps:$4 sm:$0xff]  }
 0x6aa   :  { %19729 = vmatprep.subr.bf16.mxu0 %v22771_v17  ;;  %19751 = vmatprep.subr.bf16.mxu1 %v22772_v29  ;;  %v22808_v17 = vld [vmem:[#allocation2 + $0x19c8] ss:$52 sps:$4 sm:$0xff]  }
 0x6ab   :  { %v22809_v29 = vld [vmem:[#allocation2 + $0x1008] ss:$52 sps:$4 sm:$0xff]  }
 0x6ad   :  { %19730 = vmatpush3.bf16.msra.mxu0 %v22773_v2  ;;  %19752 = vmatpush3.bf16.msra.mxu1 %v22774_v3  ;;  %v22810_v2 = vld [vmem:[#allocation2 + $0x1688] ss:$52 sps:$4 sm:$0xff]   ;;  %v22811_v3 = vld [vmem:[#allocation2 + $0x1d70] ss:$52 sps:$4 sm:$0xff]  }
 0x6ae   :  { %19731 = vmatprep.subr.bf16.mxu0 %v22775_v31  ;;  %19753 = vmatprep.subr.bf16.mxu1 %v22776_v32  ;;  %v22812_v31 = vld [vmem:[#allocation2 + $0x23f0] ss:$52 sps:$4 sm:$0xff]  }
 0x6af   :  { %v22813_v32 = vld [vmem:[#allocation2 + $0x1a30] ss:$52 sps:$4 sm:$0xff]  }
 0x6b1   :  { %19732 = vmatpush3.bf16.msra.mxu0 %v22777_v37  ;;  %19754 = vmatpush3.bf16.msra.mxu1 %v22778_v38  ;;  %v22814_v37 = vld [vmem:[#allocation2 + $0x20b0] ss:$52 sps:$4 sm:$0xff]   ;;  %v22815_v38 = vld [vmem:[#allocation2 + $0x1dd8] ss:$52 sps:$4 sm:$0xff]  }
 0x6b2   :  { %19761 = vmatprep.subr.bf16.mxu0 %v22779_v39  ;;  %19783 = vmatprep.subr.bf16.mxu1 %v22780_v40  ;;  %v22816_v39 = vld [vmem:[#allocation2 + $0x2458] ss:$52 sps:$4 sm:$0xff]  }
 0x6b3   :  { %v22817_v40 = vld [vmem:[#allocation2 + $0x1a98] ss:$52 sps:$4 sm:$0xff]  }
 0x6b4   :  { %12645 = vmatmul.mubr.bf16.vlgmr.msra.gmra.mrb[12].mxu0 %v23911_v5  ;;  %12686 = vmatmul.mubr.bf16.vlgmr.msra.gmra.mrb[12].mxu1 %v23933_v13  ;;  %v22791_v5 = vld [vmem:[#allocation2 + $0x11a8] ss:$52 sps:$4 sm:$0xff]  }
 0x6b5   :  { %19762 = vmatpush3.bf16.msra.mxu0 %v22781_v25  ;;  %19784 = vmatpush3.bf16.msra.mxu1 %v22782_v26  ;;  %v22792_v13 = vld [vmem:[#allocation2 + $0x1828] ss:$52 sps:$4 sm:$0xff]   ;;  %v22818_v25 = vld [vmem:[#allocation2 + $0x2118] ss:$52 sps:$4 sm:$0xff]   ;;  %v22819_v26 = vld [vmem:[#allocation2 + $0x1e40] ss:$52 sps:$4 sm:$0xff]  }
 0x6b6   :  { %19763 = vmatprep.subr.bf16.mxu0 %v22783_v42  ;;  %19785 = vmatprep.subr.bf16.mxu1 %v22784_v43  ;;  %v22820_v42 = vld [vmem:[#allocation2 + $0x24c0] ss:$52 sps:$4 sm:$0xff]  }
 0x6b7   :  { %12726 = vmatprep.mubr.bf16.mxu0 %v23947_v18  ;;  %12767 = vmatprep.mubr.bf16.mxu1 %v23969_v16  ;;  %v22797_v18 = vld [vmem:[#allocation2 + $0xed0] ss:$52 sps:$4 sm:$0xff]   ;;  %v22821_v43 = vld [vmem:[#allocation2 + $0x1b00] ss:$52 sps:$4 sm:$0xff]  }
 0x6b8   :  { %v22798_v16 = vld [vmem:[#allocation2 + $0x1550] ss:$52 sps:$4 sm:$0xff]  }
 0x6b9   :  { %19764 = vmatpush3.bf16.msra.mxu0 %v22785_v44  ;;  %19786 = vmatpush3.bf16.msra.mxu1 %v22786_v46  ;;  %v22822_v44 = vld [vmem:[#allocation2 + $0x2180] ss:$52 sps:$4 sm:$0xff]   ;;  %v22825_v46 = vld [vmem:[#allocation2 + $0x1b68] ss:$52 sps:$4 sm:$0xff]  }
 0x6ba   :  { %19765 = vmatprep.subr.bf16.mxu0 %v22787_v51  ;;  %19787 = vmatprep.subr.bf16.mxu1 %v22788_v52  ;;  %v22826_v51 = vld [vmem:[#allocation2 + $0x21e8] ss:$52 sps:$4 sm:$0xff]   ;;  %v22827_v52 = vld [vmem:[#allocation2 + $0x1f10] ss:$52 sps:$4 sm:$0xff]  }
 0x6bd   :  { %19766 = vmatpush3.bf16.msra.mxu0 %v22789_v53  ;;  %19788 = vmatpush3.bf16.msra.mxu1 %v22790_v54  ;;  %v22828_v53 = vld [vmem:[#allocation2 + $0x2590] ss:$52 sps:$4 sm:$0xff]   ;;  %v22831_v54 = vld [vmem:[#allocation2 + $0x1f78] ss:$52 sps:$4 sm:$0xff]  }
 0x6be   :  { %19767 = vmatprep.subr.bf16.mxu0 %v22791_v5  ;;  %19789 = vmatprep.subr.bf16.mxu1 %v22792_v13  ;;  %v22832_v5 = vld [vmem:[#allocation2 + $0x25f8] ss:$52 sps:$4 sm:$0xff]  }
 0x6bf   :  { %v22833_v13 = vld [vmem:[#allocation2 + $0x1c38] ss:$52 sps:$4 sm:$0xff]  }
 0x6c1   :  { %19768 = vmatpush3.bf16.msra.mxu0 %v22793_v33  ;;  %19790 = vmatpush3.bf16.msra.mxu1 %v22794_v21  ;;  %v22834_v33 = vld [vmem:[#allocation2 + $0x22b8] ss:$52 sps:$4 sm:$0xff]   ;;  %v22835_v21 = vld [vmem:[#allocation2 + $0x1fe0] ss:$52 sps:$4 sm:$0xff]  }
 0x6c2   :  { %19769 = vmatprep.subr.bf16.mxu0 %v22795_v22  ;;  %19791 = vmatprep.subr.bf16.mxu1 %v22796_v36  ;;  %v22836_v22 = vld [vmem:[#allocation2 + $0x2660] ss:$52 sps:$4 sm:$0xff]  }
 0x6c3   :  { %v22837_v36 = vld [vmem:[#allocation2 + $0x1ca0] ss:$52 sps:$4 sm:$0xff]  }
 0x6c5   :  { %19770 = vmatpush3.bf16.msra.mxu0 %v22797_v18  ;;  %19792 = vmatpush3.bf16.msra.mxu1 %v22798_v16  ;;  %v22838_v18 = vld [vmem:[#allocation2 + $0x2320] ss:$52 sps:$4 sm:$0xff]   ;;  %v22839_v16 = vld [vmem:[#allocation2 + $0x2048] ss:$52 sps:$4 sm:$0xff]  }
 0x6c6   :  { %19771 = vmatprep.subr.bf16.mxu0 %v22799_v58  ;;  %19793 = vmatprep.subr.bf16.mxu1 %v22800_v62  ;;  %v22840_v58 = vld [vmem:[#allocation2 + $0x26c8] ss:$52 sps:$4 sm:$0xff]  }
 0x6c7   :  { %v22841_v62 = vld [vmem:[#allocation2 + $0x1d08] ss:$52 sps:$4 sm:$0xff]  }
 0x6c9   :  { %19772 = vmatpush3.bf16.msra.mxu0 %v22801_v63  ;;  %19794 = vmatpush3.bf16.msra.mxu1 %v22802_v50  ;;  %v22842_v63 = vld [vmem:[#allocation2 + $0x2388] ss:$52 sps:$4 sm:$0xff]   ;;  %v22843_v50 = vld [vmem:[#allocation2 + $0x2a70] ss:$52 sps:$4 sm:$0xff]  }
 0x6ca   :  { %19773 = vmatprep.subr.bf16.mxu0 %v22803_v34  ;;  %19795 = vmatprep.subr.bf16.mxu1 %v22804_v0  ;;  %v22844_v34 = vld [vmem:[#allocation2 + $0x30f0] ss:$52 sps:$4 sm:$0xff]  }
 0x6cb   :  { %v22845_v0 = vld [vmem:[#allocation2 + $0x2730] ss:$52 sps:$4 sm:$0xff]  }
 0x6cd   :  { %19774 = vmatpush3.bf16.msra.mxu0 %v22805_v20  ;;  %19796 = vmatpush3.bf16.msra.mxu1 %v22806_v27  ;;  %v22846_v20 = vld [vmem:[#allocation2 + $0x2db0] ss:$52 sps:$4 sm:$0xff]   ;;  %v22847_v27 = vld [vmem:[#allocation2 + $0x2ad8] ss:$52 sps:$4 sm:$0xff]  }
 0x6ce   :  { %19775 = vmatprep.subr.bf16.mxu0 %v22807_v8  ;;  %19797 = vmatprep.subr.bf16.mxu1 %v22808_v17  ;;  %v22848_v8 = vld [vmem:[#allocation2 + $0x3158] ss:$52 sps:$4 sm:$0xff]  }
 0x6cf   :  { %v22849_v17 = vld [vmem:[#allocation2 + $0x2798] ss:$52 sps:$4 sm:$0xff]  }
 0x6d1   :  { %19776 = vmatpush3.bf16.msra.mxu0 %v22809_v29  ;;  %19798 = vmatpush3.bf16.msra.mxu1 %v22810_v2  ;;  %v22850_v29 = vld [vmem:[#allocation2 + $0x2e18] ss:$52 sps:$4 sm:$0xff]   ;;  %v22851_v2 = vld [vmem:[#allocation2 + $0x2b40] ss:$52 sps:$4 sm:$0xff]  }
 0x6d2   :  { %19805 = vmatprep.subr.bf16.mxu0 %v22811_v3  ;;  %19827 = vmatprep.subr.bf16.mxu1 %v22812_v31  ;;  %v22852_v3 = vld [vmem:[#allocation2 + $0x31c0] ss:$52 sps:$4 sm:$0xff]  }
 0x6d3   :  { %v22853_v31 = vld [vmem:[#allocation2 + $0x2800] ss:$52 sps:$4 sm:$0xff]  }
 0x6d4   :  { %12727 = vmatmul.mubr.bf16.vlgmr.msra.gmra.mrb[16].mxu0 %v23955_v24  ;;  %12768 = vmatmul.mubr.bf16.vlgmr.msra.gmra.mrb[16].mxu1 %v23982_v35  ;;  %v22823_v24 = vld [vmem:[#allocation2 + $0x1ea8] ss:$52 sps:$4 sm:$0xff]  }
 0x6d5   :  { %19806 = vmatpush3.bf16.msra.mxu0 %v22813_v32  ;;  %19828 = vmatpush3.bf16.msra.mxu1 %v22814_v37  ;;  %v22824_v35 = vld [vmem:[#allocation2 + $0x2528] ss:$52 sps:$4 sm:$0xff]   ;;  %v22854_v32 = vld [vmem:[#allocation2 + $0x2e80] ss:$52 sps:$4 sm:$0xff]  }
 0x6d6   :  { %19807 = vmatprep.subr.bf16.mxu0 %v22815_v38  ;;  %19829 = vmatprep.subr.bf16.mxu1 %v22816_v39  ;;  %v22857_v37 = vld [vmem:[#allocation2 + $0x2868] ss:$52 sps:$4 sm:$0xff]   ;;  %v22859_v39 = vld [vmem:[#allocation2 + $0x2c10] ss:$52 sps:$4 sm:$0xff]  }
 0x6d7   :  { %12808 = vmatprep.mubr.bf16.mxu0 %v23991_v41  ;;  %12849 = vmatprep.mubr.bf16.mxu1 %v24013_v55  ;;  %v22829_v41 = vld [vmem:[#allocation2 + $0x1bd0] ss:$52 sps:$4 sm:$0xff]   ;;  %v22858_v38 = vld [vmem:[#allocation2 + $0x2ee8] ss:$52 sps:$4 sm:$0xff]  }
 0x6d8   :  { %v22830_v55 = vld [vmem:[#allocation2 + $0x2250] ss:$52 sps:$4 sm:$0xff]  }
 0x6d9   :  { %19808 = vmatpush3.bf16.msra.mxu0 %v22817_v40  ;;  %19830 = vmatpush3.bf16.msra.mxu1 %v22818_v25  ;;  %v22860_v40 = vld [vmem:[#allocation2 + $0x3290] ss:$52 sps:$4 sm:$0xff]   ;;  %v22863_v25 = vld [vmem:[#allocation2 + $0x2c78] ss:$52 sps:$4 sm:$0xff]  }
 0x6da   :  { %19809 = vmatprep.subr.bf16.mxu0 %v22819_v26  ;;  %19831 = vmatprep.subr.bf16.mxu1 %v22820_v42  ;;  %v22864_v26 = vld [vmem:[#allocation2 + $0x32f8] ss:$52 sps:$4 sm:$0xff]  }
 0x6db   :  { %v22865_v42 = vld [vmem:[#allocation2 + $0x2938] ss:$52 sps:$4 sm:$0xff]  }
 0x6dd   :  { %19810 = vmatpush3.bf16.msra.mxu0 %v22821_v43  ;;  %19832 = vmatpush3.bf16.msra.mxu1 %v22822_v44  ;;  %v22866_v43 = vld [vmem:[#allocation2 + $0x2fb8] ss:$52 sps:$4 sm:$0xff]   ;;  %v22867_v44 = vld [vmem:[#allocation2 + $0x2ce0] ss:$52 sps:$4 sm:$0xff]  }
 0x6de   :  { %19811 = vmatprep.subr.bf16.mxu0 %v22823_v24  ;;  %19833 = vmatprep.subr.bf16.mxu1 %v22824_v35  ;;  %v22868_v24 = vld [vmem:[#allocation2 + $0x3360] ss:$52 sps:$4 sm:$0xff]  }
 0x6df   :  { %v22869_v35 = vld [vmem:[#allocation2 + $0x29a0] ss:$52 sps:$4 sm:$0xff]  }
 0x6e1   :  { %19812 = vmatpush3.bf16.msra.mxu0 %v22825_v46  ;;  %19834 = vmatpush3.bf16.msra.mxu1 %v22826_v51  ;;  %v22870_v46 = vld [vmem:[#allocation2 + $0x3020] ss:$52 sps:$4 sm:$0xff]   ;;  %v22871_v51 = vld [vmem:[#allocation2 + $0x2d48] ss:$52 sps:$4 sm:$0xff]  }
 0x6e2   :  { %19813 = vmatprep.subr.bf16.mxu0 %v22827_v52  ;;  %19835 = vmatprep.subr.bf16.mxu1 %v22828_v53  ;;  %v22872_v52 = vld [vmem:[#allocation2 + $0x33c8] ss:$52 sps:$4 sm:$0xff]  }
 0x6e3   :  { %v22873_v53 = vld [vmem:[#allocation2 + $0x2a08] ss:$52 sps:$4 sm:$0xff]  }
 0x6e5   :  { %19814 = vmatpush3.bf16.msra.mxu0 %v22829_v41  ;;  %19836 = vmatpush3.bf16.msra.mxu1 %v22830_v55  ;;  %v22874_v41 = vld [vmem:[#allocation2 + $0x3088] ss:$52 sps:$4 sm:$0xff]   ;;  %v22875_v55 = vld [vmem:[#allocation6 + $0x40] sm:$0xff]  }
 0x6e6   :  { %19815 = vmatprep.subr.bf16.mxu0 %v22831_v54  ;;  %19837 = vmatprep.subr.bf16.mxu1 %v22832_v5  ;;  %v22876_v54 = vld [vmem:[#allocation6 + $0xc0] sm:$0xff]  }
 0x6e7   :  { %v22877_v5 = vld [vmem:[#allocation6] sm:$0xff]  }
 0x6e9   :  { %19816 = vmatpush3.bf16.msra.mxu0 %v22833_v13  ;;  %19838 = vmatpush3.bf16.msra.mxu1 %v22834_v33  ;;  %v22878_v13 = vld [vmem:[#allocation6 + $0x80] sm:$0xff]   ;;  %v22879_v33 = vld [vmem:[#allocation6 + $0x48] sm:$0xff]  }
 0x6ea   :  { %19817 = vmatprep.subr.bf16.mxu0 %v22835_v21  ;;  %19839 = vmatprep.subr.bf16.mxu1 %v22836_v22  ;;  %v22880_v21 = vld [vmem:[#allocation6 + $0xc8] sm:$0xff]  }
 0x6eb   :  { %v22881_v22 = vld [vmem:[#allocation6 + $0x8] sm:$0xff]  }
 0x6ed   :  { %19818 = vmatpush3.bf16.msra.mxu0 %v22837_v36  ;;  %19840 = vmatpush3.bf16.msra.mxu1 %v22838_v18  ;;  %v22882_v36 = vld [vmem:[#allocation6 + $0x88] sm:$0xff]   ;;  %v22883_v18 = vld [vmem:[#allocation6 + $0x50] sm:$0xff]  }
 0x6ee   :  { %19819 = vmatprep.subr.bf16.mxu0 %v22839_v16  ;;  %19841 = vmatprep.subr.bf16.mxu1 %v22840_v58  ;;  %v22884_v16 = vld [vmem:[#allocation6 + $0xd0] sm:$0xff]  }
 0x6ef   :  { %v22885_v58 = vld [vmem:[#allocation6 + $0x10] sm:$0xff]  }
 0x6f1   :  { %19820 = vmatpush3.bf16.msra.mxu0 %v22841_v62  ;;  %19842 = vmatpush3.bf16.msra.mxu1 %v22842_v63  ;;  %v22886_v62 = vld [vmem:[#allocation6 + $0x90] sm:$0xff]   ;;  %v22889_v63 = vld [vmem:[#allocation6 + $0x18] sm:$0xff]  }
 0x6f2   :  { %19849 = vmatprep.subr.bf16.mxu0 %v22843_v50  ;;  %19871 = vmatprep.subr.bf16.mxu1 %v22844_v34  ;;  %v22891_v50 = vld [vmem:[#allocation6 + $0x60] sm:$0xff]  }
 0x6f3   :  { %v22893_v34 = vld [vmem:[#allocation6 + $0x20] sm:$0xff]  }
 0x6f4   :  { %12809 = vmatmul.mubr.bf16.vlgmr.msra.gmra.mrb[20].mxu0 %v24009_v49  ;;  %12850 = vmatmul.mubr.bf16.vlgmr.msra.gmra.mrb[20].mxu1 %v24021_v1  ;;  %v22855_v49 = vld [vmem:[#allocation2 + $0x2ba8] ss:$52 sps:$4 sm:$0xff]  }
 0x6f5   :  { %19850 = vmatpush3.bf16.msra.mxu0 %v22845_v0  ;;  %19872 = vmatpush3.bf16.msra.mxu1 %v22846_v20  ;;  %v22856_v1 = vld [vmem:[#allocation2 + $0x3228] ss:$52 sps:$4 sm:$0xff]   ;;  %v22894_v0 = vld [vmem:[#allocation6 + $0xa0] sm:$0xff]  }
 0x6f6   :  { %19851 = vmatprep.subr.bf16.mxu0 %v22847_v27  ;;  %19873 = vmatprep.subr.bf16.mxu1 %v22848_v8  ;;  %v22895_v20 = vld [vmem:[#allocation6 + $0x68] sm:$0xff]  }
 0x6f7   :  { %12890 = vmatprep.mubr.bf16.mxu0 %v24035_v47  ;;  %12931 = vmatprep.mubr.bf16.mxu1 %v24057_v30  ;;  %v22861_v47 = vld [vmem:[#allocation2 + $0x28d0] ss:$52 sps:$4 sm:$0xff]   ;;  %v22896_v27 = vld [vmem:[#allocation6 + $0xe8] sm:$0xff]  }
 0x6f8   :  { %v22862_v30 = vld [vmem:[#allocation2 + $0x2f50] ss:$52 sps:$4 sm:$0xff]   ;;  %v22897_v8 = vld [vmem:[#allocation6 + $0x28] sm:$0xff]  }
 0x6f9   :  { %19852 = vmatpush3.bf16.msra.mxu0 %v22849_v17  ;;  %19874 = vmatpush3.bf16.msra.mxu1 %v22850_v29  ;;  %v22898_v17 = vld [vmem:[#allocation6 + $0xa8] sm:$0xff]   ;;  %v22899_v29 = vld [vmem:[#allocation6 + $0x70] sm:$0xff]  }
 0x6fa   :  { %19853 = vmatprep.subr.bf16.mxu0 %v22851_v2  ;;  %19875 = vmatprep.subr.bf16.mxu1 %v22852_v3  ;;  %v22900_v2 = vld [vmem:[#allocation6 + $0xf0] sm:$0xff]  }
 0x6fb   :  { %v22901_v3 = vld [vmem:[#allocation6 + $0x30] sm:$0xff]  }
 0x6fd   :  { %19854 = vmatpush3.bf16.msra.mxu0 %v22853_v31  ;;  %19876 = vmatpush3.bf16.msra.mxu1 %v22854_v32  ;;  %v22902_v31 = vld [vmem:[#allocation6 + $0xb0] sm:$0xff]   ;;  %v22903_v32 = vld [vmem:[#allocation6 + $0x78] sm:$0xff]  }
 0x6fe   :  { %19855 = vmatprep.subr.bf16.mxu0 %v22855_v49  ;;  %19877 = vmatprep.subr.bf16.mxu1 %v22856_v1  ;;  %v22904_v49 = vld [vmem:[#allocation6 + $0xf8] sm:$0xff]  }
 0x6ff   :  { %v22905_v1 = vld [vmem:[#allocation6 + $0x38] sm:$0xff]  }
 0x701   :  { %19856 = vmatpush3.bf16.msra.mxu0 %v22857_v37  ;;  %19878 = vmatpush3.bf16.msra.mxu1 %v22858_v38  ;;  %v22906_v37 = vld [vmem:[#allocation6 + $0xb8] sm:$0xff]   ;;  %v22907_v38 = vld [vmem:[#allocation6 + $0x140] sm:$0xff]  }
 0x702   :  { %19857 = vmatprep.subr.bf16.mxu0 %v22859_v39  ;;  %19879 = vmatprep.subr.bf16.mxu1 %v22860_v40  ;;  %v22908_v39 = vld [vmem:[#allocation6 + $0x1c0] sm:$0xff]  }
 0x703   :  { %v22909_v40 = vld [vmem:[#allocation6 + $0x100] sm:$0xff]  }
 0x705   :  { %19858 = vmatpush3.bf16.msra.mxu0 %v22861_v47  ;;  %19880 = vmatpush3.bf16.msra.mxu1 %v22862_v30  ;;  %v22910_v47 = vld [vmem:[#allocation6 + $0x180] sm:$0xff]   ;;  %v22911_v30 = vld [vmem:[#allocation6 + $0x148] sm:$0xff]  }
 0x706   :  { %19859 = vmatprep.subr.bf16.mxu0 %v22863_v25  ;;  %19881 = vmatprep.subr.bf16.mxu1 %v22864_v26  ;;  %v22912_v25 = vld [vmem:[#allocation6 + $0x1c8] sm:$0xff]  }
 0x707   :  { %v22913_v26 = vld [vmem:[#allocation6 + $0x108] sm:$0xff]  }
 0x709   :  { %19860 = vmatpush3.bf16.msra.mxu0 %v22865_v42  ;;  %19882 = vmatpush3.bf16.msra.mxu1 %v22866_v43  ;;  %v22914_v42 = vld [vmem:[#allocation6 + $0x188] sm:$0xff]   ;;  %v22915_v43 = vld [vmem:[#allocation6 + $0x150] sm:$0xff]  }
 0x70a   :  { %19861 = vmatprep.subr.bf16.mxu0 %v22867_v44  ;;  %19883 = vmatprep.subr.bf16.mxu1 %v22868_v24  ;;  %v22916_v44 = vld [vmem:[#allocation6 + $0x1d0] sm:$0xff]  }
 0x70b   :  { %v22917_v24 = vld [vmem:[#allocation6 + $0x110] sm:$0xff]  }
 0x70d   :  { %19862 = vmatpush3.bf16.msra.mxu0 %v22869_v35  ;;  %19884 = vmatpush3.bf16.msra.mxu1 %v22870_v46  ;;  %v22919_v35 = vld [vmem:[#allocation6 + $0x158] sm:$0xff]  }
 0x70e   :  { %19863 = vmatprep.subr.bf16.mxu0 %v22871_v51  ;;  %19885 = vmatprep.subr.bf16.mxu1 %v22872_v52  ;;  %v22921_v46 = vld [vmem:[#allocation6 + $0x118] sm:$0xff]   ;;  %v22923_v51 = vld [vmem:[#allocation6 + $0x160] sm:$0xff]  }
 0x70f   :  { %v22924_v52 = vld [vmem:[#allocation6 + $0x1e0] sm:$0xff]  }
 0x711   :  { %19864 = vmatpush3.bf16.msra.mxu0 %v22873_v53  ;;  %19886 = vmatpush3.bf16.msra.mxu1 %v22874_v41  ;;  %v22926_v53 = vld [vmem:[#allocation6 + $0x1a0] sm:$0xff]   ;;  %v22927_v41 = vld [vmem:[#allocation6 + $0x168] sm:$0xff]  }
 0x712   :  { %19893 = vmatprep.subr.bf16.mxu0 %v22875_v55  ;;  %19915 = vmatprep.subr.bf16.mxu1 %v22876_v54  ;;  %v22928_v55 = vld [vmem:[#allocation6 + $0x1e8] sm:$0xff]  }
 0x713   :  { %v22929_v54 = vld [vmem:[#allocation6 + $0x128] sm:$0xff]  }
 0x714   :  { %12891 = vmatmul.mubr.bf16.vlgmr.msra.gmra.mrb[24].mxu0 %v24053_v23  ;;  %12932 = vmatmul.mubr.bf16.vlgmr.msra.gmra.mrb[24].mxu1 %v24065_v45  ;;  %v22887_v23 = vld [vmem:[#allocation6 + $0x58] sm:$0xff]  }
 0x715   :  { %19894 = vmatpush3.bf16.msra.mxu0 %v22877_v5  ;;  %13850 = vmatprep.mubr.bf16.mxu0 %v24105_v12  ;;  %v22888_v45 = vld [vmem:[#allocation6 + $0xd8] sm:$0xff]   ;;  %v22930_v5 = vld [vmem:[#allocation6 + $0x1a8] sm:$0xff]  }
 0x716   :  { %19916 = vmatpush3.bf16.msra.mxu1 %v22878_v13  ;;  %13891 = vmatprep.mubr.bf16.mxu1 %v24107_v14  ;;  %v22890_v12 = vld [vmem:[#allocation6 + $0x98] sm:$0xff]   ;;  %v22892_v14 = vld [vmem:[#allocation6 + $0xe0] sm:$0xff]   ;;  %v22931_v13 = vld [vmem:[#allocation6 + $0x170] sm:$0xff]  }
 0x717   :  { %19895 = vmatprep.subr.bf16.mxu0 %v22879_v33  ;;  %19917 = vmatprep.subr.bf16.mxu1 %v22880_v21  ;;  %v22932_v33 = vld [vmem:[#allocation6 + $0x1f0] sm:$0xff]  }
 0x718   :  { %v22933_v21 = vld [vmem:[#allocation6 + $0x130] sm:$0xff]  }
 0x719   :  { %19896 = vmatpush3.bf16.msra.mxu0 %v22881_v22  ;;  %v22934_v22 = vld [vmem:[#allocation6 + $0x1b0] sm:$0xff]  }
 0x71a   :  { %19918 = vmatpush3.bf16.msra.mxu1 %v22882_v36  ;;  %19897 = vmatprep.subr.bf16.mxu0 %v22883_v18  ;;  %v22935_v36 = vld [vmem:[#allocation6 + $0x178] sm:$0xff]  }
 0x71b   :  { %19919 = vmatprep.subr.bf16.mxu1 %v22884_v16  ;;  %v22936_v18 = vld [vmem:[#allocation6 + $0x1f8] sm:$0xff]  }
 0x71c   :  { %v22937_v16 = vld [vmem:[#allocation6 + $0x138] sm:$0xff]  }
 0x71d   :  { %19898 = vmatpush3.bf16.msra.mxu0 %v22885_v58  ;;  %v22938_v58 = vld [vmem:[#allocation6 + $0x1b8] sm:$0xff]  }
 0x71e   :  { %19920 = vmatpush3.bf16.msra.mxu1 %v22886_v62  ;;  %19899 = vmatprep.subr.bf16.mxu0 %v22887_v23  ;;  %v22939_v62 = vld [vmem:[#allocation6 + $0x240] sm:$0xff]  }
 0x71f   :  { %19921 = vmatprep.subr.bf16.mxu1 %v22888_v45  ;;  %v22940_v23 = vld [vmem:[#allocation6 + $0x2c0] sm:$0xff]  }
 0x720   :  { %v22941_v45 = vld [vmem:[#allocation6 + $0x200] sm:$0xff]  }
 0x721   :  { %19900 = vmatpush3.bf16.msra.mxu0 %v22889_v63  ;;  %v22942_v63 = vld [vmem:[#allocation6 + $0x280] sm:$0xff]  }
 0x722   :  { %19922 = vmatpush3.bf16.msra.mxu1 %v22890_v12  ;;  %19901 = vmatprep.subr.bf16.mxu0 %v22891_v50  ;;  %v22943_v12 = vld [vmem:[#allocation6 + $0x248] sm:$0xff]  }
 0x723   :  { %19923 = vmatprep.subr.bf16.mxu1 %v22892_v14  ;;  %v22944_v50 = vld [vmem:[#allocation6 + $0x2c8] sm:$0xff]  }
 0x724   :  { %v22945_v14 = vld [vmem:[#allocation6 + $0x208] sm:$0xff]  }
 0x725   :  { %19902 = vmatpush3.bf16.msra.mxu0 %v22893_v34  ;;  %v22946_v34 = vld [vmem:[#allocation6 + $0x288] sm:$0xff]  }
 0x726   :  { %19924 = vmatpush3.bf16.msra.mxu1 %v22894_v0  ;;  %19903 = vmatprep.subr.bf16.mxu0 %v22895_v20  ;;  %v22947_v0 = vld [vmem:[#allocation6 + $0x250] sm:$0xff]  }
 0x727   :  { %19925 = vmatprep.subr.bf16.mxu1 %v22896_v27  ;;  %v22948_v20 = vld [vmem:[#allocation6 + $0x2d0] sm:$0xff]  }
 0x728   :  { %v22949_v27 = vld [vmem:[#allocation6 + $0x210] sm:$0xff]  }
 0x729   :  { %19904 = vmatpush3.bf16.msra.mxu0 %v22897_v8  ;;  %v22950_v8 = vld [vmem:[#allocation6 + $0x290] sm:$0xff]  }
 0x72a   :  { %19926 = vmatpush3.bf16.msra.mxu1 %v22898_v17  ;;  %19905 = vmatprep.subr.bf16.mxu0 %v22899_v29  ;;  %v22951_v17 = vld [vmem:[#allocation6 + $0x258] sm:$0xff]  }
 0x72b   :  { %19927 = vmatprep.subr.bf16.mxu1 %v22900_v2  ;;  %v22952_v29 = vld [vmem:[#allocation6 + $0x2d8] sm:$0xff]   ;;  %v22955_v2 = vld [vmem:[#allocation6 + $0x260] sm:$0xff]  }
 0x72d   :  { %19906 = vmatpush3.bf16.msra.mxu0 %v22901_v3  ;;  %v22956_v3 = vld [vmem:[#allocation6 + $0x2e0] sm:$0xff]  }
 0x72e   :  { %19928 = vmatpush3.bf16.msra.mxu1 %v22902_v31  ;;  %19907 = vmatprep.subr.bf16.mxu0 %v22903_v32  ;;  %v22957_v31 = vld [vmem:[#allocation6 + $0x220] sm:$0xff]   ;;  %v24204_v32 = vld [vmem:[#allocation4 + $0x8] sm:$0x1f] }
 0x72f   :  { %19929 = vmatprep.subr.bf16.mxu1 %v22904_v49  ;;  %v22958_v49 = vld [vmem:[#allocation6 + $0x2a0] sm:$0xff]  }
 0x731   :  { %19908 = vmatpush3.bf16.msra.mxu0 %v22905_v1  ;;  %v22959_v1 = vld [vmem:[#allocation6 + $0x268] sm:$0xff]  }
 0x732   :  { %19930 = vmatpush3.bf16.msra.mxu1 %v22906_v37  ;;  %19937 = vmatprep.subr.bf16.mxu0 %v22907_v38  ;;  %v22960_v37 = vld [vmem:[#allocation6 + $0x2e8] sm:$0xff]   ;;  %v1990_v38 = vrot.slane %v24204_v32, %v24086_v6 }
 0x733   :  { %19959 = vmatprep.subr.bf16.mxu1 %v22908_v39  ;;  %v1998_v39 = vrot.slane %v24204_v32, %v24089_v48 }
 0x734   :  { %13851 = vmatmul.mubr.bf16.vlgmr.msra.gmra.mrb[28].mxu0 %v24101_v4  ;;  %v22918_v4 = vld [vmem:[#allocation6 + $0x190] sm:$0xff]  }
 0x735   :  { %13892 = vmatmul.mubr.bf16.vlgmr.msra.gmra.mrb[28].mxu1 %v24103_v7  ;;  %19938 = vmatpush3.bf16.msra.mxu0 %v22909_v40  ;;  %v22920_v7 = vld [vmem:[#allocation6 + $0x1d8] sm:$0xff]   ;;  %v1994_v40 = vrot.slane %v24204_v32, %v24092_v9 }
 0x736   :  { %13932 = vmatprep.mubr.bf16.mxu0 %v24158_v15  ;;  %19960 = vmatpush3.bf16.msra.mxu1 %v22910_v47  ;;  %v22922_v15 = vld [vmem:[#allocation6 + $0x198] sm:$0xff]   ;;  %v2002_v47 = vrot.slane %v24204_v32, %v24095_v10 }
 0x737   :  { %13973 = vmatprep.mubr.bf16.mxu1 %v24160_v19  ;;  %19939 = vmatprep.subr.bf16.mxu0 %v22911_v30  ;;  %v22925_v19 = vld [vmem:[#allocation6 + $0x120] sm:$0xff]   ;;  %v22961_v30 = vld [vmem:[#allocation6 + $0x228] sm:$0xff]  }
 0x738   :  { %19961 = vmatprep.subr.bf16.mxu1 %v22912_v25  ;;  %v22962_v25 = vld [vmem:[#allocation6 + $0x2a8] sm:$0xff]  }
 0x739   :  { %19940 = vmatpush3.bf16.msra.mxu0 %v22913_v26  ;;  %v22963_v26 = vld [vmem:[#allocation6 + $0x270] sm:$0xff]  }
 0x73a   :  { %19962 = vmatpush3.bf16.msra.mxu1 %v22914_v42  ;;  %19941 = vmatprep.subr.bf16.mxu0 %v22915_v43 }
 0x73b   :  { %19963 = vmatprep.subr.bf16.mxu1 %v22916_v44  ;;  %v22964_v44 = vld [vmem:[#allocation6 + $0x2f0] sm:$0xff]  }
 0x73d   :  { %19942 = vmatpush3.bf16.msra.mxu0 %v22917_v24 }
 0x73e   :  { %19964 = vmatpush3.bf16.msra.mxu1 %v22918_v4  ;;  %19943 = vmatprep.subr.bf16.mxu0 %v22919_v35 }
 0x73f   :  { %19965 = vmatprep.subr.bf16.mxu1 %v22920_v7 }
 0x741   :  { %19944 = vmatpush3.bf16.msra.mxu0 %v22921_v46 }
 0x742   :  { %19966 = vmatpush3.bf16.msra.mxu1 %v22922_v15  ;;  %19945 = vmatprep.subr.bf16.mxu0 %v22923_v51 }
 0x743   :  { %19967 = vmatprep.subr.bf16.mxu1 %v22924_v52 }
 0x745   :  { %19946 = vmatpush3.bf16.msra.mxu0 %v22925_v19  ;;  %v22965_v19 = vld [vmem:[#allocation6 + $0x230] sm:$0xff]  }
 0x746   :  { %19968 = vmatpush3.bf16.msra.mxu1 %v22926_v53  ;;  %19947 = vmatprep.subr.bf16.mxu0 %v22927_v41 }
 0x747   :  { %19969 = vmatprep.subr.bf16.mxu1 %v22928_v55 }
 0x749   :  { %19948 = vmatpush3.bf16.msra.mxu0 %v22929_v54 }
 0x74a   :  { %19970 = vmatpush3.bf16.msra.mxu1 %v22930_v5  ;;  %19949 = vmatprep.subr.bf16.mxu0 %v22931_v13  ;;  %v22966_v5 = vld [vmem:[#allocation6 + $0x2b0] sm:$0xff]   ;;  %v22967_v13 = vld [vmem:[#allocation6 + $0x278] sm:$0xff]  }
 0x74b   :  { %19971 = vmatprep.subr.bf16.mxu1 %v22932_v33 }
 0x74d   :  { %19950 = vmatpush3.bf16.msra.mxu0 %v22933_v21 }
 0x74e   :  { %19972 = vmatpush3.bf16.msra.mxu1 %v22934_v22  ;;  %19951 = vmatprep.subr.bf16.mxu0 %v22935_v36  ;;  %v22968_v22 = vld [vmem:[#allocation6 + $0x2f8] sm:$0xff]  }
 0x74f   :  { %19973 = vmatprep.subr.bf16.mxu1 %v22936_v18 }
 0x751   :  { %19952 = vmatpush3.bf16.msra.mxu0 %v22937_v16 }
 0x752   :  { %19974 = vmatpush3.bf16.msra.mxu1 %v22938_v58  ;;  %19981 = vmatprep.subr.bf16.mxu0 %v22939_v62 }
 0x753   :  { %20003 = vmatprep.subr.bf16.mxu1 %v22940_v23 }
 0x754   :  { %13933 = vmatmul.mubr.bf16.vlgmr.msra.gmra.mrb[32].mxu0 %v24154_v11  ;;  %v22953_v11 = vld [vmem:[#allocation6 + $0x218] sm:$0xff]  }
 0x755   :  { %13974 = vmatmul.mubr.bf16.vlgmr.msra.gmra.mrb[32].mxu1 %v24156_v28  ;;  %19982 = vmatpush3.bf16.msra.mxu0 %v22941_v45  ;;  %v22954_v28 = vld [vmem:[#allocation6 + $0x298] sm:$0xff]  }
 0x756   :  { %20004 = vmatpush3.bf16.msra.mxu1 %v22942_v63  ;;  %19983 = vmatprep.subr.bf16.mxu0 %v22943_v12  ;;  %v22969_v12 = vld [vmem:[#allocation6 + $0x238] sm:$0xff]  }
 0x757   :  { %20005 = vmatprep.subr.bf16.mxu1 %v22944_v50 }
 0x759   :  { %19984 = vmatpush3.bf16.msra.mxu0 %v22945_v14 }
 0x75a   :  { %20006 = vmatpush3.bf16.msra.mxu1 %v22946_v34  ;;  %19985 = vmatprep.subr.bf16.mxu0 %v22947_v0  ;;  %v22970_v34 = vld [vmem:[#allocation6 + $0x2b8] sm:$0xff]  }
 0x75b   :  { %20007 = vmatprep.subr.bf16.mxu1 %v22948_v20 }
 0x75d   :  { %19986 = vmatpush3.bf16.msra.mxu0 %v22949_v27  ;;  %v22973_v27 = vld [vmem:[#allocation9 + $0x4] ss:$48 sps:$4 sm:$0xff]  }
 0x75e   :  { %20008 = vmatpush3.bf16.msra.mxu1 %v22950_v8  ;;  %19987 = vmatprep.subr.bf16.mxu0 %v22951_v17  ;;  %v23019_v8 = vld [vmem:[#allocation6 + $0x300] sm:$0xff]  }
 0x75f   :  { %20009 = vmatprep.subr.bf16.mxu1 %v22952_v29  ;;  %v22971_v17 = vld [vmem:[#allocation9] ss:$48 sps:$4 sm:$0xff]  }
 0x760   :  { %v24217_v29 = vld [vmem:[%s24371_s1 + $0x4] ss:$12 sps:$4 sm:$0xff]  }
 0x761   :  { %19988 = vmatpush3.bf16.msra.mxu0 %v22953_v11  ;;  %v22976_v11 = vld [vmem:[#allocation9 + $0x64] ss:$48 sps:$4 sm:$0xff]  }
 0x762   :  { %20010 = vmatpush3.bf16.msra.mxu1 %v22954_v28  ;;  %19989 = vmatprep.subr.bf16.mxu0 %v22955_v2  ;;  %v23719_v28 = vmov 0.0   ;;  %v23026_v2 = vld [vmem:[#allocation6 + $0x308] sm:$0xff]  }
 0x763   :  { %20011 = vmatprep.subr.bf16.mxu1 %v22956_v3  ;;  %v22974_v3 = vld [vmem:[#allocation9 + $0x60] ss:$48 sps:$4 sm:$0xff]  }
 0x765   :  { %19990 = vmatpush3.bf16.msra.mxu0 %v22957_v31  ;;  %v22979_v31 = vld [vmem:[#allocation9 + $0xc4] ss:$48 sps:$4 sm:$0xff]  }
 0x766   :  { %20012 = vmatpush3.bf16.msra.mxu1 %v22958_v49  ;;  %19991 = vmatprep.subr.bf16.mxu0 %v22959_v1  ;;  %v23030_v49 = vld [vmem:[#allocation6 + $0x310] sm:$0xff]  }
 0x767   :  { %v12259_v42 = vpop.f32.mrb[8].mxu0  ;;  %v12603_v43 = vpop.f32.mrb[8].mxu1  ;;  %20013 = vmatprep.subr.bf16.mxu1 %v22960_v37  ;;  %v22977_v1 = vld [vmem:[#allocation9 + $0xc0] ss:$48 sps:$4 sm:$0xff]   ;;  %v22982_v37 = vld [vmem:[#allocation9 + $0x124] ss:$48 sps:$4 sm:$0xff]  }
 0x768   :  { %v20202_v24 = vadd.f32 %v12259_v42, %v1990_v38  ;;  %v20206_v4 = vadd.f32 %v12603_v43, %v1998_v39  ;;  %v12261_v35 = vpop.f32.mrb[9].mxu0  ;;  %v12605_v7 = vpop.f32.mrb[9].mxu1  ;;  %v22986_v42 = vld [vmem:[#allocation9 + $0x1e0] ss:$48 sps:$4 sm:$0xff]  }
 0x769   :  { %v20203_v46 = vadd.f32 %v12261_v35, %v1994_v40  ;;  %v20207_v15 = vadd.f32 %v12605_v7, %v2002_v47  ;;  %v12263_v51 = vpop.f32.mrb[10].mxu0  ;;  %v12607_v52 = vpop.f32.mrb[10].mxu1  ;;  %19992 = vmatpush3.bf16.msra.mxu0 %v22961_v30  ;;  %v22983_v30 = vld [vmem:[#allocation9 + $0x180] ss:$48 sps:$4 sm:$0xff]  }
 0x76a   :  { %v20204_v53 = vadd.f32 %v12263_v51, %v1990_v38  ;;  %v20208_v41 = vadd.f32 %v12607_v52, %v1998_v39  ;;  %20014 = vmatpush3.bf16.msra.mxu1 %v22962_v25  ;;  %v12265_v55 = vpop.f32.mrb[11].mxu0  ;;  %v12609_v54 = vpop.f32.mrb[11].mxu1  ;;  %19993 = vmatprep.subr.bf16.mxu0 %v22963_v26  ;;  %v12948_v36 = vmax.f32 %v20202_v24, 0.0  ;;  %v12950_v18 = vmax.f32 %v20206_v4, 0.0  ;;  %v23034_v38 = vld [vmem:[#allocation6 + $0x318] sm:$0xff]   ;;  %v23042_v26 = vld [vmem:[#allocation6 + $0x328] sm:$0xff]  }
 0x76b   :  { %v20205_v33 = vadd.f32 %v12265_v55, %v1994_v40  ;;  %v20209_v21 = vadd.f32 %v12609_v54, %v2002_v47  ;;  %20015 = vmatprep.subr.bf16.mxu1 %v22964_v44  ;;  %v12949_v62 = vmax.f32 %v20203_v46, 0.0  ;;  %v12951_v23 = vmax.f32 %v20207_v15, 0.0  ;;  %v22980_v39 = vld [vmem:[#allocation9 + $0x120] ss:$48 sps:$4 sm:$0xff]   ;;  %v22985_v40 = vld [vmem:[#allocation9 + $0x184] ss:$48 sps:$4 sm:$0xff]  }
 0x76c   :  { %v12961_v16 = vmax.f32 %v20204_v53, 0.0  ;;  %v12963_v58 = vmax.f32 %v20208_v41, 0.0  ;;  %v23038_v47 = vld [vmem:[#allocation6 + $0x320] sm:$0xff]   ;;  %v2006_v24 = vrot.slane %v24204_v32, %v24142_v56 }
 0x76d   :  { %v12962_v45 = vmax.f32 %v20205_v33, 0.0  ;;  %v12964_v63 = vmax.f32 %v20209_v21, 0.0  ;;  %19994 = vmatpush3.bf16.msra.mxu0 %v22965_v19  ;;  %v22988_v25 = vld [vmem:[#allocation9 + $0x1e4] ss:$48 sps:$4 sm:$0xff]   ;;  %v22989_v55 = vld [vmem:[#allocation9 + $0x240] ss:$48 sps:$4 sm:$0xff]  }
 0x76e   :  { %v12974_v50 = vpack.c.bf16 %v12961_v16, %v12948_v36  ;;  %v12976_v14 = vpack.c.bf16 %v12963_v58, %v12950_v18  ;;  %20016 = vmatpush3.bf16.msra.mxu1 %v22966_v5  ;;  %19995 = vmatprep.subr.bf16.mxu0 %v22967_v13  ;;  %v22991_v4 = vld [vmem:[#allocation9 + $0x244] ss:$48 sps:$4 sm:$0xff]   ;;  %v22992_v36 = vld [vmem:[#allocation9 + $0x2a0] ss:$48 sps:$4 sm:$0xff]   ;;  %v23056_v18 = vld [vmem:[#allocation9 + $0xc] ss:$48 sps:$4 sm:$0xff]  }
 0x76f   :  { %v12975_v0 = vpack.c.bf16 %v12962_v45, %v12949_v62  ;;  %v12977_v20 = vpack.c.bf16 %v12964_v63, %v12951_v23  ;;  %20017 = vmatprep.subr.bf16.mxu1 %v22968_v22  ;;  %v23046_v19 = vld [vmem:[#allocation6 + $0x330] sm:$0xff]   ;;  %v23050_v22 = vld [vmem:[#allocation6 + $0x338] sm:$0xff]  }
 0x770   :  { %v22994_v32 = vld [vmem:[#allocation9 + $0x2a4] ss:$48 sps:$4 sm:$0xff]   ;;  %v22995_v62 = vld [vmem:[#allocation9 + $0x300] ss:$48 sps:$4 sm:$0xff]  }
 0x771   :  { %19996 = vmatpush3.bf16.msra.mxu0 %v22969_v12  ;;  %14014 = vmatprep.mubr.bf16.mxu0 %v12975_v0  ;;  %v22997_v58 = vld [vmem:[#allocation9 + $0x304] ss:$48 sps:$4 sm:$0xff]   ;;  %v22998_v45 = vld [vmem:[#allocation9 + $0x360] ss:$48 sps:$4 sm:$0xff]  }
 0x772   :  { %20018 = vmatpush3.bf16.msra.mxu1 %v22970_v34  ;;  %14055 = vmatprep.mubr.bf16.mxu1 %v12977_v20  ;;  %v23000_v23 = vld [vmem:[#allocation9 + $0x364] ss:$48 sps:$4 sm:$0xff]   ;;  %v23001_v12 = vld [vmem:[#allocation9 + $0x3c0] ss:$48 sps:$4 sm:$0xff]  }
 0x773   :  { %15917 = vmatprep.subr.bf16.mxu1 %v22973_v27  ;;  %20166 = vmatprep.subr.bf16.mxu0 %v23719_v28  ;;  %v23003_v63 = vld [vmem:[#allocation9 + $0x3c4] ss:$48 sps:$4 sm:$0xff]   ;;  %v23007_v0 = vld [vmem:[#allocation9 + $0x480] ss:$48 sps:$4 sm:$0xff]  }
 0x774   :  { %14015 = vmatmul.mubr.bf16.vlgmr.msra.gmra.mrb[36].mxu0 %v12974_v50  ;;  %v23006_v50 = vld [vmem:[#allocation9 + $0x424] ss:$48 sps:$4 sm:$0xff]   ;;  %v23010_v27 = vld [vmem:[#allocation9 + $0x4e0] ss:$48 sps:$4 sm:$0xff]  }
 0x775   :  { %14056 = vmatmul.mubr.bf16.vlgmr.msra.gmra.mrb[36].mxu1 %v12976_v14  ;;  %20167 = vmatpush3.bf16.msra.mxu0 %v23019_v8  ;;  %v23004_v14 = vld [vmem:[#allocation9 + $0x420] ss:$48 sps:$4 sm:$0xff]   ;;  %v23009_v34 = vld [vmem:[#allocation9 + $0x484] ss:$48 sps:$4 sm:$0xff]  }
 0x776   :  { %15918 = vmatpush1.bf16.msra.mxu1 %v22971_v17  ;;  %15949 = vmatprep.mubr.bf16.mxu1 %v24217_v29  ;;  %v23012_v20 = vld [vmem:[#allocation9 + $0x4e4] ss:$48 sps:$4 sm:$0xff]  }
 0x777   :  { %15919 = vmatprep.subr.bf16.mxu1 %v22976_v11  ;;  %20168 = vmatprep.subr.bf16.mxu0 %v23719_v28  ;;  %v23015_v11 = vld [vmem:[#allocation9 + $0x544] ss:$48 sps:$4 sm:$0xff]  }
 0x778   :  { %20182 = vmatprep.mubr.msk.bf16.mxu0 %vm23720_vm0, %v23719_v28 }
 0x779   :  { %20169 = vmatpush3.bf16.msra.mxu0 %v23026_v2 }
 0x77a   :  { %15920 = vmatpush1.bf16.msra.mxu1 %v22974_v3  ;;  %20170 = vmatprep.subr.bf16.mxu0 %v23719_v28 }
 0x77b   :  { %15921 = vmatprep.subr.bf16.mxu1 %v22979_v31 }
 0x77d   :  { %20171 = vmatpush3.bf16.msra.mxu0 %v23030_v49 }
 0x77e   :  { %15922 = vmatpush1.bf16.msra.mxu1 %v22977_v1  ;;  %20172 = vmatprep.subr.bf16.mxu0 %v23719_v28 }
 0x77f   :  { %15923 = vmatprep.subr.bf16.mxu1 %v22982_v37 }
 0x781   :  { %20173 = vmatpush3.bf16.msra.mxu0 %v23034_v38 }
 0x782   :  { %15924 = vmatpush1.bf16.msra.mxu1 %v22980_v39  ;;  %20174 = vmatprep.subr.bf16.mxu0 %v23719_v28  ;;  %v23013_v39 = vld [vmem:[#allocation9 + $0x540] ss:$48 sps:$4 sm:$0xff]  }
 0x783   :  { %15925 = vmatprep.subr.bf16.mxu1 %v22985_v40 }
 0x785   :  { %20175 = vmatpush3.bf16.msra.mxu0 %v23038_v47 }
 0x786   :  { %15926 = vmatpush1.bf16.msra.mxu1 %v22983_v30  ;;  %20176 = vmatprep.subr.bf16.mxu0 %v23719_v28 }
 0x787   :  { %v19733_v43 = vpop.f32.mrb[12].mxu0  ;;  %v19755_v44 = vpop.f32.mrb[12].mxu1  ;;  %15927 = vmatprep.subr.bf16.mxu1 %v22988_v25  ;;  %v23018_v25 = vld [vmem:[#allocation9 + $0x5a4] ss:$48 sps:$4 sm:$0xff]  }
 0x788   :  { %v19734_v35 = vpop.f32.mrb[13].mxu0  ;;  %v19756_v7 = vpop.f32.mrb[13].mxu1 }
 0x789   :  { %v19735_v46 = vadd.f32 %v19734_v35, %v19733_v43  ;;  %v19757_v15 = vadd.f32 %v19756_v7, %v19755_v44  ;;  %v19736_v51 = vpop.f32.mrb[14].mxu0  ;;  %v19758_v52 = vpop.f32.mrb[14].mxu1  ;;  %20177 = vmatpush3.bf16.msra.mxu0 %v23042_v26  ;;  %v23016_v43 = vld [vmem:[#allocation9 + $0x5a0] ss:$48 sps:$4 sm:$0xff]   ;;  %v23029_v7 = vld [vmem:[#allocation9 + $0x664] ss:$48 sps:$4 sm:$0xff]  }
 0x78a   :  { %v19737_v53 = vpop.f32.mrb[15].mxu0  ;;  %v19759_v41 = vpop.f32.mrb[15].mxu1  ;;  %15928 = vmatpush1.bf16.msra.mxu1 %v22986_v42  ;;  %20178 = vmatprep.subr.bf16.mxu0 %v23719_v28  ;;  %v23022_v35 = vld [vmem:[#allocation9 + $0x600] ss:$48 sps:$4 sm:$0xff]  }
 0x78b   :  { %v12647_v54 = vadd.f32 %v19735_v46, %v2006_v24  ;;  %v19738_v5 = vadd.f32 %v19737_v53, %v19736_v51  ;;  %v19760_v13 = vadd.f32 %v19759_v41, %v19758_v52  ;;  %15929 = vmatprep.subr.bf16.mxu1 %v22991_v4  ;;  %v24234_v4 = vld [vmem:[%s24371_s1] ss:$12 sps:$4 sm:$0xff]   ;;  %v23033_v51 = vld [vmem:[#allocation9 + $0x6c4] ss:$48 sps:$4 sm:$0xff]  }
 0x78c   :  { %v23027_v46 = vld [vmem:[#allocation9 + $0x660] ss:$48 sps:$4 sm:$0xff]   ;;  %v23041_v41 = vld [vmem:[#allocation9 + $0x784] ss:$48 sps:$4 sm:$0xff]  }
 0x78d   :  { %v12688_v33 = vadd.f32 %v19757_v15, %v12647_v54  ;;  %v12650_v21 = vadd.f32 %v19738_v5, %v2006_v24  ;;  %20179 = vmatpush3.bf16.msra.mxu0 %v23046_v19  ;;  %v23024_v24 = vld [vmem:[#allocation9 + $0x604] ss:$48 sps:$4 sm:$0xff]   ;;  %v23721_v15 = vmov 0   ;;  %v23031_v52 = vld [vmem:[#allocation9 + $0x6c0] ss:$48 sps:$4 sm:$0xff]  }
 0x78e   :  { %15930 = vmatpush1.bf16.msra.mxu1 %v22989_v55  ;;  %20180 = vmatprep.subr.bf16.mxu0 %v23719_v28  ;;  %v23037_v19 = vld [vmem:[#allocation9 + $0x724] ss:$48 sps:$4 sm:$0xff]   ;;  %v23035_v53 = vld [vmem:[#allocation9 + $0x720] ss:$48 sps:$4 sm:$0xff]  }
 0x78f   :  { %v12691_v16 = vadd.f32 %v19760_v13, %v12650_v21  ;;  %15931 = vmatprep.subr.bf16.mxu1 %v22994_v32  ;;  %v23039_v55 = vld [vmem:[#allocation9 + $0x780] ss:$48 sps:$4 sm:$0xff]   ;;  %v23045_v54 = vld [vmem:[#allocation9 + $0x7e4] ss:$48 sps:$4 sm:$0xff]  }
 0x790   :  { %v23043_v5 = vld [vmem:[#allocation9 + $0x7e0] ss:$48 sps:$4 sm:$0xff]  }
 0x791   :  { %20181 = vmatpush3.bf16.msra.mxu0 %v23050_v22 }
 0x792   :  { %15932 = vmatpush1.bf16.msra.mxu1 %v22992_v36  ;;  %16003 = vmatprep.subr.bf16.mxu0 %v23056_v18 }
 0x793   :  { %15933 = vmatprep.subr.bf16.mxu1 %v22997_v58 }
 0x796   :  { %15934 = vmatpush1.bf16.msra.mxu1 %v22995_v62 }
 0x797   :  { %15935 = vmatprep.subr.bf16.mxu1 %v23000_v23 }
 0x79a   :  { %15936 = vmatpush1.bf16.msra.mxu1 %v22998_v45  ;;  %v23047_v45 = vld [vmem:[#allocation9 + $0x840] ss:$48 sps:$4 sm:$0xff]  }
 0x79b   :  { %15937 = vmatprep.subr.bf16.mxu1 %v23003_v63 }
 0x79e   :  { %15938 = vmatpush1.bf16.msra.mxu1 %v23001_v12 }
 0x79f   :  { %15939 = vmatprep.subr.bf16.mxu1 %v23006_v50 }
 0x7a2   :  { %15940 = vmatpush1.bf16.msra.mxu1 %v23004_v14  ;;  %v23053_v14 = vld [vmem:[#allocation9 + $0x8a4] ss:$48 sps:$4 sm:$0xff]  }
 0x7a3   :  { %15941 = vmatprep.subr.bf16.mxu1 %v23009_v34 }
 0x7a6   :  { %15942 = vmatpush1.bf16.msra.mxu1 %v23007_v0 }
 0x7a7   :  { %v19777_v8 = vpop.f32.mrb[16].mxu0  ;;  %v19799_v17 = vpop.f32.mrb[16].mxu1  ;;  %15943 = vmatprep.subr.bf16.mxu1 %v23012_v20  ;;  %v23051_v20 = vld [vmem:[#allocation9 + $0x8a0] ss:$48 sps:$4 sm:$0xff]  }
 0x7a8   :  { %v19778_v28 = vpop.f32.mrb[17].mxu0  ;;  %v19800_v2 = vpop.f32.mrb[17].mxu1 }
 0x7a9   :  { %v19779_v3 = vadd.f32 %v19778_v28, %v19777_v8  ;;  %v19801_v31 = vadd.f32 %v19800_v2, %v19799_v17  ;;  %v19780_v49 = vpop.f32.mrb[18].mxu0  ;;  %v19802_v1 = vpop.f32.mrb[18].mxu1  ;;  %v23059_v8 = vld [vmem:[#allocation9 + $0x14] ss:$48 sps:$4 sm:$0xff]   ;;  %v23064_v2 = vld [vmem:[#allocation9 + $0x70] ss:$48 sps:$4 sm:$0xff]  }
 0x7aa   :  { %v19781_v37 = vpop.f32.mrb[19].mxu0  ;;  %v19803_v38 = vpop.f32.mrb[19].mxu1  ;;  %15944 = vmatpush1.bf16.msra.mxu1 %v23010_v27  ;;  %v24241_v17 = vld [vmem:[%s24371_s1 + $0x8] ss:$12 sps:$4 sm:$0xff]  }
 0x7ab   :  { %v12729_v40 = vadd.f32 %v19779_v3, %v12688_v33  ;;  %v19782_v47 = vadd.f32 %v19781_v37, %v19780_v49  ;;  %v19804_v30 = vadd.f32 %v19803_v38, %v19802_v1  ;;  %15945 = vmatprep.subr.bf16.mxu1 %v23015_v11  ;;  %v23049_v33 = vld [vmem:[#allocation9 + $0x844] ss:$48 sps:$4 sm:$0xff]   ;;  %v23057_v11 = vld [vmem:[#allocation9 + $0x10] ss:$48 sps:$4 sm:$0xff]  }
 0x7ac   :  { %v23066_v28 = vld [vmem:[#allocation9 + $0x74] ss:$48 sps:$4 sm:$0xff]   ;;  %v23076_v1 = vld [vmem:[#allocation9 + $0x130] ss:$48 sps:$4 sm:$0xff]  }
 0x7ad   :  { %v12770_v26 = vadd.f32 %v19801_v31, %v12729_v40  ;;  %v12732_v42 = vadd.f32 %v19782_v47, %v12691_v16  ;;  %v23072_v3 = vld [vmem:[#allocation9 + $0xd4] ss:$48 sps:$4 sm:$0xff]   ;;  %v23070_v31 = vld [vmem:[#allocation9 + $0xd0] ss:$48 sps:$4 sm:$0xff]  }
 0x7ae   :  { %15946 = vmatpush1.bf16.msra.mxu1 %v23013_v39  ;;  %v23078_v49 = vld [vmem:[#allocation9 + $0x134] ss:$48 sps:$4 sm:$0xff]   ;;  %v23082_v38 = vld [vmem:[#allocation9 + $0x190] ss:$48 sps:$4 sm:$0xff]  }
 0x7af   :  { %v12773_v44 = vadd.f32 %v19804_v30, %v12732_v42  ;;  %15947 = vmatprep.subr.bf16.mxu1 %v23018_v25  ;;  %v23084_v37 = vld [vmem:[#allocation9 + $0x194] ss:$48 sps:$4 sm:$0xff]   ;;  %v23088_v40 = vld [vmem:[#allocation9 + $0x1f0] ss:$48 sps:$4 sm:$0xff]  }
 0x7b0   :  { %v23090_v39 = vld [vmem:[#allocation9 + $0x1f4] ss:$48 sps:$4 sm:$0xff]  }
 0x7b1   :  { %v23096_v25 = vld [vmem:[#allocation9 + $0x254] ss:$48 sps:$4 sm:$0xff]  }
 0x7b2   :  { %15948 = vmatpush1.bf16.msra.mxu1 %v23016_v43 }
 0x7b3   :  { %15960 = vmatprep.subr.bf16.mxu1 %v23024_v24 }
 0x7b5   :  { %15950 = vmatmul.mubr.bf16.vlgmr.msra.gmra.mrb[40].mxu1 %v24234_v4 }
 0x7b6   :  { %15961 = vmatpush1.bf16.msra.mxu1 %v23022_v35  ;;  %15992 = vmatprep.mubr.bf16.mxu1 %v23721_v15 }
 0x7b7   :  { %15962 = vmatprep.subr.bf16.mxu1 %v23029_v7 }
 0x7ba   :  { %15963 = vmatpush1.bf16.msra.mxu1 %v23027_v46 }
 0x7bb   :  { %15964 = vmatprep.subr.bf16.mxu1 %v23033_v51  ;;  %v23094_v51 = vld [vmem:[#allocation9 + $0x250] ss:$48 sps:$4 sm:$0xff]  }
 0x7be   :  { %15965 = vmatpush1.bf16.msra.mxu1 %v23031_v52 }
 0x7bf   :  { %15966 = vmatprep.subr.bf16.mxu1 %v23037_v19 }
 0x7c2   :  { %15967 = vmatpush1.bf16.msra.mxu1 %v23035_v53 }
 0x7c3   :  { %15968 = vmatprep.subr.bf16.mxu1 %v23041_v41  ;;  %v23102_v41 = vld [vmem:[#allocation9 + $0x2b4] ss:$48 sps:$4 sm:$0xff]  }
 0x7c6   :  { %15969 = vmatpush1.bf16.msra.mxu1 %v23039_v55 }
 0x7c7   :  { %v19821_v13 = vpop.f32.mrb[20].mxu0  ;;  %v19843_v32 = vpop.f32.mrb[20].mxu1  ;;  %15970 = vmatprep.subr.bf16.mxu1 %v23045_v54 }
 0x7c8   :  { %v19822_v21 = vpop.f32.mrb[21].mxu0  ;;  %v19844_v22 = vpop.f32.mrb[21].mxu1 }
 0x7c9   :  { %v19823_v36 = vadd.f32 %v19822_v21, %v19821_v13  ;;  %v19845_v18 = vadd.f32 %v19844_v22, %v19843_v32  ;;  %v19824_v16 = vpop.f32.mrb[22].mxu0  ;;  %v19846_v58 = vpop.f32.mrb[22].mxu1  ;;  %v23108_v32 = vld [vmem:[#allocation9 + $0x314] ss:$48 sps:$4 sm:$0xff]   ;;  %v23054_v22 = vld [vmem:[#allocation9 + $0x8] ss:$48 sps:$4 sm:$0xff]  }
 0x7ca   :  { %v19825_v62 = vpop.f32.mrb[23].mxu0  ;;  %v19847_v23 = vpop.f32.mrb[23].mxu1  ;;  %15971 = vmatpush1.bf16.msra.mxu1 %v23043_v5  ;;  %v23100_v5 = vld [vmem:[#allocation9 + $0x2b0] ss:$48 sps:$4 sm:$0xff]  }
 0x7cb   :  { %v12811_v63 = vadd.f32 %v19823_v36, %v12770_v26  ;;  %v19826_v12 = vadd.f32 %v19825_v62, %v19824_v16  ;;  %v19848_v50 = vadd.f32 %v19847_v23, %v19846_v58  ;;  %15972 = vmatprep.subr.bf16.mxu1 %v23049_v33  ;;  %v23106_v36 = vld [vmem:[#allocation9 + $0x310] ss:$48 sps:$4 sm:$0xff]   ;;  %v23063_v16 = vld [vmem:[#allocation9 + $0x6c] ss:$48 sps:$4 sm:$0xff]   ;;  %v23114_v58 = vld [vmem:[#allocation9 + $0x374] ss:$48 sps:$4 sm:$0xff]  }
 0x7cc   :  { %v23061_v62 = vld [vmem:[#allocation9 + $0x68] ss:$48 sps:$4 sm:$0xff]   ;;  %v23112_v23 = vld [vmem:[#allocation9 + $0x370] ss:$48 sps:$4 sm:$0xff]  }
 0x7cd   :  { %v12852_v34 = vadd.f32 %v19845_v18, %v12811_v63  ;;  %v12814_v0 = vadd.f32 %v19826_v12, %v12773_v44  ;;  %v23120_v63 = vld [vmem:[#allocation9 + $0x3d4] ss:$48 sps:$4 sm:$0xff]   ;;  %v23067_v12 = vld [vmem:[#allocation9 + $0xc8] ss:$48 sps:$4 sm:$0xff]  }
 0x7ce   :  { %15973 = vmatpush1.bf16.msra.mxu1 %v23047_v45  ;;  %v23069_v45 = vld [vmem:[#allocation9 + $0xcc] ss:$48 sps:$4 sm:$0xff]  }
 0x7cf   :  { %v12855_v27 = vadd.f32 %v19848_v50, %v12814_v0  ;;  %15974 = vmatprep.subr.bf16.mxu1 %v23053_v14  ;;  %v23118_v50 = vld [vmem:[#allocation9 + $0x3d0] ss:$48 sps:$4 sm:$0xff]   ;;  %v23075_v14 = vld [vmem:[#allocation9 + $0x12c] ss:$48 sps:$4 sm:$0xff]   ;;  %v23073_v0 = vld [vmem:[#allocation9 + $0x128] ss:$48 sps:$4 sm:$0xff]  }
 0x7d2   :  { %15975 = vmatpush1.bf16.msra.mxu1 %v23051_v20  ;;  %v23124_v20 = vld [vmem:[#allocation9 + $0x430] ss:$48 sps:$4 sm:$0xff]  }
 0x7d3   :  { %16089 = vmatprep.subr.bf16.mxu1 %v23059_v8  ;;  %v23132_v8 = vld [vmem:[#allocation9 + $0x494] ss:$48 sps:$4 sm:$0xff]  }
 0x7d5   :  { %15993 = vmatmul.mubr.bf16.vlgmr.msra.gmra.mrb[40].mxu1 %v24241_v17 }
 0x7d6   :  { %16090 = vmatpush1.bf16.msra.mxu1 %v23057_v11  ;;  %16121 = vmatprep.mubr.bf16.mxu1 %v24217_v29  ;;  %v23079_v11 = vld [vmem:[#allocation9 + $0x188] ss:$48 sps:$4 sm:$0xff]  }
 0x7d7   :  { %16091 = vmatprep.subr.bf16.mxu1 %v23066_v28  ;;  %v23130_v28 = vld [vmem:[#allocation9 + $0x490] ss:$48 sps:$4 sm:$0xff]  }
 0x7da   :  { %16092 = vmatpush1.bf16.msra.mxu1 %v23064_v2  ;;  %v23087_v2 = vld [vmem:[#allocation9 + $0x1ec] ss:$48 sps:$4 sm:$0xff]  }
 0x7db   :  { %16093 = vmatprep.subr.bf16.mxu1 %v23072_v3  ;;  %v23138_v3 = vld [vmem:[#allocation9 + $0x4f4] ss:$48 sps:$4 sm:$0xff]  }
 0x7de   :  { %16094 = vmatpush1.bf16.msra.mxu1 %v23070_v31  ;;  %v23085_v31 = vld [vmem:[#allocation9 + $0x1e8] ss:$48 sps:$4 sm:$0xff]  }
 0x7df   :  { %16095 = vmatprep.subr.bf16.mxu1 %v23078_v49  ;;  %v23136_v49 = vld [vmem:[#allocation9 + $0x4f0] ss:$48 sps:$4 sm:$0xff]  }
 0x7e2   :  { %16096 = vmatpush1.bf16.msra.mxu1 %v23076_v1 }
 0x7e3   :  { %16097 = vmatprep.subr.bf16.mxu1 %v23084_v37  ;;  %v23093_v37 = vld [vmem:[#allocation9 + $0x24c] ss:$48 sps:$4 sm:$0xff]  }
 0x7e6   :  { %16098 = vmatpush1.bf16.msra.mxu1 %v23082_v38  ;;  %v23144_v38 = vld [vmem:[#allocation9 + $0x554] ss:$48 sps:$4 sm:$0xff]  }
 0x7e7   :  { %v19865_v47 = vpop.f32.mrb[24].mxu0  ;;  %v19887_v30 = vpop.f32.mrb[24].mxu1  ;;  %16099 = vmatprep.subr.bf16.mxu1 %v23090_v39 }
 0x7e8   :  { %v19866_v26 = vpop.f32.mrb[25].mxu0  ;;  %v19888_v42 = vpop.f32.mrb[25].mxu1 }
 0x7e9   :  { %v19867_v43 = vadd.f32 %v19866_v26, %v19865_v47  ;;  %v19889_v44 = vadd.f32 %v19888_v42, %v19887_v30  ;;  %v19868_v24 = vpop.f32.mrb[26].mxu0  ;;  %v19890_v35 = vpop.f32.mrb[26].mxu1 }
 0x7ea   :  { %v19869_v7 = vpop.f32.mrb[27].mxu0  ;;  %v19891_v46 = vpop.f32.mrb[27].mxu1  ;;  %16100 = vmatpush1.bf16.msra.mxu1 %v23088_v40  ;;  %v19224_v40 = vld [vmem:[#allocation7] ss:$0 sm:$0xff] }
 0x7eb   :  { %v12893_v52 = vadd.f32 %v19867_v43, %v12852_v34  ;;  %v19870_v19 = vadd.f32 %v19869_v7, %v19868_v24  ;;  %v19892_v53 = vadd.f32 %v19891_v46, %v19890_v35  ;;  %16101 = vmatprep.subr.bf16.mxu1 %v23096_v25  ;;  %v23126_v34 = vld [vmem:[#allocation9 + $0x434] ss:$48 sps:$4 sm:$0xff]   ;;  %v23091_v24 = vld [vmem:[#allocation9 + $0x248] ss:$48 sps:$4 sm:$0xff]   ;;  %v23142_v35 = vld [vmem:[#allocation9 + $0x550] ss:$48 sps:$4 sm:$0xff]  }
 0x7ed   :  { %v12934_v55 = vadd.f32 %v19889_v44, %v12893_v52  ;;  %v12896_v54 = vadd.f32 %v19870_v19, %v12855_v27  ;;  %v23081_v27 = vld [vmem:[#allocation9 + $0x18c] ss:$48 sps:$4 sm:$0xff]   ;;  %v23150_v19 = vld [vmem:[#allocation9 + $0x5b4] ss:$48 sps:$4 sm:$0xff]  }
 0x7ee   :  { %16102 = vmatpush1.bf16.msra.mxu1 %v23094_v51  ;;  %v23099_v52 = vld [vmem:[#allocation9 + $0x2ac] ss:$48 sps:$4 sm:$0xff]  }
 0x7ef   :  { %v12937_v13 = vadd.f32 %v19892_v53, %v12896_v54  ;;  %16103 = vmatprep.subr.bf16.mxu1 %v23102_v41  ;;  %v12952_v33 = vmax.f32 %v12934_v55, 0.0  ;;  %v23097_v54 = vld [vmem:[#allocation9 + $0x2a8] ss:$48 sps:$4 sm:$0xff]  }
 0x7f1   :  { %v12965_v21 = vmax.f32 %v12937_v13, 0.0 }
 0x7f2   :  { %16104 = vmatpush1.bf16.msra.mxu1 %v23100_v5  ;;  %v23148_v5 = vld [vmem:[#allocation9 + $0x5b0] ss:$48 sps:$4 sm:$0xff]  }
 0x7f3   :  { %v12978_v18 = vpack.c.bf16 %v12965_v21, %v12952_v33  ;;  %16105 = vmatprep.subr.bf16.mxu1 %v23108_v32  ;;  %v23105_v32 = vld [vmem:[#allocation9 + $0x30c] ss:$48 sps:$4 sm:$0xff]   ;;  %v23156_v33 = vld [vmem:[#allocation9 + $0x614] ss:$48 sps:$4 sm:$0xff]   ;;  %v23103_v21 = vld [vmem:[#allocation9 + $0x308] ss:$48 sps:$4 sm:$0xff]  }
 0x7f5   :  { %20183 = vmatmul.mubr.bf16.vlgmr.msra.gmra.mrb[40].mxu0 %v12978_v18  ;;  %v23162_v18 = vld [vmem:[#allocation9 + $0x674] ss:$48 sps:$4 sm:$0xff]  }
 0x7f6   :  { %16004 = vmatpush1.bf16.msra.mxu0 %v23054_v22  ;;  %16106 = vmatpush1.bf16.msra.mxu1 %v23106_v36  ;;  %v23154_v22 = vld [vmem:[#allocation9 + $0x610] ss:$48 sps:$4 sm:$0xff]   ;;  %v23111_v36 = vld [vmem:[#allocation9 + $0x36c] ss:$48 sps:$4 sm:$0xff]  }
 0x7f7   :  { %16005 = vmatprep.subr.bf16.mxu0 %v23063_v16  ;;  %16107 = vmatprep.subr.bf16.mxu1 %v23114_v58  ;;  %v23109_v16 = vld [vmem:[#allocation9 + $0x368] ss:$48 sps:$4 sm:$0xff]   ;;  %v23160_v58 = vld [vmem:[#allocation9 + $0x670] ss:$48 sps:$4 sm:$0xff]  }
 0x7f8   :  { %16035 = vmatprep.mubr.bf16.mxu0 %v24217_v29 }
 0x7fa   :  { %16006 = vmatpush1.bf16.msra.mxu0 %v23061_v62  ;;  %16108 = vmatpush1.bf16.msra.mxu1 %v23112_v23  ;;  %v23117_v62 = vld [vmem:[#allocation9 + $0x3cc] ss:$48 sps:$4 sm:$0xff]   ;;  %v23168_v23 = vld [vmem:[#allocation9 + $0x6d4] ss:$48 sps:$4 sm:$0xff]  }
 0x7fb   :  { %16007 = vmatprep.subr.bf16.mxu0 %v23069_v45  ;;  %16109 = vmatprep.subr.bf16.mxu1 %v23120_v63  ;;  %v23115_v45 = vld [vmem:[#allocation9 + $0x3c8] ss:$48 sps:$4 sm:$0xff]   ;;  %v23166_v63 = vld [vmem:[#allocation9 + $0x6d0] ss:$48 sps:$4 sm:$0xff]  }
 0x7fe   :  { %16008 = vmatpush1.bf16.msra.mxu0 %v23067_v12  ;;  %16110 = vmatpush1.bf16.msra.mxu1 %v23118_v50  ;;  %v23123_v12 = vld [vmem:[#allocation9 + $0x42c] ss:$48 sps:$4 sm:$0xff]   ;;  %v23174_v50 = vld [vmem:[#allocation9 + $0x734] ss:$48 sps:$4 sm:$0xff]  }
 0x7ff   :  { %16009 = vmatprep.subr.bf16.mxu0 %v23075_v14  ;;  %16111 = vmatprep.subr.bf16.mxu1 %v23126_v34  ;;  %v23121_v14 = vld [vmem:[#allocation9 + $0x428] ss:$48 sps:$4 sm:$0xff]   ;;  %v23172_v34 = vld [vmem:[#allocation9 + $0x730] ss:$48 sps:$4 sm:$0xff]  }
 0x802   :  { %16010 = vmatpush1.bf16.msra.mxu0 %v23073_v0  ;;  %16112 = vmatpush1.bf16.msra.mxu1 %v23124_v20  ;;  %v23129_v0 = vld [vmem:[#allocation9 + $0x48c] ss:$48 sps:$4 sm:$0xff]   ;;  %v23180_v20 = vld [vmem:[#allocation9 + $0x794] ss:$48 sps:$4 sm:$0xff]  }
 0x803   :  { %16011 = vmatprep.subr.bf16.mxu0 %v23081_v27  ;;  %16113 = vmatprep.subr.bf16.mxu1 %v23132_v8  ;;  %v23127_v27 = vld [vmem:[#allocation9 + $0x488] ss:$48 sps:$4 sm:$0xff]   ;;  %v23178_v8 = vld [vmem:[#allocation9 + $0x790] ss:$48 sps:$4 sm:$0xff]  }
 0x806   :  { %16012 = vmatpush1.bf16.msra.mxu0 %v23079_v11  ;;  %16114 = vmatpush1.bf16.msra.mxu1 %v23130_v28  ;;  %v23135_v11 = vld [vmem:[#allocation9 + $0x4ec] ss:$48 sps:$4 sm:$0xff]   ;;  %v23186_v28 = vld [vmem:[#allocation9 + $0x7f4] ss:$48 sps:$4 sm:$0xff]  }
 0x807   :  { %v19909_v1 = vpop.f32.mrb[28].mxu0  ;;  %16013 = vmatprep.subr.bf16.mxu0 %v23087_v2  ;;  %16115 = vmatprep.subr.bf16.mxu1 %v23138_v3  ;;  %v23133_v2 = vld [vmem:[#allocation9 + $0x4e8] ss:$48 sps:$4 sm:$0xff]   ;;  %v23184_v3 = vld [vmem:[#allocation9 + $0x7f0] ss:$48 sps:$4 sm:$0xff]  }
 0x808   :  { %v19931_v39 = vpop.f32.mrb[28].mxu1  ;;  %v19910_v47 = vpop.f32.mrb[29].mxu0 }
 0x809   :  { %v19911_v30 = vadd.f32 %v19910_v47, %v19909_v1  ;;  %v19932_v25 = vpop.f32.mrb[29].mxu1  ;;  %v19912_v26 = vpop.f32.mrb[30].mxu0  ;;  %v23192_v1 = vld [vmem:[#allocation9 + $0x854] ss:$48 sps:$4 sm:$0xff]  }
 0x80a   :  { %v19933_v42 = vadd.f32 %v19932_v25, %v19931_v39  ;;  %v19934_v43 = vpop.f32.mrb[30].mxu1  ;;  %16014 = vmatpush1.bf16.msra.mxu0 %v23085_v31  ;;  %v19913_v44 = vpop.f32.mrb[31].mxu0  ;;  %16116 = vmatpush1.bf16.msra.mxu1 %v23136_v49  ;;  %v23141_v49 = vld [vmem:[#allocation9 + $0x54c] ss:$48 sps:$4 sm:$0xff]  }
 0x80b   :  { %v13853_v7 = vadd.f32 %v19911_v30, %v19224_v40  ;;  %v19914_v46 = vadd.f32 %v19913_v44, %v19912_v26  ;;  %v19935_v51 = vpop.f32.mrb[31].mxu1  ;;  %16015 = vmatprep.subr.bf16.mxu0 %v23093_v37  ;;  %16117 = vmatprep.subr.bf16.mxu1 %v23144_v38 }
 0x80c   :  { %v19936_v53 = vadd.f32 %v19935_v51, %v19934_v43  ;;  %v23190_v43 = vld [vmem:[#allocation9 + $0x850] ss:$48 sps:$4 sm:$0xff]  }
 0x80d   :  { %v24246_v41 = vadd.f32 %v19933_v42, %v13853_v7  ;;  %v13856_v55 = vadd.f32 %v19914_v46, %v19224_v40  ;;  %v23139_v42 = vld [vmem:[#allocation9 + $0x548] ss:$48 sps:$4 sm:$0xff]   ;;  %v23147_v7 = vld [vmem:[#allocation9 + $0x5ac] ss:$48 sps:$4 sm:$0xff]   ;;  %v23198_v46 = vld [vmem:[#allocation9 + $0x8b4] ss:$48 sps:$4 sm:$0xff]  }
 0x80e   :  { %16016 = vmatpush1.bf16.msra.mxu0 %v23091_v24  ;;  %16118 = vmatpush1.bf16.msra.mxu1 %v23142_v35 }
 0x80f   :  { %v24248_v13 = vadd.f32 %v19936_v53, %v13856_v55  ;;  %16017 = vmatprep.subr.bf16.mxu0 %v23099_v52  ;;  %16119 = vmatprep.subr.bf16.mxu1 %v23150_v19  ;;  %v23145_v53 = vld [vmem:[#allocation9 + $0x5a8] ss:$48 sps:$4 sm:$0xff]   ;;  %v23196_v55 = vld [vmem:[#allocation9 + $0x8b0] ss:$48 sps:$4 sm:$0xff]  }
 0x812   :  { %16018 = vmatpush1.bf16.msra.mxu0 %v23097_v54  ;;  %16120 = vmatpush1.bf16.msra.mxu1 %v23148_v5  ;;  %v23153_v5 = vld [vmem:[#allocation9 + $0x60c] ss:$48 sps:$4 sm:$0xff]  }
 0x813   :  { %16019 = vmatprep.subr.bf16.mxu0 %v23105_v32  ;;  %16132 = vmatprep.subr.bf16.mxu1 %v23156_v33  ;;  %v23151_v32 = vld [vmem:[#allocation9 + $0x608] ss:$48 sps:$4 sm:$0xff]   ;;  %v23159_v33 = vld [vmem:[#allocation9 + $0x66c] ss:$48 sps:$4 sm:$0xff]  }
 0x815   :  { %16122 = vmatmul.mubr.bf16.vlgmr.msra.gmra.mrb[44].mxu1 %v24234_v4 }
 0x816   :  { %16020 = vmatpush1.bf16.msra.mxu0 %v23103_v21  ;;  %16133 = vmatpush1.bf16.msra.mxu1 %v23154_v22  ;;  %v23202_v21 = vld [vmem:[#allocation9 + $0x20] ss:$48 sps:$4 sm:$0xff]   ;;  %v23210_v22 = vld [vmem:[#allocation9 + $0x84] ss:$48 sps:$4 sm:$0xff]  }
 0x817   :  { %16021 = vmatprep.subr.bf16.mxu0 %v23111_v36  ;;  %16134 = vmatprep.subr.bf16.mxu1 %v23162_v18  ;;  %v23165_v36 = vld [vmem:[#allocation9 + $0x6cc] ss:$48 sps:$4 sm:$0xff]   ;;  %v23208_v18 = vld [vmem:[#allocation9 + $0x80] ss:$48 sps:$4 sm:$0xff]  }
 0x818   :  { %16164 = vmatprep.mubr.bf16.mxu1 %v23721_v15 }
 0x81a   :  { %16022 = vmatpush1.bf16.msra.mxu0 %v23109_v16  ;;  %16135 = vmatpush1.bf16.msra.mxu1 %v23160_v58  ;;  %v23216_v16 = vld [vmem:[#allocation9 + $0xe4] ss:$48 sps:$4 sm:$0xff]   ;;  %v23163_v58 = vld [vmem:[#allocation9 + $0x6c8] ss:$48 sps:$4 sm:$0xff]  }
 0x81b   :  { %16023 = vmatprep.subr.bf16.mxu0 %v23117_v62  ;;  %16136 = vmatprep.subr.bf16.mxu1 %v23168_v23  ;;  %v23171_v62 = vld [vmem:[#allocation9 + $0x72c] ss:$48 sps:$4 sm:$0xff]   ;;  %v23214_v23 = vld [vmem:[#allocation9 + $0xe0] ss:$48 sps:$4 sm:$0xff]  }
 0x81e   :  { %16024 = vmatpush1.bf16.msra.mxu0 %v23115_v45  ;;  %16137 = vmatpush1.bf16.msra.mxu1 %v23166_v63  ;;  %v23222_v45 = vld [vmem:[#allocation9 + $0x144] ss:$48 sps:$4 sm:$0xff]   ;;  %v23169_v63 = vld [vmem:[#allocation9 + $0x728] ss:$48 sps:$4 sm:$0xff]  }
 0x81f   :  { %16025 = vmatprep.subr.bf16.mxu0 %v23123_v12  ;;  %16138 = vmatprep.subr.bf16.mxu1 %v23174_v50  ;;  %v23177_v12 = vld [vmem:[#allocation9 + $0x78c] ss:$48 sps:$4 sm:$0xff]   ;;  %v23220_v50 = vld [vmem:[#allocation9 + $0x140] ss:$48 sps:$4 sm:$0xff]  }
 0x822   :  { %16026 = vmatpush1.bf16.msra.mxu0 %v23121_v14  ;;  %16139 = vmatpush1.bf16.msra.mxu1 %v23172_v34  ;;  %v23228_v14 = vld [vmem:[#allocation9 + $0x1a4] ss:$48 sps:$4 sm:$0xff]   ;;  %v23175_v34 = vld [vmem:[#allocation9 + $0x788] ss:$48 sps:$4 sm:$0xff]  }
 0x823   :  { %16027 = vmatprep.subr.bf16.mxu0 %v23129_v0  ;;  %16140 = vmatprep.subr.bf16.mxu1 %v23180_v20  ;;  %v23183_v0 = vld [vmem:[#allocation9 + $0x7ec] ss:$48 sps:$4 sm:$0xff]   ;;  %v23226_v20 = vld [vmem:[#allocation9 + $0x1a0] ss:$48 sps:$4 sm:$0xff]  }
 0x826   :  { %16028 = vmatpush1.bf16.msra.mxu0 %v23127_v27  ;;  %16141 = vmatpush1.bf16.msra.mxu1 %v23178_v8  ;;  %v23234_v27 = vld [vmem:[#allocation9 + $0x204] ss:$48 sps:$4 sm:$0xff]   ;;  %v23181_v8 = vld [vmem:[#allocation9 + $0x7e8] ss:$48 sps:$4 sm:$0xff]  }
 0x827   :  { %v19953_v31 = vpop.f32.mrb[32].mxu0  ;;  %16029 = vmatprep.subr.bf16.mxu0 %v23135_v11  ;;  %16142 = vmatprep.subr.bf16.mxu1 %v23186_v28  ;;  %v23189_v28 = vld [vmem:[#allocation9 + $0x84c] ss:$48 sps:$4 sm:$0xff]  }
 0x828   :  { %v19975_v37 = vpop.f32.mrb[32].mxu1  ;;  %v19954_v38 = vpop.f32.mrb[33].mxu0 }
 0x829   :  { %v19955_v39 = vadd.f32 %v19954_v38, %v19953_v31  ;;  %v19976_v40 = vpop.f32.mrb[33].mxu1  ;;  %v19956_v47 = vpop.f32.mrb[34].mxu0 }
 0x82a   :  { %v19977_v30 = vadd.f32 %v19976_v40, %v19975_v37  ;;  %v19978_v25 = vpop.f32.mrb[34].mxu1  ;;  %16030 = vmatpush1.bf16.msra.mxu0 %v23133_v2  ;;  %v19957_v26 = vpop.f32.mrb[35].mxu0  ;;  %16143 = vmatpush1.bf16.msra.mxu1 %v23184_v3  ;;  %v23232_v2 = vld [vmem:[#allocation9 + $0x200] ss:$48 sps:$4 sm:$0xff]  }
 0x82b   :  { %v13935_v44 = vadd.f32 %v19955_v39, %v24246_v41  ;;  %v19958_v24 = vadd.f32 %v19957_v26, %v19956_v47  ;;  %v19979_v35 = vpop.f32.mrb[35].mxu1  ;;  %16031 = vmatprep.subr.bf16.mxu0 %v23141_v49  ;;  %16144 = vmatprep.subr.bf16.mxu1 %v23192_v1  ;;  %v23204_v41 = vld [vmem:[#allocation9 + $0x24] ss:$48 sps:$4 sm:$0xff]  }
 0x82c   :  { %v19980_v51 = vadd.f32 %v19979_v35, %v19978_v25  ;;  %v23240_v49 = vld [vmem:[#allocation9 + $0x264] ss:$48 sps:$4 sm:$0xff]  }
 0x82d   :  { %v24253_v52 = vadd.f32 %v19977_v30, %v13935_v44  ;;  %v13938_v19 = vadd.f32 %v19958_v24, %v24248_v13  ;;  %v23157_v13 = vld [vmem:[#allocation9 + $0x668] ss:$48 sps:$4 sm:$0xff]   ;;  %v23238_v44 = vld [vmem:[#allocation9 + $0x260] ss:$48 sps:$4 sm:$0xff]   ;;  %v23246_v35 = vld [vmem:[#allocation9 + $0x2c4] ss:$48 sps:$4 sm:$0xff]  }
 0x82e   :  { %16032 = vmatpush1.bf16.msra.mxu0 %v23139_v42  ;;  %16145 = vmatpush1.bf16.msra.mxu1 %v23190_v43  ;;  %v23187_v30 = vld [vmem:[#allocation9 + $0x848] ss:$48 sps:$4 sm:$0xff]   ;;  %v23195_v43 = vld [vmem:[#allocation9 + $0x8ac] ss:$48 sps:$4 sm:$0xff]  }
 0x82f   :  { %v24256_v54 = vadd.f32 %v19980_v51, %v13938_v19  ;;  %16033 = vmatprep.subr.bf16.mxu0 %v23147_v7  ;;  %16146 = vmatprep.subr.bf16.mxu1 %v23198_v46  ;;  %v23193_v51 = vld [vmem:[#allocation9 + $0x8a8] ss:$48 sps:$4 sm:$0xff]   ;;  %v23201_v19 = vld [vmem:[#allocation9 + $0x1c] ss:$48 sps:$4 sm:$0xff]  }
 0x832   :  { %16034 = vmatpush1.bf16.msra.mxu0 %v23145_v53  ;;  %16147 = vmatpush1.bf16.msra.mxu1 %v23196_v55  ;;  %v23244_v53 = vld [vmem:[#allocation9 + $0x2c0] ss:$48 sps:$4 sm:$0xff]   ;;  %v23252_v55 = vld [vmem:[#allocation9 + $0x324] ss:$48 sps:$4 sm:$0xff]  }
 0x833   :  { %16046 = vmatprep.subr.bf16.mxu0 %v23153_v5  ;;  %16261 = vmatprep.subr.bf16.mxu1 %v23204_v41  ;;  %v23199_v5 = vld [vmem:[#allocation9 + $0x18] ss:$48 sps:$4 sm:$0xff]   ;;  %v23207_v41 = vld [vmem:[#allocation9 + $0x7c] ss:$48 sps:$4 sm:$0xff]  }
 0x835   :  { %16036 = vmatmul.mubr.bf16.vlgmr.msra.gmra.mrb[44].mxu0 %v24234_v4  ;;  %16165 = vmatmul.mubr.bf16.vlgmr.msra.gmra.mrb[44].mxu1 %v24241_v17 }
 0x836   :  { %16047 = vmatpush1.bf16.msra.mxu0 %v23151_v32  ;;  %16078 = vmatprep.mubr.bf16.mxu0 %v23721_v15  ;;  %v23250_v32 = vld [vmem:[#allocation9 + $0x320] ss:$48 sps:$4 sm:$0xff]  }
 0x837   :  { %16048 = vmatprep.subr.bf16.mxu0 %v23159_v33  ;;  %16262 = vmatpush1.bf16.msra.mxu1 %v23202_v21  ;;  %v23205_v33 = vld [vmem:[#allocation9 + $0x78] ss:$48 sps:$4 sm:$0xff]   ;;  %v23213_v21 = vld [vmem:[#allocation9 + $0xdc] ss:$48 sps:$4 sm:$0xff]  }
 0x838   :  { %16263 = vmatprep.subr.bf16.mxu1 %v23210_v22  ;;  %16293 = vmatprep.mubr.bf16.mxu1 %v24217_v29  ;;  %v23256_v22 = vld [vmem:[#allocation9 + $0x380] ss:$48 sps:$4 sm:$0xff]  }
 0x83a   :  { %16049 = vmatpush1.bf16.msra.mxu0 %v23157_v13  ;;  %v23264_v13 = vld [vmem:[#allocation9 + $0x3e4] ss:$48 sps:$4 sm:$0xff]  }
 0x83b   :  { %16050 = vmatprep.subr.bf16.mxu0 %v23165_v36  ;;  %16264 = vmatpush1.bf16.msra.mxu1 %v23208_v18  ;;  %v23211_v36 = vld [vmem:[#allocation9 + $0xd8] ss:$48 sps:$4 sm:$0xff]   ;;  %v23219_v18 = vld [vmem:[#allocation9 + $0x13c] ss:$48 sps:$4 sm:$0xff]  }
 0x83c   :  { %16265 = vmatprep.subr.bf16.mxu1 %v23216_v16  ;;  %v23262_v16 = vld [vmem:[#allocation9 + $0x3e0] ss:$48 sps:$4 sm:$0xff]  }
 0x83e   :  { %16051 = vmatpush1.bf16.msra.mxu0 %v23163_v58  ;;  %v23270_v58 = vld [vmem:[#allocation9 + $0x444] ss:$48 sps:$4 sm:$0xff]  }
 0x83f   :  { %16052 = vmatprep.subr.bf16.mxu0 %v23171_v62  ;;  %16266 = vmatpush1.bf16.msra.mxu1 %v23214_v23  ;;  %v23217_v62 = vld [vmem:[#allocation9 + $0x138] ss:$48 sps:$4 sm:$0xff]   ;;  %v23225_v23 = vld [vmem:[#allocation9 + $0x19c] ss:$48 sps:$4 sm:$0xff]  }
 0x840   :  { %16267 = vmatprep.subr.bf16.mxu1 %v23222_v45  ;;  %v23276_v45 = vld [vmem:[#allocation9 + $0x4a4] ss:$48 sps:$4 sm:$0xff]  }
 0x842   :  { %16053 = vmatpush1.bf16.msra.mxu0 %v23169_v63  ;;  %v23223_v63 = vld [vmem:[#allocation9 + $0x198] ss:$48 sps:$4 sm:$0xff]  }
 0x843   :  { %16054 = vmatprep.subr.bf16.mxu0 %v23177_v12  ;;  %16268 = vmatpush1.bf16.msra.mxu1 %v23220_v50  ;;  %v23231_v12 = vld [vmem:[#allocation9 + $0x1fc] ss:$48 sps:$4 sm:$0xff]   ;;  %v23274_v50 = vld [vmem:[#allocation9 + $0x4a0] ss:$48 sps:$4 sm:$0xff]  }
 0x844   :  { %16269 = vmatprep.subr.bf16.mxu1 %v23228_v14  ;;  %v23282_v14 = vld [vmem:[#allocation9 + $0x504] ss:$48 sps:$4 sm:$0xff]  }
 0x846   :  { %16055 = vmatpush1.bf16.msra.mxu0 %v23175_v34  ;;  %v23229_v34 = vld [vmem:[#allocation9 + $0x1f8] ss:$48 sps:$4 sm:$0xff]  }
 0x847   :  { %v19997_v11 = vpop.f32.mrb[36].mxu0  ;;  %16056 = vmatprep.subr.bf16.mxu0 %v23183_v0  ;;  %16270 = vmatpush1.bf16.msra.mxu1 %v23226_v20  ;;  %v23237_v0 = vld [vmem:[#allocation9 + $0x25c] ss:$48 sps:$4 sm:$0xff]   ;;  %v23280_v20 = vld [vmem:[#allocation9 + $0x500] ss:$48 sps:$4 sm:$0xff]  }
 0x848   :  { %v20019_v3 = vpop.f32.mrb[36].mxu1  ;;  %v19998_v31 = vpop.f32.mrb[37].mxu0  ;;  %16271 = vmatprep.subr.bf16.mxu1 %v23234_v27  ;;  %v23288_v27 = vld [vmem:[#allocation9 + $0x564] ss:$48 sps:$4 sm:$0xff]  }
 0x849   :  { %v19999_v1 = vadd.f32 %v19998_v31, %v19997_v11  ;;  %v20020_v37 = vpop.f32.mrb[37].mxu1  ;;  %v20000_v38 = vpop.f32.mrb[38].mxu0  ;;  %v23243_v11 = vld [vmem:[#allocation9 + $0x2bc] ss:$48 sps:$4 sm:$0xff]  }
 0x84a   :  { %v20021_v39 = vadd.f32 %v20020_v37, %v20019_v3  ;;  %v20022_v40 = vpop.f32.mrb[38].mxu1  ;;  %16057 = vmatpush1.bf16.msra.mxu0 %v23181_v8  ;;  %v20001_v47 = vpop.f32.mrb[39].mxu0  ;;  %v23235_v8 = vld [vmem:[#allocation9 + $0x258] ss:$48 sps:$4 sm:$0xff]   ;;  %v23249_v31 = vld [vmem:[#allocation9 + $0x31c] ss:$48 sps:$4 sm:$0xff]  }
 0x84b   :  { %v14017_v25 = vadd.f32 %v19999_v1, %v24253_v52  ;;  %v20002_v26 = vadd.f32 %v20001_v47, %v20000_v38  ;;  %v20023_v42 = vpop.f32.mrb[39].mxu1  ;;  %16058 = vmatprep.subr.bf16.mxu0 %v23189_v28  ;;  %16272 = vmatpush1.bf16.msra.mxu1 %v23232_v2  ;;  %v23286_v28 = vld [vmem:[#allocation9 + $0x560] ss:$48 sps:$4 sm:$0xff]   ;;  %v23294_v2 = vld [vmem:[#allocation9 + $0x5c4] ss:$48 sps:$4 sm:$0xff]  }
 0x84c   :  { %v20024_v24 = vadd.f32 %v20023_v42, %v20022_v40  ;;  %16273 = vmatprep.subr.bf16.mxu1 %v23240_v49  ;;  %v23241_v3 = vld [vmem:[#allocation9 + $0x2b8] ss:$48 sps:$4 sm:$0xff]   ;;  %v23292_v49 = vld [vmem:[#allocation9 + $0x5c0] ss:$48 sps:$4 sm:$0xff]   ;;  %v23300_v1 = vld [vmem:[#allocation9 + $0x624] ss:$48 sps:$4 sm:$0xff]  }
 0x84d   :  { %v14020_v7 = vadd.f32 %v20002_v26, %v24256_v54  ;;  %v24264_v46 = vadd.f32 %v20021_v39, %v14017_v25  ;;  %v23258_v54 = vld [vmem:[#allocation9 + $0x384] ss:$48 sps:$4 sm:$0xff]   ;;  %v23247_v37 = vld [vmem:[#allocation9 + $0x318] ss:$48 sps:$4 sm:$0xff]   ;;  %v23255_v38 = vld [vmem:[#allocation9 + $0x37c] ss:$48 sps:$4 sm:$0xff]  }
 0x84e   :  { %16059 = vmatpush1.bf16.msra.mxu0 %v23187_v30  ;;  %v23298_v39 = vld [vmem:[#allocation9 + $0x620] ss:$48 sps:$4 sm:$0xff]   ;;  %v23306_v40 = vld [vmem:[#allocation9 + $0x684] ss:$48 sps:$4 sm:$0xff]   ;;  %v23253_v47 = vld [vmem:[#allocation9 + $0x378] ss:$48 sps:$4 sm:$0xff]  }
 0x84f   :  { %16060 = vmatprep.subr.bf16.mxu0 %v23195_v43  ;;  %16274 = vmatpush1.bf16.msra.mxu1 %v23238_v44  ;;  %v24266_v52 = vadd.f32 %v20024_v24, %v14020_v7  ;;  %v23261_v30 = vld [vmem:[#allocation9 + $0x3dc] ss:$48 sps:$4 sm:$0xff]   ;;  %v23304_v25 = vld [vmem:[#allocation9 + $0x680] ss:$48 sps:$4 sm:$0xff]   ;;  %v23312_v26 = vld [vmem:[#allocation9 + $0x6e4] ss:$48 sps:$4 sm:$0xff]  }
 0x850   :  { %16275 = vmatprep.subr.bf16.mxu1 %v23246_v35  ;;  %v23259_v42 = vld [vmem:[#allocation9 + $0x3d8] ss:$48 sps:$4 sm:$0xff]   ;;  %v23267_v43 = vld [vmem:[#allocation9 + $0x43c] ss:$48 sps:$4 sm:$0xff]   ;;  %v23310_v44 = vld [vmem:[#allocation9 + $0x6e0] ss:$48 sps:$4 sm:$0xff]  }
 0x851   :  { %v23318_v24 = vld [vmem:[#allocation9 + $0x744] ss:$48 sps:$4 sm:$0xff]   ;;  %v23265_v35 = vld [vmem:[#allocation9 + $0x438] ss:$48 sps:$4 sm:$0xff]   ;;  %v23273_v7 = vld [vmem:[#allocation9 + $0x49c] ss:$48 sps:$4 sm:$0xff]  }
 0x852   :  { %16061 = vmatpush1.bf16.msra.mxu0 %v23193_v51  ;;  %v23316_v51 = vld [vmem:[#allocation9 + $0x740] ss:$48 sps:$4 sm:$0xff]  }
 0x853   :  { %16175 = vmatprep.subr.bf16.mxu0 %v23201_v19  ;;  %16276 = vmatpush1.bf16.msra.mxu1 %v23244_v53  ;;  %v23324_v19 = vld [vmem:[#allocation9 + $0x7a4] ss:$48 sps:$4 sm:$0xff]   ;;  %v23271_v53 = vld [vmem:[#allocation9 + $0x498] ss:$48 sps:$4 sm:$0xff]  }
 0x854   :  { %16277 = vmatprep.subr.bf16.mxu1 %v23252_v55  ;;  %v23279_v55 = vld [vmem:[#allocation9 + $0x4fc] ss:$48 sps:$4 sm:$0xff]  }
 0x855   :  { %16079 = vmatmul.mubr.bf16.vlgmr.msra.gmra.mrb[44].mxu0 %v24241_v17 }
 0x856   :  { %16176 = vmatpush1.bf16.msra.mxu0 %v23199_v5  ;;  %16207 = vmatprep.mubr.bf16.mxu0 %v24217_v29  ;;  %v23268_v29 = vld [vmem:[#allocation9 + $0x440] ss:$48 sps:$4 sm:$0xff]  }
 0x857   :  { %16177 = vmatprep.subr.bf16.mxu0 %v23207_v41  ;;  %16278 = vmatpush1.bf16.msra.mxu1 %v23250_v32  ;;  %v23322_v5 = vld [vmem:[#allocation9 + $0x7a0] ss:$48 sps:$4 sm:$0xff]   ;;  %v23330_v41 = vld [vmem:[#allocation9 + $0x804] ss:$48 sps:$4 sm:$0xff]   ;;  %v23277_v32 = vld [vmem:[#allocation9 + $0x4f8] ss:$48 sps:$4 sm:$0xff]  }
 0x858   :  { %16279 = vmatprep.subr.bf16.mxu1 %v23258_v54  ;;  %v23285_v54 = vld [vmem:[#allocation9 + $0x55c] ss:$48 sps:$4 sm:$0xff]  }
 0x85a   :  { %16178 = vmatpush1.bf16.msra.mxu0 %v23205_v33  ;;  %v23328_v33 = vld [vmem:[#allocation9 + $0x800] ss:$48 sps:$4 sm:$0xff]  }
 0x85b   :  { %16179 = vmatprep.subr.bf16.mxu0 %v23213_v21  ;;  %16280 = vmatpush1.bf16.msra.mxu1 %v23256_v22  ;;  %v23336_v21 = vld [vmem:[#allocation9 + $0x864] ss:$48 sps:$4 sm:$0xff]   ;;  %v23283_v22 = vld [vmem:[#allocation9 + $0x558] ss:$48 sps:$4 sm:$0xff]  }
 0x85c   :  { %16281 = vmatprep.subr.bf16.mxu1 %v23264_v13  ;;  %v23291_v13 = vld [vmem:[#allocation9 + $0x5bc] ss:$48 sps:$4 sm:$0xff]  }
 0x85e   :  { %16180 = vmatpush1.bf16.msra.mxu0 %v23211_v36  ;;  %v23334_v36 = vld [vmem:[#allocation9 + $0x860] ss:$48 sps:$4 sm:$0xff]  }
 0x85f   :  { %16181 = vmatprep.subr.bf16.mxu0 %v23219_v18  ;;  %16282 = vmatpush1.bf16.msra.mxu1 %v23262_v16  ;;  %v23342_v18 = vld [vmem:[#allocation9 + $0x8c4] ss:$48 sps:$4 sm:$0xff]   ;;  %v23289_v16 = vld [vmem:[#allocation9 + $0x5b8] ss:$48 sps:$4 sm:$0xff]  }
 0x860   :  { %16283 = vmatprep.subr.bf16.mxu1 %v23270_v58  ;;  %v23297_v58 = vld [vmem:[#allocation9 + $0x61c] ss:$48 sps:$4 sm:$0xff]  }
 0x862   :  { %16182 = vmatpush1.bf16.msra.mxu0 %v23217_v62  ;;  %v23340_v62 = vld [vmem:[#allocation9 + $0x8c0] ss:$48 sps:$4 sm:$0xff]  }
 0x863   :  { %16183 = vmatprep.subr.bf16.mxu0 %v23225_v23  ;;  %16284 = vmatpush1.bf16.msra.mxu1 %v23268_v29  ;;  %v23385_v23 = vld [vmem:[#allocation12 + $0x40] sm:$0xff]   ;;  %v23295_v29 = vld [vmem:[#allocation9 + $0x618] ss:$48 sps:$4 sm:$0xff]  }
 0x864   :  { %16285 = vmatprep.subr.bf16.mxu1 %v23276_v45  ;;  %v23303_v45 = vld [vmem:[#allocation9 + $0x67c] ss:$48 sps:$4 sm:$0xff]  }
 0x866   :  { %16184 = vmatpush1.bf16.msra.mxu0 %v23223_v63  ;;  %v23386_v63 = vld [vmem:[#allocation12] sm:$0xff]  }
 0x867   :  { %16185 = vmatprep.subr.bf16.mxu0 %v23231_v12  ;;  %16286 = vmatpush1.bf16.msra.mxu1 %v23274_v50  ;;  %v23390_v12 = vld [vmem:[#allocation12 + $0x48] sm:$0xff]  }
 0x868   :  { %16287 = vmatprep.subr.bf16.mxu1 %v23282_v14  ;;  %v23301_v50 = vld [vmem:[#allocation9 + $0x678] ss:$48 sps:$4 sm:$0xff]   ;;  %v23309_v14 = vld [vmem:[#allocation9 + $0x6dc] ss:$48 sps:$4 sm:$0xff]  }
 0x86a   :  { %16186 = vmatpush1.bf16.msra.mxu0 %v23229_v34  ;;  %v23391_v34 = vld [vmem:[#allocation12 + $0x8] sm:$0xff]  }
 0x86b   :  { %16187 = vmatprep.subr.bf16.mxu0 %v23237_v0  ;;  %16288 = vmatpush1.bf16.msra.mxu1 %v23280_v20  ;;  %v23395_v0 = vld [vmem:[#allocation12 + $0x50] sm:$0xff]   ;;  %v23307_v20 = vld [vmem:[#allocation9 + $0x6d8] ss:$48 sps:$4 sm:$0xff]  }
 0x86c   :  { %16289 = vmatprep.subr.bf16.mxu1 %v23288_v27  ;;  %v23315_v27 = vld [vmem:[#allocation9 + $0x73c] ss:$48 sps:$4 sm:$0xff]  }
 0x86e   :  { %16188 = vmatpush1.bf16.msra.mxu0 %v23235_v8  ;;  %v23396_v8 = vld [vmem:[#allocation12 + $0x10] sm:$0xff]  }
 0x86f   :  { %16189 = vmatprep.subr.bf16.mxu0 %v23243_v11  ;;  %16290 = vmatpush1.bf16.msra.mxu1 %v23286_v28  ;;  %v23313_v11 = vld [vmem:[#allocation9 + $0x738] ss:$48 sps:$4 sm:$0xff]   ;;  %v23321_v28 = vld [vmem:[#allocation9 + $0x79c] ss:$48 sps:$4 sm:$0xff]  }
 0x870   :  { %16291 = vmatprep.subr.bf16.mxu1 %v23294_v2  ;;  %v23401_v2 = vld [vmem:[#allocation12 + $0x18] sm:$0xff]  }
 0x872   :  { %16190 = vmatpush1.bf16.msra.mxu0 %v23241_v3  ;;  %v23319_v3 = vld [vmem:[#allocation9 + $0x798] ss:$48 sps:$4 sm:$0xff]  }
 0x873   :  { %16191 = vmatprep.subr.bf16.mxu0 %v23249_v31  ;;  %16292 = vmatpush1.bf16.msra.mxu1 %v23292_v49  ;;  %v24275_v31 = vld [vmem:[#allocation10] sm:$0xff]  ;;  %v23327_v49 = vld [vmem:[#allocation9 + $0x7fc] ss:$48 sps:$4 sm:$0xff]  }
 0x874   :  { %16304 = vmatprep.subr.bf16.mxu1 %v23300_v1  ;;  %v23406_v1 = vld [vmem:[#allocation12 + $0x20] sm:$0xff]  }
 0x876   :  { %16192 = vmatpush1.bf16.msra.mxu0 %v23247_v37  ;;  %16294 = vmatmul.mubr.bf16.vlgmr.msra.gmra.mrb[48].mxu1 %v24234_v4  ;;  %v23410_v37 = vld [vmem:[#allocation12 + $0x68] sm:$0xff]  }
 0x877   :  { %16193 = vmatprep.subr.bf16.mxu0 %v23255_v38  ;;  %16305 = vmatpush1.bf16.msra.mxu1 %v23298_v39  ;;  %v14404_v38 = vrot.slane %v24275_v31, %v24086_v6  ;;  %v23325_v39 = vld [vmem:[#allocation9 + $0x7f8] ss:$48 sps:$4 sm:$0xff]  }
 0x878   :  { %16306 = vmatprep.subr.bf16.mxu1 %v23306_v40  ;;  %16336 = vmatprep.mubr.bf16.mxu1 %v23721_v15  ;;  %v14408_v40 = vrot.slane %v24275_v31, %v24092_v9 }
 0x87a   :  { %16194 = vmatpush1.bf16.msra.mxu0 %v23253_v47  ;;  %v23333_v47 = vld [vmem:[#allocation9 + $0x85c] ss:$48 sps:$4 sm:$0xff]  }
 0x87b   :  { %16195 = vmatprep.subr.bf16.mxu0 %v23261_v30  ;;  %16307 = vmatpush1.bf16.msra.mxu1 %v23304_v25  ;;  %v23411_v25 = vld [vmem:[#allocation12 + $0x28] sm:$0xff]  }
 0x87c   :  { %16308 = vmatprep.subr.bf16.mxu1 %v23312_v26 }
 0x87e   :  { %16196 = vmatpush1.bf16.msra.mxu0 %v23259_v42 }
 0x87f   :  { %16197 = vmatprep.subr.bf16.mxu0 %v23267_v43  ;;  %16309 = vmatpush1.bf16.msra.mxu1 %v23310_v44  ;;  %v23415_v43 = vld [vmem:[#allocation12 + $0x70] sm:$0xff]   ;;  %v23331_v44 = vld [vmem:[#allocation9 + $0x858] ss:$48 sps:$4 sm:$0xff]  }
 0x880   :  { %16310 = vmatprep.subr.bf16.mxu1 %v23318_v24 }
 0x882   :  { %16198 = vmatpush1.bf16.msra.mxu0 %v23265_v35 }
 0x883   :  { %16199 = vmatprep.subr.bf16.mxu0 %v23273_v7  ;;  %16311 = vmatpush1.bf16.msra.mxu1 %v23316_v51  ;;  %v23339_v7 = vld [vmem:[#allocation9 + $0x8bc] ss:$48 sps:$4 sm:$0xff]  }
 0x884   :  { %16312 = vmatprep.subr.bf16.mxu1 %v23324_v19 }
 0x886   :  { %16200 = vmatpush1.bf16.msra.mxu0 %v23271_v53 }
 0x887   :  { %16201 = vmatprep.subr.bf16.mxu0 %v23279_v55  ;;  %16313 = vmatpush1.bf16.msra.mxu1 %v23322_v5 }
 0x888   :  { %16314 = vmatprep.subr.bf16.mxu1 %v23330_v41  ;;  %v23416_v41 = vld [vmem:[#allocation12 + $0x30] sm:$0xff]  }
 0x88a   :  { %16202 = vmatpush1.bf16.msra.mxu0 %v23277_v32 }
 0x88b   :  { %16203 = vmatprep.subr.bf16.mxu0 %v23285_v54  ;;  %16315 = vmatpush1.bf16.msra.mxu1 %v23328_v33  ;;  %v23420_v54 = vld [vmem:[#allocation12 + $0x78] sm:$0xff]  }
 0x88c   :  { %16316 = vmatprep.subr.bf16.mxu1 %v23336_v21  ;;  %v23337_v33 = vld [vmem:[#allocation9 + $0x8b8] ss:$48 sps:$4 sm:$0xff]  }
 0x88e   :  { %16204 = vmatpush1.bf16.msra.mxu0 %v23283_v22  ;;  %v23345_v22 = vld [vmem:[#allocation9 + $0x2c] ss:$48 sps:$4 sm:$0xff]  }
 0x88f   :  { %16205 = vmatprep.subr.bf16.mxu0 %v23291_v13  ;;  %16317 = vmatpush1.bf16.msra.mxu1 %v23334_v36 }
 0x890   :  { %16318 = vmatprep.subr.bf16.mxu1 %v23342_v18  ;;  %v23421_v18 = vld [vmem:[#allocation12 + $0x38] sm:$0xff]  }
 0x892   :  { %16206 = vmatpush1.bf16.msra.mxu0 %v23289_v16  ;;  %v23433_v16 = vld [vmem:[#allocation12 + $0x140] sm:$0xff]  }
 0x893   :  { %16218 = vmatprep.subr.bf16.mxu0 %v23297_v58  ;;  %16319 = vmatpush1.bf16.msra.mxu1 %v23340_v62  ;;  %v23343_v58 = vld [vmem:[#allocation9 + $0x28] ss:$48 sps:$4 sm:$0xff]   ;;  %v23348_v62 = vld [vmem:[#allocation9 + $0x8c] ss:$48 sps:$4 sm:$0xff]  }
 0x894   :  { %20034 = vmatprep.subr.bf16.mxu1 %v23385_v23  ;;  %v23434_v23 = vld [vmem:[#allocation12 + $0x100] sm:$0xff]  }
 0x895   :  { %16208 = vmatmul.mubr.bf16.vlgmr.msra.gmra.mrb[48].mxu0 %v24234_v4  ;;  %v23400_v4 = vld [vmem:[#allocation12 + $0x58] sm:$0xff]  }
 0x896   :  { %16219 = vmatpush1.bf16.msra.mxu0 %v23295_v29  ;;  %16250 = vmatprep.mubr.bf16.mxu0 %v23721_v15  ;;  %v24284_v29 = vld [vmem:[%s24371_s1 + $0x8] ss:$12 sps:$4 sm:$0xff]  }
 0x897   :  { %16220 = vmatprep.subr.bf16.mxu0 %v23303_v45  ;;  %16337 = vmatmul.mubr.bf16.vlgmr.msra.gmra.mrb[48].mxu1 %v24241_v17  ;;  %v23405_v17 = vld [vmem:[#allocation12 + $0x60] sm:$0xff]   ;;  %v23437_v45 = vld [vmem:[#allocation12 + $0x148] sm:$0xff]  }
 0x898   :  { %20035 = vmatpush3.bf16.msra.mxu1 %v23386_v63  ;;  %v23346_v63 = vld [vmem:[#allocation9 + $0x88] ss:$48 sps:$4 sm:$0xff]  }
 0x899   :  { %20036 = vmatprep.subr.bf16.mxu1 %v23390_v12  ;;  %v23517_v12 = vld [vmem:[%s24371_s1 + $0x4] ss:$12 sps:$4 sm:$0xff]  }
 0x89a   :  { %16221 = vmatpush1.bf16.msra.mxu0 %v23301_v50  ;;  %v23351_v50 = vld [vmem:[#allocation9 + $0xec] ss:$48 sps:$4 sm:$0xff]  }
 0x89b   :  { %16222 = vmatprep.subr.bf16.mxu0 %v23309_v14  ;;  %v23438_v14 = vld [vmem:[#allocation12 + $0x108] sm:$0xff]  }
 0x89c   :  { %20037 = vmatpush3.bf16.msra.mxu1 %v23391_v34  ;;  %v23441_v34 = vld [vmem:[#allocation12 + $0x150] sm:$0xff]  }
 0x89d   :  { %20038 = vmatprep.subr.bf16.mxu1 %v23395_v0  ;;  %v23349_v0 = vld [vmem:[#allocation9 + $0xe8] ss:$48 sps:$4 sm:$0xff]  }
 0x89e   :  { %16223 = vmatpush1.bf16.msra.mxu0 %v23307_v20  ;;  %v23354_v20 = vld [vmem:[#allocation9 + $0x14c] ss:$48 sps:$4 sm:$0xff]  }
 0x89f   :  { %16224 = vmatprep.subr.bf16.mxu0 %v23315_v27  ;;  %v23442_v27 = vld [vmem:[#allocation12 + $0x110] sm:$0xff]  }
 0x8a0   :  { %20039 = vmatpush3.bf16.msra.mxu1 %v23396_v8  ;;  %v23445_v8 = vld [vmem:[#allocation12 + $0x158] sm:$0xff]  }
 0x8a1   :  { %20040 = vmatprep.subr.bf16.mxu1 %v23400_v4  ;;  %v23352_v4 = vld [vmem:[#allocation9 + $0x148] ss:$48 sps:$4 sm:$0xff]  }
 0x8a2   :  { %16225 = vmatpush1.bf16.msra.mxu0 %v23313_v11  ;;  %v23357_v11 = vld [vmem:[#allocation9 + $0x1ac] ss:$48 sps:$4 sm:$0xff]  }
 0x8a3   :  { %16226 = vmatprep.subr.bf16.mxu0 %v23321_v28  ;;  %v23446_v28 = vld [vmem:[#allocation12 + $0x118] sm:$0xff]  }
 0x8a4   :  { %20041 = vmatpush3.bf16.msra.mxu1 %v23401_v2  ;;  %v23449_v2 = vld [vmem:[#allocation12 + $0x160] sm:$0xff]  }
 0x8a5   :  { %20042 = vmatprep.subr.bf16.mxu1 %v23405_v17  ;;  %v23355_v17 = vld [vmem:[#allocation9 + $0x1a8] ss:$48 sps:$4 sm:$0xff]  }
 0x8a6   :  { %16227 = vmatpush1.bf16.msra.mxu0 %v23319_v3  ;;  %v23360_v3 = vld [vmem:[#allocation9 + $0x20c] ss:$48 sps:$4 sm:$0xff]  }
 0x8a7   :  { %16228 = vmatprep.subr.bf16.mxu0 %v23327_v49  ;;  %v23450_v49 = vld [vmem:[#allocation12 + $0x120] sm:$0xff]  }
 0x8a8   :  { %20043 = vmatpush3.bf16.msra.mxu1 %v23406_v1  ;;  %v15994_v30 = vpop.f32.mrb[40].mxu1  ;;  %v23453_v1 = vld [vmem:[#allocation12 + $0x168] sm:$0xff]  }
 0x8a9   :  { %20044 = vmatprep.subr.bf16.mxu1 %v23410_v37  ;;  %v20210_v26 = vadd.f32 %v15994_v30, %v14404_v38  ;;  %v15996_v42 = vpop.f32.mrb[41].mxu1  ;;  %v23358_v37 = vld [vmem:[#allocation9 + $0x208] ss:$48 sps:$4 sm:$0xff]  }
 0x8aa   :  { %16229 = vmatpush1.bf16.msra.mxu0 %v23325_v39  ;;  %v20211_v24 = vadd.f32 %v15996_v42, %v14408_v40  ;;  %v15998_v35 = vpop.f32.mrb[42].mxu1  ;;  %v23361_v42 = vld [vmem:[#allocation9 + $0x268] ss:$48 sps:$4 sm:$0xff]  }
 0x8ab   :  { %16230 = vmatprep.subr.bf16.mxu0 %v23333_v47  ;;  %v16433_v51 = vmax.f32 %v20210_v26, 0.0  ;;  %v20212_v19 = vadd.f32 %v15998_v35, %v14404_v38  ;;  %v16000_v53 = vpop.f32.mrb[43].mxu1  ;;  %v23363_v38 = vld [vmem:[#allocation9 + $0x26c] ss:$48 sps:$4 sm:$0xff]   ;;  %v23461_v35 = vld [vmem:[#allocation12 + $0x178] sm:$0xff]  }
 0x8ac   :  { %20045 = vmatpush3.bf16.msra.mxu1 %v23411_v25  ;;  %v16434_v55 = vmax.f32 %v20211_v24, 0.0  ;;  %v20213_v5 = vadd.f32 %v16000_v53, %v14408_v40  ;;  %v23454_v40 = vld [vmem:[#allocation12 + $0x128] sm:$0xff]   ;;  %v23457_v25 = vld [vmem:[#allocation12 + $0x170] sm:$0xff]  }
 0x8ad   :  { %v16445_v32 = vmax.f32 %v20212_v19, 0.0  ;;  %20046 = vmatprep.subr.bf16.mxu1 %v23415_v43  ;;  %v23458_v24 = vld [vmem:[#allocation12 + $0x130] sm:$0xff]   ;;  %v23465_v19 = vld [vmem:[#allocation12 + $0x240] sm:$0xff]   ;;  %v23367_v53 = vld [vmem:[#allocation9 + $0x328] ss:$48 sps:$4 sm:$0xff]  }
 0x8ae   :  { %16231 = vmatpush1.bf16.msra.mxu0 %v23331_v44  ;;  %v16446_v21 = vmax.f32 %v20213_v5, 0.0  ;;  %v23370_v5 = vld [vmem:[#allocation9 + $0x388] ss:$48 sps:$4 sm:$0xff]  }
 0x8af   :  { %16232 = vmatprep.subr.bf16.mxu0 %v23339_v7  ;;  %v16457_v13 = vpack.c.bf16 %v16445_v32, %v16433_v51  ;;  %v23364_v7 = vld [vmem:[#allocation9 + $0x2c8] ss:$48 sps:$4 sm:$0xff]  }
 0x8b0   :  { %v16458_v36 = vpack.c.bf16 %v16446_v21, %v16434_v55  ;;  %20047 = vmatpush3.bf16.msra.mxu1 %v23416_v41  ;;  %v23462_v51 = vld [vmem:[#allocation12 + $0x138] sm:$0xff]   ;;  %v23372_v55 = vld [vmem:[#allocation9 + $0x38c] ss:$48 sps:$4 sm:$0xff]  }
 0x8b1   :  { %20048 = vmatprep.subr.bf16.mxu1 %v23420_v54  ;;  %v23375_v41 = vld [vmem:[#allocation9 + $0x3ec] ss:$48 sps:$4 sm:$0xff]   ;;  %v23373_v32 = vld [vmem:[#allocation9 + $0x3e8] ss:$48 sps:$4 sm:$0xff]  }
 0x8b2   :  { %16233 = vmatpush1.bf16.msra.mxu0 %v23337_v33  ;;  %17276 = vmatprep.mubr.bf16.mxu1 %v16458_v36  ;;  %v23378_v54 = vld [vmem:[#allocation9 + $0x44c] ss:$48 sps:$4 sm:$0xff]   ;;  %v23376_v33 = vld [vmem:[#allocation9 + $0x448] ss:$48 sps:$4 sm:$0xff]  }
 0x8b3   :  { %16347 = vmatprep.subr.bf16.mxu0 %v23345_v22  ;;  %v23381_v21 = vld [vmem:[#allocation9 + $0x4ac] ss:$48 sps:$4 sm:$0xff]   ;;  %v23379_v22 = vld [vmem:[#allocation9 + $0x4a8] ss:$48 sps:$4 sm:$0xff]  }
 0x8b4   :  { %20049 = vmatpush3.bf16.msra.mxu1 %v23421_v18  ;;  %v23382_v36 = vld [vmem:[#allocation9 + $0x508] ss:$48 sps:$4 sm:$0xff]   ;;  %v23389_v18 = vld [vmem:[#allocation9 + $0x56c] ss:$48 sps:$4 sm:$0xff]  }
 0x8b5   :  { %16251 = vmatmul.mubr.bf16.vlgmr.msra.gmra.mrb[48].mxu0 %v24284_v29  ;;  %20078 = vmatprep.subr.bf16.mxu1 %v23433_v16  ;;  %v23387_v16 = vld [vmem:[#allocation9 + $0x568] ss:$48 sps:$4 sm:$0xff]  }
 0x8b6   :  { %16348 = vmatpush1.bf16.msra.mxu0 %v23343_v58  ;;  %16379 = vmatprep.mubr.bf16.mxu0 %v23517_v12  ;;  %v23394_v58 = vld [vmem:[#allocation9 + $0x5cc] ss:$48 sps:$4 sm:$0xff]  }
 0x8b7   :  { %16349 = vmatprep.subr.bf16.mxu0 %v23348_v62  ;;  %17277 = vmatmul.mubr.bf16.vlgmr.msra.gmra.mrb[52].mxu1 %v16457_v13  ;;  %v23384_v13 = vld [vmem:[#allocation9 + $0x50c] ss:$48 sps:$4 sm:$0xff]   ;;  %v23392_v62 = vld [vmem:[#allocation9 + $0x5c8] ss:$48 sps:$4 sm:$0xff]  }
 0x8b8   :  { %20079 = vmatpush3.bf16.msra.mxu1 %v23434_v23  ;;  %v23399_v23 = vld [vmem:[#allocation9 + $0x62c] ss:$48 sps:$4 sm:$0xff]  }
 0x8b9   :  { %20080 = vmatprep.subr.bf16.mxu1 %v23437_v45  ;;  %v23397_v45 = vld [vmem:[#allocation9 + $0x628] ss:$48 sps:$4 sm:$0xff]   ;;  %v23518_v12 = vld [vmem:[%s24371_s1] ss:$12 sps:$4 sm:$0xff]  }
 0x8ba   :  { %16350 = vmatpush1.bf16.msra.mxu0 %v23346_v63  ;;  %v23404_v63 = vld [vmem:[#allocation9 + $0x68c] ss:$48 sps:$4 sm:$0xff]  }
 0x8bb   :  { %16351 = vmatprep.subr.bf16.mxu0 %v23351_v50  ;;  %v23402_v50 = vld [vmem:[#allocation9 + $0x688] ss:$48 sps:$4 sm:$0xff]  }
 0x8bc   :  { %20081 = vmatpush3.bf16.msra.mxu1 %v23438_v14  ;;  %v23409_v14 = vld [vmem:[#allocation9 + $0x6ec] ss:$48 sps:$4 sm:$0xff]  }
 0x8bd   :  { %20082 = vmatprep.subr.bf16.mxu1 %v23441_v34  ;;  %v23407_v34 = vld [vmem:[#allocation9 + $0x6e8] ss:$48 sps:$4 sm:$0xff]  }
 0x8be   :  { %16352 = vmatpush1.bf16.msra.mxu0 %v23349_v0  ;;  %v23414_v0 = vld [vmem:[#allocation9 + $0x74c] ss:$48 sps:$4 sm:$0xff]  }
 0x8bf   :  { %16353 = vmatprep.subr.bf16.mxu0 %v23354_v20  ;;  %v23412_v20 = vld [vmem:[#allocation9 + $0x748] ss:$48 sps:$4 sm:$0xff]  }
 0x8c0   :  { %20083 = vmatpush3.bf16.msra.mxu1 %v23442_v27  ;;  %v23419_v27 = vld [vmem:[#allocation9 + $0x7ac] ss:$48 sps:$4 sm:$0xff]  }
 0x8c1   :  { %20084 = vmatprep.subr.bf16.mxu1 %v23445_v8  ;;  %v23417_v8 = vld [vmem:[#allocation9 + $0x7a8] ss:$48 sps:$4 sm:$0xff]  }
 0x8c2   :  { %16354 = vmatpush1.bf16.msra.mxu0 %v23352_v4  ;;  %v23424_v4 = vld [vmem:[#allocation9 + $0x80c] ss:$48 sps:$4 sm:$0xff]  }
 0x8c3   :  { %16355 = vmatprep.subr.bf16.mxu0 %v23357_v11  ;;  %v14420_v11 = vrot.slane %v24275_v31, %v24142_v56 }
 0x8c4   :  { %20085 = vmatpush3.bf16.msra.mxu1 %v23446_v28  ;;  %v23422_v28 = vld [vmem:[#allocation9 + $0x808] ss:$48 sps:$4 sm:$0xff]  }
 0x8c5   :  { %20086 = vmatprep.subr.bf16.mxu1 %v23449_v2  ;;  %v23427_v2 = vld [vmem:[#allocation9 + $0x86c] ss:$48 sps:$4 sm:$0xff]  }
 0x8c6   :  { %16356 = vmatpush1.bf16.msra.mxu0 %v23355_v17 }
 0x8c7   :  { %16357 = vmatprep.subr.bf16.mxu0 %v23360_v3 }
 0x8c8   :  { %v14098_v39 = vpop.f32.mrb[40].mxu0  ;;  %20087 = vmatpush3.bf16.msra.mxu1 %v23450_v49 }
 0x8c9   :  { %v24291_v47 = vadd.f32 %v14098_v39, %v24264_v46  ;;  %v20184_v30 = vpop.f32.mrb[41].mxu0  ;;  %20088 = vmatprep.subr.bf16.mxu1 %v23453_v1  ;;  %v23366_v46 = vld [vmem:[#allocation9 + $0x2cc] ss:$48 sps:$4 sm:$0xff]   ;;  %v23425_v1 = vld [vmem:[#allocation9 + $0x868] ss:$48 sps:$4 sm:$0xff]  }
 0x8ca   :  { %16358 = vmatpush1.bf16.msra.mxu0 %v23358_v37  ;;  %v14101_v26 = vpop.f32.mrb[42].mxu0  ;;  %v23430_v39 = vld [vmem:[#allocation9 + $0x8cc] ss:$48 sps:$4 sm:$0xff]  }
 0x8cb   :  { %17523 = vst [vmem:[%s24382_s12] sm:$0xff] %v24291_v47  ;;  %v24298_v43 = vadd.f32 %v14101_v26, %v24266_v52  ;;  %v20185_v44 = vpop.f32.mrb[43].mxu0  ;;  %17503 = vrot.lane.b32.xlu0 %v24291_v47, %s23712_s3  ;;  %16359 = vmatprep.subr.bf16.mxu0 %v23363_v38  ;;  %v23369_v52 = vld [vmem:[#allocation9 + $0x32c] ss:$48 sps:$4 sm:$0xff]  }
 0x8cc   :  { %20089 = vmatpush3.bf16.msra.mxu1 %v23454_v40  ;;  %v23428_v44 = vld [vmem:[#allocation9 + $0x8c8] ss:$48 sps:$4 sm:$0xff]  }
 0x8cd   :  { %17524 = vst [vmem:[%s24382_s12 + $0x8] sm:$0xff] %v24298_v43  ;;  %20090 = vmatprep.subr.bf16.mxu1 %v23457_v25 }
 0x8ce   :  { %16360 = vmatpush1.bf16.msra.mxu0 %v23361_v42 }
 0x8cf   :  { %17505 = vrot.lane.b32.xlu0 %v24298_v43, %s23712_s3  ;;  %16361 = vmatprep.subr.bf16.mxu0 %v23366_v46  ;;  %v23431_v46 = vld [vmem:[#allocation12 + $0xc0] sm:$0xff]  }
 0x8d0   :  { %20091 = vmatpush3.bf16.msra.mxu1 %v23458_v24 }
 0x8d1   :  { %20092 = vmatprep.subr.bf16.mxu1 %v23461_v35 }
 0x8d2   :  { %16362 = vmatpush1.bf16.msra.mxu0 %v23364_v7  ;;  %v23466_v7 = vld [vmem:[#allocation12 + $0x200] sm:$0xff]  }
 0x8d3   :  { %16363 = vmatprep.subr.bf16.mxu0 %v23369_v52  ;;  %v23469_v52 = vld [vmem:[#allocation12 + $0x248] sm:$0xff]  }
 0x8d4   :  { %20093 = vmatpush3.bf16.msra.mxu1 %v23462_v51  ;;  %v23432_v51 = vld [vmem:[#allocation12 + $0x80] sm:$0xff]  }
 0x8d5   :  { %20122 = vmatprep.subr.bf16.mxu1 %v23465_v19  ;;  %v23435_v19 = vld [vmem:[#allocation12 + $0xc8] sm:$0xff]  }
 0x8d6   :  { %16364 = vmatpush1.bf16.msra.mxu0 %v23367_v53  ;;  %v23470_v53 = vld [vmem:[#allocation12 + $0x208] sm:$0xff]  }
 0x8d7   :  { %16365 = vmatprep.subr.bf16.mxu0 %v23372_v55  ;;  %v23473_v55 = vld [vmem:[#allocation12 + $0x250] sm:$0xff]  }
 0x8da   :  { %16366 = vmatpush1.bf16.msra.mxu0 %v23370_v5  ;;  %v23436_v5 = vld [vmem:[#allocation12 + $0x88] sm:$0xff]  }
 0x8db   :  { %16367 = vmatprep.subr.bf16.mxu0 %v23375_v41  ;;  %v23439_v41 = vld [vmem:[#allocation12 + $0xd0] sm:$0xff]  }
 0x8de   :  { %16368 = vmatpush1.bf16.msra.mxu0 %v23373_v32  ;;  %v23474_v32 = vld [vmem:[#allocation12 + $0x210] sm:$0xff]  }
 0x8df   :  { %16369 = vmatprep.subr.bf16.mxu0 %v23378_v54  ;;  %v23477_v54 = vld [vmem:[#allocation12 + $0x258] sm:$0xff]  }
 0x8e2   :  { %16370 = vmatpush1.bf16.msra.mxu0 %v23376_v33  ;;  %v23440_v33 = vld [vmem:[#allocation12 + $0x90] sm:$0xff]  }
 0x8e3   :  { %16371 = vmatprep.subr.bf16.mxu0 %v23381_v21  ;;  %v23443_v21 = vld [vmem:[#allocation12 + $0xd8] sm:$0xff]  }
 0x8e6   :  { %16372 = vmatpush1.bf16.msra.mxu0 %v23379_v22  ;;  %v23478_v22 = vld [vmem:[#allocation12 + $0x218] sm:$0xff]  }
 0x8e7   :  { %16373 = vmatprep.subr.bf16.mxu0 %v23384_v13  ;;  %v23481_v13 = vld [vmem:[#allocation12 + $0x260] sm:$0xff]  }
 0x8ea   :  { %16374 = vmatpush1.bf16.msra.mxu0 %v23382_v36  ;;  %v23447_v36 = vld [vmem:[#allocation12 + $0xe0] sm:$0xff]  }
 0x8eb   :  { %16375 = vmatprep.subr.bf16.mxu0 %v23389_v18  ;;  %v23482_v18 = vld [vmem:[#allocation12 + $0x220] sm:$0xff]  }
 0x8ee   :  { %16376 = vmatpush1.bf16.msra.mxu0 %v23387_v16  ;;  %v23485_v16 = vld [vmem:[#allocation12 + $0x268] sm:$0xff]  }
 0x8ef   :  { %16377 = vmatprep.subr.bf16.mxu0 %v23394_v58  ;;  %v23448_v58 = vld [vmem:[#allocation12 + $0xa0] sm:$0xff]  }
 0x8f2   :  { %16378 = vmatpush1.bf16.msra.mxu0 %v23392_v62  ;;  %v23451_v62 = vld [vmem:[#allocation12 + $0xe8] sm:$0xff]  }
 0x8f3   :  { %16390 = vmatprep.subr.bf16.mxu0 %v23399_v23  ;;  %v23486_v23 = vld [vmem:[#allocation12 + $0x228] sm:$0xff]  }
 0x8f5   :  { %16380 = vmatmul.mubr.bf16.vlgmr.msra.gmra.mrb[52].mxu0 %v23518_v12  ;;  %v14416_v12 = vrot.slane %v24275_v31, %v24095_v10 }
 0x8f6   :  { %16391 = vmatpush1.bf16.msra.mxu0 %v23397_v45  ;;  %16422 = vmatprep.mubr.bf16.mxu0 %v23721_v15  ;;  %v14424_v15 = vrot.slane %v24275_v31, %v1977_v59  ;;  %v14412_v45 = vrot.slane %v24275_v31, %v24089_v48 }
 0x8f7   :  { %16392 = vmatprep.subr.bf16.mxu0 %v23404_v63  ;;  %v23489_v63 = vld [vmem:[#allocation12 + $0x270] sm:$0xff]  }
 0x8fa   :  { %16393 = vmatpush1.bf16.msra.mxu0 %v23402_v50  ;;  %v23452_v50 = vld [vmem:[#allocation12 + $0xa8] sm:$0xff]  }
 0x8fb   :  { %16394 = vmatprep.subr.bf16.mxu0 %v23409_v14  ;;  %v23455_v14 = vld [vmem:[#allocation12 + $0xf0] sm:$0xff]  }
 0x8fe   :  { %16395 = vmatpush1.bf16.msra.mxu0 %v23407_v34 }
 0x8ff   :  { %16396 = vmatprep.subr.bf16.mxu0 %v23414_v0  ;;  %v23490_v0 = vld [vmem:[#allocation12 + $0x230] sm:$0xff]  }
 0x902   :  { %16397 = vmatpush1.bf16.msra.mxu0 %v23412_v20 }
 0x903   :  { %16398 = vmatprep.subr.bf16.mxu0 %v23419_v27 }
 0x906   :  { %16399 = vmatpush1.bf16.msra.mxu0 %v23417_v8  ;;  %v23493_v8 = vld [vmem:[#allocation12 + $0x278] sm:$0xff]  }
 0x907   :  { %16400 = vmatprep.subr.bf16.mxu0 %v23424_v4 }
 0x908   :  { %v16166_v17 = vpop.f32.mrb[44].mxu1 }
 0x909   :  { %v20218_v3 = vadd.f32 %v16166_v17, %v14420_v11  ;;  %v16168_v49 = vpop.f32.mrb[45].mxu1  ;;  %v23459_v17 = vld [vmem:[#allocation12 + $0xf8] sm:$0xff]  }
 0x90a   :  { %16401 = vmatpush1.bf16.msra.mxu0 %v23422_v28  ;;  %v20219_v37 = vadd.f32 %v16168_v49, %v14424_v15  ;;  %v16170_v38 = vpop.f32.mrb[46].mxu1  ;;  %v23456_v28 = vld [vmem:[#allocation12 + $0xb0] sm:$0xff]   ;;  %v23494_v49 = vld [vmem:[#allocation12 + $0x238] sm:$0xff]  }
 0x90b   :  { %16402 = vmatprep.subr.bf16.mxu0 %v23427_v2  ;;  %v16437_v40 = vmax.f32 %v20218_v3, 0.0  ;;  %v20220_v30 = vadd.f32 %v16170_v38, %v14420_v11  ;;  %v16172_v56 = vpop.f32.mrb[47].mxu1 }
 0x90c   :  { %v16438_v25 = vmax.f32 %v20219_v37, 0.0  ;;  %v20221_v26 = vadd.f32 %v16172_v56, %v14424_v15  ;;  %v23463_v56 = vld [vmem:[#allocation12 + $0x1c0] sm:$0xff]  }
 0x90d   :  { %v16449_v42 = vmax.f32 %v20220_v30, 0.0 }
 0x90e   :  { %16403 = vmatpush1.bf16.msra.mxu0 %v23425_v1  ;;  %v16450_v59 = vmax.f32 %v20221_v26, 0.0  ;;  %v23464_v26 = vld [vmem:[#allocation12 + $0x180] sm:$0xff]  }
 0x90f   :  { %16404 = vmatprep.subr.bf16.mxu0 %v23430_v39  ;;  %v16461_v24 = vpack.c.bf16 %v16449_v42, %v16437_v40  ;;  %v23460_v40 = vld [vmem:[#allocation12 + $0xb8] sm:$0xff]   ;;  %v23467_v42 = vld [vmem:[#allocation12 + $0x1c8] sm:$0xff]  }
 0x910   :  { %v16462_v35 = vpack.c.bf16 %v16450_v59, %v16438_v25  ;;  %v23471_v59 = vld [vmem:[#allocation12 + $0x1d0] sm:$0xff]  }
 0x912   :  { %16405 = vmatpush1.bf16.msra.mxu0 %v23428_v44  ;;  %17358 = vmatprep.mubr.bf16.mxu1 %v16462_v35  ;;  %v23468_v44 = vld [vmem:[#allocation12 + $0x188] sm:$0xff]   ;;  %v23476_v35 = vld [vmem:[#allocation12 + $0x198] sm:$0xff]  }
 0x913   :  { %20056 = vmatprep.subr.bf16.mxu0 %v23431_v46  ;;  %17359 = vmatmul.mubr.bf16.vlgmr.msra.gmra.mrb[56].mxu1 %v16461_v24  ;;  %v23472_v46 = vld [vmem:[#allocation12 + $0x190] sm:$0xff]   ;;  %v23475_v24 = vld [vmem:[#allocation12 + $0x1d8] sm:$0xff]  }
 0x914   :  { %20123 = vmatpush3.bf16.msra.mxu1 %v23466_v7  ;;  %v23479_v7 = vld [vmem:[#allocation12 + $0x1e0] sm:$0xff]  }
 0x915   :  { %16423 = vmatmul.mubr.bf16.vlgmr.msra.gmra.mrb[52].mxu0 %v24284_v29  ;;  %20124 = vmatprep.subr.bf16.mxu1 %v23469_v52  ;;  %v23444_v29 = vld [vmem:[#allocation12 + $0x98] sm:$0xff]   ;;  %v23480_v52 = vld [vmem:[#allocation12 + $0x1a0] sm:$0xff]  }
 0x916   :  { %20057 = vmatpush3.bf16.msra.mxu0 %v23432_v51  ;;  %v23483_v51 = vld [vmem:[#allocation12 + $0x1e8] sm:$0xff]  }
 0x917   :  { %20058 = vmatprep.subr.bf16.mxu0 %v23435_v19  ;;  %v23484_v19 = vld [vmem:[#allocation12 + $0x1a8] sm:$0xff]  }
 0x918   :  { %20125 = vmatpush3.bf16.msra.mxu1 %v23470_v53  ;;  %v23487_v53 = vld [vmem:[#allocation12 + $0x1f0] sm:$0xff]  }
 0x919   :  { %20126 = vmatprep.subr.bf16.mxu1 %v23473_v55  ;;  %v23488_v55 = vld [vmem:[#allocation12 + $0x1b0] sm:$0xff]  }
 0x91a   :  { %20059 = vmatpush3.bf16.msra.mxu0 %v23436_v5  ;;  %v23491_v5 = vld [vmem:[#allocation12 + $0x1f8] sm:$0xff]  }
 0x91b   :  { %20060 = vmatprep.subr.bf16.mxu0 %v23439_v41  ;;  %v23492_v41 = vld [vmem:[#allocation12 + $0x1b8] sm:$0xff]  }
 0x91c   :  { %20127 = vmatpush3.bf16.msra.mxu1 %v23474_v32  ;;  %v23495_v32 = vld [vmem:[#allocation12 + $0x2c0] sm:$0xff]  }
 0x91d   :  { %20128 = vmatprep.subr.bf16.mxu1 %v23477_v54  ;;  %v24322_v54 = vld [vmem:[#allocation10 + $0x8] sm:$0xf] }
 0x91e   :  { %20061 = vmatpush3.bf16.msra.mxu0 %v23440_v33  ;;  %v14436_v33 = vrot.slane %v24322_v54, %v24086_v6  ;;  %v14428_v6 = vrot.slane %v24275_v31, %v1981_v57 }
 0x91f   :  { %20062 = vmatprep.subr.bf16.mxu0 %v23443_v21  ;;  %v14440_v21 = vrot.slane %v24322_v54, %v24092_v9  ;;  %v14432_v9 = vrot.slane %v24275_v31, %v1985_v61 }
 0x920   :  { %20129 = vmatpush3.bf16.msra.mxu1 %v23478_v22 }
 0x921   :  { %20130 = vmatprep.subr.bf16.mxu1 %v23481_v13 }
 0x922   :  { %20063 = vmatpush3.bf16.msra.mxu0 %v23444_v29 }
 0x923   :  { %20064 = vmatprep.subr.bf16.mxu0 %v23447_v36 }
 0x924   :  { %20131 = vmatpush3.bf16.msra.mxu1 %v23482_v18 }
 0x925   :  { %20132 = vmatprep.subr.bf16.mxu1 %v23485_v16 }
 0x926   :  { %20065 = vmatpush3.bf16.msra.mxu0 %v23448_v58 }
 0x927   :  { %20066 = vmatprep.subr.bf16.mxu0 %v23451_v62 }
 0x928   :  { %v16080_v34 = vpop.f32.mrb[44].mxu0  ;;  %20133 = vmatpush3.bf16.msra.mxu1 %v23486_v23 }
 0x929   :  { %v20214_v20 = vadd.f32 %v16080_v34, %v14412_v45  ;;  %v16082_v27 = vpop.f32.mrb[45].mxu0  ;;  %20134 = vmatprep.subr.bf16.mxu1 %v23489_v63 }
 0x92a   :  { %v20215_v4 = vadd.f32 %v16082_v27, %v14416_v12  ;;  %v16084_v11 = vpop.f32.mrb[46].mxu0  ;;  %20067 = vmatpush3.bf16.msra.mxu0 %v23452_v50 }
 0x92b   :  { %v20216_v15 = vadd.f32 %v16084_v11, %v14412_v45  ;;  %v16086_v2 = vpop.f32.mrb[47].mxu0  ;;  %20068 = vmatprep.subr.bf16.mxu0 %v23455_v14  ;;  %v16435_v1 = vmax.f32 %v20214_v20, 0.0 }
 0x92c   :  { %v20217_v3 = vadd.f32 %v16086_v2, %v14416_v12  ;;  %20135 = vmatpush3.bf16.msra.mxu1 %v23490_v0  ;;  %v16436_v38 = vmax.f32 %v20215_v4, 0.0 }
 0x92d   :  { %v16447_v37 = vmax.f32 %v20216_v15, 0.0  ;;  %20136 = vmatprep.subr.bf16.mxu1 %v23493_v8 }
 0x92e   :  { %v16448_v39 = vmax.f32 %v20217_v3, 0.0  ;;  %20069 = vmatpush3.bf16.msra.mxu0 %v23456_v28 }
 0x92f   :  { %v16459_v30 = vpack.c.bf16 %v16447_v37, %v16435_v1  ;;  %20070 = vmatprep.subr.bf16.mxu0 %v23459_v17 }
 0x930   :  { %v16460_v25 = vpack.c.bf16 %v16448_v39, %v16436_v38  ;;  %20137 = vmatpush3.bf16.msra.mxu1 %v23494_v49  ;;  %v23496_v39 = vld [vmem:[#allocation12 + $0x280] sm:$0xff]  }
 0x932   :  { %20071 = vmatpush3.bf16.msra.mxu0 %v23460_v40  ;;  %17317 = vmatprep.mubr.bf16.mxu0 %v16460_v25  ;;  %v23497_v40 = vld [vmem:[#allocation12 + $0x2c8] sm:$0xff]   ;;  %v23500_v25 = vld [vmem:[#allocation12 + $0x290] sm:$0xff]  }
 0x933   :  { %20100 = vmatprep.subr.bf16.mxu0 %v23463_v56  ;;  %v23499_v56 = vld [vmem:[#allocation12 + $0x2d0] sm:$0xff]  }
 0x935   :  { %17318 = vmatmul.mubr.bf16.vlgmr.msra.gmra.mrb[56].mxu0 %v16459_v30  ;;  %v23498_v30 = vld [vmem:[#allocation12 + $0x288] sm:$0xff]  }
 0x936   :  { %20101 = vmatpush3.bf16.msra.mxu0 %v23464_v26  ;;  %v23501_v26 = vld [vmem:[#allocation12 + $0x2d8] sm:$0xff]  }
 0x937   :  { %20102 = vmatprep.subr.bf16.mxu0 %v23467_v42  ;;  %v23502_v42 = vld [vmem:[#allocation12 + $0x298] sm:$0xff]  }
 0x93a   :  { %20103 = vmatpush3.bf16.msra.mxu0 %v23468_v44  ;;  %v23503_v44 = vld [vmem:[#allocation12 + $0x2e0] sm:$0xff]  }
 0x93b   :  { %20104 = vmatprep.subr.bf16.mxu0 %v23471_v59  ;;  %v23504_v59 = vld [vmem:[#allocation12 + $0x2a0] sm:$0xff]  }
 0x93e   :  { %20105 = vmatpush3.bf16.msra.mxu0 %v23472_v46  ;;  %v23505_v46 = vld [vmem:[#allocation12 + $0x2e8] sm:$0xff]  }
 0x93f   :  { %20106 = vmatprep.subr.bf16.mxu0 %v23475_v24  ;;  %v23506_v24 = vld [vmem:[#allocation12 + $0x2a8] sm:$0xff]  }
 0x942   :  { %20107 = vmatpush3.bf16.msra.mxu0 %v23476_v35  ;;  %v23507_v35 = vld [vmem:[#allocation12 + $0x2f0] sm:$0xff]  }
 0x943   :  { %20108 = vmatprep.subr.bf16.mxu0 %v23479_v7  ;;  %v23508_v7 = vld [vmem:[#allocation12 + $0x2b0] sm:$0xff]  }
 0x946   :  { %20109 = vmatpush3.bf16.msra.mxu0 %v23480_v52  ;;  %v23509_v52 = vld [vmem:[#allocation12 + $0x2f8] sm:$0xff]  }
 0x947   :  { %20110 = vmatprep.subr.bf16.mxu0 %v23483_v51  ;;  %v23510_v51 = vld [vmem:[#allocation12 + $0x2b8] sm:$0xff]  }
 0x94a   :  { %20111 = vmatpush3.bf16.msra.mxu0 %v23484_v19  ;;  %v14444_v19 = vrot.slane %v24322_v54, %v24089_v48 }
 0x94b   :  { %20112 = vmatprep.subr.bf16.mxu0 %v23487_v53  ;;  %v14448_v53 = vrot.slane %v24322_v54, %v24095_v10  ;;  %v19620_v54 = vld [vmem:[#allocation13] ss:$0 sm:$0xff] }
 0x94e   :  { %20113 = vmatpush3.bf16.msra.mxu0 %v23488_v55 }
 0x94f   :  { %20114 = vmatprep.subr.bf16.mxu0 %v23491_v5 }
 0x952   :  { %20115 = vmatpush3.bf16.msra.mxu0 %v23492_v41 }
 0x953   :  { %20144 = vmatprep.subr.bf16.mxu0 %v23495_v32 }
 0x96a   :  { %v16338_v22 = vpop.f32.mrb[48].mxu1 }
 0x96b   :  { %v20226_v13 = vadd.f32 %v16338_v22, %v14436_v33  ;;  %v16340_v29 = vpop.f32.mrb[49].mxu1 }
 0x96c   :  { %v20227_v36 = vadd.f32 %v16340_v29, %v14440_v21  ;;  %v16342_v18 = vpop.f32.mrb[50].mxu1 }
 0x96d   :  { %v16441_v16 = vmax.f32 %v20226_v13, 0.0  ;;  %v20228_v58 = vadd.f32 %v16342_v18, %v14436_v33  ;;  %v16344_v62 = vpop.f32.mrb[51].mxu1 }
 0x96e   :  { %v16442_v23 = vmax.f32 %v20227_v36, 0.0  ;;  %v20229_v45 = vadd.f32 %v16344_v62, %v14440_v21 }
 0x96f   :  { %v16453_v63 = vmax.f32 %v20228_v58, 0.0 }
 0x970   :  { %v16454_v12 = vmax.f32 %v20229_v45, 0.0 }
 0x971   :  { %v16465_v50 = vpack.c.bf16 %v16453_v63, %v16441_v16 }
 0x972   :  { %v16466_v14 = vpack.c.bf16 %v16454_v12, %v16442_v23 }
 0x974   :  { %17440 = vmatprep.mubr.bf16.mxu1 %v16466_v14 }
 0x975   :  { %17441 = vmatmul.mubr.bf16.vlgmr.msra.gmra.mrb[60].mxu1 %v16465_v50 }
 0x988   :  { %v16252_v34 = vpop.f32.mrb[48].mxu0 }
 0x989   :  { %v20222_v0 = vadd.f32 %v16252_v34, %v14428_v6  ;;  %v16254_v20 = vpop.f32.mrb[49].mxu0 }
 0x98a   :  { %v20223_v27 = vadd.f32 %v16254_v20, %v14432_v9  ;;  %v16256_v8 = vpop.f32.mrb[50].mxu0  ;;  %v20050_v4 = vpop.f32.mrb[52].mxu1 }
 0x98b   :  { %v20224_v11 = vadd.f32 %v16256_v8, %v14428_v6  ;;  %v16258_v28 = vpop.f32.mrb[51].mxu0  ;;  %v20051_v15 = vpop.f32.mrb[53].mxu1  ;;  %v16439_v49 = vmax.f32 %v20222_v0, 0.0 }
 0x98c   :  { %v20225_v2 = vadd.f32 %v16258_v28, %v14432_v9  ;;  %v24334_v17 = vadd.f32 %v20051_v15, %v20050_v4  ;;  %v20053_v3 = vpop.f32.mrb[54].mxu1  ;;  %v16440_v37 = vmax.f32 %v20223_v27, 0.0 }
 0x98d   :  { %v16451_v1 = vmax.f32 %v20224_v11, 0.0  ;;  %v20054_v57 = vpop.f32.mrb[55].mxu1 }
 0x98e   :  { %v16452_v60 = vmax.f32 %v20225_v2, 0.0  ;;  %v24336_v38 = vadd.f32 %v20054_v57, %v20053_v3  ;;  %v17279_v6 = vadd.f32 %v24334_v17, %v19620_v54 }
 0x98f   :  { %v16463_v61 = vpack.c.bf16 %v16451_v1, %v16439_v49 }
 0x990   :  { %v16464_v31 = vpack.c.bf16 %v16452_v60, %v16440_v37  ;;  %v17282_v20 = vadd.f32 %v24336_v38, %v19620_v54 }
 0x992   :  { %17399 = vmatprep.mubr.bf16.mxu0 %v16464_v31 }
 0x993   :  { %17400 = vmatmul.mubr.bf16.vlgmr.msra.gmra.mrb[60].mxu0 %v16463_v61 }
 0x994   :  { %20145 = vmatpush3.bf16.msra.mxu0 %v23496_v39 }
 0x995   :  { %20146 = vmatprep.subr.bf16.mxu0 %v23497_v40 }
 0x998   :  { %20147 = vmatpush3.bf16.msra.mxu0 %v23498_v30 }
 0x999   :  { %20148 = vmatprep.subr.bf16.mxu0 %v23499_v56 }
 0x99c   :  { %20149 = vmatpush3.bf16.msra.mxu0 %v23500_v25 }
 0x99d   :  { %20150 = vmatprep.subr.bf16.mxu0 %v23501_v26 }
 0x9a0   :  { %20151 = vmatpush3.bf16.msra.mxu0 %v23502_v42 }
 0x9a1   :  { %20152 = vmatprep.subr.bf16.mxu0 %v23503_v44 }
 0x9a4   :  { %20153 = vmatpush3.bf16.msra.mxu0 %v23504_v59 }
 0x9a5   :  { %20154 = vmatprep.subr.bf16.mxu0 %v23505_v46 }
 0x9a8   :  { %20155 = vmatpush3.bf16.msra.mxu0 %v23506_v24 }
 0x9a9   :  { %20156 = vmatprep.subr.bf16.mxu0 %v23507_v35 }
 0x9ac   :  { %20157 = vmatpush3.bf16.msra.mxu0 %v23508_v7  ;;  %v17504_v7 = vpop.permute.xlu0 %17503 }
 0x9ad   :  { %20158 = vmatprep.subr.bf16.mxu0 %v23509_v52 }
 0x9b0   :  { %20159 = vmatpush3.bf16.msra.mxu0 %v23510_v51  ;;  %v17506_v51 = vpop.permute.xlu0 %17505 }
 0x9e6   :  { %v20094_v55 = vpop.f32.mrb[56].mxu1 }
 0x9e7   :  { %v20095_v5 = vpop.f32.mrb[57].mxu1 }
 0x9e8   :  { %v16424_v41 = vpop.f32.mrb[52].mxu0  ;;  %v20096_v32 = vadd.f32 %v20095_v5, %v20094_v55  ;;  %v20097_v33 = vpop.f32.mrb[58].mxu1 }
 0x9e9   :  { %v20230_v21 = vadd.f32 %v16424_v41, %v14444_v19  ;;  %v16426_v22 = vpop.f32.mrb[53].mxu0  ;;  %v20098_v13 = vpop.f32.mrb[59].mxu1  ;;  %v17515_v41 = vld [vmem:[%s24372_s2] sm:$0xff] }
 0x9ea   :  { %v20231_v29 = vadd.f32 %v16426_v22, %v14448_v53  ;;  %v16428_v36 = vpop.f32.mrb[54].mxu0  ;;  %v20099_v18 = vadd.f32 %v20098_v13, %v20097_v33  ;;  %v17516_v13 = vld [vmem:[%s24372_s2 + $0x8] sm:$0xff] }
 0x9eb   :  { %v20232_v16 = vadd.f32 %v16428_v36, %v14444_v19  ;;  %v16430_v58 = vpop.f32.mrb[55].mxu0  ;;  %v16443_v23 = vmax.f32 %v20230_v21, 0.0 }
 0x9ec   :  { %v20233_v62 = vadd.f32 %v16430_v58, %v14448_v53  ;;  %v16444_v48 = vmax.f32 %v20231_v29, 0.0 }
 0x9ed   :  { %v16455_v45 = vmax.f32 %v20232_v16, 0.0 }
 0x9ee   :  { %v16456_v63 = vmax.f32 %v20233_v62, 0.0 }
 0x9ef   :  { %v16467_v12 = vpack.c.bf16 %v16455_v45, %v16443_v23 }
 0x9f0   :  { %v16468_v10 = vpack.c.bf16 %v16456_v63, %v16444_v48 }
 0x9f2   :  { %17481 = vmatprep.mubr.bf16.mxu0 %v16468_v10 }
 0x9f3   :  { %17482 = vmatmul.mubr.bf16.vlgmr.msra.gmra.mrb[64].mxu0 %v16467_v12 }
 0xa08   :  { %v20072_v50 = vpop.f32.mrb[56].mxu0 }
 0xa09   :  { %v20073_v14 = vpop.f32.mrb[57].mxu0 }
 0xa0a   :  { %v20074_v9 = vadd.f32 %v20073_v14, %v20072_v50  ;;  %v20075_v34 = vpop.f32.mrb[58].mxu0 }
 0xa0b   :  { %v20076_v0 = vpop.f32.mrb[59].mxu0 }
 0xa0c   :  { %v17320_v27 = vadd.f32 %v20074_v9, %v17279_v6  ;;  %v20077_v8 = vadd.f32 %v20076_v0, %v20075_v34 }
 0xa0e   :  { %v17323_v4 = vadd.f32 %v20077_v8, %v17282_v20  ;;  %v17361_v11 = vadd.f32 %v20096_v32, %v17320_v27 }
 0xa10   :  { %v17364_v28 = vadd.f32 %v20099_v18, %v17323_v4 }
 0xa48   :  { %v20138_v15 = vpop.f32.mrb[60].mxu1 }
 0xa49   :  { %v20139_v2 = vpop.f32.mrb[61].mxu1 }
 0xa4a   :  { %v20140_v3 = vadd.f32 %v20139_v2, %v20138_v15  ;;  %v20141_v49 = vpop.f32.mrb[62].mxu1 }
 0xa4b   :  { %v20142_v1 = vpop.f32.mrb[63].mxu1 }
 0xa4c   :  { %v20143_v57 = vadd.f32 %v20142_v1, %v20141_v49 }
 0xa66   :  { %v20116_v37 = vpop.f32.mrb[60].mxu0 }
 0xa67   :  { %v20117_v60 = vpop.f32.mrb[61].mxu0 }
 0xa68   :  { %v20118_v61 = vadd.f32 %v20117_v60, %v20116_v37  ;;  %v20119_v17 = vpop.f32.mrb[62].mxu0 }
 0xa69   :  { %v20120_v31 = vpop.f32.mrb[63].mxu0 }
 0xa6a   :  { %v17402_v39 = vadd.f32 %v20118_v61, %v17361_v11  ;;  %v20121_v40 = vadd.f32 %v20120_v31, %v20119_v17 }
 0xa6c   :  { %v17405_v30 = vadd.f32 %v20121_v40, %v17364_v28  ;;  %v17443_v38 = vadd.f32 %v20140_v3, %v17402_v39 }
 0xa6e   :  { %v17446_v56 = vadd.f32 %v20143_v57, %v17405_v30 }
 0xac6   :  { %v20160_v25 = vpop.f32.mrb[64].mxu0 }
 0xac7   :  { %v20161_v26 = vpop.f32.mrb[65].mxu0 }
 0xac8   :  { %v20162_v42 = vadd.f32 %v20161_v26, %v20160_v25  ;;  %v20163_v44 = vpop.f32.mrb[66].mxu0 }
 0xac9   :  { %v20164_v59 = vpop.f32.mrb[67].mxu0 }
 0xaca   :  { %v17484_v46 = vadd.f32 %v20162_v42, %v17443_v38  ;;  %v20165_v24 = vadd.f32 %v20164_v59, %v20163_v44 }
 0xacc   :  { %17525 = vst [vmem:[%s24383_s13] sm:$0xff] %v17484_v46  ;;  %v17487_v35 = vadd.f32 %v20165_v24, %v17446_v56  ;;  %17492 = vrot.lane.b32.xlu1 %v17484_v46, %s23712_s3  ;;  %v17509_v52 = vsel %vm17498_vm1, %v17504_v7, %v17484_v46 }
 0xacd   :  { %v17511_v19 = vmul.f32 1.442695, %v17509_v52 }
 0xace   :  { %17526 = vst [vmem:[%s24383_s13 + $0x8] sm:$0xff] %v17487_v35  ;;  %v17510_v53 = vsel %vm17498_vm1, %v17506_v51, %v17487_v35 }
 0xacf   :  { %23511 = vpow2.f32 %v17511_v19  ;;  %v17513_v55 = vmul.f32 1.442695, %v17510_v53 }
 0xad0   :  { %17494 = vrot.lane.b32.xlu1 %v17487_v35, %s23712_s3 }
 0xad1   :  { %23513 = vpow2.f32 %v17513_v55 }
 0xad9   :  { %v23512_v5 = vpop.eup %23511 }
 0xada   :  { %v17517_v33 = vmul.f32 %v23512_v5, %v17515_v41 }
 0xadb   :  { %v23514_v21 = vpop.eup %23513 }
 0xadc   :  { %v17518_v18 = vmul.f32 %v23514_v21, %v17516_v13 }
 0xb3e   :  { %v17493_v32 = vpop.permute.xlu1 %17492 }
 0xb3f   :  { %v17499_v22 = vsel %vm17498_vm1, %v24291_v47, %v17493_v32 }
 0xb40   :  { %v17519_v29 = vadd.f32 %v17517_v33, %v17499_v22 }
 0xb42   :  { %17521 = vst [vmem:[%s24381_s11] sm:$0xff] %v17519_v29  ;;  %v17495_v36 = vpop.permute.xlu1 %17494 }
 0xb43   :  { %v17500_v16 = vsel %vm17498_vm1, %v24298_v43, %v17495_v36 }
 0xb44   :  { %v17520_v58 = vadd.f32 %v17518_v18, %v17500_v16 }
 0xb46   :  { %17522 = vst [vmem:[%s24381_s11 + $0x8] sm:$0xff] %v17520_v58 }
 0xb47   :  { %17539 = vsyncpa [#allocation3], 1 }
 0xb48   :  { %17540 = vsyncpa [#allocation5], 1 }
 0xb49   :  { %17541 = vsyncpa [#allocation8], 1 }
 0xb4a   :  { %17542 = vsyncpa [#allocation11], 1 }
 0xb4b   :  { %17543 = vsyncpa [#allocation14], 1 }

</bundles_post_ra>
